<compile_context>
chip_gen: v7x
topology: tpu7x:2x2x1
jax: 0.10.0
libtpu: 0.0.40
codegen_flags: <defaults>
</compile_context>

<pallas_src>
import functools
import math

import jax
import jax.numpy as jnp
from jax.experimental import pallas as pl
from jax.experimental.pallas import tpu as pltpu


# ----------------------------------------------------------------------------
# Small helpers
# ----------------------------------------------------------------------------
def _round_up(x, m):
    return ((x + m - 1) // m) * m


def _pad_axis(a, axis, new_size):
    pad = new_size - a.shape[axis]
    if pad <= 0:
        return a
    cfg = [(0, 0)] * a.ndim
    cfg[axis] = (0, pad)
    return jnp.pad(a, cfg)


@functools.lru_cache(maxsize=1)
def _chip():
    try:
        kind = jax.devices()[0].device_kind.lower()
    except Exception:  # pragma: no cover
        kind = ""
    if ("v5 lite" in kind or "v5lite" in kind or "v5e" in kind
            or "v5litepod" in kind):
        return "v5e"
    if "v7" in kind:
        return "v7x"
    return "v6e"


@functools.lru_cache(maxsize=1)
def _default_tiles():
    """(tm, tn, tk) MXU-friendly tile sizes per TPU generation."""
    c = _chip()
    if c == "v5e":
        return 512, 128, 256       # 4x128^2 MXU, least HBM BW / VMEM headroom
    if c == "v7x":
        return 512, 256, 512       # 2x256^2 MXU, 64 MiB VMEM
    return 1024, 512, 512          # v6e: 2x256^2 MXU, 128 MiB VMEM


@functools.lru_cache(maxsize=1)
def _vmem_limit():
    return (40 if _chip() == "v7x" else 96) * 1024 * 1024


def _mosaic_params(dims, vmem_limit_bytes=None):
    kwargs = dict(dimension_semantics=dims)
    if vmem_limit_bytes is not None:
        kwargs["vmem_limit_bytes"] = vmem_limit_bytes
    try:
        return pltpu.CompilerParams(**kwargs)
    except (AttributeError, TypeError):     # older/newer API fallback
        try:
            return pltpu.CompilerParams(dimension_semantics=dims)
        except Exception:
            return None


# ----------------------------------------------------------------------------
# Tiled matmul kernel: out = act((x * sigmoid(se)?) @ w + bias) (+ residual)?
# ----------------------------------------------------------------------------
def _mm_kernel(*refs, act, nk, has_se, has_res):
    x_ref, w_ref, b_ref = refs[0], refs[1], refs[2]
    pos = 3
    se_ref = refs[pos] if has_se else None
    pos += int(has_se)
    res_ref = refs[pos] if has_res else None
    pos += int(has_res)
    o_ref = refs[pos]
    acc_ref = refs[pos + 1]

    kk = pl.program_id(3)

    @pl.when(kk == 0)
    def _init():
        acc_ref[...] = jnp.zeros_like(acc_ref)

    xb = x_ref[0]                                            # (bm, bk) bf16
    if has_se:
        # sigmoid on the tiny (1,bk) gate in f32 (EUP slot), one cast, bf16 mul
        gate = jax.nn.sigmoid(se_ref[0].astype(jnp.float32)).astype(xb.dtype)
        xb = xb * gate
    acc_ref[...] += jnp.dot(xb, w_ref[...], preferred_element_type=jnp.float32)

    @pl.when(kk == nk - 1)
    def _finalize():
        y = acc_ref[...] + b_ref[...]                        # f32 epilogue
        if act == "swish":
            y = y * jax.nn.sigmoid(y)
        if has_res:
            y = y + res_ref[0].astype(jnp.float32)
        o_ref[0] = y.astype(o_ref.dtype)


def matmul_bias_act(x, w, bias, act="linear", se=None, res=None,
                    out_dtype=jnp.bfloat16):
    """x: [B, M, K] (K may exceed w's rows; the extra channels are zero pad)
    w: [Kw, N]  bias: [N]  se: [B, 1, K] gate logits or None
    res: [B, M, >=round_up(N,128)] or None.
    Returns [B, M, round_up(N, 128)] in `out_dtype` (channels stay padded)."""
    B, M, K = x.shape
    Kw, N = w.shape
    assert Kw <= K
    tm, tn, tk = _default_tiles()

    # Lane axes (K, N): always pad to multiples of 128 (lane-dense tiles,
    # unmasked vst).  Sublane axis (M): pad to a multiple of 8.
    Kp = _round_up(K, 128)
    bk = Kp if Kp <= tk else tk
    Kp = _round_up(Kp, bk)
    Np = _round_up(N, 128)
    bn = Np if Np <= tn else tn
    Npi = _round_up(Np, bn)
    Mp = _round_up(M, 8)
    bm = Mp if Mp <= tm else tm
    Mp = _round_up(Mp, bm)

    # v7x: make sure both TensorCores get parallel grid points.
    if _chip() == "v7x":
        while (B * (Mp // bm) * (Npi // bn) < 2 and bm % 16 == 0
               and Mp % (bm // 2) == 0):
            bm //= 2

    xb = _pad_axis(_pad_axis(x.astype(jnp.bfloat16), 1, Mp), 2, Kp)
    wb = _pad_axis(_pad_axis(w.astype(jnp.bfloat16), 0, Kp), 1, Npi)
    bb = _pad_axis(bias.reshape(1, -1).astype(jnp.float32), 1, Npi)

    has_se, has_res = se is not None, res is not None
    grid = (B, Mp // bm, Npi // bn, Kp // bk)
    nk = grid[3]

    inputs = [xb, wb, bb]
    in_specs = [
        pl.BlockSpec((1, bm, bk), lambda b, i, j, k: (b, i, k)),
        pl.BlockSpec((bk, bn), lambda b, i, j, k: (k, j)),
        pl.BlockSpec((1, bn), lambda b, i, j, k: (0, j)),
    ]
    if has_se:
        inputs.append(_pad_axis(se.astype(jnp.float32), 2, Kp))
        in_specs.append(pl.BlockSpec((1, 1, bk), lambda b, i, j, k: (b, 0, k)))
    if has_res:
        inputs.append(
            _pad_axis(_pad_axis(res.astype(jnp.bfloat16), 1, Mp), 2, Npi))
        in_specs.append(pl.BlockSpec((1, bm, bn), lambda b, i, j, k: (b, i, j)))

    kernel = functools.partial(_mm_kernel, act=act, nk=nk,
                               has_se=has_se, has_res=has_res)
    out = pl.pallas_call(
        kernel,
        out_shape=jax.ShapeDtypeStruct((B, Mp, Npi), out_dtype),
        grid=grid,
        in_specs=in_specs,
        out_specs=pl.BlockSpec((1, bm, bn), lambda b, i, j, k: (b, i, j)),
        scratch_shapes=[pltpu.VMEM((bm, bn), jnp.float32)],
        compiler_params=_mosaic_params(
            ("parallel", "parallel", "parallel", "arbitrary"), _vmem_limit()),
    )(*inputs)
    if Mp != M or Npi != Np:
        out = out[:, :M, :Np]
    return out


# ----------------------------------------------------------------------------
# Depthwise conv kernel: strided taps via phase-split layout, fused BN bias,
# swish and SE global-average-pool.
# ----------------------------------------------------------------------------
def _dw_kernel(x_ref, w_ref, b_ref, o_ref, pool_ref, *, k, stride, ho, wo, c,
               inv_hw):
    s = stride
    acc = jnp.zeros((ho, wo, c), jnp.float32)
    for kh in range(k):
        qh, ph = kh // s, kh % s
        for kw in range(k):
            qw, pw = kw // s, kw % s
            tap = w_ref[kh * k + kw:kh * k + kw + 1, :]          # (1, c) bf16
            # Static contiguous slice; lane start pw*c is 128-aligned.
            sl = x_ref[0, qh:qh + ho, ph, qw:qw + wo, pw * c:(pw + 1) * c]
            acc = acc + sl * tap                                 # bf16 mul, f32 acc
    y = acc + b_ref[...]                                         # (ho, wo, c) f32
    y = y * jax.nn.sigmoid(y)                                    # swish
    o_ref[0] = y.astype(o_ref.dtype)
    # Fused global average pool (feeds the SE block) — no extra HBM pass.
    pool_ref[0] = (jnp.sum(y, axis=(0, 1)) * inv_hw).reshape(1, c)


def depthwise_conv_bn_swish(x_nhwc, w_kk_c, bias, k, stride, pad):
    """x: [N,H,W,C] bf16 (C lane-padded).  w: [k*k, C] (BN-folded), bias: [C].
    Returns (activation [N,Ho,Wo,C] bf16, pooled [N,C] f32)."""
    N, H, W, C = x_nhwc.shape
    pleft, pright, ptop, pbot = pad
    s = stride
    Hp, Wp = H + ptop + pbot, W + pleft + pright
    Ho, Wo = (Hp - k) // s + 1, (Wp - k) // s + 1
    # Extra zero rows/cols so H/W divide the stride (never read by a valid
    # tap; only needed for the phase-split reshape below).
    Hp2, Wp2 = _round_up(Hp, s), _round_up(Wp, s)
    xp = jnp.pad(x_nhwc, ((0, 0), (ptop, Hp2 - H - ptop),
                          (pleft, Wp2 - W - pleft), (0, 0)))
    # Phase-split layout: row r = qh*s + ph, col w = qw*s + pw, channel c ->
    # (n, qh, ph, qw, pw*C + c).  A pure row-major reshape (no data movement).
    xr = xp.reshape(N, Hp2 // s, s, Wp2 // s, s * C)

    kernel = functools.partial(_dw_kernel, k=k, stride=s, ho=Ho, wo=Wo, c=C,
                               inv_hw=1.0 / float(Ho * Wo))
    # TODO(synk): for very large resolutions, tile the grid over H with halo'd
    # row blocks (manual DMA) to bound per-step VMEM on v7x (64 MiB).
    act, pooled = pl.pallas_call(
        kernel,
        out_shape=(jax.ShapeDtypeStruct((N, Ho, Wo, C), jnp.bfloat16),
                   jax.ShapeDtypeStruct((N, 1, C), jnp.float32)),
        grid=(N,),
        in_specs=[
            pl.BlockSpec((1, Hp2 // s, s, Wp2 // s, s * C),
                         lambda n: (n, 0, 0, 0, 0)),
            pl.BlockSpec((k * k, C), lambda n: (0, 0)),
            pl.BlockSpec((1, C), lambda n: (0, 0)),
        ],
        out_specs=(pl.BlockSpec((1, Ho, Wo, C), lambda n: (n, 0, 0, 0)),
                   pl.BlockSpec((1, 1, C), lambda n: (n, 0, 0))),
        compiler_params=_mosaic_params(("parallel",), _vmem_limit()),
    )(xr.astype(jnp.bfloat16),
      w_kk_c.astype(jnp.bfloat16),
      bias.reshape(1, C).astype(jnp.float32))
    return act, pooled.reshape(N, C)


# ----------------------------------------------------------------------------
# SE block: both 1x1 FCs fused into one tiny kernel (sigmoid gate is fused
# into the downstream project-conv matmul).
# ----------------------------------------------------------------------------
def _se_kernel(p_ref, w1_ref, b1_ref, w2_ref, b2_ref, o_ref):
    x = p_ref[...].astype(jnp.bfloat16)
    h = jnp.dot(x, w1_ref[...], preferred_element_type=jnp.float32) + b1_ref[...]
    h = h * jax.nn.sigmoid(h)                                    # swish
    g = jnp.dot(h.astype(jnp.bfloat16), w2_ref[...],
                preferred_element_type=jnp.float32) + b2_ref[...]
    o_ref[...] = g                                               # pre-sigmoid logits


def se_gate_logits(pooled, w_reduce, b_reduce, w_expand, b_expand):
    """pooled: [N, C] f32 (C lane-padded).  Returns gate logits [N, C] f32."""
    N, C = pooled.shape
    sq = w_reduce.shape[1]
    Sq = _round_up(sq, 128)
    Nr = _round_up(N, 8)
    p = _pad_axis(pooled.astype(jnp.float32), 0, Nr)
    w1 = _pad_axis(_pad_axis(w_reduce.astype(jnp.bfloat16), 0, C), 1, Sq)
    b1 = _pad_axis(b_reduce.reshape(1, -1).astype(jnp.float32), 1, Sq)
    w2 = _pad_axis(_pad_axis(w_expand.astype(jnp.bfloat16), 0, Sq), 1, C)
    b2 = _pad_axis(b_expand.reshape(1, -1).astype(jnp.float32), 1, C)
    out = pl.pallas_call(
        _se_kernel,
        out_shape=jax.ShapeDtypeStruct((Nr, C), jnp.float32),
        grid=(1,),
        in_specs=[pl.BlockSpec((Nr, C), lambda i: (0, 0)),
                  pl.BlockSpec((C, Sq), lambda i: (0, 0)),
                  pl.BlockSpec((1, Sq), lambda i: (0, 0)),
                  pl.BlockSpec((Sq, C), lambda i: (0, 0)),
                  pl.BlockSpec((1, C), lambda i: (0, 0))],
        out_specs=pl.BlockSpec((Nr, C), lambda i: (0, 0)),
        compiler_params=_mosaic_params(("arbitrary",)),
    )(p, w1, b1, w2, b2)
    return out[:N]


# ----------------------------------------------------------------------------
# Global average pool (only used once, after the head conv)
# ----------------------------------------------------------------------------
def _pool_kernel(x_ref, o_ref):
    o_ref[0] = jnp.mean(x_ref[0].astype(jnp.float32), axis=0, keepdims=True)


def global_pool(x_nhwc):
    N, H, W, C = x_nhwc.shape
    out = pl.pallas_call(
        _pool_kernel,
        out_shape=jax.ShapeDtypeStruct((N, 1, C), jnp.float32),
        grid=(N,),
        in_specs=[pl.BlockSpec((1, H * W, C), lambda n: (n, 0, 0))],
        out_specs=pl.BlockSpec((1, 1, C), lambda n: (n, 0, 0)),
        compiler_params=_mosaic_params(("parallel",)),
    )(x_nhwc.reshape(N, H * W, C))
    return out.reshape(N, C)


# ----------------------------------------------------------------------------
# Conv wrappers (glue + Pallas hot path)
# ----------------------------------------------------------------------------
def static_same_pad(image_size, k, s, dilation=1):
    """Replicates Conv2dStaticSamePadding / ZeroPad2d((l, r, t, b))."""
    ih = iw = image_size
    oh, ow = math.ceil(ih / s), math.ceil(iw / s)
    pad_h = max((oh - 1) * s + (k - 1) * dilation + 1 - ih, 0)
    pad_w = max((ow - 1) * s + (k - 1) * dilation + 1 - iw, 0)
    return (pad_w // 2, pad_w - pad_w // 2, pad_h // 2, pad_h - pad_h // 2)


def conv1x1_bias_act(x_nhwc, w, bias, act="linear", se=None, res=None,
                     out_dtype=jnp.bfloat16):
    N, H, W, C = x_nhwc.shape
    if se is None and res is None:
        out = matmul_bias_act(x_nhwc.reshape(1, N * H * W, C), w, bias,
                              act=act, out_dtype=out_dtype)
        return out.reshape(N, H, W, -1)
    x3 = x_nhwc.reshape(N, H * W, C)
    se3 = None if se is None else se.reshape(N, 1, -1)
    res3 = None if res is None else res.reshape(N, H * W, -1)
    out = matmul_bias_act(x3, w, bias, act=act, se=se3, res=res3,
                          out_dtype=out_dtype)
    return out.reshape(N, H, W, -1)


def conv_stem_bn_swish(x_nhwc, w, bias, k, stride, pad):
    # TODO(synk): move the 3x3 im2col into the kernel (halo'd tile + shifted
    # reads) for large images; here it is tiny (Cin=3) and K is lane-padded
    # 27 -> 128 inside matmul_bias_act so the MXU pass is lane-dense.
    N, H, W, C = x_nhwc.shape
    pleft, pright, ptop, pbot = pad
    xp = jnp.pad(x_nhwc, ((0, 0), (ptop, pbot), (pleft, pright), (0, 0)))
    Hp, Wp = H + ptop + pbot, W + pleft + pright
    Ho = (Hp - k) // stride + 1
    Wo = (Wp - k) // stride + 1
    cols = []
    for kh in range(k):
        for kw in range(k):
            cols.append(xp[:, kh: kh + stride * (Ho - 1) + 1: stride,
                           kw: kw + stride * (Wo - 1) + 1: stride, :])
    patches = jnp.stack(cols, axis=3).reshape(1, N * Ho * Wo, k * k * C)
    out = matmul_bias_act(patches, w, bias, act="swish")
    return out.reshape(N, Ho, Wo, -1)


# ----------------------------------------------------------------------------
# Model construction (mirrors EfficientNet.__init__ / round_filters / etc.)
# ----------------------------------------------------------------------------
def round_filters(filters, gp):
    multiplier = gp["width_coefficient"]
    if not multiplier:
        return filters
    divisor = gp["depth_divisor"]
    min_depth = gp["min_depth"]
    filters *= multiplier
    min_depth = min_depth or divisor
    new_filters = max(min_depth, int(filters + divisor / 2) // divisor * divisor)
    if new_filters < 0.9 * filters:
        new_filters += divisor
    return int(new_filters)


def round_repeats(repeats, gp):
    multiplier = gp["depth_coefficient"]
    if not multiplier:
        return repeats
    return int(math.ceil(multiplier * repeats))


class KeyGen:
    def __init__(self, key):
        self._key = key
        self._i = 0

    def __call__(self):
        self._i += 1
        return jax.random.fold_in(self._key, self._i)


def _winit(key, shape, scale=0.1):
    return scale * jax.random.normal(key, shape, dtype=jnp.float32)


def bn_init(c):
    return dict(gamma=jnp.ones((c,), jnp.float32), beta=jnp.zeros((c,), jnp.float32),
                mean=jnp.zeros((c,), jnp.float32), var=jnp.ones((c,), jnp.float32))


def bn_fold(bn, eps):
    scale = bn["gamma"] / jnp.sqrt(bn["var"] + eps)
    bias = bn["beta"] - bn["mean"] * scale
    return scale, bias


def make_block_params(ba, kg):
    inp = ba["input_filters"]
    oup = inp * ba["expand_ratio"]
    stride = ba["stride"]
    stride_val = stride[0] if isinstance(stride, (list, tuple)) else stride
    has_se = ba["se_ratio"] is not None and 0 < ba["se_ratio"] <= 1
    cfg = dict(kernel_size=ba["kernel_size"], stride=stride, stride_val=stride_val,
               expand_ratio=ba["expand_ratio"], input_filters=inp,
               output_filters=ba["output_filters"], id_skip=ba["id_skip"], has_se=has_se)
    p = dict(cfg=cfg)
    if ba["expand_ratio"] != 1:
        p["expand_w"] = _winit(kg(), (inp, oup))              # 1x1 conv as [Cin, Cout]
        p["bn0"] = bn_init(oup)
    p["dw_w"] = _winit(kg(), (ba["kernel_size"] ** 2, oup))   # [kh*kw, C]
    p["bn1"] = bn_init(oup)
    if has_se:
        sq = max(1, int(inp * ba["se_ratio"]))
        p["se_reduce_w"] = _winit(kg(), (oup, sq))
        p["se_reduce_b"] = _winit(kg(), (sq,))
        p["se_expand_w"] = _winit(kg(), (sq, oup))
        p["se_expand_b"] = _winit(kg(), (oup,))
    p["project_w"] = _winit(kg(), (oup, ba["output_filters"]))
    p["bn2"] = bn_init(ba["output_filters"])
    return p


def init_efficientnet_params(key, blocks_args, gp):
    kg = KeyGen(key)
    params = dict(global_params=gp, blocks=[])

    # Stem: 3x3 stride-2 conv, no bias.  Stored as [kh*kw*Cin, Cout]
    # ((kh,kw,Cin)-major; real PyTorch weights would need permuting).
    c_stem = round_filters(32, gp)
    params["stem_w"] = _winit(kg(), (3 * 3 * 3, c_stem))
    params["stem_bn"] = bn_init(c_stem)

    for ba0 in blocks_args:
        ba = dict(ba0)
        ba["input_filters"] = round_filters(ba["input_filters"], gp)
        ba["output_filters"] = round_filters(ba["output_filters"], gp)
        ba["num_repeat"] = round_repeats(ba["num_repeat"], gp)
        params["blocks"].append(make_block_params(ba, kg))
        if ba["num_repeat"] > 1:
            ba = dict(ba)
            ba["input_filters"] = ba["output_filters"]
            ba["stride"] = 1
        for _ in range(ba["num_repeat"] - 1):
            params["blocks"].append(make_block_params(ba, kg))
    in_channels = ba["output_filters"]

    c_head = round_filters(1280, gp)
    params["head_w"] = _winit(kg(), (in_channels, c_head))
    params["head_bn"] = bn_init(c_head)
    params["fc_w"] = _winit(kg(), (c_head, gp["num_classes"]))
    params["fc_b"] = _winit(kg(), (gp["num_classes"],))
    return params


# ----------------------------------------------------------------------------
# Forward pass (activations carried NHWC bf16, channels padded to 128)
# ----------------------------------------------------------------------------
def mbconv_forward(blk, inputs, image_size, eps):
    cfg = blk["cfg"]
    x = inputs
    if cfg["expand_ratio"] != 1:
        s, b = bn_fold(blk["bn0"], eps)
        x = conv1x1_bias_act(x, blk["expand_w"] * s[None, :], b, act="swish")

    k, sv = cfg["kernel_size"], cfg["stride_val"]
    pad = static_same_pad(image_size, k, sv)
    s, b = bn_fold(blk["bn1"], eps)
    cmid = x.shape[-1]                                   # padded expanded channels
    w_dw = _pad_axis(blk["dw_w"] * s[None, :], 1, cmid)
    b_dw = _pad_axis(b, 0, cmid)
    x, pooled = depthwise_conv_bn_swish(x, w_dw, b_dw, k, sv, pad)

    se = None
    if cfg["has_se"]:
        se = se_gate_logits(pooled, blk["se_reduce_w"], blk["se_reduce_b"],
                            blk["se_expand_w"], blk["se_expand_b"])   # [N, cmid]

    # Faithful replication of the reference skip condition (stride is a *list*
    # for the first block of a stage, so `stride == 1` is False there).
    use_res = (cfg["id_skip"] and cfg["stride"] == 1
               and cfg["input_filters"] == cfg["output_filters"])
    # drop_connect is identity in eval mode.
    s, b = bn_fold(blk["bn2"], eps)
    x = conv1x1_bias_act(x, blk["project_w"] * s[None, :], b, act="linear",
                         se=se, res=inputs if use_res else None)
    return x


def efficientnet_forward(params, x_nchw):
    gp = params["global_params"]
    eps = gp["batch_norm_epsilon"]
    img = gp["image_size"]

    x = jnp.transpose(x_nchw, (0, 2, 3, 1)).astype(jnp.bfloat16)   # NCHW -> NHWC

    # Stem conv + BN + swish (BN scale folded into the weight columns)
    s, b = bn_fold(params["stem_bn"], eps)
    pad = static_same_pad(img, 3, 2)
    x = conv_stem_bn_swish(x, params["stem_w"] * s[None, :], b, k=3, stride=2, pad=pad)

    for blk in params["blocks"]:
        x = mbconv_forward(blk, x, img, eps)

    # Head conv + BN + swish
    s, b = bn_fold(params["head_bn"], eps)
    x = conv1x1_bias_act(x, params["head_w"] * s[None, :], b, act="swish")

    # Global average pool, (eval-mode dropout = identity), FC
    pooled = global_pool(x)                                        # [N, Cp_head] f32
    logits = matmul_bias_act(pooled[None], params["fc_w"], params["fc_b"],
                             act="linear", out_dtype=jnp.float32)[0]
    return logits[:, :gp["num_classes"]]


# ----------------------------------------------------------------------------
# Main
# ----------------------------------------------------------------------------
if __name__ == "__main__":
    key = jax.random.PRNGKey(0)
    pkey, xkey = jax.random.split(key)

    # Small EfficientNet configuration (width 0.25, image 16, 3 stages).
    global_params = dict(
        batch_norm_momentum=0.99, batch_norm_epsilon=1e-3,
        dropout_rate=0.2, drop_connect_rate=0.2,
        num_classes=8, width_coefficient=0.25, depth_coefficient=1.0,
        depth_divisor=8, min_depth=None, image_size=16,
    )
    blocks_args = [
        dict(kernel_size=3, num_repeat=1, input_filters=32, output_filters=16,
             expand_ratio=1, id_skip=True, stride=[1], se_ratio=0.25),
        dict(kernel_size=3, num_repeat=2, input_filters=16, output_filters=24,
             expand_ratio=6, id_skip=True, stride=[2], se_ratio=0.25),
        dict(kernel_size=5, num_repeat=1, input_filters=24, output_filters=40,
             expand_ratio=6, id_skip=True, stride=[2], se_ratio=0.25),
    ]

    params = init_efficientnet_params(pkey, blocks_args, global_params)

    # PyTorch-convention NCHW input: batch=2, channels=3, 16x16 image.
    x = jax.random.normal(xkey, (2, 3, 16, 16), dtype=jnp.float32)

    fwd = jax.jit(lambda inp: efficientnet_forward(params, inp))
    out = fwd(x)
    out = jax.block_until_ready(out)

    assert out.shape == (2, global_params["num_classes"]), out.shape
    assert bool(jnp.all(jnp.isfinite(out)))
    print("KERNEL_OK")
</pallas_src>

<mosaic_0001>
module attributes {stable_mosaic.version = 11 : i64} {
  func.func @_mm_kernel(%arg0: i32, %arg1: i32, %arg2: i32, %arg3: i32, %arg4: memref<1x128x128xbf16, #tpu.memory_space<vmem>>, %arg5: memref<128x128xbf16, #tpu.memory_space<vmem>>, %arg6: memref<1x128xf32, #tpu.memory_space<vmem>>, %arg7: memref<1x128x128xbf16, #tpu.memory_space<vmem>>, %arg8: memref<128x128xf32, #tpu.memory_space<vmem>>) attributes {dimension_semantics = [#tpu.dimension_semantics<parallel>, #tpu.dimension_semantics<parallel>, #tpu.dimension_semantics<parallel>, #tpu.dimension_semantics<arbitrary>], iteration_bounds = array<i64: 1, 1, 1, 1>, scalar_prefetch = 0 : i64, scratch_operands = 1 : i64, tpu.core_type = #tpu.core_type<tc>, window_params = [{transform_indices = @transform_0, window_bounds = array<i64: 1, 128, 128>}, {transform_indices = @transform_1, window_bounds = array<i64: 128, 128>}, {transform_indices = @transform_2, window_bounds = array<i64: 1, 128>}, {transform_indices = @transform_3, window_bounds = array<i64: 1, 128, 128>}]} {
    %c0_i32 = arith.constant 0 : i32
    %0 = arith.cmpi eq, %arg3, %c0_i32 : i32
    %1 = arith.extui %0 : i1 to i32
    %c0_i32_0 = arith.constant 0 : i32
    %2 = arith.cmpi ne, %1, %c0_i32_0 : i32
    scf.if %2 {
      %cst_11 = arith.constant 0.000000e+00 : f32
      %13 = vector.broadcast %cst_11 : f32 to vector<128x128xf32>
      %c0_12 = arith.constant 0 : index
      %c0_13 = arith.constant 0 : index
      %14 = vector.load %arg8[%c0_12, %c0_13] : memref<128x128xf32, #tpu.memory_space<vmem>>, vector<128x128xf32>
      tpu.vector_store %arg8[%c0_12, %c0_13], %13 {strides = array<i32>} : memref<128x128xf32, #tpu.memory_space<vmem>>, vector<128x128xf32>,
    } else {
    }
    %c0 = arith.constant 0 : index
    %c0_1 = arith.constant 0 : index
    %c0_2 = arith.constant 0 : index
    %3 = vector.load %arg4[%c0, %c0_1, %c0_2] : memref<1x128x128xbf16, #tpu.memory_space<vmem>>, vector<1x128x128xbf16>
    %4 = vector.shape_cast %3 : vector<1x128x128xbf16> to vector<128x128xbf16>
    %c0_3 = arith.constant 0 : index
    %c0_4 = arith.constant 0 : index
    %5 = vector.load %arg8[%c0_3, %c0_4] : memref<128x128xf32, #tpu.memory_space<vmem>>, vector<128x128xf32>
    %c0_5 = arith.constant 0 : index
    %c0_6 = arith.constant 0 : index
    %6 = vector.load %arg5[%c0_5, %c0_6] : memref<128x128xbf16, #tpu.memory_space<vmem>>, vector<128x128xbf16>
    %cst = arith.constant dense<0.000000e+00> : vector<128x128xf32>
    %7 = tpu.matmul %4, %6, %cst {dimension_numbers = #tpu.dot_dimension_numbers<[1], [0], [0], [1], [0, 0, 1, 1], [], []>} : vector<128x128xbf16>, vector<128x128xbf16>, vector<128x128xf32> -> vector<128x128xf32>
    %8 = arith.addf %5, %7 : vector<128x128xf32>
    %c0_7 = arith.constant 0 : index
    %c0_8 = arith.constant 0 : index
    %9 = vector.load %arg8[%c0_7, %c0_8] : memref<128x128xf32, #tpu.memory_space<vmem>>, vector<128x128xf32>
    tpu.vector_store %arg8[%c0_7, %c0_8], %8 {strides = array<i32>} : memref<128x128xf32, #tpu.memory_space<vmem>>, vector<128x128xf32>,
    %c0_i32_9 = arith.constant 0 : i32
    %10 = arith.cmpi eq, %arg3, %c0_i32_9 : i32
    %11 = arith.extui %10 : i1 to i32
    %c0_i32_10 = arith.constant 0 : i32
    %12 = arith.cmpi ne, %11, %c0_i32_10 : i32
    scf.if %12 {
      %c0_11 = arith.constant 0 : index
      %c0_12 = arith.constant 0 : index
      %13 = vector.load %arg8[%c0_11, %c0_12] : memref<128x128xf32, #tpu.memory_space<vmem>>, vector<128x128xf32>
      %c0_13 = arith.constant 0 : index
      %c0_14 = arith.constant 0 : index
      %14 = vector.load %arg6[%c0_13, %c0_14] : memref<1x128xf32, #tpu.memory_space<vmem>>, vector<1x128xf32>
      %15 = vector.broadcast %14 : vector<1x128xf32> to vector<128x128xf32>
      %16 = arith.addf %13, %15 : vector<128x128xf32>
      %17 = arith.negf %16 : vector<128x128xf32>
      %18 = math.exp %17 : vector<128x128xf32>
      %cst_15 = arith.constant 1.000000e+00 : f32
      %19 = vector.broadcast %cst_15 : f32 to vector<128x128xf32>
      %20 = arith.addf %19, %18 : vector<128x128xf32>
      %21 = arith.divf %19, %20 : vector<128x128xf32>
      %22 = arith.mulf %16, %21 : vector<128x128xf32>
      %23 = arith.truncf %22 : vector<128x128xf32> to vector<128x128xbf16>
      %c0_16 = arith.constant 0 : index
      %c0_17 = arith.constant 0 : index
      %c0_18 = arith.constant 0 : index
      %24 = vector.load %arg7[%c0_16, %c0_17, %c0_18] : memref<1x128x128xbf16, #tpu.memory_space<vmem>>, vector<1x128x128xbf16>
      %25 = vector.shape_cast %24 : vector<1x128x128xbf16> to vector<128x128xbf16>
      %26 = vector.shape_cast %23 : vector<128x128xbf16> to vector<1x128x128xbf16>
      tpu.vector_store %arg7[%c0_16, %c0_17, %c0_18], %26 {strides = array<i32>} : memref<1x128x128xbf16, #tpu.memory_space<vmem>>, vector<1x128x128xbf16>,
    } else {
    }
    return
  }
  func.func @transform_0(%arg0: i32, %arg1: i32, %arg2: i32, %arg3: i32) -> (i32, i32, i32) {
    %c0_i32 = arith.constant 0 : i32
    return %arg0, %arg1, %arg3 : i32, i32, i32
  }
  func.func @transform_1(%arg0: i32, %arg1: i32, %arg2: i32, %arg3: i32) -> (i32, i32) {
    %c0_i32 = arith.constant 0 : i32
    return %arg3, %arg2 : i32, i32
  }
  func.func @transform_2(%arg0: i32, %arg1: i32, %arg2: i32, %arg3: i32) -> (i32, i32) {
    %c0_i32 = arith.constant 0 : i32
    %c0_i32_0 = arith.constant 0 : i32
    return %c0_i32, %arg2 : i32, i32
  }
  func.func @transform_3(%arg0: i32, %arg1: i32, %arg2: i32, %arg3: i32) -> (i32, i32, i32) {
    %c0_i32 = arith.constant 0 : i32
    return %arg0, %arg1, %arg2 : i32, i32, i32
  }
}

module attributes {stable_mosaic.version = 11 : i64} {
  func.func @_se_kernel(%arg0: i32, %arg1: memref<8x128xf32, #tpu.memory_space<vmem>>, %arg2: memref<128x128xbf16, #tpu.memory_space<vmem>>, %arg3: memref<1x128xf32, #tpu.memory_space<vmem>>, %arg4: memref<128x128xbf16, #tpu.memory_space<vmem>>, %arg5: memref<1x128xf32, #tpu.memory_space<vmem>>, %arg6: memref<8x128xf32, #tpu.memory_space<vmem>>) attributes {dimension_semantics = [#tpu.dimension_semantics<arbitrary>], iteration_bounds = array<i64: 1>, scalar_prefetch = 0 : i64, scratch_operands = 0 : i64, tpu.core_type = #tpu.core_type<tc>, window_params = [{pipeline_mode = #tpu.pipeline_mode<synchronous>, transform_indices = @transform_0, window_bounds = array<i64: 8, 128>}, {pipeline_mode = #tpu.pipeline_mode<synchronous>, transform_indices = @transform_1, window_bounds = array<i64: 128, 128>}, {pipeline_mode = #tpu.pipeline_mode<synchronous>, transform_indices = @transform_2, window_bounds = array<i64: 1, 128>}, {pipeline_mode = #tpu.pipeline_mode<synchronous>, transform_indices = @transform_3, window_bounds = array<i64: 128, 128>}, {pipeline_mode = #tpu.pipeline_mode<synchronous>, transform_indices = @transform_4, window_bounds = array<i64: 1, 128>}, {pipeline_mode = #tpu.pipeline_mode<synchronous>, transform_indices = @transform_5, window_bounds = array<i64: 8, 128>}]} {
    %c0 = arith.constant 0 : index
    %c0_0 = arith.constant 0 : index
    %0 = vector.load %arg1[%c0, %c0_0] : memref<8x128xf32, #tpu.memory_space<vmem>>, vector<8x128xf32>
    %1 = arith.truncf %0 : vector<8x128xf32> to vector<8x128xbf16>
    %c0_1 = arith.constant 0 : index
    %c0_2 = arith.constant 0 : index
    %2 = vector.load %arg2[%c0_1, %c0_2] : memref<128x128xbf16, #tpu.memory_space<vmem>>, vector<128x128xbf16>
    %cst = arith.constant dense<0.000000e+00> : vector<8x128xf32>
    %3 = tpu.matmul %1, %2, %cst {dimension_numbers = #tpu.dot_dimension_numbers<[1], [0], [0], [1], [0, 0, 1, 1], [], []>} : vector<8x128xbf16>, vector<128x128xbf16>, vector<8x128xf32> -> vector<8x128xf32>
    %c0_3 = arith.constant 0 : index
    %c0_4 = arith.constant 0 : index
    %4 = vector.load %arg3[%c0_3, %c0_4] : memref<1x128xf32, #tpu.memory_space<vmem>>, vector<1x128xf32>
    %5 = vector.broadcast %4 : vector<1x128xf32> to vector<8x128xf32>
    %6 = arith.addf %3, %5 : vector<8x128xf32>
    %7 = arith.negf %6 : vector<8x128xf32>
    %8 = math.exp %7 : vector<8x128xf32>
    %cst_5 = arith.constant 1.000000e+00 : f32
    %9 = vector.broadcast %cst_5 : f32 to vector<8x128xf32>
    %10 = arith.addf %9, %8 : vector<8x128xf32>
    %11 = arith.divf %9, %10 : vector<8x128xf32>
    %12 = arith.mulf %6, %11 : vector<8x128xf32>
    %13 = arith.truncf %12 : vector<8x128xf32> to vector<8x128xbf16>
    %c0_6 = arith.constant 0 : index
    %c0_7 = arith.constant 0 : index
    %14 = vector.load %arg4[%c0_6, %c0_7] : memref<128x128xbf16, #tpu.memory_space<vmem>>, vector<128x128xbf16>
    %cst_8 = arith.constant dense<0.000000e+00> : vector<8x128xf32>
    %15 = tpu.matmul %13, %14, %cst_8 {dimension_numbers = #tpu.dot_dimension_numbers<[1], [0], [0], [1], [0, 0, 1, 1], [], []>} : vector<8x128xbf16>, vector<128x128xbf16>, vector<8x128xf32> -> vector<8x128xf32>
    %c0_9 = arith.constant 0 : index
    %c0_10 = arith.constant 0 : index
    %16 = vector.load %arg5[%c0_9, %c0_10] : memref<1x128xf32, #tpu.memory_space<vmem>>, vector<1x128xf32>
    %17 = vector.broadcast %16 : vector<1x128xf32> to vector<8x128xf32>
    %18 = arith.addf %15, %17 : vector<8x128xf32>
    %c0_11 = arith.constant 0 : index
    %c0_12 = arith.constant 0 : index
    %19 = vector.load %arg6[%c0_11, %c0_12] : memref<8x128xf32, #tpu.memory_space<vmem>>, vector<8x128xf32>
    tpu.vector_store %arg6[%c0_11, %c0_12], %18 {strides = array<i32>} : memref<8x128xf32, #tpu.memory_space<vmem>>, vector<8x128xf32>,
    return
  }
  func.func @transform_0(%arg0: i32) -> (i32, i32) {
    %c0_i32 = arith.constant 0 : i32
    %c0_i32_0 = arith.constant 0 : i32
    %c0_i32_1 = arith.constant 0 : i32
    return %c0_i32, %c0_i32_0 : i32, i32
  }
  func.func @transform_1(%arg0: i32) -> (i32, i32) {
    %c0_i32 = arith.constant 0 : i32
    %c0_i32_0 = arith.constant 0 : i32
    %c0_i32_1 = arith.constant 0 : i32
    return %c0_i32, %c0_i32_0 : i32, i32
  }
  func.func @transform_2(%arg0: i32) -> (i32, i32) {
    %c0_i32 = arith.constant 0 : i32
    %c0_i32_0 = arith.constant 0 : i32
    %c0_i32_1 = arith.constant 0 : i32
    return %c0_i32, %c0_i32_0 : i32, i32
  }
  func.func @transform_3(%arg0: i32) -> (i32, i32) {
    %c0_i32 = arith.constant 0 : i32
    %c0_i32_0 = arith.constant 0 : i32
    %c0_i32_1 = arith.constant 0 : i32
    return %c0_i32, %c0_i32_0 : i32, i32
  }
  func.func @transform_4(%arg0: i32) -> (i32, i32) {
    %c0_i32 = arith.constant 0 : i32
    %c0_i32_0 = arith.constant 0 : i32
    %c0_i32_1 = arith.constant 0 : i32
    return %c0_i32, %c0_i32_0 : i32, i32
  }
  func.func @transform_5(%arg0: i32) -> (i32, i32) {
    %c0_i32 = arith.constant 0 : i32
    %c0_i32_0 = arith.constant 0 : i32
    %c0_i32_1 = arith.constant 0 : i32
    return %c0_i32, %c0_i32_0 : i32, i32
  }
}

module attributes {stable_mosaic.version = 11 : i64} {
  func.func @_dw_kernel(%arg0: i32, %arg1: memref<1x10x1x10x128xbf16, #tpu.memory_space<vmem>>, %arg2: memref<9x128xbf16, #tpu.memory_space<vmem>>, %arg3: memref<1x128xf32, #tpu.memory_space<vmem>>, %arg4: memref<1x8x8x128xbf16, #tpu.memory_space<vmem>>, %arg5: memref<1x1x128xf32, #tpu.memory_space<vmem>>) attributes {dimension_semantics = [#tpu.dimension_semantics<parallel>], iteration_bounds = array<i64: 2>, scalar_prefetch = 0 : i64, scratch_operands = 0 : i64, tpu.core_type = #tpu.core_type<tc>, window_params = [{transform_indices = @transform_0, window_bounds = array<i64: 1, 10, 1, 10, 128>}, {pipeline_mode = #tpu.pipeline_mode<synchronous>, transform_indices = @transform_1, window_bounds = array<i64: 9, 128>}, {pipeline_mode = #tpu.pipeline_mode<synchronous>, transform_indices = @transform_2, window_bounds = array<i64: 1, 128>}, {transform_indices = @transform_3, window_bounds = array<i64: 1, 8, 8, 128>}, {transform_indices = @transform_4, window_bounds = array<i64: 1, 1, 128>}]} {
    %cst = arith.constant 0.000000e+00 : f32
    %0 = vector.broadcast %cst : f32 to vector<8x8x128xf32>
    %c0 = arith.constant 0 : index
    %c0_0 = arith.constant 0 : index
    %1 = vector.load %arg2[%c0, %c0_0] : memref<9x128xbf16, #tpu.memory_space<vmem>>, vector<1x128xbf16>
    %c0_1 = arith.constant 0 : index
    %c0_2 = arith.constant 0 : index
    %c0_3 = arith.constant 0 : index
    %c0_4 = arith.constant 0 : index
    %c0_5 = arith.constant 0 : index
    %2 = vector.load %arg1[%c0_1, %c0_2, %c0_3, %c0_4, %c0_5] : memref<1x10x1x10x128xbf16, #tpu.memory_space<vmem>>, vector<1x8x1x8x128xbf16>
    %3 = vector.shape_cast %2 : vector<1x8x1x8x128xbf16> to vector<8x8x128xbf16>
    %4 = vector.shape_cast %1 : vector<1x128xbf16> to vector<1x1x128xbf16>
    %5 = vector.broadcast %4 : vector<1x1x128xbf16> to vector<8x8x128xbf16>
    %6 = arith.mulf %3, %5 : vector<8x8x128xbf16>
    %7 = arith.extf %6 : vector<8x8x128xbf16> to vector<8x8x128xf32>
    %8 = arith.addf %0, %7 : vector<8x8x128xf32>
    %c1 = arith.constant 1 : index
    %c0_6 = arith.constant 0 : index
    %9 = vector.load %arg2[%c1, %c0_6] : memref<9x128xbf16, #tpu.memory_space<vmem>>, vector<1x128xbf16>
    %c0_7 = arith.constant 0 : index
    %c0_8 = arith.constant 0 : index
    %c0_9 = arith.constant 0 : index
    %c1_10 = arith.constant 1 : index
    %c0_11 = arith.constant 0 : index
    %10 = vector.load %arg1[%c0_7, %c0_8, %c0_9, %c1_10, %c0_11] : memref<1x10x1x10x128xbf16, #tpu.memory_space<vmem>>, vector<1x8x1x8x128xbf16>
    %11 = vector.shape_cast %10 : vector<1x8x1x8x128xbf16> to vector<8x8x128xbf16>
    %12 = vector.shape_cast %9 : vector<1x128xbf16> to vector<1x1x128xbf16>
    %13 = vector.broadcast %12 : vector<1x1x128xbf16> to vector<8x8x128xbf16>
    %14 = arith.mulf %11, %13 : vector<8x8x128xbf16>
    %15 = arith.extf %14 : vector<8x8x128xbf16> to vector<8x8x128xf32>
    %16 = arith.addf %8, %15 : vector<8x8x128xf32>
    %c2 = arith.constant 2 : index
    %c0_12 = arith.constant 0 : index
    %17 = vector.load %arg2[%c2, %c0_12] : memref<9x128xbf16, #tpu.memory_space<vmem>>, vector<1x128xbf16>
    %c0_13 = arith.constant 0 : index
    %c0_14 = arith.constant 0 : index
    %c0_15 = arith.constant 0 : index
    %c2_16 = arith.constant 2 : index
    %c0_17 = arith.constant 0 : index
    %18 = vector.load %arg1[%c0_13, %c0_14, %c0_15, %c2_16, %c0_17] : memref<1x10x1x10x128xbf16, #tpu.memory_space<vmem>>, vector<1x8x1x8x128xbf16>
    %19 = vector.shape_cast %18 : vector<1x8x1x8x128xbf16> to vector<8x8x128xbf16>
    %20 = vector.shape_cast %17 : vector<1x128xbf16> to vector<1x1x128xbf16>
    %21 = vector.broadcast %20 : vector<1x1x128xbf16> to vector<8x8x128xbf16>
    %22 = arith.mulf %19, %21 : vector<8x8x128xbf16>
    %23 = arith.extf %22 : vector<8x8x128xbf16> to vector<8x8x128xf32>
    %24 = arith.addf %16, %23 : vector<8x8x128xf32>
    %c3 = arith.constant 3 : index
    %c0_18 = arith.constant 0 : index
    %25 = vector.load %arg2[%c3, %c0_18] : memref<9x128xbf16, #tpu.memory_space<vmem>>, vector<1x128xbf16>
    %c0_19 = arith.constant 0 : index
    %c1_20 = arith.constant 1 : index
    %c0_21 = arith.constant 0 : index
    %c0_22 = arith.constant 0 : index
    %c0_23 = arith.constant 0 : index
    %26 = vector.load %arg1[%c0_19, %c1_20, %c0_21, %c0_22, %c0_23] : memref<1x10x1x10x128xbf16, #tpu.memory_space<vmem>>, vector<1x8x1x8x128xbf16>
    %27 = vector.shape_cast %26 : vector<1x8x1x8x128xbf16> to vector<8x8x128xbf16>
    %28 = vector.shape_cast %25 : vector<1x128xbf16> to vector<1x1x128xbf16>
    %29 = vector.broadcast %28 : vector<1x1x128xbf16> to vector<8x8x128xbf16>
    %30 = arith.mulf %27, %29 : vector<8x8x128xbf16>
    %31 = arith.extf %30 : vector<8x8x128xbf16> to vector<8x8x128xf32>
    %32 = arith.addf %24, %31 : vector<8x8x128xf32>
    %c4 = arith.constant 4 : index
    %c0_24 = arith.constant 0 : index
    %33 = vector.load %arg2[%c4, %c0_24] : memref<9x128xbf16, #tpu.memory_space<vmem>>, vector<1x128xbf16>
    %c0_25 = arith.constant 0 : index
    %c1_26 = arith.constant 1 : index
    %c0_27 = arith.constant 0 : index
    %c1_28 = arith.constant 1 : index
    %c0_29 = arith.constant 0 : index
    %34 = vector.load %arg1[%c0_25, %c1_26, %c0_27, %c1_28, %c0_29] : memref<1x10x1x10x128xbf16, #tpu.memory_space<vmem>>, vector<1x8x1x8x128xbf16>
    %35 = vector.shape_cast %34 : vector<1x8x1x8x128xbf16> to vector<8x8x128xbf16>
    %36 = vector.shape_cast %33 : vector<1x128xbf16> to vector<1x1x128xbf16>
    %37 = vector.broadcast %36 : vector<1x1x128xbf16> to vector<8x8x128xbf16>
    %38 = arith.mulf %35, %37 : vector<8x8x128xbf16>
    %39 = arith.extf %38 : vector<8x8x128xbf16> to vector<8x8x128xf32>
    %40 = arith.addf %32, %39 : vector<8x8x128xf32>
    %c5 = arith.constant 5 : index
    %c0_30 = arith.constant 0 : index
    %41 = vector.load %arg2[%c5, %c0_30] : memref<9x128xbf16, #tpu.memory_space<vmem>>, vector<1x128xbf16>
    %c0_31 = arith.constant 0 : index
    %c1_32 = arith.constant 1 : index
    %c0_33 = arith.constant 0 : index
    %c2_34 = arith.constant 2 : index
    %c0_35 = arith.constant 0 : index
    %42 = vector.load %arg1[%c0_31, %c1_32, %c0_33, %c2_34, %c0_35] : memref<1x10x1x10x128xbf16, #tpu.memory_space<vmem>>, vector<1x8x1x8x128xbf16>
    %43 = vector.shape_cast %42 : vector<1x8x1x8x128xbf16> to vector<8x8x128xbf16>
    %44 = vector.shape_cast %41 : vector<1x128xbf16> to vector<1x1x128xbf16>
    %45 = vector.broadcast %44 : vector<1x1x128xbf16> to vector<8x8x128xbf16>
    %46 = arith.mulf %43, %45 : vector<8x8x128xbf16>
    %47 = arith.extf %46 : vector<8x8x128xbf16> to vector<8x8x128xf32>
    %48 = arith.addf %40, %47 : vector<8x8x128xf32>
    %c6 = arith.constant 6 : index
    %c0_36 = arith.constant 0 : index
    %49 = vector.load %arg2[%c6, %c0_36] : memref<9x128xbf16, #tpu.memory_space<vmem>>, vector<1x128xbf16>
    %c0_37 = arith.constant 0 : index
    %c2_38 = arith.constant 2 : index
    %c0_39 = arith.constant 0 : index
    %c0_40 = arith.constant 0 : index
    %c0_41 = arith.constant 0 : index
    %50 = vector.load %arg1[%c0_37, %c2_38, %c0_39, %c0_40, %c0_41] : memref<1x10x1x10x128xbf16, #tpu.memory_space<vmem>>, vector<1x8x1x8x128xbf16>
    %51 = vector.shape_cast %50 : vector<1x8x1x8x128xbf16> to vector<8x8x128xbf16>
    %52 = vector.shape_cast %49 : vector<1x128xbf16> to vector<1x1x128xbf16>
    %53 = vector.broadcast %52 : vector<1x1x128xbf16> to vector<8x8x128xbf16>
    %54 = arith.mulf %51, %53 : vector<8x8x128xbf16>
    %55 = arith.extf %54 : vector<8x8x128xbf16> to vector<8x8x128xf32>
    %56 = arith.addf %48, %55 : vector<8x8x128xf32>
    %c7 = arith.constant 7 : index
    %c0_42 = arith.constant 0 : index
    %57 = vector.load %arg2[%c7, %c0_42] : memref<9x128xbf16, #tpu.memory_space<vmem>>, vector<1x128xbf16>
    %c0_43 = arith.constant 0 : index
    %c2_44 = arith.constant 2 : index
    %c0_45 = arith.constant 0 : index
    %c1_46 = arith.constant 1 : index
    %c0_47 = arith.constant 0 : index
    %58 = vector.load %arg1[%c0_43, %c2_44, %c0_45, %c1_46, %c0_47] : memref<1x10x1x10x128xbf16, #tpu.memory_space<vmem>>, vector<1x8x1x8x128xbf16>
    %59 = vector.shape_cast %58 : vector<1x8x1x8x128xbf16> to vector<8x8x128xbf16>
    %60 = vector.shape_cast %57 : vector<1x128xbf16> to vector<1x1x128xbf16>
    %61 = vector.broadcast %60 : vector<1x1x128xbf16> to vector<8x8x128xbf16>
    %62 = arith.mulf %59, %61 : vector<8x8x128xbf16>
    %63 = arith.extf %62 : vector<8x8x128xbf16> to vector<8x8x128xf32>
    %64 = arith.addf %56, %63 : vector<8x8x128xf32>
    %c8 = arith.constant 8 : index
    %c0_48 = arith.constant 0 : index
    %65 = vector.load %arg2[%c8, %c0_48] : memref<9x128xbf16, #tpu.memory_space<vmem>>, vector<1x128xbf16>
    %c0_49 = arith.constant 0 : index
    %c2_50 = arith.constant 2 : index
    %c0_51 = arith.constant 0 : index
    %c2_52 = arith.constant 2 : index
    %c0_53 = arith.constant 0 : index
    %66 = vector.load %arg1[%c0_49, %c2_50, %c0_51, %c2_52, %c0_53] : memref<1x10x1x10x128xbf16, #tpu.memory_space<vmem>>, vector<1x8x1x8x128xbf16>
    %67 = vector.shape_cast %66 : vector<1x8x1x8x128xbf16> to vector<8x8x128xbf16>
    %68 = vector.shape_cast %65 : vector<1x128xbf16> to vector<1x1x128xbf16>
    %69 = vector.broadcast %68 : vector<1x1x128xbf16> to vector<8x8x128xbf16>
    %70 = arith.mulf %67, %69 : vector<8x8x128xbf16>
    %71 = arith.extf %70 : vector<8x8x128xbf16> to vector<8x8x128xf32>
    %72 = arith.addf %64, %71 : vector<8x8x128xf32>
    %c0_54 = arith.constant 0 : index
    %c0_55 = arith.constant 0 : index
    %73 = vector.load %arg3[%c0_54, %c0_55] : memref<1x128xf32, #tpu.memory_space<vmem>>, vector<1x128xf32>
    %74 = vector.shape_cast %73 : vector<1x128xf32> to vector<1x1x128xf32>
    %75 = vector.broadcast %74 : vector<1x1x128xf32> to vector<8x8x128xf32>
    %76 = arith.addf %72, %75 : vector<8x8x128xf32>
    %77 = arith.negf %76 : vector<8x8x128xf32>
    %78 = math.exp %77 : vector<8x8x128xf32>
    %cst_56 = arith.constant 1.000000e+00 : f32
    %79 = vector.broadcast %cst_56 : f32 to vector<8x8x128xf32>
    %80 = arith.addf %79, %78 : vector<8x8x128xf32>
    %81 = arith.divf %79, %80 : vector<8x8x128xf32>
    %82 = arith.mulf %76, %81 : vector<8x8x128xf32>
    %83 = arith.truncf %82 : vector<8x8x128xf32> to vector<8x8x128xbf16>
    %c0_57 = arith.constant 0 : index
    %c0_58 = arith.constant 0 : index
    %c0_59 = arith.constant 0 : index
    %c0_60 = arith.constant 0 : index
    %84 = vector.load %arg4[%c0_57, %c0_58, %c0_59, %c0_60] : memref<1x8x8x128xbf16, #tpu.memory_space<vmem>>, vector<1x8x8x128xbf16>
    %85 = vector.shape_cast %84 : vector<1x8x8x128xbf16> to vector<8x8x128xbf16>
    %86 = vector.shape_cast %83 : vector<8x8x128xbf16> to vector<1x8x8x128xbf16>
    tpu.vector_store %arg4[%c0_57, %c0_58, %c0_59, %c0_60], %86 {strides = array<i32>} : memref<1x8x8x128xbf16, #tpu.memory_space<vmem>>, vector<1x8x8x128xbf16>,
    %cst_61 = arith.constant dense<0.000000e+00> : vector<128xf32>
    %87 = vector.multi_reduction <add>, %82, %cst_61 [0, 1] : vector<8x8x128xf32> to vector<128xf32>
    %cst_62 = arith.constant 1.562500e-02 : f32
    %88 = vector.broadcast %cst_62 : f32 to vector<128xf32>
    %89 = arith.mulf %87, %88 : vector<128xf32>
    %90 = vector.shape_cast %89 : vector<128xf32> to vector<1x128xf32>
    %c0_63 = arith.constant 0 : index
    %c0_64 = arith.constant 0 : index
    %c0_65 = arith.constant 0 : index
    %91 = vector.load %arg5[%c0_63, %c0_64, %c0_65] : memref<1x1x128xf32, #tpu.memory_space<vmem>>, vector<1x1x128xf32>
    %92 = vector.shape_cast %91 : vector<1x1x128xf32> to vector<1x128xf32>
    %93 = vector.shape_cast %90 : vector<1x128xf32> to vector<1x1x128xf32>
    tpu.vector_store %arg5[%c0_63, %c0_64, %c0_65], %93 {strides = array<i32>} : memref<1x1x128xf32, #tpu.memory_space<vmem>>, vector<1x1x128xf32>,
    return
  }
  func.func @transform_0(%arg0: i32) -> (i32, i32, i32, i32, i32) {
    %c0_i32 = arith.constant 0 : i32
    %c0_i32_0 = arith.constant 0 : i32
    %c0_i32_1 = arith.constant 0 : i32
    %c0_i32_2 = arith.constant 0 : i32
    %c0_i32_3 = arith.constant 0 : i32
    return %arg0, %c0_i32, %c0_i32_0, %c0_i32_1, %c0_i32_2 : i32, i32, i32, i32, i32
  }
  func.func @transform_1(%arg0: i32) -> (i32, i32) {
    %c0_i32 = arith.constant 0 : i32
    %c0_i32_0 = arith.constant 0 : i32
    %c0_i32_1 = arith.constant 0 : i32
    return %c0_i32, %c0_i32_0 : i32, i32
  }
  func.func @transform_2(%arg0: i32) -> (i32, i32) {
    %c0_i32 = arith.constant 0 : i32
    %c0_i32_0 = arith.constant 0 : i32
    %c0_i32_1 = arith.constant 0 : i32
    return %c0_i32, %c0_i32_0 : i32, i32
  }
  func.func @transform_3(%arg0: i32) -> (i32, i32, i32, i32) {
    %c0_i32 = arith.constant 0 : i32
    %c0_i32_0 = arith.constant 0 : i32
    %c0_i32_1 = arith.constant 0 : i32
    %c0_i32_2 = arith.constant 0 : i32
    return %arg0, %c0_i32, %c0_i32_0, %c0_i32_1 : i32, i32, i32, i32
  }
  func.func @transform_4(%arg0: i32) -> (i32, i32, i32) {
    %c0_i32 = arith.constant 0 : i32
    %c0_i32_0 = arith.constant 0 : i32
    %c0_i32_1 = arith.constant 0 : i32
    return %arg0, %c0_i32, %c0_i32_0 : i32, i32, i32
  }
}

module attributes {stable_mosaic.version = 11 : i64} {
  func.func @_mm_kernel(%arg0: i32, %arg1: i32, %arg2: i32, %arg3: i32, %arg4: memref<1x64x128xbf16, #tpu.memory_space<vmem>>, %arg5: memref<128x128xbf16, #tpu.memory_space<vmem>>, %arg6: memref<1x128xf32, #tpu.memory_space<vmem>>, %arg7: memref<1x1x128xf32, #tpu.memory_space<vmem>>, %arg8: memref<1x64x128xbf16, #tpu.memory_space<vmem>>, %arg9: memref<64x128xf32, #tpu.memory_space<vmem>>) attributes {dimension_semantics = [#tpu.dimension_semantics<parallel>, #tpu.dimension_semantics<parallel>, #tpu.dimension_semantics<parallel>, #tpu.dimension_semantics<arbitrary>], iteration_bounds = array<i64: 2, 1, 1, 1>, scalar_prefetch = 0 : i64, scratch_operands = 1 : i64, tpu.core_type = #tpu.core_type<tc>, window_params = [{transform_indices = @transform_0, window_bounds = array<i64: 1, 64, 128>}, {transform_indices = @transform_1, window_bounds = array<i64: 128, 128>}, {transform_indices = @transform_2, window_bounds = array<i64: 1, 128>}, {transform_indices = @transform_3, window_bounds = array<i64: 1, 1, 128>}, {transform_indices = @transform_4, window_bounds = array<i64: 1, 64, 128>}]} {
    %c0_i32 = arith.constant 0 : i32
    %0 = arith.cmpi eq, %arg3, %c0_i32 : i32
    %1 = arith.extui %0 : i1 to i32
    %c0_i32_0 = arith.constant 0 : i32
    %2 = arith.cmpi ne, %1, %c0_i32_0 : i32
    scf.if %2 {
      %cst_15 = arith.constant 0.000000e+00 : f32
      %23 = vector.broadcast %cst_15 : f32 to vector<64x128xf32>
      %c0_16 = arith.constant 0 : index
      %c0_17 = arith.constant 0 : index
      %24 = vector.load %arg9[%c0_16, %c0_17] : memref<64x128xf32, #tpu.memory_space<vmem>>, vector<64x128xf32>
      tpu.vector_store %arg9[%c0_16, %c0_17], %23 {strides = array<i32>} : memref<64x128xf32, #tpu.memory_space<vmem>>, vector<64x128xf32>,
    } else {
    }
    %c0 = arith.constant 0 : index
    %c0_1 = arith.constant 0 : index
    %c0_2 = arith.constant 0 : index
    %3 = vector.load %arg4[%c0, %c0_1, %c0_2] : memref<1x64x128xbf16, #tpu.memory_space<vmem>>, vector<1x64x128xbf16>
    %4 = vector.shape_cast %3 : vector<1x64x128xbf16> to vector<64x128xbf16>
    %c0_3 = arith.constant 0 : index
    %c0_4 = arith.constant 0 : index
    %c0_5 = arith.constant 0 : index
    %5 = vector.load %arg7[%c0_3, %c0_4, %c0_5] : memref<1x1x128xf32, #tpu.memory_space<vmem>>, vector<1x1x128xf32>
    %6 = vector.shape_cast %5 : vector<1x1x128xf32> to vector<1x128xf32>
    %7 = arith.negf %6 : vector<1x128xf32>
    %8 = math.exp %7 : vector<1x128xf32>
    %cst = arith.constant 1.000000e+00 : f32
    %9 = vector.broadcast %cst : f32 to vector<1x128xf32>
    %10 = arith.addf %9, %8 : vector<1x128xf32>
    %11 = arith.divf %9, %10 : vector<1x128xf32>
    %12 = arith.truncf %11 : vector<1x128xf32> to vector<1x128xbf16>
    %13 = vector.broadcast %12 : vector<1x128xbf16> to vector<64x128xbf16>
    %14 = arith.mulf %4, %13 : vector<64x128xbf16>
    %c0_6 = arith.constant 0 : index
    %c0_7 = arith.constant 0 : index
    %15 = vector.load %arg9[%c0_6, %c0_7] : memref<64x128xf32, #tpu.memory_space<vmem>>, vector<64x128xf32>
    %c0_8 = arith.constant 0 : index
    %c0_9 = arith.constant 0 : index
    %16 = vector.load %arg5[%c0_8, %c0_9] : memref<128x128xbf16, #tpu.memory_space<vmem>>, vector<128x128xbf16>
    %cst_10 = arith.constant dense<0.000000e+00> : vector<64x128xf32>
    %17 = tpu.matmul %14, %16, %cst_10 {dimension_numbers = #tpu.dot_dimension_numbers<[1], [0], [0], [1], [0, 0, 1, 1], [], []>} : vector<64x128xbf16>, vector<128x128xbf16>, vector<64x128xf32> -> vector<64x128xf32>
    %18 = arith.addf %15, %17 : vector<64x128xf32>
    %c0_11 = arith.constant 0 : index
    %c0_12 = arith.constant 0 : index
    %19 = vector.load %arg9[%c0_11, %c0_12] : memref<64x128xf32, #tpu.memory_space<vmem>>, vector<64x128xf32>
    tpu.vector_store %arg9[%c0_11, %c0_12], %18 {strides = array<i32>} : memref<64x128xf32, #tpu.memory_space<vmem>>, vector<64x128xf32>,
    %c0_i32_13 = arith.constant 0 : i32
    %20 = arith.cmpi eq, %arg3, %c0_i32_13 : i32
    %21 = arith.extui %20 : i1 to i32
    %c0_i32_14 = arith.constant 0 : i32
    %22 = arith.cmpi ne, %21, %c0_i32_14 : i32
    scf.if %22 {
      %c0_15 = arith.constant 0 : index
      %c0_16 = arith.constant 0 : index
      %23 = vector.load %arg9[%c0_15, %c0_16] : memref<64x128xf32, #tpu.memory_space<vmem>>, vector<64x128xf32>
      %c0_17 = arith.constant 0 : index
      %c0_18 = arith.constant 0 : index
      %24 = vector.load %arg6[%c0_17, %c0_18] : memref<1x128xf32, #tpu.memory_space<vmem>>, vector<1x128xf32>
      %25 = vector.broadcast %24 : vector<1x128xf32> to vector<64x128xf32>
      %26 = arith.addf %23, %25 : vector<64x128xf32>
      %27 = arith.truncf %26 : vector<64x128xf32> to vector<64x128xbf16>
      %c0_19 = arith.constant 0 : index
      %c0_20 = arith.constant 0 : index
      %c0_21 = arith.constant 0 : index
      %28 = vector.load %arg8[%c0_19, %c0_20, %c0_21] : memref<1x64x128xbf16, #tpu.memory_space<vmem>>, vector<1x64x128xbf16>
      %29 = vector.shape_cast %28 : vector<1x64x128xbf16> to vector<64x128xbf16>
      %30 = vector.shape_cast %27 : vector<64x128xbf16> to vector<1x64x128xbf16>
      tpu.vector_store %arg8[%c0_19, %c0_20, %c0_21], %30 {strides = array<i32>} : memref<1x64x128xbf16, #tpu.memory_space<vmem>>, vector<1x64x128xbf16>,
    } else {
    }
    return
  }
  func.func @transform_0(%arg0: i32, %arg1: i32, %arg2: i32, %arg3: i32) -> (i32, i32, i32) {
    %c0_i32 = arith.constant 0 : i32
    return %arg0, %arg1, %arg3 : i32, i32, i32
  }
  func.func @transform_1(%arg0: i32, %arg1: i32, %arg2: i32, %arg3: i32) -> (i32, i32) {
    %c0_i32 = arith.constant 0 : i32
    return %arg3, %arg2 : i32, i32
  }
  func.func @transform_2(%arg0: i32, %arg1: i32, %arg2: i32, %arg3: i32) -> (i32, i32) {
    %c0_i32 = arith.constant 0 : i32
    %c0_i32_0 = arith.constant 0 : i32
    return %c0_i32, %arg2 : i32, i32
  }
  func.func @transform_3(%arg0: i32, %arg1: i32, %arg2: i32, %arg3: i32) -> (i32, i32, i32) {
    %c0_i32 = arith.constant 0 : i32
    %c0_i32_0 = arith.constant 0 : i32
    return %arg0, %c0_i32, %arg3 : i32, i32, i32
  }
  func.func @transform_4(%arg0: i32, %arg1: i32, %arg2: i32, %arg3: i32) -> (i32, i32, i32) {
    %c0_i32 = arith.constant 0 : i32
    return %arg0, %arg1, %arg2 : i32, i32, i32
  }
}

module attributes {stable_mosaic.version = 11 : i64} {
  func.func @_mm_kernel(%arg0: i32, %arg1: i32, %arg2: i32, %arg3: i32, %arg4: memref<1x16x128xbf16, #tpu.memory_space<vmem>>, %arg5: memref<128x128xbf16, #tpu.memory_space<vmem>>, %arg6: memref<1x128xf32, #tpu.memory_space<vmem>>, %arg7: memref<1x1x128xf32, #tpu.memory_space<vmem>>, %arg8: memref<1x16x128xbf16, #tpu.memory_space<vmem>>, %arg9: memref<16x128xf32, #tpu.memory_space<vmem>>) attributes {dimension_semantics = [#tpu.dimension_semantics<parallel>, #tpu.dimension_semantics<parallel>, #tpu.dimension_semantics<parallel>, #tpu.dimension_semantics<arbitrary>], iteration_bounds = array<i64: 2, 1, 1, 1>, scalar_prefetch = 0 : i64, scratch_operands = 1 : i64, tpu.core_type = #tpu.core_type<tc>, window_params = [{transform_indices = @transform_0, window_bounds = array<i64: 1, 16, 128>}, {transform_indices = @transform_1, window_bounds = array<i64: 128, 128>}, {transform_indices = @transform_2, window_bounds = array<i64: 1, 128>}, {transform_indices = @transform_3, window_bounds = array<i64: 1, 1, 128>}, {transform_indices = @transform_4, window_bounds = array<i64: 1, 16, 128>}]} {
    %c0_i32 = arith.constant 0 : i32
    %0 = arith.cmpi eq, %arg3, %c0_i32 : i32
    %1 = arith.extui %0 : i1 to i32
    %c0_i32_0 = arith.constant 0 : i32
    %2 = arith.cmpi ne, %1, %c0_i32_0 : i32
    scf.if %2 {
      %cst_15 = arith.constant 0.000000e+00 : f32
      %23 = vector.broadcast %cst_15 : f32 to vector<16x128xf32>
      %c0_16 = arith.constant 0 : index
      %c0_17 = arith.constant 0 : index
      %24 = vector.load %arg9[%c0_16, %c0_17] : memref<16x128xf32, #tpu.memory_space<vmem>>, vector<16x128xf32>
      tpu.vector_store %arg9[%c0_16, %c0_17], %23 {strides = array<i32>} : memref<16x128xf32, #tpu.memory_space<vmem>>, vector<16x128xf32>,
    } else {
    }
    %c0 = arith.constant 0 : index
    %c0_1 = arith.constant 0 : index
    %c0_2 = arith.constant 0 : index
    %3 = vector.load %arg4[%c0, %c0_1, %c0_2] : memref<1x16x128xbf16, #tpu.memory_space<vmem>>, vector<1x16x128xbf16>
    %4 = vector.shape_cast %3 : vector<1x16x128xbf16> to vector<16x128xbf16>
    %c0_3 = arith.constant 0 : index
    %c0_4 = arith.constant 0 : index
    %c0_5 = arith.constant 0 : index
    %5 = vector.load %arg7[%c0_3, %c0_4, %c0_5] : memref<1x1x128xf32, #tpu.memory_space<vmem>>, vector<1x1x128xf32>
    %6 = vector.shape_cast %5 : vector<1x1x128xf32> to vector<1x128xf32>
    %7 = arith.negf %6 : vector<1x128xf32>
    %8 = math.exp %7 : vector<1x128xf32>
    %cst = arith.constant 1.000000e+00 : f32
    %9 = vector.broadcast %cst : f32 to vector<1x128xf32>
    %10 = arith.addf %9, %8 : vector<1x128xf32>
    %11 = arith.divf %9, %10 : vector<1x128xf32>
    %12 = arith.truncf %11 : vector<1x128xf32> to vector<1x128xbf16>
    %13 = vector.broadcast %12 : vector<1x128xbf16> to vector<16x128xbf16>
    %14 = arith.mulf %4, %13 : vector<16x128xbf16>
    %c0_6 = arith.constant 0 : index
    %c0_7 = arith.constant 0 : index
    %15 = vector.load %arg9[%c0_6, %c0_7] : memref<16x128xf32, #tpu.memory_space<vmem>>, vector<16x128xf32>
    %c0_8 = arith.constant 0 : index
    %c0_9 = arith.constant 0 : index
    %16 = vector.load %arg5[%c0_8, %c0_9] : memref<128x128xbf16, #tpu.memory_space<vmem>>, vector<128x128xbf16>
    %cst_10 = arith.constant dense<0.000000e+00> : vector<16x128xf32>
    %17 = tpu.matmul %14, %16, %cst_10 {dimension_numbers = #tpu.dot_dimension_numbers<[1], [0], [0], [1], [0, 0, 1, 1], [], []>} : vector<16x128xbf16>, vector<128x128xbf16>, vector<16x128xf32> -> vector<16x128xf32>
    %18 = arith.addf %15, %17 : vector<16x128xf32>
    %c0_11 = arith.constant 0 : index
    %c0_12 = arith.constant 0 : index
    %19 = vector.load %arg9[%c0_11, %c0_12] : memref<16x128xf32, #tpu.memory_space<vmem>>, vector<16x128xf32>
    tpu.vector_store %arg9[%c0_11, %c0_12], %18 {strides = array<i32>} : memref<16x128xf32, #tpu.memory_space<vmem>>, vector<16x128xf32>,
    %c0_i32_13 = arith.constant 0 : i32
    %20 = arith.cmpi eq, %arg3, %c0_i32_13 : i32
    %21 = arith.extui %20 : i1 to i32
    %c0_i32_14 = arith.constant 0 : i32
    %22 = arith.cmpi ne, %21, %c0_i32_14 : i32
    scf.if %22 {
      %c0_15 = arith.constant 0 : index
      %c0_16 = arith.constant 0 : index
      %23 = vector.load %arg9[%c0_15, %c0_16] : memref<16x128xf32, #tpu.memory_space<vmem>>, vector<16x128xf32>
      %c0_17 = arith.constant 0 : index
      %c0_18 = arith.constant 0 : index
      %24 = vector.load %arg6[%c0_17, %c0_18] : memref<1x128xf32, #tpu.memory_space<vmem>>, vector<1x128xf32>
      %25 = vector.broadcast %24 : vector<1x128xf32> to vector<16x128xf32>
      %26 = arith.addf %23, %25 : vector<16x128xf32>
      %27 = arith.truncf %26 : vector<16x128xf32> to vector<16x128xbf16>
      %c0_19 = arith.constant 0 : index
      %c0_20 = arith.constant 0 : index
      %c0_21 = arith.constant 0 : index
      %28 = vector.load %arg8[%c0_19, %c0_20, %c0_21] : memref<1x16x128xbf16, #tpu.memory_space<vmem>>, vector<1x16x128xbf16>
      %29 = vector.shape_cast %28 : vector<1x16x128xbf16> to vector<16x128xbf16>
      %30 = vector.shape_cast %27 : vector<16x128xbf16> to vector<1x16x128xbf16>
      tpu.vector_store %arg8[%c0_19, %c0_20, %c0_21], %30 {strides = array<i32>} : memref<1x16x128xbf16, #tpu.memory_space<vmem>>, vector<1x16x128xbf16>,
    } else {
    }
    return
  }
  func.func @transform_0(%arg0: i32, %arg1: i32, %arg2: i32, %arg3: i32) -> (i32, i32, i32) {
    %c0_i32 = arith.constant 0 : i32
    return %arg0, %arg1, %arg3 : i32, i32, i32
  }
  func.func @transform_1(%arg0: i32, %arg1: i32, %arg2: i32, %arg3: i32) -> (i32, i32) {
    %c0_i32 = arith.constant 0 : i32
    return %arg3, %arg2 : i32, i32
  }
  func.func @transform_2(%arg0: i32, %arg1: i32, %arg2: i32, %arg3: i32) -> (i32, i32) {
    %c0_i32 = arith.constant 0 : i32
    %c0_i32_0 = arith.constant 0 : i32
    return %c0_i32, %arg2 : i32, i32
  }
  func.func @transform_3(%arg0: i32, %arg1: i32, %arg2: i32, %arg3: i32) -> (i32, i32, i32) {
    %c0_i32 = arith.constant 0 : i32
    %c0_i32_0 = arith.constant 0 : i32
    return %arg0, %c0_i32, %arg3 : i32, i32, i32
  }
  func.func @transform_4(%arg0: i32, %arg1: i32, %arg2: i32, %arg3: i32) -> (i32, i32, i32) {
    %c0_i32 = arith.constant 0 : i32
    return %arg0, %arg1, %arg2 : i32, i32, i32
  }
}

module attributes {stable_mosaic.version = 11 : i64} {
  func.func @_dw_kernel(%arg0: i32, %arg1: memref<1x5x2x5x256xbf16, #tpu.memory_space<vmem>>, %arg2: memref<9x128xbf16, #tpu.memory_space<vmem>>, %arg3: memref<1x128xf32, #tpu.memory_space<vmem>>, %arg4: memref<1x4x4x128xbf16, #tpu.memory_space<vmem>>, %arg5: memref<1x1x128xf32, #tpu.memory_space<vmem>>) attributes {dimension_semantics = [#tpu.dimension_semantics<parallel>], iteration_bounds = array<i64: 2>, scalar_prefetch = 0 : i64, scratch_operands = 0 : i64, tpu.core_type = #tpu.core_type<tc>, window_params = [{transform_indices = @transform_0, window_bounds = array<i64: 1, 5, 2, 5, 256>}, {pipeline_mode = #tpu.pipeline_mode<synchronous>, transform_indices = @transform_1, window_bounds = array<i64: 9, 128>}, {pipeline_mode = #tpu.pipeline_mode<synchronous>, transform_indices = @transform_2, window_bounds = array<i64: 1, 128>}, {transform_indices = @transform_3, window_bounds = array<i64: 1, 4, 4, 128>}, {transform_indices = @transform_4, window_bounds = array<i64: 1, 1, 128>}]} {
    %cst = arith.constant 0.000000e+00 : f32
    %0 = vector.broadcast %cst : f32 to vector<4x4x128xf32>
    %c0 = arith.constant 0 : index
    %c0_0 = arith.constant 0 : index
    %1 = vector.load %arg2[%c0, %c0_0] : memref<9x128xbf16, #tpu.memory_space<vmem>>, vector<1x128xbf16>
    %c0_1 = arith.constant 0 : index
    %c0_2 = arith.constant 0 : index
    %c0_3 = arith.constant 0 : index
    %c0_4 = arith.constant 0 : index
    %c0_5 = arith.constant 0 : index
    %2 = vector.load %arg1[%c0_1, %c0_2, %c0_3, %c0_4, %c0_5] : memref<1x5x2x5x256xbf16, #tpu.memory_space<vmem>>, vector<1x4x1x4x128xbf16>
    %3 = vector.shape_cast %2 : vector<1x4x1x4x128xbf16> to vector<4x4x128xbf16>
    %4 = vector.shape_cast %1 : vector<1x128xbf16> to vector<1x1x128xbf16>
    %5 = vector.broadcast %4 : vector<1x1x128xbf16> to vector<4x4x128xbf16>
    %6 = arith.mulf %3, %5 : vector<4x4x128xbf16>
    %7 = arith.extf %6 : vector<4x4x128xbf16> to vector<4x4x128xf32>
    %8 = arith.addf %0, %7 : vector<4x4x128xf32>
    %c1 = arith.constant 1 : index
    %c0_6 = arith.constant 0 : index
    %9 = vector.load %arg2[%c1, %c0_6] : memref<9x128xbf16, #tpu.memory_space<vmem>>, vector<1x128xbf16>
    %c0_7 = arith.constant 0 : index
    %c0_8 = arith.constant 0 : index
    %c0_9 = arith.constant 0 : index
    %c0_10 = arith.constant 0 : index
    %c128 = arith.constant 128 : index
    %10 = vector.load %arg1[%c0_7, %c0_8, %c0_9, %c0_10, %c128] : memref<1x5x2x5x256xbf16, #tpu.memory_space<vmem>>, vector<1x4x1x4x128xbf16>
    %11 = vector.shape_cast %10 : vector<1x4x1x4x128xbf16> to vector<4x4x128xbf16>
    %12 = vector.shape_cast %9 : vector<1x128xbf16> to vector<1x1x128xbf16>
    %13 = vector.broadcast %12 : vector<1x1x128xbf16> to vector<4x4x128xbf16>
    %14 = arith.mulf %11, %13 : vector<4x4x128xbf16>
    %15 = arith.extf %14 : vector<4x4x128xbf16> to vector<4x4x128xf32>
    %16 = arith.addf %8, %15 : vector<4x4x128xf32>
    %c2 = arith.constant 2 : index
    %c0_11 = arith.constant 0 : index
    %17 = vector.load %arg2[%c2, %c0_11] : memref<9x128xbf16, #tpu.memory_space<vmem>>, vector<1x128xbf16>
    %c0_12 = arith.constant 0 : index
    %c0_13 = arith.constant 0 : index
    %c0_14 = arith.constant 0 : index
    %c1_15 = arith.constant 1 : index
    %c0_16 = arith.constant 0 : index
    %18 = vector.load %arg1[%c0_12, %c0_13, %c0_14, %c1_15, %c0_16] : memref<1x5x2x5x256xbf16, #tpu.memory_space<vmem>>, vector<1x4x1x4x128xbf16>
    %19 = vector.shape_cast %18 : vector<1x4x1x4x128xbf16> to vector<4x4x128xbf16>
    %20 = vector.shape_cast %17 : vector<1x128xbf16> to vector<1x1x128xbf16>
    %21 = vector.broadcast %20 : vector<1x1x128xbf16> to vector<4x4x128xbf16>
    %22 = arith.mulf %19, %21 : vector<4x4x128xbf16>
    %23 = arith.extf %22 : vector<4x4x128xbf16> to vector<4x4x128xf32>
    %24 = arith.addf %16, %23 : vector<4x4x128xf32>
    %c3 = arith.constant 3 : index
    %c0_17 = arith.constant 0 : index
    %25 = vector.load %arg2[%c3, %c0_17] : memref<9x128xbf16, #tpu.memory_space<vmem>>, vector<1x128xbf16>
    %c0_18 = arith.constant 0 : index
    %c0_19 = arith.constant 0 : index
    %c1_20 = arith.constant 1 : index
    %c0_21 = arith.constant 0 : index
    %c0_22 = arith.constant 0 : index
    %26 = vector.load %arg1[%c0_18, %c0_19, %c1_20, %c0_21, %c0_22] : memref<1x5x2x5x256xbf16, #tpu.memory_space<vmem>>, vector<1x4x1x4x128xbf16>
    %27 = vector.shape_cast %26 : vector<1x4x1x4x128xbf16> to vector<4x4x128xbf16>
    %28 = vector.shape_cast %25 : vector<1x128xbf16> to vector<1x1x128xbf16>
    %29 = vector.broadcast %28 : vector<1x1x128xbf16> to vector<4x4x128xbf16>
    %30 = arith.mulf %27, %29 : vector<4x4x128xbf16>
    %31 = arith.extf %30 : vector<4x4x128xbf16> to vector<4x4x128xf32>
    %32 = arith.addf %24, %31 : vector<4x4x128xf32>
    %c4 = arith.constant 4 : index
    %c0_23 = arith.constant 0 : index
    %33 = vector.load %arg2[%c4, %c0_23] : memref<9x128xbf16, #tpu.memory_space<vmem>>, vector<1x128xbf16>
    %c0_24 = arith.constant 0 : index
    %c0_25 = arith.constant 0 : index
    %c1_26 = arith.constant 1 : index
    %c0_27 = arith.constant 0 : index
    %c128_28 = arith.constant 128 : index
    %34 = vector.load %arg1[%c0_24, %c0_25, %c1_26, %c0_27, %c128_28] : memref<1x5x2x5x256xbf16, #tpu.memory_space<vmem>>, vector<1x4x1x4x128xbf16>
    %35 = vector.shape_cast %34 : vector<1x4x1x4x128xbf16> to vector<4x4x128xbf16>
    %36 = vector.shape_cast %33 : vector<1x128xbf16> to vector<1x1x128xbf16>
    %37 = vector.broadcast %36 : vector<1x1x128xbf16> to vector<4x4x128xbf16>
    %38 = arith.mulf %35, %37 : vector<4x4x128xbf16>
    %39 = arith.extf %38 : vector<4x4x128xbf16> to vector<4x4x128xf32>
    %40 = arith.addf %32, %39 : vector<4x4x128xf32>
    %c5 = arith.constant 5 : index
    %c0_29 = arith.constant 0 : index
    %41 = vector.load %arg2[%c5, %c0_29] : memref<9x128xbf16, #tpu.memory_space<vmem>>, vector<1x128xbf16>
    %c0_30 = arith.constant 0 : index
    %c0_31 = arith.constant 0 : index
    %c1_32 = arith.constant 1 : index
    %c1_33 = arith.constant 1 : index
    %c0_34 = arith.constant 0 : index
    %42 = vector.load %arg1[%c0_30, %c0_31, %c1_32, %c1_33, %c0_34] : memref<1x5x2x5x256xbf16, #tpu.memory_space<vmem>>, vector<1x4x1x4x128xbf16>
    %43 = vector.shape_cast %42 : vector<1x4x1x4x128xbf16> to vector<4x4x128xbf16>
    %44 = vector.shape_cast %41 : vector<1x128xbf16> to vector<1x1x128xbf16>
    %45 = vector.broadcast %44 : vector<1x1x128xbf16> to vector<4x4x128xbf16>
    %46 = arith.mulf %43, %45 : vector<4x4x128xbf16>
    %47 = arith.extf %46 : vector<4x4x128xbf16> to vector<4x4x128xf32>
    %48 = arith.addf %40, %47 : vector<4x4x128xf32>
    %c6 = arith.constant 6 : index
    %c0_35 = arith.constant 0 : index
    %49 = vector.load %arg2[%c6, %c0_35] : memref<9x128xbf16, #tpu.memory_space<vmem>>, vector<1x128xbf16>
    %c0_36 = arith.constant 0 : index
    %c1_37 = arith.constant 1 : index
    %c0_38 = arith.constant 0 : index
    %c0_39 = arith.constant 0 : index
    %c0_40 = arith.constant 0 : index
    %50 = vector.load %arg1[%c0_36, %c1_37, %c0_38, %c0_39, %c0_40] : memref<1x5x2x5x256xbf16, #tpu.memory_space<vmem>>, vector<1x4x1x4x128xbf16>
    %51 = vector.shape_cast %50 : vector<1x4x1x4x128xbf16> to vector<4x4x128xbf16>
    %52 = vector.shape_cast %49 : vector<1x128xbf16> to vector<1x1x128xbf16>
    %53 = vector.broadcast %52 : vector<1x1x128xbf16> to vector<4x4x128xbf16>
    %54 = arith.mulf %51, %53 : vector<4x4x128xbf16>
    %55 = arith.extf %54 : vector<4x4x128xbf16> to vector<4x4x128xf32>
    %56 = arith.addf %48, %55 : vector<4x4x128xf32>
    %c7 = arith.constant 7 : index
    %c0_41 = arith.constant 0 : index
    %57 = vector.load %arg2[%c7, %c0_41] : memref<9x128xbf16, #tpu.memory_space<vmem>>, vector<1x128xbf16>
    %c0_42 = arith.constant 0 : index
    %c1_43 = arith.constant 1 : index
    %c0_44 = arith.constant 0 : index
    %c0_45 = arith.constant 0 : index
    %c128_46 = arith.constant 128 : index
    %58 = vector.load %arg1[%c0_42, %c1_43, %c0_44, %c0_45, %c128_46] : memref<1x5x2x5x256xbf16, #tpu.memory_space<vmem>>, vector<1x4x1x4x128xbf16>
    %59 = vector.shape_cast %58 : vector<1x4x1x4x128xbf16> to vector<4x4x128xbf16>
    %60 = vector.shape_cast %57 : vector<1x128xbf16> to vector<1x1x128xbf16>
    %61 = vector.broadcast %60 : vector<1x1x128xbf16> to vector<4x4x128xbf16>
    %62 = arith.mulf %59, %61 : vector<4x4x128xbf16>
    %63 = arith.extf %62 : vector<4x4x128xbf16> to vector<4x4x128xf32>
    %64 = arith.addf %56, %63 : vector<4x4x128xf32>
    %c8 = arith.constant 8 : index
    %c0_47 = arith.constant 0 : index
    %65 = vector.load %arg2[%c8, %c0_47] : memref<9x128xbf16, #tpu.memory_space<vmem>>, vector<1x128xbf16>
    %c0_48 = arith.constant 0 : index
    %c1_49 = arith.constant 1 : index
    %c0_50 = arith.constant 0 : index
    %c1_51 = arith.constant 1 : index
    %c0_52 = arith.constant 0 : index
    %66 = vector.load %arg1[%c0_48, %c1_49, %c0_50, %c1_51, %c0_52] : memref<1x5x2x5x256xbf16, #tpu.memory_space<vmem>>, vector<1x4x1x4x128xbf16>
    %67 = vector.shape_cast %66 : vector<1x4x1x4x128xbf16> to vector<4x4x128xbf16>
    %68 = vector.shape_cast %65 : vector<1x128xbf16> to vector<1x1x128xbf16>
    %69 = vector.broadcast %68 : vector<1x1x128xbf16> to vector<4x4x128xbf16>
    %70 = arith.mulf %67, %69 : vector<4x4x128xbf16>
    %71 = arith.extf %70 : vector<4x4x128xbf16> to vector<4x4x128xf32>
    %72 = arith.addf %64, %71 : vector<4x4x128xf32>
    %c0_53 = arith.constant 0 : index
    %c0_54 = arith.constant 0 : index
    %73 = vector.load %arg3[%c0_53, %c0_54] : memref<1x128xf32, #tpu.memory_space<vmem>>, vector<1x128xf32>
    %74 = vector.shape_cast %73 : vector<1x128xf32> to vector<1x1x128xf32>
    %75 = vector.broadcast %74 : vector<1x1x128xf32> to vector<4x4x128xf32>
    %76 = arith.addf %72, %75 : vector<4x4x128xf32>
    %77 = arith.negf %76 : vector<4x4x128xf32>
    %78 = math.exp %77 : vector<4x4x128xf32>
    %cst_55 = arith.constant 1.000000e+00 : f32
    %79 = vector.broadcast %cst_55 : f32 to vector<4x4x128xf32>
    %80 = arith.addf %79, %78 : vector<4x4x128xf32>
    %81 = arith.divf %79, %80 : vector<4x4x128xf32>
    %82 = arith.mulf %76, %81 : vector<4x4x128xf32>
    %83 = arith.truncf %82 : vector<4x4x128xf32> to vector<4x4x128xbf16>
    %c0_56 = arith.constant 0 : index
    %c0_57 = arith.constant 0 : index
    %c0_58 = arith.constant 0 : index
    %c0_59 = arith.constant 0 : index
    %84 = vector.load %arg4[%c0_56, %c0_57, %c0_58, %c0_59] : memref<1x4x4x128xbf16, #tpu.memory_space<vmem>>, vector<1x4x4x128xbf16>
    %85 = vector.shape_cast %84 : vector<1x4x4x128xbf16> to vector<4x4x128xbf16>
    %86 = vector.shape_cast %83 : vector<4x4x128xbf16> to vector<1x4x4x128xbf16>
    tpu.vector_store %arg4[%c0_56, %c0_57, %c0_58, %c0_59], %86 {strides = array<i32>} : memref<1x4x4x128xbf16, #tpu.memory_space<vmem>>, vector<1x4x4x128xbf16>,
    %cst_60 = arith.constant dense<0.000000e+00> : vector<128xf32>
    %87 = vector.multi_reduction <add>, %82, %cst_60 [0, 1] : vector<4x4x128xf32> to vector<128xf32>
    %cst_61 = arith.constant 6.250000e-02 : f32
    %88 = vector.broadcast %cst_61 : f32 to vector<128xf32>
    %89 = arith.mulf %87, %88 : vector<128xf32>
    %90 = vector.shape_cast %89 : vector<128xf32> to vector<1x128xf32>
    %c0_62 = arith.constant 0 : index
    %c0_63 = arith.constant 0 : index
    %c0_64 = arith.constant 0 : index
    %91 = vector.load %arg5[%c0_62, %c0_63, %c0_64] : memref<1x1x128xf32, #tpu.memory_space<vmem>>, vector<1x1x128xf32>
    %92 = vector.shape_cast %91 : vector<1x1x128xf32> to vector<1x128xf32>
    %93 = vector.shape_cast %90 : vector<1x128xf32> to vector<1x1x128xf32>
    tpu.vector_store %arg5[%c0_62, %c0_63, %c0_64], %93 {strides = array<i32>} : memref<1x1x128xf32, #tpu.memory_space<vmem>>, vector<1x1x128xf32>,
    return
  }
  func.func @transform_0(%arg0: i32) -> (i32, i32, i32, i32, i32) {
    %c0_i32 = arith.constant 0 : i32
    %c0_i32_0 = arith.constant 0 : i32
    %c0_i32_1 = arith.constant 0 : i32
    %c0_i32_2 = arith.constant 0 : i32
    %c0_i32_3 = arith.constant 0 : i32
    return %arg0, %c0_i32, %c0_i32_0, %c0_i32_1, %c0_i32_2 : i32, i32, i32, i32, i32
  }
  func.func @transform_1(%arg0: i32) -> (i32, i32) {
    %c0_i32 = arith.constant 0 : i32
    %c0_i32_0 = arith.constant 0 : i32
    %c0_i32_1 = arith.constant 0 : i32
    return %c0_i32, %c0_i32_0 : i32, i32
  }
  func.func @transform_2(%arg0: i32) -> (i32, i32) {
    %c0_i32 = arith.constant 0 : i32
    %c0_i32_0 = arith.constant 0 : i32
    %c0_i32_1 = arith.constant 0 : i32
    return %c0_i32, %c0_i32_0 : i32, i32
  }
  func.func @transform_3(%arg0: i32) -> (i32, i32, i32, i32) {
    %c0_i32 = arith.constant 0 : i32
    %c0_i32_0 = arith.constant 0 : i32
    %c0_i32_1 = arith.constant 0 : i32
    %c0_i32_2 = arith.constant 0 : i32
    return %arg0, %c0_i32, %c0_i32_0, %c0_i32_1 : i32, i32, i32, i32
  }
  func.func @transform_4(%arg0: i32) -> (i32, i32, i32) {
    %c0_i32 = arith.constant 0 : i32
    %c0_i32_0 = arith.constant 0 : i32
    %c0_i32_1 = arith.constant 0 : i32
    return %arg0, %c0_i32, %c0_i32_0 : i32, i32, i32
  }
}

module attributes {stable_mosaic.version = 11 : i64} {
  func.func @_mm_kernel(%arg0: i32, %arg1: i32, %arg2: i32, %arg3: i32, %arg4: memref<1x32x128xbf16, #tpu.memory_space<vmem>>, %arg5: memref<128x128xbf16, #tpu.memory_space<vmem>>, %arg6: memref<1x128xf32, #tpu.memory_space<vmem>>, %arg7: memref<1x32x128xbf16, #tpu.memory_space<vmem>>, %arg8: memref<32x128xf32, #tpu.memory_space<vmem>>) attributes {dimension_semantics = [#tpu.dimension_semantics<parallel>, #tpu.dimension_semantics<parallel>, #tpu.dimension_semantics<parallel>, #tpu.dimension_semantics<arbitrary>], iteration_bounds = array<i64: 1, 1, 1, 1>, scalar_prefetch = 0 : i64, scratch_operands = 1 : i64, tpu.core_type = #tpu.core_type<tc>, window_params = [{transform_indices = @transform_0, window_bounds = array<i64: 1, 32, 128>}, {transform_indices = @transform_1, window_bounds = array<i64: 128, 128>}, {transform_indices = @transform_2, window_bounds = array<i64: 1, 128>}, {transform_indices = @transform_3, window_bounds = array<i64: 1, 32, 128>}]} {
    %c0_i32 = arith.constant 0 : i32
    %0 = arith.cmpi eq, %arg3, %c0_i32 : i32
    %1 = arith.extui %0 : i1 to i32
    %c0_i32_0 = arith.constant 0 : i32
    %2 = arith.cmpi ne, %1, %c0_i32_0 : i32
    scf.if %2 {
      %cst_11 = arith.constant 0.000000e+00 : f32
      %13 = vector.broadcast %cst_11 : f32 to vector<32x128xf32>
      %c0_12 = arith.constant 0 : index
      %c0_13 = arith.constant 0 : index
      %14 = vector.load %arg8[%c0_12, %c0_13] : memref<32x128xf32, #tpu.memory_space<vmem>>, vector<32x128xf32>
      tpu.vector_store %arg8[%c0_12, %c0_13], %13 {strides = array<i32>} : memref<32x128xf32, #tpu.memory_space<vmem>>, vector<32x128xf32>,
    } else {
    }
    %c0 = arith.constant 0 : index
    %c0_1 = arith.constant 0 : index
    %c0_2 = arith.constant 0 : index
    %3 = vector.load %arg4[%c0, %c0_1, %c0_2] : memref<1x32x128xbf16, #tpu.memory_space<vmem>>, vector<1x32x128xbf16>
    %4 = vector.shape_cast %3 : vector<1x32x128xbf16> to vector<32x128xbf16>
    %c0_3 = arith.constant 0 : index
    %c0_4 = arith.constant 0 : index
    %5 = vector.load %arg8[%c0_3, %c0_4] : memref<32x128xf32, #tpu.memory_space<vmem>>, vector<32x128xf32>
    %c0_5 = arith.constant 0 : index
    %c0_6 = arith.constant 0 : index
    %6 = vector.load %arg5[%c0_5, %c0_6] : memref<128x128xbf16, #tpu.memory_space<vmem>>, vector<128x128xbf16>
    %cst = arith.constant dense<0.000000e+00> : vector<32x128xf32>
    %7 = tpu.matmul %4, %6, %cst {dimension_numbers = #tpu.dot_dimension_numbers<[1], [0], [0], [1], [0, 0, 1, 1], [], []>} : vector<32x128xbf16>, vector<128x128xbf16>, vector<32x128xf32> -> vector<32x128xf32>
    %8 = arith.addf %5, %7 : vector<32x128xf32>
    %c0_7 = arith.constant 0 : index
    %c0_8 = arith.constant 0 : index
    %9 = vector.load %arg8[%c0_7, %c0_8] : memref<32x128xf32, #tpu.memory_space<vmem>>, vector<32x128xf32>
    tpu.vector_store %arg8[%c0_7, %c0_8], %8 {strides = array<i32>} : memref<32x128xf32, #tpu.memory_space<vmem>>, vector<32x128xf32>,
    %c0_i32_9 = arith.constant 0 : i32
    %10 = arith.cmpi eq, %arg3, %c0_i32_9 : i32
    %11 = arith.extui %10 : i1 to i32
    %c0_i32_10 = arith.constant 0 : i32
    %12 = arith.cmpi ne, %11, %c0_i32_10 : i32
    scf.if %12 {
      %c0_11 = arith.constant 0 : index
      %c0_12 = arith.constant 0 : index
      %13 = vector.load %arg8[%c0_11, %c0_12] : memref<32x128xf32, #tpu.memory_space<vmem>>, vector<32x128xf32>
      %c0_13 = arith.constant 0 : index
      %c0_14 = arith.constant 0 : index
      %14 = vector.load %arg6[%c0_13, %c0_14] : memref<1x128xf32, #tpu.memory_space<vmem>>, vector<1x128xf32>
      %15 = vector.broadcast %14 : vector<1x128xf32> to vector<32x128xf32>
      %16 = arith.addf %13, %15 : vector<32x128xf32>
      %17 = arith.negf %16 : vector<32x128xf32>
      %18 = math.exp %17 : vector<32x128xf32>
      %cst_15 = arith.constant 1.000000e+00 : f32
      %19 = vector.broadcast %cst_15 : f32 to vector<32x128xf32>
      %20 = arith.addf %19, %18 : vector<32x128xf32>
      %21 = arith.divf %19, %20 : vector<32x128xf32>
      %22 = arith.mulf %16, %21 : vector<32x128xf32>
      %23 = arith.truncf %22 : vector<32x128xf32> to vector<32x128xbf16>
      %c0_16 = arith.constant 0 : index
      %c0_17 = arith.constant 0 : index
      %c0_18 = arith.constant 0 : index
      %24 = vector.load %arg7[%c0_16, %c0_17, %c0_18] : memref<1x32x128xbf16, #tpu.memory_space<vmem>>, vector<1x32x128xbf16>
      %25 = vector.shape_cast %24 : vector<1x32x128xbf16> to vector<32x128xbf16>
      %26 = vector.shape_cast %23 : vector<32x128xbf16> to vector<1x32x128xbf16>
      tpu.vector_store %arg7[%c0_16, %c0_17, %c0_18], %26 {strides = array<i32>} : memref<1x32x128xbf16, #tpu.memory_space<vmem>>, vector<1x32x128xbf16>,
    } else {
    }
    return
  }
  func.func @transform_0(%arg0: i32, %arg1: i32, %arg2: i32, %arg3: i32) -> (i32, i32, i32) {
    %c0_i32 = arith.constant 0 : i32
    return %arg0, %arg1, %arg3 : i32, i32, i32
  }
  func.func @transform_1(%arg0: i32, %arg1: i32, %arg2: i32, %arg3: i32) -> (i32, i32) {
    %c0_i32 = arith.constant 0 : i32
    return %arg3, %arg2 : i32, i32
  }
  func.func @transform_2(%arg0: i32, %arg1: i32, %arg2: i32, %arg3: i32) -> (i32, i32) {
    %c0_i32 = arith.constant 0 : i32
    %c0_i32_0 = arith.constant 0 : i32
    return %c0_i32, %arg2 : i32, i32
  }
  func.func @transform_3(%arg0: i32, %arg1: i32, %arg2: i32, %arg3: i32) -> (i32, i32, i32) {
    %c0_i32 = arith.constant 0 : i32
    return %arg0, %arg1, %arg2 : i32, i32, i32
  }
}

module attributes {stable_mosaic.version = 11 : i64} {
  func.func @_mm_kernel(%arg0: i32, %arg1: i32, %arg2: i32, %arg3: i32, %arg4: memref<1x16x128xbf16, #tpu.memory_space<vmem>>, %arg5: memref<128x128xbf16, #tpu.memory_space<vmem>>, %arg6: memref<1x128xf32, #tpu.memory_space<vmem>>, %arg7: memref<1x1x128xf32, #tpu.memory_space<vmem>>, %arg8: memref<1x16x128xbf16, #tpu.memory_space<vmem>>, %arg9: memref<1x16x128xbf16, #tpu.memory_space<vmem>>, %arg10: memref<16x128xf32, #tpu.memory_space<vmem>>) attributes {dimension_semantics = [#tpu.dimension_semantics<parallel>, #tpu.dimension_semantics<parallel>, #tpu.dimension_semantics<parallel>, #tpu.dimension_semantics<arbitrary>], iteration_bounds = array<i64: 2, 1, 1, 1>, scalar_prefetch = 0 : i64, scratch_operands = 1 : i64, tpu.core_type = #tpu.core_type<tc>, window_params = [{transform_indices = @transform_0, window_bounds = array<i64: 1, 16, 128>}, {transform_indices = @transform_1, window_bounds = array<i64: 128, 128>}, {transform_indices = @transform_2, window_bounds = array<i64: 1, 128>}, {transform_indices = @transform_3, window_bounds = array<i64: 1, 1, 128>}, {transform_indices = @transform_4, window_bounds = array<i64: 1, 16, 128>}, {transform_indices = @transform_5, window_bounds = array<i64: 1, 16, 128>}]} {
    %c0_i32 = arith.constant 0 : i32
    %0 = arith.cmpi eq, %arg3, %c0_i32 : i32
    %1 = arith.extui %0 : i1 to i32
    %c0_i32_0 = arith.constant 0 : i32
    %2 = arith.cmpi ne, %1, %c0_i32_0 : i32
    scf.if %2 {
      %cst_15 = arith.constant 0.000000e+00 : f32
      %23 = vector.broadcast %cst_15 : f32 to vector<16x128xf32>
      %c0_16 = arith.constant 0 : index
      %c0_17 = arith.constant 0 : index
      %24 = vector.load %arg10[%c0_16, %c0_17] : memref<16x128xf32, #tpu.memory_space<vmem>>, vector<16x128xf32>
      tpu.vector_store %arg10[%c0_16, %c0_17], %23 {strides = array<i32>} : memref<16x128xf32, #tpu.memory_space<vmem>>, vector<16x128xf32>,
    } else {
    }
    %c0 = arith.constant 0 : index
    %c0_1 = arith.constant 0 : index
    %c0_2 = arith.constant 0 : index
    %3 = vector.load %arg4[%c0, %c0_1, %c0_2] : memref<1x16x128xbf16, #tpu.memory_space<vmem>>, vector<1x16x128xbf16>
    %4 = vector.shape_cast %3 : vector<1x16x128xbf16> to vector<16x128xbf16>
    %c0_3 = arith.constant 0 : index
    %c0_4 = arith.constant 0 : index
    %c0_5 = arith.constant 0 : index
    %5 = vector.load %arg7[%c0_3, %c0_4, %c0_5] : memref<1x1x128xf32, #tpu.memory_space<vmem>>, vector<1x1x128xf32>
    %6 = vector.shape_cast %5 : vector<1x1x128xf32> to vector<1x128xf32>
    %7 = arith.negf %6 : vector<1x128xf32>
    %8 = math.exp %7 : vector<1x128xf32>
    %cst = arith.constant 1.000000e+00 : f32
    %9 = vector.broadcast %cst : f32 to vector<1x128xf32>
    %10 = arith.addf %9, %8 : vector<1x128xf32>
    %11 = arith.divf %9, %10 : vector<1x128xf32>
    %12 = arith.truncf %11 : vector<1x128xf32> to vector<1x128xbf16>
    %13 = vector.broadcast %12 : vector<1x128xbf16> to vector<16x128xbf16>
    %14 = arith.mulf %4, %13 : vector<16x128xbf16>
    %c0_6 = arith.constant 0 : index
    %c0_7 = arith.constant 0 : index
    %15 = vector.load %arg10[%c0_6, %c0_7] : memref<16x128xf32, #tpu.memory_space<vmem>>, vector<16x128xf32>
    %c0_8 = arith.constant 0 : index
    %c0_9 = arith.constant 0 : index
    %16 = vector.load %arg5[%c0_8, %c0_9] : memref<128x128xbf16, #tpu.memory_space<vmem>>, vector<128x128xbf16>
    %cst_10 = arith.constant dense<0.000000e+00> : vector<16x128xf32>
    %17 = tpu.matmul %14, %16, %cst_10 {dimension_numbers = #tpu.dot_dimension_numbers<[1], [0], [0], [1], [0, 0, 1, 1], [], []>} : vector<16x128xbf16>, vector<128x128xbf16>, vector<16x128xf32> -> vector<16x128xf32>
    %18 = arith.addf %15, %17 : vector<16x128xf32>
    %c0_11 = arith.constant 0 : index
    %c0_12 = arith.constant 0 : index
    %19 = vector.load %arg10[%c0_11, %c0_12] : memref<16x128xf32, #tpu.memory_space<vmem>>, vector<16x128xf32>
    tpu.vector_store %arg10[%c0_11, %c0_12], %18 {strides = array<i32>} : memref<16x128xf32, #tpu.memory_space<vmem>>, vector<16x128xf32>,
    %c0_i32_13 = arith.constant 0 : i32
    %20 = arith.cmpi eq, %arg3, %c0_i32_13 : i32
    %21 = arith.extui %20 : i1 to i32
    %c0_i32_14 = arith.constant 0 : i32
    %22 = arith.cmpi ne, %21, %c0_i32_14 : i32
    scf.if %22 {
      %c0_15 = arith.constant 0 : index
      %c0_16 = arith.constant 0 : index
      %23 = vector.load %arg10[%c0_15, %c0_16] : memref<16x128xf32, #tpu.memory_space<vmem>>, vector<16x128xf32>
      %c0_17 = arith.constant 0 : index
      %c0_18 = arith.constant 0 : index
      %24 = vector.load %arg6[%c0_17, %c0_18] : memref<1x128xf32, #tpu.memory_space<vmem>>, vector<1x128xf32>
      %25 = vector.broadcast %24 : vector<1x128xf32> to vector<16x128xf32>
      %26 = arith.addf %23, %25 : vector<16x128xf32>
      %c0_19 = arith.constant 0 : index
      %c0_20 = arith.constant 0 : index
      %c0_21 = arith.constant 0 : index
      %27 = vector.load %arg8[%c0_19, %c0_20, %c0_21] : memref<1x16x128xbf16, #tpu.memory_space<vmem>>, vector<1x16x128xbf16>
      %28 = vector.shape_cast %27 : vector<1x16x128xbf16> to vector<16x128xbf16>
      %29 = arith.extf %28 : vector<16x128xbf16> to vector<16x128xf32>
      %30 = arith.addf %26, %29 : vector<16x128xf32>
      %31 = arith.truncf %30 : vector<16x128xf32> to vector<16x128xbf16>
      %c0_22 = arith.constant 0 : index
      %c0_23 = arith.constant 0 : index
      %c0_24 = arith.constant 0 : index
      %32 = vector.load %arg9[%c0_22, %c0_23, %c0_24] : memref<1x16x128xbf16, #tpu.memory_space<vmem>>, vector<1x16x128xbf16>
      %33 = vector.shape_cast %32 : vector<1x16x128xbf16> to vector<16x128xbf16>
      %34 = vector.shape_cast %31 : vector<16x128xbf16> to vector<1x16x128xbf16>
      tpu.vector_store %arg9[%c0_22, %c0_23, %c0_24], %34 {strides = array<i32>} : memref<1x16x128xbf16, #tpu.memory_space<vmem>>, vector<1x16x128xbf16>,
    } else {
    }
    return
  }
  func.func @transform_0(%arg0: i32, %arg1: i32, %arg2: i32, %arg3: i32) -> (i32, i32, i32) {
    %c0_i32 = arith.constant 0 : i32
    return %arg0, %arg1, %arg3 : i32, i32, i32
  }
  func.func @transform_1(%arg0: i32, %arg1: i32, %arg2: i32, %arg3: i32) -> (i32, i32) {
    %c0_i32 = arith.constant 0 : i32
    return %arg3, %arg2 : i32, i32
  }
  func.func @transform_2(%arg0: i32, %arg1: i32, %arg2: i32, %arg3: i32) -> (i32, i32) {
    %c0_i32 = arith.constant 0 : i32
    %c0_i32_0 = arith.constant 0 : i32
    return %c0_i32, %arg2 : i32, i32
  }
  func.func @transform_3(%arg0: i32, %arg1: i32, %arg2: i32, %arg3: i32) -> (i32, i32, i32) {
    %c0_i32 = arith.constant 0 : i32
    %c0_i32_0 = arith.constant 0 : i32
    return %arg0, %c0_i32, %arg3 : i32, i32, i32
  }
  func.func @transform_4(%arg0: i32, %arg1: i32, %arg2: i32, %arg3: i32) -> (i32, i32, i32) {
    %c0_i32 = arith.constant 0 : i32
    return %arg0, %arg1, %arg2 : i32, i32, i32
  }
  func.func @transform_5(%arg0: i32, %arg1: i32, %arg2: i32, %arg3: i32) -> (i32, i32, i32) {
    %c0_i32 = arith.constant 0 : i32
    return %arg0, %arg1, %arg2 : i32, i32, i32
  }
}

module attributes {stable_mosaic.version = 11 : i64} {
  func.func @_dw_kernel(%arg0: i32, %arg1: memref<1x6x1x6x128xbf16, #tpu.memory_space<vmem>>, %arg2: memref<9x128xbf16, #tpu.memory_space<vmem>>, %arg3: memref<1x128xf32, #tpu.memory_space<vmem>>, %arg4: memref<1x4x4x128xbf16, #tpu.memory_space<vmem>>, %arg5: memref<1x1x128xf32, #tpu.memory_space<vmem>>) attributes {dimension_semantics = [#tpu.dimension_semantics<parallel>], iteration_bounds = array<i64: 2>, scalar_prefetch = 0 : i64, scratch_operands = 0 : i64, tpu.core_type = #tpu.core_type<tc>, window_params = [{transform_indices = @transform_0, window_bounds = array<i64: 1, 6, 1, 6, 128>}, {pipeline_mode = #tpu.pipeline_mode<synchronous>, transform_indices = @transform_1, window_bounds = array<i64: 9, 128>}, {pipeline_mode = #tpu.pipeline_mode<synchronous>, transform_indices = @transform_2, window_bounds = array<i64: 1, 128>}, {transform_indices = @transform_3, window_bounds = array<i64: 1, 4, 4, 128>}, {transform_indices = @transform_4, window_bounds = array<i64: 1, 1, 128>}]} {
    %cst = arith.constant 0.000000e+00 : f32
    %0 = vector.broadcast %cst : f32 to vector<4x4x128xf32>
    %c0 = arith.constant 0 : index
    %c0_0 = arith.constant 0 : index
    %1 = vector.load %arg2[%c0, %c0_0] : memref<9x128xbf16, #tpu.memory_space<vmem>>, vector<1x128xbf16>
    %c0_1 = arith.constant 0 : index
    %c0_2 = arith.constant 0 : index
    %c0_3 = arith.constant 0 : index
    %c0_4 = arith.constant 0 : index
    %c0_5 = arith.constant 0 : index
    %2 = vector.load %arg1[%c0_1, %c0_2, %c0_3, %c0_4, %c0_5] : memref<1x6x1x6x128xbf16, #tpu.memory_space<vmem>>, vector<1x4x1x4x128xbf16>
    %3 = vector.shape_cast %2 : vector<1x4x1x4x128xbf16> to vector<4x4x128xbf16>
    %4 = vector.shape_cast %1 : vector<1x128xbf16> to vector<1x1x128xbf16>
    %5 = vector.broadcast %4 : vector<1x1x128xbf16> to vector<4x4x128xbf16>
    %6 = arith.mulf %3, %5 : vector<4x4x128xbf16>
    %7 = arith.extf %6 : vector<4x4x128xbf16> to vector<4x4x128xf32>
    %8 = arith.addf %0, %7 : vector<4x4x128xf32>
    %c1 = arith.constant 1 : index
    %c0_6 = arith.constant 0 : index
    %9 = vector.load %arg2[%c1, %c0_6] : memref<9x128xbf16, #tpu.memory_space<vmem>>, vector<1x128xbf16>
    %c0_7 = arith.constant 0 : index
    %c0_8 = arith.constant 0 : index
    %c0_9 = arith.constant 0 : index
    %c1_10 = arith.constant 1 : index
    %c0_11 = arith.constant 0 : index
    %10 = vector.load %arg1[%c0_7, %c0_8, %c0_9, %c1_10, %c0_11] : memref<1x6x1x6x128xbf16, #tpu.memory_space<vmem>>, vector<1x4x1x4x128xbf16>
    %11 = vector.shape_cast %10 : vector<1x4x1x4x128xbf16> to vector<4x4x128xbf16>
    %12 = vector.shape_cast %9 : vector<1x128xbf16> to vector<1x1x128xbf16>
    %13 = vector.broadcast %12 : vector<1x1x128xbf16> to vector<4x4x128xbf16>
    %14 = arith.mulf %11, %13 : vector<4x4x128xbf16>
    %15 = arith.extf %14 : vector<4x4x128xbf16> to vector<4x4x128xf32>
    %16 = arith.addf %8, %15 : vector<4x4x128xf32>
    %c2 = arith.constant 2 : index
    %c0_12 = arith.constant 0 : index
    %17 = vector.load %arg2[%c2, %c0_12] : memref<9x128xbf16, #tpu.memory_space<vmem>>, vector<1x128xbf16>
    %c0_13 = arith.constant 0 : index
    %c0_14 = arith.constant 0 : index
    %c0_15 = arith.constant 0 : index
    %c2_16 = arith.constant 2 : index
    %c0_17 = arith.constant 0 : index
    %18 = vector.load %arg1[%c0_13, %c0_14, %c0_15, %c2_16, %c0_17] : memref<1x6x1x6x128xbf16, #tpu.memory_space<vmem>>, vector<1x4x1x4x128xbf16>
    %19 = vector.shape_cast %18 : vector<1x4x1x4x128xbf16> to vector<4x4x128xbf16>
    %20 = vector.shape_cast %17 : vector<1x128xbf16> to vector<1x1x128xbf16>
    %21 = vector.broadcast %20 : vector<1x1x128xbf16> to vector<4x4x128xbf16>
    %22 = arith.mulf %19, %21 : vector<4x4x128xbf16>
    %23 = arith.extf %22 : vector<4x4x128xbf16> to vector<4x4x128xf32>
    %24 = arith.addf %16, %23 : vector<4x4x128xf32>
    %c3 = arith.constant 3 : index
    %c0_18 = arith.constant 0 : index
    %25 = vector.load %arg2[%c3, %c0_18] : memref<9x128xbf16, #tpu.memory_space<vmem>>, vector<1x128xbf16>
    %c0_19 = arith.constant 0 : index
    %c1_20 = arith.constant 1 : index
    %c0_21 = arith.constant 0 : index
    %c0_22 = arith.constant 0 : index
    %c0_23 = arith.constant 0 : index
    %26 = vector.load %arg1[%c0_19, %c1_20, %c0_21, %c0_22, %c0_23] : memref<1x6x1x6x128xbf16, #tpu.memory_space<vmem>>, vector<1x4x1x4x128xbf16>
    %27 = vector.shape_cast %26 : vector<1x4x1x4x128xbf16> to vector<4x4x128xbf16>
    %28 = vector.shape_cast %25 : vector<1x128xbf16> to vector<1x1x128xbf16>
    %29 = vector.broadcast %28 : vector<1x1x128xbf16> to vector<4x4x128xbf16>
    %30 = arith.mulf %27, %29 : vector<4x4x128xbf16>
    %31 = arith.extf %30 : vector<4x4x128xbf16> to vector<4x4x128xf32>
    %32 = arith.addf %24, %31 : vector<4x4x128xf32>
    %c4 = arith.constant 4 : index
    %c0_24 = arith.constant 0 : index
    %33 = vector.load %arg2[%c4, %c0_24] : memref<9x128xbf16, #tpu.memory_space<vmem>>, vector<1x128xbf16>
    %c0_25 = arith.constant 0 : index
    %c1_26 = arith.constant 1 : index
    %c0_27 = arith.constant 0 : index
    %c1_28 = arith.constant 1 : index
    %c0_29 = arith.constant 0 : index
    %34 = vector.load %arg1[%c0_25, %c1_26, %c0_27, %c1_28, %c0_29] : memref<1x6x1x6x128xbf16, #tpu.memory_space<vmem>>, vector<1x4x1x4x128xbf16>
    %35 = vector.shape_cast %34 : vector<1x4x1x4x128xbf16> to vector<4x4x128xbf16>
    %36 = vector.shape_cast %33 : vector<1x128xbf16> to vector<1x1x128xbf16>
    %37 = vector.broadcast %36 : vector<1x1x128xbf16> to vector<4x4x128xbf16>
    %38 = arith.mulf %35, %37 : vector<4x4x128xbf16>
    %39 = arith.extf %38 : vector<4x4x128xbf16> to vector<4x4x128xf32>
    %40 = arith.addf %32, %39 : vector<4x4x128xf32>
    %c5 = arith.constant 5 : index
    %c0_30 = arith.constant 0 : index
    %41 = vector.load %arg2[%c5, %c0_30] : memref<9x128xbf16, #tpu.memory_space<vmem>>, vector<1x128xbf16>
    %c0_31 = arith.constant 0 : index
    %c1_32 = arith.constant 1 : index
    %c0_33 = arith.constant 0 : index
    %c2_34 = arith.constant 2 : index
    %c0_35 = arith.constant 0 : index
    %42 = vector.load %arg1[%c0_31, %c1_32, %c0_33, %c2_34, %c0_35] : memref<1x6x1x6x128xbf16, #tpu.memory_space<vmem>>, vector<1x4x1x4x128xbf16>
    %43 = vector.shape_cast %42 : vector<1x4x1x4x128xbf16> to vector<4x4x128xbf16>
    %44 = vector.shape_cast %41 : vector<1x128xbf16> to vector<1x1x128xbf16>
    %45 = vector.broadcast %44 : vector<1x1x128xbf16> to vector<4x4x128xbf16>
    %46 = arith.mulf %43, %45 : vector<4x4x128xbf16>
    %47 = arith.extf %46 : vector<4x4x128xbf16> to vector<4x4x128xf32>
    %48 = arith.addf %40, %47 : vector<4x4x128xf32>
    %c6 = arith.constant 6 : index
    %c0_36 = arith.constant 0 : index
    %49 = vector.load %arg2[%c6, %c0_36] : memref<9x128xbf16, #tpu.memory_space<vmem>>, vector<1x128xbf16>
    %c0_37 = arith.constant 0 : index
    %c2_38 = arith.constant 2 : index
    %c0_39 = arith.constant 0 : index
    %c0_40 = arith.constant 0 : index
    %c0_41 = arith.constant 0 : index
    %50 = vector.load %arg1[%c0_37, %c2_38, %c0_39, %c0_40, %c0_41] : memref<1x6x1x6x128xbf16, #tpu.memory_space<vmem>>, vector<1x4x1x4x128xbf16>
    %51 = vector.shape_cast %50 : vector<1x4x1x4x128xbf16> to vector<4x4x128xbf16>
    %52 = vector.shape_cast %49 : vector<1x128xbf16> to vector<1x1x128xbf16>
    %53 = vector.broadcast %52 : vector<1x1x128xbf16> to vector<4x4x128xbf16>
    %54 = arith.mulf %51, %53 : vector<4x4x128xbf16>
    %55 = arith.extf %54 : vector<4x4x128xbf16> to vector<4x4x128xf32>
    %56 = arith.addf %48, %55 : vector<4x4x128xf32>
    %c7 = arith.constant 7 : index
    %c0_42 = arith.constant 0 : index
    %57 = vector.load %arg2[%c7, %c0_42] : memref<9x128xbf16, #tpu.memory_space<vmem>>, vector<1x128xbf16>
    %c0_43 = arith.constant 0 : index
    %c2_44 = arith.constant 2 : index
    %c0_45 = arith.constant 0 : index
    %c1_46 = arith.constant 1 : index
    %c0_47 = arith.constant 0 : index
    %58 = vector.load %arg1[%c0_43, %c2_44, %c0_45, %c1_46, %c0_47] : memref<1x6x1x6x128xbf16, #tpu.memory_space<vmem>>, vector<1x4x1x4x128xbf16>
    %59 = vector.shape_cast %58 : vector<1x4x1x4x128xbf16> to vector<4x4x128xbf16>
    %60 = vector.shape_cast %57 : vector<1x128xbf16> to vector<1x1x128xbf16>
    %61 = vector.broadcast %60 : vector<1x1x128xbf16> to vector<4x4x128xbf16>
    %62 = arith.mulf %59, %61 : vector<4x4x128xbf16>
    %63 = arith.extf %62 : vector<4x4x128xbf16> to vector<4x4x128xf32>
    %64 = arith.addf %56, %63 : vector<4x4x128xf32>
    %c8 = arith.constant 8 : index
    %c0_48 = arith.constant 0 : index
    %65 = vector.load %arg2[%c8, %c0_48] : memref<9x128xbf16, #tpu.memory_space<vmem>>, vector<1x128xbf16>
    %c0_49 = arith.constant 0 : index
    %c2_50 = arith.constant 2 : index
    %c0_51 = arith.constant 0 : index
    %c2_52 = arith.constant 2 : index
    %c0_53 = arith.constant 0 : index
    %66 = vector.load %arg1[%c0_49, %c2_50, %c0_51, %c2_52, %c0_53] : memref<1x6x1x6x128xbf16, #tpu.memory_space<vmem>>, vector<1x4x1x4x128xbf16>
    %67 = vector.shape_cast %66 : vector<1x4x1x4x128xbf16> to vector<4x4x128xbf16>
    %68 = vector.shape_cast %65 : vector<1x128xbf16> to vector<1x1x128xbf16>
    %69 = vector.broadcast %68 : vector<1x1x128xbf16> to vector<4x4x128xbf16>
    %70 = arith.mulf %67, %69 : vector<4x4x128xbf16>
    %71 = arith.extf %70 : vector<4x4x128xbf16> to vector<4x4x128xf32>
    %72 = arith.addf %64, %71 : vector<4x4x128xf32>
    %c0_54 = arith.constant 0 : index
    %c0_55 = arith.constant 0 : index
    %73 = vector.load %arg3[%c0_54, %c0_55] : memref<1x128xf32, #tpu.memory_space<vmem>>, vector<1x128xf32>
    %74 = vector.shape_cast %73 : vector<1x128xf32> to vector<1x1x128xf32>
    %75 = vector.broadcast %74 : vector<1x1x128xf32> to vector<4x4x128xf32>
    %76 = arith.addf %72, %75 : vector<4x4x128xf32>
    %77 = arith.negf %76 : vector<4x4x128xf32>
    %78 = math.exp %77 : vector<4x4x128xf32>
    %cst_56 = arith.constant 1.000000e+00 : f32
    %79 = vector.broadcast %cst_56 : f32 to vector<4x4x128xf32>
    %80 = arith.addf %79, %78 : vector<4x4x128xf32>
    %81 = arith.divf %79, %80 : vector<4x4x128xf32>
    %82 = arith.mulf %76, %81 : vector<4x4x128xf32>
    %83 = arith.truncf %82 : vector<4x4x128xf32> to vector<4x4x128xbf16>
    %c0_57 = arith.constant 0 : index
    %c0_58 = arith.constant 0 : index
    %c0_59 = arith.constant 0 : index
    %c0_60 = arith.constant 0 : index
    %84 = vector.load %arg4[%c0_57, %c0_58, %c0_59, %c0_60] : memref<1x4x4x128xbf16, #tpu.memory_space<vmem>>, vector<1x4x4x128xbf16>
    %85 = vector.shape_cast %84 : vector<1x4x4x128xbf16> to vector<4x4x128xbf16>
    %86 = vector.shape_cast %83 : vector<4x4x128xbf16> to vector<1x4x4x128xbf16>
    tpu.vector_store %arg4[%c0_57, %c0_58, %c0_59, %c0_60], %86 {strides = array<i32>} : memref<1x4x4x128xbf16, #tpu.memory_space<vmem>>, vector<1x4x4x128xbf16>,
    %cst_61 = arith.constant dense<0.000000e+00> : vector<128xf32>
    %87 = vector.multi_reduction <add>, %82, %cst_61 [0, 1] : vector<4x4x128xf32> to vector<128xf32>
    %cst_62 = arith.constant 6.250000e-02 : f32
    %88 = vector.broadcast %cst_62 : f32 to vector<128xf32>
    %89 = arith.mulf %87, %88 : vector<128xf32>
    %90 = vector.shape_cast %89 : vector<128xf32> to vector<1x128xf32>
    %c0_63 = arith.constant 0 : index
    %c0_64 = arith.constant 0 : index
    %c0_65 = arith.constant 0 : index
    %91 = vector.load %arg5[%c0_63, %c0_64, %c0_65] : memref<1x1x128xf32, #tpu.memory_space<vmem>>, vector<1x1x128xf32>
    %92 = vector.shape_cast %91 : vector<1x1x128xf32> to vector<1x128xf32>
    %93 = vector.shape_cast %90 : vector<1x128xf32> to vector<1x1x128xf32>
    tpu.vector_store %arg5[%c0_63, %c0_64, %c0_65], %93 {strides = array<i32>} : memref<1x1x128xf32, #tpu.memory_space<vmem>>, vector<1x1x128xf32>,
    return
  }
  func.func @transform_0(%arg0: i32) -> (i32, i32, i32, i32, i32) {
    %c0_i32 = arith.constant 0 : i32
    %c0_i32_0 = arith.constant 0 : i32
    %c0_i32_1 = arith.constant 0 : i32
    %c0_i32_2 = arith.constant 0 : i32
    %c0_i32_3 = arith.constant 0 : i32
    return %arg0, %c0_i32, %c0_i32_0, %c0_i32_1, %c0_i32_2 : i32, i32, i32, i32, i32
  }
  func.func @transform_1(%arg0: i32) -> (i32, i32) {
    %c0_i32 = arith.constant 0 : i32
    %c0_i32_0 = arith.constant 0 : i32
    %c0_i32_1 = arith.constant 0 : i32
    return %c0_i32, %c0_i32_0 : i32, i32
  }
  func.func @transform_2(%arg0: i32) -> (i32, i32) {
    %c0_i32 = arith.constant 0 : i32
    %c0_i32_0 = arith.constant 0 : i32
    %c0_i32_1 = arith.constant 0 : i32
    return %c0_i32, %c0_i32_0 : i32, i32
  }
  func.func @transform_3(%arg0: i32) -> (i32, i32, i32, i32) {
    %c0_i32 = arith.constant 0 : i32
    %c0_i32_0 = arith.constant 0 : i32
    %c0_i32_1 = arith.constant 0 : i32
    %c0_i32_2 = arith.constant 0 : i32
    return %arg0, %c0_i32, %c0_i32_0, %c0_i32_1 : i32, i32, i32, i32
  }
  func.func @transform_4(%arg0: i32) -> (i32, i32, i32) {
    %c0_i32 = arith.constant 0 : i32
    %c0_i32_0 = arith.constant 0 : i32
    %c0_i32_1 = arith.constant 0 : i32
    return %arg0, %c0_i32, %c0_i32_0 : i32, i32, i32
  }
}

module attributes {stable_mosaic.version = 11 : i64} {
  func.func @_mm_kernel(%arg0: i32, %arg1: i32, %arg2: i32, %arg3: i32, %arg4: memref<1x8x128xbf16, #tpu.memory_space<vmem>>, %arg5: memref<128x128xbf16, #tpu.memory_space<vmem>>, %arg6: memref<1x128xf32, #tpu.memory_space<vmem>>, %arg7: memref<1x1x128xf32, #tpu.memory_space<vmem>>, %arg8: memref<1x8x128xbf16, #tpu.memory_space<vmem>>, %arg9: memref<8x128xf32, #tpu.memory_space<vmem>>) attributes {dimension_semantics = [#tpu.dimension_semantics<parallel>, #tpu.dimension_semantics<parallel>, #tpu.dimension_semantics<parallel>, #tpu.dimension_semantics<arbitrary>], iteration_bounds = array<i64: 2, 1, 1, 1>, scalar_prefetch = 0 : i64, scratch_operands = 1 : i64, tpu.core_type = #tpu.core_type<tc>, window_params = [{transform_indices = @transform_0, window_bounds = array<i64: 1, 8, 128>}, {transform_indices = @transform_1, window_bounds = array<i64: 128, 128>}, {transform_indices = @transform_2, window_bounds = array<i64: 1, 128>}, {transform_indices = @transform_3, window_bounds = array<i64: 1, 1, 128>}, {transform_indices = @transform_4, window_bounds = array<i64: 1, 8, 128>}]} {
    %c0_i32 = arith.constant 0 : i32
    %0 = arith.cmpi eq, %arg3, %c0_i32 : i32
    %1 = arith.extui %0 : i1 to i32
    %c0_i32_0 = arith.constant 0 : i32
    %2 = arith.cmpi ne, %1, %c0_i32_0 : i32
    scf.if %2 {
      %cst_15 = arith.constant 0.000000e+00 : f32
      %23 = vector.broadcast %cst_15 : f32 to vector<8x128xf32>
      %c0_16 = arith.constant 0 : index
      %c0_17 = arith.constant 0 : index
      %24 = vector.load %arg9[%c0_16, %c0_17] : memref<8x128xf32, #tpu.memory_space<vmem>>, vector<8x128xf32>
      tpu.vector_store %arg9[%c0_16, %c0_17], %23 {strides = array<i32>} : memref<8x128xf32, #tpu.memory_space<vmem>>, vector<8x128xf32>,
    } else {
    }
    %c0 = arith.constant 0 : index
    %c0_1 = arith.constant 0 : index
    %c0_2 = arith.constant 0 : index
    %3 = vector.load %arg4[%c0, %c0_1, %c0_2] : memref<1x8x128xbf16, #tpu.memory_space<vmem>>, vector<1x8x128xbf16>
    %4 = vector.shape_cast %3 : vector<1x8x128xbf16> to vector<8x128xbf16>
    %c0_3 = arith.constant 0 : index
    %c0_4 = arith.constant 0 : index
    %c0_5 = arith.constant 0 : index
    %5 = vector.load %arg7[%c0_3, %c0_4, %c0_5] : memref<1x1x128xf32, #tpu.memory_space<vmem>>, vector<1x1x128xf32>
    %6 = vector.shape_cast %5 : vector<1x1x128xf32> to vector<1x128xf32>
    %7 = arith.negf %6 : vector<1x128xf32>
    %8 = math.exp %7 : vector<1x128xf32>
    %cst = arith.constant 1.000000e+00 : f32
    %9 = vector.broadcast %cst : f32 to vector<1x128xf32>
    %10 = arith.addf %9, %8 : vector<1x128xf32>
    %11 = arith.divf %9, %10 : vector<1x128xf32>
    %12 = arith.truncf %11 : vector<1x128xf32> to vector<1x128xbf16>
    %13 = vector.broadcast %12 : vector<1x128xbf16> to vector<8x128xbf16>
    %14 = arith.mulf %4, %13 : vector<8x128xbf16>
    %c0_6 = arith.constant 0 : index
    %c0_7 = arith.constant 0 : index
    %15 = vector.load %arg9[%c0_6, %c0_7] : memref<8x128xf32, #tpu.memory_space<vmem>>, vector<8x128xf32>
    %c0_8 = arith.constant 0 : index
    %c0_9 = arith.constant 0 : index
    %16 = vector.load %arg5[%c0_8, %c0_9] : memref<128x128xbf16, #tpu.memory_space<vmem>>, vector<128x128xbf16>
    %cst_10 = arith.constant dense<0.000000e+00> : vector<8x128xf32>
    %17 = tpu.matmul %14, %16, %cst_10 {dimension_numbers = #tpu.dot_dimension_numbers<[1], [0], [0], [1], [0, 0, 1, 1], [], []>} : vector<8x128xbf16>, vector<128x128xbf16>, vector<8x128xf32> -> vector<8x128xf32>
    %18 = arith.addf %15, %17 : vector<8x128xf32>
    %c0_11 = arith.constant 0 : index
    %c0_12 = arith.constant 0 : index
    %19 = vector.load %arg9[%c0_11, %c0_12] : memref<8x128xf32, #tpu.memory_space<vmem>>, vector<8x128xf32>
    tpu.vector_store %arg9[%c0_11, %c0_12], %18 {strides = array<i32>} : memref<8x128xf32, #tpu.memory_space<vmem>>, vector<8x128xf32>,
    %c0_i32_13 = arith.constant 0 : i32
    %20 = arith.cmpi eq, %arg3, %c0_i32_13 : i32
    %21 = arith.extui %20 : i1 to i32
    %c0_i32_14 = arith.constant 0 : i32
    %22 = arith.cmpi ne, %21, %c0_i32_14 : i32
    scf.if %22 {
      %c0_15 = arith.constant 0 : index
      %c0_16 = arith.constant 0 : index
      %23 = vector.load %arg9[%c0_15, %c0_16] : memref<8x128xf32, #tpu.memory_space<vmem>>, vector<8x128xf32>
      %c0_17 = arith.constant 0 : index
      %c0_18 = arith.constant 0 : index
      %24 = vector.load %arg6[%c0_17, %c0_18] : memref<1x128xf32, #tpu.memory_space<vmem>>, vector<1x128xf32>
      %25 = vector.broadcast %24 : vector<1x128xf32> to vector<8x128xf32>
      %26 = arith.addf %23, %25 : vector<8x128xf32>
      %27 = arith.truncf %26 : vector<8x128xf32> to vector<8x128xbf16>
      %c0_19 = arith.constant 0 : index
      %c0_20 = arith.constant 0 : index
      %c0_21 = arith.constant 0 : index
      %28 = vector.load %arg8[%c0_19, %c0_20, %c0_21] : memref<1x8x128xbf16, #tpu.memory_space<vmem>>, vector<1x8x128xbf16>
      %29 = vector.shape_cast %28 : vector<1x8x128xbf16> to vector<8x128xbf16>
      %30 = vector.shape_cast %27 : vector<8x128xbf16> to vector<1x8x128xbf16>
      tpu.vector_store %arg8[%c0_19, %c0_20, %c0_21], %30 {strides = array<i32>} : memref<1x8x128xbf16, #tpu.memory_space<vmem>>, vector<1x8x128xbf16>,
    } else {
    }
    return
  }
  func.func @transform_0(%arg0: i32, %arg1: i32, %arg2: i32, %arg3: i32) -> (i32, i32, i32) {
    %c0_i32 = arith.constant 0 : i32
    return %arg0, %arg1, %arg3 : i32, i32, i32
  }
  func.func @transform_1(%arg0: i32, %arg1: i32, %arg2: i32, %arg3: i32) -> (i32, i32) {
    %c0_i32 = arith.constant 0 : i32
    return %arg3, %arg2 : i32, i32
  }
  func.func @transform_2(%arg0: i32, %arg1: i32, %arg2: i32, %arg3: i32) -> (i32, i32) {
    %c0_i32 = arith.constant 0 : i32
    %c0_i32_0 = arith.constant 0 : i32
    return %c0_i32, %arg2 : i32, i32
  }
  func.func @transform_3(%arg0: i32, %arg1: i32, %arg2: i32, %arg3: i32) -> (i32, i32, i32) {
    %c0_i32 = arith.constant 0 : i32
    %c0_i32_0 = arith.constant 0 : i32
    return %arg0, %c0_i32, %arg3 : i32, i32, i32
  }
  func.func @transform_4(%arg0: i32, %arg1: i32, %arg2: i32, %arg3: i32) -> (i32, i32, i32) {
    %c0_i32 = arith.constant 0 : i32
    return %arg0, %arg1, %arg2 : i32, i32, i32
  }
}

module attributes {stable_mosaic.version = 11 : i64} {
  func.func @_pool_kernel(%arg0: i32, %arg1: memref<1x4x384xbf16, #tpu.memory_space<vmem>>, %arg2: memref<1x1x384xf32, #tpu.memory_space<vmem>>) attributes {dimension_semantics = [#tpu.dimension_semantics<parallel>], iteration_bounds = array<i64: 2>, scalar_prefetch = 0 : i64, scratch_operands = 0 : i64, tpu.core_type = #tpu.core_type<tc>, window_params = [{transform_indices = @transform_0, window_bounds = array<i64: 1, 4, 384>}, {transform_indices = @transform_1, window_bounds = array<i64: 1, 1, 384>}]} {
    %c0 = arith.constant 0 : index
    %c0_0 = arith.constant 0 : index
    %c0_1 = arith.constant 0 : index
    %0 = vector.load %arg1[%c0, %c0_0, %c0_1] : memref<1x4x384xbf16, #tpu.memory_space<vmem>>, vector<1x4x384xbf16>
    %1 = vector.shape_cast %0 : vector<1x4x384xbf16> to vector<4x384xbf16>
    %2 = arith.extf %1 : vector<4x384xbf16> to vector<4x384xf32>
    %cst = arith.constant dense<0.000000e+00> : vector<384xf32>
    %3 = vector.multi_reduction <add>, %2, %cst [0] : vector<4x384xf32> to vector<384xf32>
    %4 = vector.shape_cast %3 : vector<384xf32> to vector<1x384xf32>
    %cst_2 = arith.constant 4.000000e+00 : f32
    %5 = vector.broadcast %cst_2 : f32 to vector<1x384xf32>
    %6 = arith.divf %4, %5 : vector<1x384xf32>
    %c0_3 = arith.constant 0 : index
    %c0_4 = arith.constant 0 : index
    %c0_5 = arith.constant 0 : index
    %7 = vector.load %arg2[%c0_3, %c0_4, %c0_5] : memref<1x1x384xf32, #tpu.memory_space<vmem>>, vector<1x1x384xf32>
    %8 = vector.shape_cast %7 : vector<1x1x384xf32> to vector<1x384xf32>
    %9 = vector.shape_cast %6 : vector<1x384xf32> to vector<1x1x384xf32>
    tpu.vector_store %arg2[%c0_3, %c0_4, %c0_5], %9 {strides = array<i32>} : memref<1x1x384xf32, #tpu.memory_space<vmem>>, vector<1x1x384xf32>,
    return
  }
  func.func @transform_0(%arg0: i32) -> (i32, i32, i32) {
    %c0_i32 = arith.constant 0 : i32
    %c0_i32_0 = arith.constant 0 : i32
    %c0_i32_1 = arith.constant 0 : i32
    return %arg0, %c0_i32, %c0_i32_0 : i32, i32, i32
  }
  func.func @transform_1(%arg0: i32) -> (i32, i32, i32) {
    %c0_i32 = arith.constant 0 : i32
    %c0_i32_0 = arith.constant 0 : i32
    %c0_i32_1 = arith.constant 0 : i32
    return %arg0, %c0_i32, %c0_i32_0 : i32, i32, i32
  }
}

module attributes {stable_mosaic.version = 11 : i64} {
  func.func @_dw_kernel(%arg0: i32, %arg1: memref<1x4x2x4x256xbf16, #tpu.memory_space<vmem>>, %arg2: memref<25x128xbf16, #tpu.memory_space<vmem>>, %arg3: memref<1x128xf32, #tpu.memory_space<vmem>>, %arg4: memref<1x2x2x128xbf16, #tpu.memory_space<vmem>>, %arg5: memref<1x1x128xf32, #tpu.memory_space<vmem>>) attributes {dimension_semantics = [#tpu.dimension_semantics<parallel>], iteration_bounds = array<i64: 2>, scalar_prefetch = 0 : i64, scratch_operands = 0 : i64, tpu.core_type = #tpu.core_type<tc>, window_params = [{transform_indices = @transform_0, window_bounds = array<i64: 1, 4, 2, 4, 256>}, {pipeline_mode = #tpu.pipeline_mode<synchronous>, transform_indices = @transform_1, window_bounds = array<i64: 25, 128>}, {pipeline_mode = #tpu.pipeline_mode<synchronous>, transform_indices = @transform_2, window_bounds = array<i64: 1, 128>}, {transform_indices = @transform_3, window_bounds = array<i64: 1, 2, 2, 128>}, {transform_indices = @transform_4, window_bounds = array<i64: 1, 1, 128>}]} {
    %cst = arith.constant 0.000000e+00 : f32
    %0 = vector.broadcast %cst : f32 to vector<2x2x128xf32>
    %c0 = arith.constant 0 : index
    %c0_0 = arith.constant 0 : index
    %1 = vector.load %arg2[%c0, %c0_0] : memref<25x128xbf16, #tpu.memory_space<vmem>>, vector<1x128xbf16>
    %c0_1 = arith.constant 0 : index
    %c0_2 = arith.constant 0 : index
    %c0_3 = arith.constant 0 : index
    %c0_4 = arith.constant 0 : index
    %c0_5 = arith.constant 0 : index
    %2 = vector.load %arg1[%c0_1, %c0_2, %c0_3, %c0_4, %c0_5] : memref<1x4x2x4x256xbf16, #tpu.memory_space<vmem>>, vector<1x2x1x2x128xbf16>
    %3 = vector.shape_cast %2 : vector<1x2x1x2x128xbf16> to vector<2x2x128xbf16>
    %4 = vector.shape_cast %1 : vector<1x128xbf16> to vector<1x1x128xbf16>
    %5 = vector.broadcast %4 : vector<1x1x128xbf16> to vector<2x2x128xbf16>
    %6 = arith.mulf %3, %5 : vector<2x2x128xbf16>
    %7 = arith.extf %6 : vector<2x2x128xbf16> to vector<2x2x128xf32>
    %8 = arith.addf %0, %7 : vector<2x2x128xf32>
    %c1 = arith.constant 1 : index
    %c0_6 = arith.constant 0 : index
    %9 = vector.load %arg2[%c1, %c0_6] : memref<25x128xbf16, #tpu.memory_space<vmem>>, vector<1x128xbf16>
    %c0_7 = arith.constant 0 : index
    %c0_8 = arith.constant 0 : index
    %c0_9 = arith.constant 0 : index
    %c0_10 = arith.constant 0 : index
    %c128 = arith.constant 128 : index
    %10 = vector.load %arg1[%c0_7, %c0_8, %c0_9, %c0_10, %c128] : memref<1x4x2x4x256xbf16, #tpu.memory_space<vmem>>, vector<1x2x1x2x128xbf16>
    %11 = vector.shape_cast %10 : vector<1x2x1x2x128xbf16> to vector<2x2x128xbf16>
    %12 = vector.shape_cast %9 : vector<1x128xbf16> to vector<1x1x128xbf16>
    %13 = vector.broadcast %12 : vector<1x1x128xbf16> to vector<2x2x128xbf16>
    %14 = arith.mulf %11, %13 : vector<2x2x128xbf16>
    %15 = arith.extf %14 : vector<2x2x128xbf16> to vector<2x2x128xf32>
    %16 = arith.addf %8, %15 : vector<2x2x128xf32>
    %c2 = arith.constant 2 : index
    %c0_11 = arith.constant 0 : index
    %17 = vector.load %arg2[%c2, %c0_11] : memref<25x128xbf16, #tpu.memory_space<vmem>>, vector<1x128xbf16>
    %c0_12 = arith.constant 0 : index
    %c0_13 = arith.constant 0 : index
    %c0_14 = arith.constant 0 : index
    %c1_15 = arith.constant 1 : index
    %c0_16 = arith.constant 0 : index
    %18 = vector.load %arg1[%c0_12, %c0_13, %c0_14, %c1_15, %c0_16] : memref<1x4x2x4x256xbf16, #tpu.memory_space<vmem>>, vector<1x2x1x2x128xbf16>
    %19 = vector.shape_cast %18 : vector<1x2x1x2x128xbf16> to vector<2x2x128xbf16>
    %20 = vector.shape_cast %17 : vector<1x128xbf16> to vector<1x1x128xbf16>
    %21 = vector.broadcast %20 : vector<1x1x128xbf16> to vector<2x2x128xbf16>
    %22 = arith.mulf %19, %21 : vector<2x2x128xbf16>
    %23 = arith.extf %22 : vector<2x2x128xbf16> to vector<2x2x128xf32>
    %24 = arith.addf %16, %23 : vector<2x2x128xf32>
    %c3 = arith.constant 3 : index
    %c0_17 = arith.constant 0 : index
    %25 = vector.load %arg2[%c3, %c0_17] : memref<25x128xbf16, #tpu.memory_space<vmem>>, vector<1x128xbf16>
    %c0_18 = arith.constant 0 : index
    %c0_19 = arith.constant 0 : index
    %c0_20 = arith.constant 0 : index
    %c1_21 = arith.constant 1 : index
    %c128_22 = arith.constant 128 : index
    %26 = vector.load %arg1[%c0_18, %c0_19, %c0_20, %c1_21, %c128_22] : memref<1x4x2x4x256xbf16, #tpu.memory_space<vmem>>, vector<1x2x1x2x128xbf16>
    %27 = vector.shape_cast %26 : vector<1x2x1x2x128xbf16> to vector<2x2x128xbf16>
    %28 = vector.shape_cast %25 : vector<1x128xbf16> to vector<1x1x128xbf16>
    %29 = vector.broadcast %28 : vector<1x1x128xbf16> to vector<2x2x128xbf16>
    %30 = arith.mulf %27, %29 : vector<2x2x128xbf16>
    %31 = arith.extf %30 : vector<2x2x128xbf16> to vector<2x2x128xf32>
    %32 = arith.addf %24, %31 : vector<2x2x128xf32>
    %c4 = arith.constant 4 : index
    %c0_23 = arith.constant 0 : index
    %33 = vector.load %arg2[%c4, %c0_23] : memref<25x128xbf16, #tpu.memory_space<vmem>>, vector<1x128xbf16>
    %c0_24 = arith.constant 0 : index
    %c0_25 = arith.constant 0 : index
    %c0_26 = arith.constant 0 : index
    %c2_27 = arith.constant 2 : index
    %c0_28 = arith.constant 0 : index
    %34 = vector.load %arg1[%c0_24, %c0_25, %c0_26, %c2_27, %c0_28] : memref<1x4x2x4x256xbf16, #tpu.memory_space<vmem>>, vector<1x2x1x2x128xbf16>
    %35 = vector.shape_cast %34 : vector<1x2x1x2x128xbf16> to vector<2x2x128xbf16>
    %36 = vector.shape_cast %33 : vector<1x128xbf16> to vector<1x1x128xbf16>
    %37 = vector.broadcast %36 : vector<1x1x128xbf16> to vector<2x2x128xbf16>
    %38 = arith.mulf %35, %37 : vector<2x2x128xbf16>
    %39 = arith.extf %38 : vector<2x2x128xbf16> to vector<2x2x128xf32>
    %40 = arith.addf %32, %39 : vector<2x2x128xf32>
    %c5 = arith.constant 5 : index
    %c0_29 = arith.constant 0 : index
    %41 = vector.load %arg2[%c5, %c0_29] : memref<25x128xbf16, #tpu.memory_space<vmem>>, vector<1x128xbf16>
    %c0_30 = arith.constant 0 : index
    %c0_31 = arith.constant 0 : index
    %c1_32 = arith.constant 1 : index
    %c0_33 = arith.constant 0 : index
    %c0_34 = arith.constant 0 : index
    %42 = vector.load %arg1[%c0_30, %c0_31, %c1_32, %c0_33, %c0_34] : memref<1x4x2x4x256xbf16, #tpu.memory_space<vmem>>, vector<1x2x1x2x128xbf16>
    %43 = vector.shape_cast %42 : vector<1x2x1x2x128xbf16> to vector<2x2x128xbf16>
    %44 = vector.shape_cast %41 : vector<1x128xbf16> to vector<1x1x128xbf16>
    %45 = vector.broadcast %44 : vector<1x1x128xbf16> to vector<2x2x128xbf16>
    %46 = arith.mulf %43, %45 : vector<2x2x128xbf16>
    %47 = arith.extf %46 : vector<2x2x128xbf16> to vector<2x2x128xf32>
    %48 = arith.addf %40, %47 : vector<2x2x128xf32>
    %c6 = arith.constant 6 : index
    %c0_35 = arith.constant 0 : index
    %49 = vector.load %arg2[%c6, %c0_35] : memref<25x128xbf16, #tpu.memory_space<vmem>>, vector<1x128xbf16>
    %c0_36 = arith.constant 0 : index
    %c0_37 = arith.constant 0 : index
    %c1_38 = arith.constant 1 : index
    %c0_39 = arith.constant 0 : index
    %c128_40 = arith.constant 128 : index
    %50 = vector.load %arg1[%c0_36, %c0_37, %c1_38, %c0_39, %c128_40] : memref<1x4x2x4x256xbf16, #tpu.memory_space<vmem>>, vector<1x2x1x2x128xbf16>
    %51 = vector.shape_cast %50 : vector<1x2x1x2x128xbf16> to vector<2x2x128xbf16>
    %52 = vector.shape_cast %49 : vector<1x128xbf16> to vector<1x1x128xbf16>
    %53 = vector.broadcast %52 : vector<1x1x128xbf16> to vector<2x2x128xbf16>
    %54 = arith.mulf %51, %53 : vector<2x2x128xbf16>
    %55 = arith.extf %54 : vector<2x2x128xbf16> to vector<2x2x128xf32>
    %56 = arith.addf %48, %55 : vector<2x2x128xf32>
    %c7 = arith.constant 7 : index
    %c0_41 = arith.constant 0 : index
    %57 = vector.load %arg2[%c7, %c0_41] : memref<25x128xbf16, #tpu.memory_space<vmem>>, vector<1x128xbf16>
    %c0_42 = arith.constant 0 : index
    %c0_43 = arith.constant 0 : index
    %c1_44 = arith.constant 1 : index
    %c1_45 = arith.constant 1 : index
    %c0_46 = arith.constant 0 : index
    %58 = vector.load %arg1[%c0_42, %c0_43, %c1_44, %c1_45, %c0_46] : memref<1x4x2x4x256xbf16, #tpu.memory_space<vmem>>, vector<1x2x1x2x128xbf16>
    %59 = vector.shape_cast %58 : vector<1x2x1x2x128xbf16> to vector<2x2x128xbf16>
    %60 = vector.shape_cast %57 : vector<1x128xbf16> to vector<1x1x128xbf16>
    %61 = vector.broadcast %60 : vector<1x1x128xbf16> to vector<2x2x128xbf16>
    %62 = arith.mulf %59, %61 : vector<2x2x128xbf16>
    %63 = arith.extf %62 : vector<2x2x128xbf16> to vector<2x2x128xf32>
    %64 = arith.addf %56, %63 : vector<2x2x128xf32>
    %c8 = arith.constant 8 : index
    %c0_47 = arith.constant 0 : index
    %65 = vector.load %arg2[%c8, %c0_47] : memref<25x128xbf16, #tpu.memory_space<vmem>>, vector<1x128xbf16>
    %c0_48 = arith.constant 0 : index
    %c0_49 = arith.constant 0 : index
    %c1_50 = arith.constant 1 : index
    %c1_51 = arith.constant 1 : index
    %c128_52 = arith.constant 128 : index
    %66 = vector.load %arg1[%c0_48, %c0_49, %c1_50, %c1_51, %c128_52] : memref<1x4x2x4x256xbf16, #tpu.memory_space<vmem>>, vector<1x2x1x2x128xbf16>
    %67 = vector.shape_cast %66 : vector<1x2x1x2x128xbf16> to vector<2x2x128xbf16>
    %68 = vector.shape_cast %65 : vector<1x128xbf16> to vector<1x1x128xbf16>
    %69 = vector.broadcast %68 : vector<1x1x128xbf16> to vector<2x2x128xbf16>
    %70 = arith.mulf %67, %69 : vector<2x2x128xbf16>
    %71 = arith.extf %70 : vector<2x2x128xbf16> to vector<2x2x128xf32>
    %72 = arith.addf %64, %71 : vector<2x2x128xf32>
    %c9 = arith.constant 9 : index
    %c0_53 = arith.constant 0 : index
    %73 = vector.load %arg2[%c9, %c0_53] : memref<25x128xbf16, #tpu.memory_space<vmem>>, vector<1x128xbf16>
    %c0_54 = arith.constant 0 : index
    %c0_55 = arith.constant 0 : index
    %c1_56 = arith.constant 1 : index
    %c2_57 = arith.constant 2 : index
    %c0_58 = arith.constant 0 : index
    %74 = vector.load %arg1[%c0_54, %c0_55, %c1_56, %c2_57, %c0_58] : memref<1x4x2x4x256xbf16, #tpu.memory_space<vmem>>, vector<1x2x1x2x128xbf16>
    %75 = vector.shape_cast %74 : vector<1x2x1x2x128xbf16> to vector<2x2x128xbf16>
    %76 = vector.shape_cast %73 : vector<1x128xbf16> to vector<1x1x128xbf16>
    %77 = vector.broadcast %76 : vector<1x1x128xbf16> to vector<2x2x128xbf16>
    %78 = arith.mulf %75, %77 : vector<2x2x128xbf16>
    %79 = arith.extf %78 : vector<2x2x128xbf16> to vector<2x2x128xf32>
    %80 = arith.addf %72, %79 : vector<2x2x128xf32>
    %c10 = arith.constant 10 : index
    %c0_59 = arith.constant 0 : index
    %81 = vector.load %arg2[%c10, %c0_59] : memref<25x128xbf16, #tpu.memory_space<vmem>>, vector<1x128xbf16>
    %c0_60 = arith.constant 0 : index
    %c1_61 = arith.constant 1 : index
    %c0_62 = arith.constant 0 : index
    %c0_63 = arith.constant 0 : index
    %c0_64 = arith.constant 0 : index
    %82 = vector.load %arg1[%c0_60, %c1_61, %c0_62, %c0_63, %c0_64] : memref<1x4x2x4x256xbf16, #tpu.memory_space<vmem>>, vector<1x2x1x2x128xbf16>
    %83 = vector.shape_cast %82 : vector<1x2x1x2x128xbf16> to vector<2x2x128xbf16>
    %84 = vector.shape_cast %81 : vector<1x128xbf16> to vector<1x1x128xbf16>
    %85 = vector.broadcast %84 : vector<1x1x128xbf16> to vector<2x2x128xbf16>
    %86 = arith.mulf %83, %85 : vector<2x2x128xbf16>
    %87 = arith.extf %86 : vector<2x2x128xbf16> to vector<2x2x128xf32>
    %88 = arith.addf %80, %87 : vector<2x2x128xf32>
    %c11 = arith.constant 11 : index
    %c0_65 = arith.constant 0 : index
    %89 = vector.load %arg2[%c11, %c0_65] : memref<25x128xbf16, #tpu.memory_space<vmem>>, vector<1x128xbf16>
    %c0_66 = arith.constant 0 : index
    %c1_67 = arith.constant 1 : index
    %c0_68 = arith.constant 0 : index
    %c0_69 = arith.constant 0 : index
    %c128_70 = arith.constant 128 : index
    %90 = vector.load %arg1[%c0_66, %c1_67, %c0_68, %c0_69, %c128_70] : memref<1x4x2x4x256xbf16, #tpu.memory_space<vmem>>, vector<1x2x1x2x128xbf16>
    %91 = vector.shape_cast %90 : vector<1x2x1x2x128xbf16> to vector<2x2x128xbf16>
    %92 = vector.shape_cast %89 : vector<1x128xbf16> to vector<1x1x128xbf16>
    %93 = vector.broadcast %92 : vector<1x1x128xbf16> to vector<2x2x128xbf16>
    %94 = arith.mulf %91, %93 : vector<2x2x128xbf16>
    %95 = arith.extf %94 : vector<2x2x128xbf16> to vector<2x2x128xf32>
    %96 = arith.addf %88, %95 : vector<2x2x128xf32>
    %c12 = arith.constant 12 : index
    %c0_71 = arith.constant 0 : index
    %97 = vector.load %arg2[%c12, %c0_71] : memref<25x128xbf16, #tpu.memory_space<vmem>>, vector<1x128xbf16>
    %c0_72 = arith.constant 0 : index
    %c1_73 = arith.constant 1 : index
    %c0_74 = arith.constant 0 : index
    %c1_75 = arith.constant 1 : index
    %c0_76 = arith.constant 0 : index
    %98 = vector.load %arg1[%c0_72, %c1_73, %c0_74, %c1_75, %c0_76] : memref<1x4x2x4x256xbf16, #tpu.memory_space<vmem>>, vector<1x2x1x2x128xbf16>
    %99 = vector.shape_cast %98 : vector<1x2x1x2x128xbf16> to vector<2x2x128xbf16>
    %100 = vector.shape_cast %97 : vector<1x128xbf16> to vector<1x1x128xbf16>
    %101 = vector.broadcast %100 : vector<1x1x128xbf16> to vector<2x2x128xbf16>
    %102 = arith.mulf %99, %101 : vector<2x2x128xbf16>
    %103 = arith.extf %102 : vector<2x2x128xbf16> to vector<2x2x128xf32>
    %104 = arith.addf %96, %103 : vector<2x2x128xf32>
    %c13 = arith.constant 13 : index
    %c0_77 = arith.constant 0 : index
    %105 = vector.load %arg2[%c13, %c0_77] : memref<25x128xbf16, #tpu.memory_space<vmem>>, vector<1x128xbf16>
    %c0_78 = arith.constant 0 : index
    %c1_79 = arith.constant 1 : index
    %c0_80 = arith.constant 0 : index
    %c1_81 = arith.constant 1 : index
    %c128_82 = arith.constant 128 : index
    %106 = vector.load %arg1[%c0_78, %c1_79, %c0_80, %c1_81, %c128_82] : memref<1x4x2x4x256xbf16, #tpu.memory_space<vmem>>, vector<1x2x1x2x128xbf16>
    %107 = vector.shape_cast %106 : vector<1x2x1x2x128xbf16> to vector<2x2x128xbf16>
    %108 = vector.shape_cast %105 : vector<1x128xbf16> to vector<1x1x128xbf16>
    %109 = vector.broadcast %108 : vector<1x1x128xbf16> to vector<2x2x128xbf16>
    %110 = arith.mulf %107, %109 : vector<2x2x128xbf16>
    %111 = arith.extf %110 : vector<2x2x128xbf16> to vector<2x2x128xf32>
    %112 = arith.addf %104, %111 : vector<2x2x128xf32>
    %c14 = arith.constant 14 : index
    %c0_83 = arith.constant 0 : index
    %113 = vector.load %arg2[%c14, %c0_83] : memref<25x128xbf16, #tpu.memory_space<vmem>>, vector<1x128xbf16>
    %c0_84 = arith.constant 0 : index
    %c1_85 = arith.constant 1 : index
    %c0_86 = arith.constant 0 : index
    %c2_87 = arith.constant 2 : index
    %c0_88 = arith.constant 0 : index
    %114 = vector.load %arg1[%c0_84, %c1_85, %c0_86, %c2_87, %c0_88] : memref<1x4x2x4x256xbf16, #tpu.memory_space<vmem>>, vector<1x2x1x2x128xbf16>
    %115 = vector.shape_cast %114 : vector<1x2x1x2x128xbf16> to vector<2x2x128xbf16>
    %116 = vector.shape_cast %113 : vector<1x128xbf16> to vector<1x1x128xbf16>
    %117 = vector.broadcast %116 : vector<1x1x128xbf16> to vector<2x2x128xbf16>
    %118 = arith.mulf %115, %117 : vector<2x2x128xbf16>
    %119 = arith.extf %118 : vector<2x2x128xbf16> to vector<2x2x128xf32>
    %120 = arith.addf %112, %119 : vector<2x2x128xf32>
    %c15 = arith.constant 15 : index
    %c0_89 = arith.constant 0 : index
    %121 = vector.load %arg2[%c15, %c0_89] : memref<25x128xbf16, #tpu.memory_space<vmem>>, vector<1x128xbf16>
    %c0_90 = arith.constant 0 : index
    %c1_91 = arith.constant 1 : index
    %c1_92 = arith.constant 1 : index
    %c0_93 = arith.constant 0 : index
    %c0_94 = arith.constant 0 : index
    %122 = vector.load %arg1[%c0_90, %c1_91, %c1_92, %c0_93, %c0_94] : memref<1x4x2x4x256xbf16, #tpu.memory_space<vmem>>, vector<1x2x1x2x128xbf16>
    %123 = vector.shape_cast %122 : vector<1x2x1x2x128xbf16> to vector<2x2x128xbf16>
    %124 = vector.shape_cast %121 : vector<1x128xbf16> to vector<1x1x128xbf16>
    %125 = vector.broadcast %124 : vector<1x1x128xbf16> to vector<2x2x128xbf16>
    %126 = arith.mulf %123, %125 : vector<2x2x128xbf16>
    %127 = arith.extf %126 : vector<2x2x128xbf16> to vector<2x2x128xf32>
    %128 = arith.addf %120, %127 : vector<2x2x128xf32>
    %c16 = arith.constant 16 : index
    %c0_95 = arith.constant 0 : index
    %129 = vector.load %arg2[%c16, %c0_95] : memref<25x128xbf16, #tpu.memory_space<vmem>>, vector<1x128xbf16>
    %c0_96 = arith.constant 0 : index
    %c1_97 = arith.constant 1 : index
    %c1_98 = arith.constant 1 : index
    %c0_99 = arith.constant 0 : index
    %c128_100 = arith.constant 128 : index
    %130 = vector.load %arg1[%c0_96, %c1_97, %c1_98, %c0_99, %c128_100] : memref<1x4x2x4x256xbf16, #tpu.memory_space<vmem>>, vector<1x2x1x2x128xbf16>
    %131 = vector.shape_cast %130 : vector<1x2x1x2x128xbf16> to vector<2x2x128xbf16>
    %132 = vector.shape_cast %129 : vector<1x128xbf16> to vector<1x1x128xbf16>
    %133 = vector.broadcast %132 : vector<1x1x128xbf16> to vector<2x2x128xbf16>
    %134 = arith.mulf %131, %133 : vector<2x2x128xbf16>
    %135 = arith.extf %134 : vector<2x2x128xbf16> to vector<2x2x128xf32>
    %136 = arith.addf %128, %135 : vector<2x2x128xf32>
    %c17 = arith.constant 17 : index
    %c0_101 = arith.constant 0 : index
    %137 = vector.load %arg2[%c17, %c0_101] : memref<25x128xbf16, #tpu.memory_space<vmem>>, vector<1x128xbf16>
    %c0_102 = arith.constant 0 : index
    %c1_103 = arith.constant 1 : index
    %c1_104 = arith.constant 1 : index
    %c1_105 = arith.constant 1 : index
    %c0_106 = arith.constant 0 : index
    %138 = vector.load %arg1[%c0_102, %c1_103, %c1_104, %c1_105, %c0_106] : memref<1x4x2x4x256xbf16, #tpu.memory_space<vmem>>, vector<1x2x1x2x128xbf16>
    %139 = vector.shape_cast %138 : vector<1x2x1x2x128xbf16> to vector<2x2x128xbf16>
    %140 = vector.shape_cast %137 : vector<1x128xbf16> to vector<1x1x128xbf16>
    %141 = vector.broadcast %140 : vector<1x1x128xbf16> to vector<2x2x128xbf16>
    %142 = arith.mulf %139, %141 : vector<2x2x128xbf16>
    %143 = arith.extf %142 : vector<2x2x128xbf16> to vector<2x2x128xf32>
    %144 = arith.addf %136, %143 : vector<2x2x128xf32>
    %c18 = arith.constant 18 : index
    %c0_107 = arith.constant 0 : index
    %145 = vector.load %arg2[%c18, %c0_107] : memref<25x128xbf16, #tpu.memory_space<vmem>>, vector<1x128xbf16>
    %c0_108 = arith.constant 0 : index
    %c1_109 = arith.constant 1 : index
    %c1_110 = arith.constant 1 : index
    %c1_111 = arith.constant 1 : index
    %c128_112 = arith.constant 128 : index
    %146 = vector.load %arg1[%c0_108, %c1_109, %c1_110, %c1_111, %c128_112] : memref<1x4x2x4x256xbf16, #tpu.memory_space<vmem>>, vector<1x2x1x2x128xbf16>
    %147 = vector.shape_cast %146 : vector<1x2x1x2x128xbf16> to vector<2x2x128xbf16>
    %148 = vector.shape_cast %145 : vector<1x128xbf16> to vector<1x1x128xbf16>
    %149 = vector.broadcast %148 : vector<1x1x128xbf16> to vector<2x2x128xbf16>
    %150 = arith.mulf %147, %149 : vector<2x2x128xbf16>
    %151 = arith.extf %150 : vector<2x2x128xbf16> to vector<2x2x128xf32>
    %152 = arith.addf %144, %151 : vector<2x2x128xf32>
    %c19 = arith.constant 19 : index
    %c0_113 = arith.constant 0 : index
    %153 = vector.load %arg2[%c19, %c0_113] : memref<25x128xbf16, #tpu.memory_space<vmem>>, vector<1x128xbf16>
    %c0_114 = arith.constant 0 : index
    %c1_115 = arith.constant 1 : index
    %c1_116 = arith.constant 1 : index
    %c2_117 = arith.constant 2 : index
    %c0_118 = arith.constant 0 : index
    %154 = vector.load %arg1[%c0_114, %c1_115, %c1_116, %c2_117, %c0_118] : memref<1x4x2x4x256xbf16, #tpu.memory_space<vmem>>, vector<1x2x1x2x128xbf16>
    %155 = vector.shape_cast %154 : vector<1x2x1x2x128xbf16> to vector<2x2x128xbf16>
    %156 = vector.shape_cast %153 : vector<1x128xbf16> to vector<1x1x128xbf16>
    %157 = vector.broadcast %156 : vector<1x1x128xbf16> to vector<2x2x128xbf16>
    %158 = arith.mulf %155, %157 : vector<2x2x128xbf16>
    %159 = arith.extf %158 : vector<2x2x128xbf16> to vector<2x2x128xf32>
    %160 = arith.addf %152, %159 : vector<2x2x128xf32>
    %c20 = arith.constant 20 : index
    %c0_119 = arith.constant 0 : index
    %161 = vector.load %arg2[%c20, %c0_119] : memref<25x128xbf16, #tpu.memory_space<vmem>>, vector<1x128xbf16>
    %c0_120 = arith.constant 0 : index
    %c2_121 = arith.constant 2 : index
    %c0_122 = arith.constant 0 : index
    %c0_123 = arith.constant 0 : index
    %c0_124 = arith.constant 0 : index
    %162 = vector.load %arg1[%c0_120, %c2_121, %c0_122, %c0_123, %c0_124] : memref<1x4x2x4x256xbf16, #tpu.memory_space<vmem>>, vector<1x2x1x2x128xbf16>
    %163 = vector.shape_cast %162 : vector<1x2x1x2x128xbf16> to vector<2x2x128xbf16>
    %164 = vector.shape_cast %161 : vector<1x128xbf16> to vector<1x1x128xbf16>
    %165 = vector.broadcast %164 : vector<1x1x128xbf16> to vector<2x2x128xbf16>
    %166 = arith.mulf %163, %165 : vector<2x2x128xbf16>
    %167 = arith.extf %166 : vector<2x2x128xbf16> to vector<2x2x128xf32>
    %168 = arith.addf %160, %167 : vector<2x2x128xf32>
    %c21 = arith.constant 21 : index
    %c0_125 = arith.constant 0 : index
    %169 = vector.load %arg2[%c21, %c0_125] : memref<25x128xbf16, #tpu.memory_space<vmem>>, vector<1x128xbf16>
    %c0_126 = arith.constant 0 : index
    %c2_127 = arith.constant 2 : index
    %c0_128 = arith.constant 0 : index
    %c0_129 = arith.constant 0 : index
    %c128_130 = arith.constant 128 : index
    %170 = vector.load %arg1[%c0_126, %c2_127, %c0_128, %c0_129, %c128_130] : memref<1x4x2x4x256xbf16, #tpu.memory_space<vmem>>, vector<1x2x1x2x128xbf16>
    %171 = vector.shape_cast %170 : vector<1x2x1x2x128xbf16> to vector<2x2x128xbf16>
    %172 = vector.shape_cast %169 : vector<1x128xbf16> to vector<1x1x128xbf16>
    %173 = vector.broadcast %172 : vector<1x1x128xbf16> to vector<2x2x128xbf16>
    %174 = arith.mulf %171, %173 : vector<2x2x128xbf16>
    %175 = arith.extf %174 : vector<2x2x128xbf16> to vector<2x2x128xf32>
    %176 = arith.addf %168, %175 : vector<2x2x128xf32>
    %c22 = arith.constant 22 : index
    %c0_131 = arith.constant 0 : index
    %177 = vector.load %arg2[%c22, %c0_131] : memref<25x128xbf16, #tpu.memory_space<vmem>>, vector<1x128xbf16>
    %c0_132 = arith.constant 0 : index
    %c2_133 = arith.constant 2 : index
    %c0_134 = arith.constant 0 : index
    %c1_135 = arith.constant 1 : index
    %c0_136 = arith.constant 0 : index
    %178 = vector.load %arg1[%c0_132, %c2_133, %c0_134, %c1_135, %c0_136] : memref<1x4x2x4x256xbf16, #tpu.memory_space<vmem>>, vector<1x2x1x2x128xbf16>
    %179 = vector.shape_cast %178 : vector<1x2x1x2x128xbf16> to vector<2x2x128xbf16>
    %180 = vector.shape_cast %177 : vector<1x128xbf16> to vector<1x1x128xbf16>
    %181 = vector.broadcast %180 : vector<1x1x128xbf16> to vector<2x2x128xbf16>
    %182 = arith.mulf %179, %181 : vector<2x2x128xbf16>
    %183 = arith.extf %182 : vector<2x2x128xbf16> to vector<2x2x128xf32>
    %184 = arith.addf %176, %183 : vector<2x2x128xf32>
    %c23 = arith.constant 23 : index
    %c0_137 = arith.constant 0 : index
    %185 = vector.load %arg2[%c23, %c0_137] : memref<25x128xbf16, #tpu.memory_space<vmem>>, vector<1x128xbf16>
    %c0_138 = arith.constant 0 : index
    %c2_139 = arith.constant 2 : index
    %c0_140 = arith.constant 0 : index
    %c1_141 = arith.constant 1 : index
    %c128_142 = arith.constant 128 : index
    %186 = vector.load %arg1[%c0_138, %c2_139, %c0_140, %c1_141, %c128_142] : memref<1x4x2x4x256xbf16, #tpu.memory_space<vmem>>, vector<1x2x1x2x128xbf16>
    %187 = vector.shape_cast %186 : vector<1x2x1x2x128xbf16> to vector<2x2x128xbf16>
    %188 = vector.shape_cast %185 : vector<1x128xbf16> to vector<1x1x128xbf16>
    %189 = vector.broadcast %188 : vector<1x1x128xbf16> to vector<2x2x128xbf16>
    %190 = arith.mulf %187, %189 : vector<2x2x128xbf16>
    %191 = arith.extf %190 : vector<2x2x128xbf16> to vector<2x2x128xf32>
    %192 = arith.addf %184, %191 : vector<2x2x128xf32>
    %c24 = arith.constant 24 : index
    %c0_143 = arith.constant 0 : index
    %193 = vector.load %arg2[%c24, %c0_143] : memref<25x128xbf16, #tpu.memory_space<vmem>>, vector<1x128xbf16>
    %c0_144 = arith.constant 0 : index
    %c2_145 = arith.constant 2 : index
    %c0_146 = arith.constant 0 : index
    %c2_147 = arith.constant 2 : index
    %c0_148 = arith.constant 0 : index
    %194 = vector.load %arg1[%c0_144, %c2_145, %c0_146, %c2_147, %c0_148] : memref<1x4x2x4x256xbf16, #tpu.memory_space<vmem>>, vector<1x2x1x2x128xbf16>
    %195 = vector.shape_cast %194 : vector<1x2x1x2x128xbf16> to vector<2x2x128xbf16>
    %196 = vector.shape_cast %193 : vector<1x128xbf16> to vector<1x1x128xbf16>
    %197 = vector.broadcast %196 : vector<1x1x128xbf16> to vector<2x2x128xbf16>
    %198 = arith.mulf %195, %197 : vector<2x2x128xbf16>
    %199 = arith.extf %198 : vector<2x2x128xbf16> to vector<2x2x128xf32>
    %200 = arith.addf %192, %199 : vector<2x2x128xf32>
    %c0_149 = arith.constant 0 : index
    %c0_150 = arith.constant 0 : index
    %201 = vector.load %arg3[%c0_149, %c0_150] : memref<1x128xf32, #tpu.memory_space<vmem>>, vector<1x128xf32>
    %202 = vector.shape_cast %201 : vector<1x128xf32> to vector<1x1x128xf32>
    %203 = vector.broadcast %202 : vector<1x1x128xf32> to vector<2x2x128xf32>
    %204 = arith.addf %200, %203 : vector<2x2x128xf32>
    %205 = arith.negf %204 : vector<2x2x128xf32>
    %206 = math.exp %205 : vector<2x2x128xf32>
    %cst_151 = arith.constant 1.000000e+00 : f32
    %207 = vector.broadcast %cst_151 : f32 to vector<2x2x128xf32>
    %208 = arith.addf %207, %206 : vector<2x2x128xf32>
    %209 = arith.divf %207, %208 : vector<2x2x128xf32>
    %210 = arith.mulf %204, %209 : vector<2x2x128xf32>
    %211 = arith.truncf %210 : vector<2x2x128xf32> to vector<2x2x128xbf16>
    %c0_152 = arith.constant 0 : index
    %c0_153 = arith.constant 0 : index
    %c0_154 = arith.constant 0 : index
    %c0_155 = arith.constant 0 : index
    %212 = vector.load %arg4[%c0_152, %c0_153, %c0_154, %c0_155] : memref<1x2x2x128xbf16, #tpu.memory_space<vmem>>, vector<1x2x2x128xbf16>
    %213 = vector.shape_cast %212 : vector<1x2x2x128xbf16> to vector<2x2x128xbf16>
    %214 = vector.shape_cast %211 : vector<2x2x128xbf16> to vector<1x2x2x128xbf16>
    tpu.vector_store %arg4[%c0_152, %c0_153, %c0_154, %c0_155], %214 {strides = array<i32>} : memref<1x2x2x128xbf16, #tpu.memory_space<vmem>>, vector<1x2x2x128xbf16>,
    %cst_156 = arith.constant dense<0.000000e+00> : vector<128xf32>
    %215 = vector.multi_reduction <add>, %210, %cst_156 [0, 1] : vector<2x2x128xf32> to vector<128xf32>
    %cst_157 = arith.constant 2.500000e-01 : f32
    %216 = vector.broadcast %cst_157 : f32 to vector<128xf32>
    %217 = arith.mulf %215, %216 : vector<128xf32>
    %218 = vector.shape_cast %217 : vector<128xf32> to vector<1x128xf32>
    %c0_158 = arith.constant 0 : index
    %c0_159 = arith.constant 0 : index
    %c0_160 = arith.constant 0 : index
    %219 = vector.load %arg5[%c0_158, %c0_159, %c0_160] : memref<1x1x128xf32, #tpu.memory_space<vmem>>, vector<1x1x128xf32>
    %220 = vector.shape_cast %219 : vector<1x1x128xf32> to vector<1x128xf32>
    %221 = vector.shape_cast %218 : vector<1x128xf32> to vector<1x1x128xf32>
    tpu.vector_store %arg5[%c0_158, %c0_159, %c0_160], %221 {strides = array<i32>} : memref<1x1x128xf32, #tpu.memory_space<vmem>>, vector<1x1x128xf32>,
    return
  }
  func.func @transform_0(%arg0: i32) -> (i32, i32, i32, i32, i32) {
    %c0_i32 = arith.constant 0 : i32
    %c0_i32_0 = arith.constant 0 : i32
    %c0_i32_1 = arith.constant 0 : i32
    %c0_i32_2 = arith.constant 0 : i32
    %c0_i32_3 = arith.constant 0 : i32
    return %arg0, %c0_i32, %c0_i32_0, %c0_i32_1, %c0_i32_2 : i32, i32, i32, i32, i32
  }
  func.func @transform_1(%arg0: i32) -> (i32, i32) {
    %c0_i32 = arith.constant 0 : i32
    %c0_i32_0 = arith.constant 0 : i32
    %c0_i32_1 = arith.constant 0 : i32
    return %c0_i32, %c0_i32_0 : i32, i32
  }
  func.func @transform_2(%arg0: i32) -> (i32, i32) {
    %c0_i32 = arith.constant 0 : i32
    %c0_i32_0 = arith.constant 0 : i32
    %c0_i32_1 = arith.constant 0 : i32
    return %c0_i32, %c0_i32_0 : i32, i32
  }
  func.func @transform_3(%arg0: i32) -> (i32, i32, i32, i32) {
    %c0_i32 = arith.constant 0 : i32
    %c0_i32_0 = arith.constant 0 : i32
    %c0_i32_1 = arith.constant 0 : i32
    %c0_i32_2 = arith.constant 0 : i32
    return %arg0, %c0_i32, %c0_i32_0, %c0_i32_1 : i32, i32, i32, i32
  }
  func.func @transform_4(%arg0: i32) -> (i32, i32, i32) {
    %c0_i32 = arith.constant 0 : i32
    %c0_i32_0 = arith.constant 0 : i32
    %c0_i32_1 = arith.constant 0 : i32
    return %arg0, %c0_i32, %c0_i32_0 : i32, i32, i32
  }
}

module attributes {stable_mosaic.version = 11 : i64} {
  func.func @_mm_kernel(%arg0: i32, %arg1: i32, %arg2: i32, %arg3: i32, %arg4: memref<1x8x128xbf16, #tpu.memory_space<vmem>>, %arg5: memref<128x384xbf16, #tpu.memory_space<vmem>>, %arg6: memref<1x384xf32, #tpu.memory_space<vmem>>, %arg7: memref<1x8x384xbf16, #tpu.memory_space<vmem>>, %arg8: memref<8x384xf32, #tpu.memory_space<vmem>>) attributes {dimension_semantics = [#tpu.dimension_semantics<parallel>, #tpu.dimension_semantics<parallel>, #tpu.dimension_semantics<parallel>, #tpu.dimension_semantics<arbitrary>], iteration_bounds = array<i64: 1, 1, 1, 1>, scalar_prefetch = 0 : i64, scratch_operands = 1 : i64, tpu.core_type = #tpu.core_type<tc>, window_params = [{transform_indices = @transform_0, window_bounds = array<i64: 1, 8, 128>}, {transform_indices = @transform_1, window_bounds = array<i64: 128, 384>}, {transform_indices = @transform_2, window_bounds = array<i64: 1, 384>}, {transform_indices = @transform_3, window_bounds = array<i64: 1, 8, 384>}]} {
    %c0_i32 = arith.constant 0 : i32
    %0 = arith.cmpi eq, %arg3, %c0_i32 : i32
    %1 = arith.extui %0 : i1 to i32
    %c0_i32_0 = arith.constant 0 : i32
    %2 = arith.cmpi ne, %1, %c0_i32_0 : i32
    scf.if %2 {
      %cst_11 = arith.constant 0.000000e+00 : f32
      %13 = vector.broadcast %cst_11 : f32 to vector<8x384xf32>
      %c0_12 = arith.constant 0 : index
      %c0_13 = arith.constant 0 : index
      %14 = vector.load %arg8[%c0_12, %c0_13] : memref<8x384xf32, #tpu.memory_space<vmem>>, vector<8x384xf32>
      tpu.vector_store %arg8[%c0_12, %c0_13], %13 {strides = array<i32>} : memref<8x384xf32, #tpu.memory_space<vmem>>, vector<8x384xf32>,
    } else {
    }
    %c0 = arith.constant 0 : index
    %c0_1 = arith.constant 0 : index
    %c0_2 = arith.constant 0 : index
    %3 = vector.load %arg4[%c0, %c0_1, %c0_2] : memref<1x8x128xbf16, #tpu.memory_space<vmem>>, vector<1x8x128xbf16>
    %4 = vector.shape_cast %3 : vector<1x8x128xbf16> to vector<8x128xbf16>
    %c0_3 = arith.constant 0 : index
    %c0_4 = arith.constant 0 : index
    %5 = vector.load %arg8[%c0_3, %c0_4] : memref<8x384xf32, #tpu.memory_space<vmem>>, vector<8x384xf32>
    %c0_5 = arith.constant 0 : index
    %c0_6 = arith.constant 0 : index
    %6 = vector.load %arg5[%c0_5, %c0_6] : memref<128x384xbf16, #tpu.memory_space<vmem>>, vector<128x384xbf16>
    %cst = arith.constant dense<0.000000e+00> : vector<8x384xf32>
    %7 = tpu.matmul %4, %6, %cst {dimension_numbers = #tpu.dot_dimension_numbers<[1], [0], [0], [1], [0, 0, 1, 1], [], []>} : vector<8x128xbf16>, vector<128x384xbf16>, vector<8x384xf32> -> vector<8x384xf32>
    %8 = arith.addf %5, %7 : vector<8x384xf32>
    %c0_7 = arith.constant 0 : index
    %c0_8 = arith.constant 0 : index
    %9 = vector.load %arg8[%c0_7, %c0_8] : memref<8x384xf32, #tpu.memory_space<vmem>>, vector<8x384xf32>
    tpu.vector_store %arg8[%c0_7, %c0_8], %8 {strides = array<i32>} : memref<8x384xf32, #tpu.memory_space<vmem>>, vector<8x384xf32>,
    %c0_i32_9 = arith.constant 0 : i32
    %10 = arith.cmpi eq, %arg3, %c0_i32_9 : i32
    %11 = arith.extui %10 : i1 to i32
    %c0_i32_10 = arith.constant 0 : i32
    %12 = arith.cmpi ne, %11, %c0_i32_10 : i32
    scf.if %12 {
      %c0_11 = arith.constant 0 : index
      %c0_12 = arith.constant 0 : index
      %13 = vector.load %arg8[%c0_11, %c0_12] : memref<8x384xf32, #tpu.memory_space<vmem>>, vector<8x384xf32>
      %c0_13 = arith.constant 0 : index
      %c0_14 = arith.constant 0 : index
      %14 = vector.load %arg6[%c0_13, %c0_14] : memref<1x384xf32, #tpu.memory_space<vmem>>, vector<1x384xf32>
      %15 = vector.broadcast %14 : vector<1x384xf32> to vector<8x384xf32>
      %16 = arith.addf %13, %15 : vector<8x384xf32>
      %17 = arith.negf %16 : vector<8x384xf32>
      %18 = math.exp %17 : vector<8x384xf32>
      %cst_15 = arith.constant 1.000000e+00 : f32
      %19 = vector.broadcast %cst_15 : f32 to vector<8x384xf32>
      %20 = arith.addf %19, %18 : vector<8x384xf32>
      %21 = arith.divf %19, %20 : vector<8x384xf32>
      %22 = arith.mulf %16, %21 : vector<8x384xf32>
      %23 = arith.truncf %22 : vector<8x384xf32> to vector<8x384xbf16>
      %c0_16 = arith.constant 0 : index
      %c0_17 = arith.constant 0 : index
      %c0_18 = arith.constant 0 : index
      %24 = vector.load %arg7[%c0_16, %c0_17, %c0_18] : memref<1x8x384xbf16, #tpu.memory_space<vmem>>, vector<1x8x384xbf16>
      %25 = vector.shape_cast %24 : vector<1x8x384xbf16> to vector<8x384xbf16>
      %26 = vector.shape_cast %23 : vector<8x384xbf16> to vector<1x8x384xbf16>
      tpu.vector_store %arg7[%c0_16, %c0_17, %c0_18], %26 {strides = array<i32>} : memref<1x8x384xbf16, #tpu.memory_space<vmem>>, vector<1x8x384xbf16>,
    } else {
    }
    return
  }
  func.func @transform_0(%arg0: i32, %arg1: i32, %arg2: i32, %arg3: i32) -> (i32, i32, i32) {
    %c0_i32 = arith.constant 0 : i32
    return %arg0, %arg1, %arg3 : i32, i32, i32
  }
  func.func @transform_1(%arg0: i32, %arg1: i32, %arg2: i32, %arg3: i32) -> (i32, i32) {
    %c0_i32 = arith.constant 0 : i32
    return %arg3, %arg2 : i32, i32
  }
  func.func @transform_2(%arg0: i32, %arg1: i32, %arg2: i32, %arg3: i32) -> (i32, i32) {
    %c0_i32 = arith.constant 0 : i32
    %c0_i32_0 = arith.constant 0 : i32
    return %c0_i32, %arg2 : i32, i32
  }
  func.func @transform_3(%arg0: i32, %arg1: i32, %arg2: i32, %arg3: i32) -> (i32, i32, i32) {
    %c0_i32 = arith.constant 0 : i32
    return %arg0, %arg1, %arg2 : i32, i32, i32
  }
}

module attributes {stable_mosaic.version = 11 : i64} {
  func.func @_mm_kernel(%arg0: i32, %arg1: i32, %arg2: i32, %arg3: i32, %arg4: memref<1x8x384xbf16, #tpu.memory_space<vmem>>, %arg5: memref<384x128xbf16, #tpu.memory_space<vmem>>, %arg6: memref<1x128xf32, #tpu.memory_space<vmem>>, %arg7: memref<1x8x128xf32, #tpu.memory_space<vmem>>, %arg8: memref<8x128xf32, #tpu.memory_space<vmem>>) attributes {dimension_semantics = [#tpu.dimension_semantics<parallel>, #tpu.dimension_semantics<parallel>, #tpu.dimension_semantics<parallel>, #tpu.dimension_semantics<arbitrary>], iteration_bounds = array<i64: 1, 1, 1, 1>, scalar_prefetch = 0 : i64, scratch_operands = 1 : i64, tpu.core_type = #tpu.core_type<tc>, window_params = [{transform_indices = @transform_0, window_bounds = array<i64: 1, 8, 384>}, {transform_indices = @transform_1, window_bounds = array<i64: 384, 128>}, {transform_indices = @transform_2, window_bounds = array<i64: 1, 128>}, {transform_indices = @transform_3, window_bounds = array<i64: 1, 8, 128>}]} {
    %c0_i32 = arith.constant 0 : i32
    %0 = arith.cmpi eq, %arg3, %c0_i32 : i32
    %1 = arith.extui %0 : i1 to i32
    %c0_i32_0 = arith.constant 0 : i32
    %2 = arith.cmpi ne, %1, %c0_i32_0 : i32
    scf.if %2 {
      %cst_11 = arith.constant 0.000000e+00 : f32
      %13 = vector.broadcast %cst_11 : f32 to vector<8x128xf32>
      %c0_12 = arith.constant 0 : index
      %c0_13 = arith.constant 0 : index
      %14 = vector.load %arg8[%c0_12, %c0_13] : memref<8x128xf32, #tpu.memory_space<vmem>>, vector<8x128xf32>
      tpu.vector_store %arg8[%c0_12, %c0_13], %13 {strides = array<i32>} : memref<8x128xf32, #tpu.memory_space<vmem>>, vector<8x128xf32>,
    } else {
    }
    %c0 = arith.constant 0 : index
    %c0_1 = arith.constant 0 : index
    %c0_2 = arith.constant 0 : index
    %3 = vector.load %arg4[%c0, %c0_1, %c0_2] : memref<1x8x384xbf16, #tpu.memory_space<vmem>>, vector<1x8x384xbf16>
    %4 = vector.shape_cast %3 : vector<1x8x384xbf16> to vector<8x384xbf16>
    %c0_3 = arith.constant 0 : index
    %c0_4 = arith.constant 0 : index
    %5 = vector.load %arg8[%c0_3, %c0_4] : memref<8x128xf32, #tpu.memory_space<vmem>>, vector<8x128xf32>
    %c0_5 = arith.constant 0 : index
    %c0_6 = arith.constant 0 : index
    %6 = vector.load %arg5[%c0_5, %c0_6] : memref<384x128xbf16, #tpu.memory_space<vmem>>, vector<384x128xbf16>
    %cst = arith.constant dense<0.000000e+00> : vector<8x128xf32>
    %7 = tpu.matmul %4, %6, %cst {dimension_numbers = #tpu.dot_dimension_numbers<[1], [0], [0], [1], [0, 0, 1, 1], [], []>} : vector<8x384xbf16>, vector<384x128xbf16>, vector<8x128xf32> -> vector<8x128xf32>
    %8 = arith.addf %5, %7 : vector<8x128xf32>
    %c0_7 = arith.constant 0 : index
    %c0_8 = arith.constant 0 : index
    %9 = vector.load %arg8[%c0_7, %c0_8] : memref<8x128xf32, #tpu.memory_space<vmem>>, vector<8x128xf32>
    tpu.vector_store %arg8[%c0_7, %c0_8], %8 {strides = array<i32>} : memref<8x128xf32, #tpu.memory_space<vmem>>, vector<8x128xf32>,
    %c0_i32_9 = arith.constant 0 : i32
    %10 = arith.cmpi eq, %arg3, %c0_i32_9 : i32
    %11 = arith.extui %10 : i1 to i32
    %c0_i32_10 = arith.constant 0 : i32
    %12 = arith.cmpi ne, %11, %c0_i32_10 : i32
    scf.if %12 {
      %c0_11 = arith.constant 0 : index
      %c0_12 = arith.constant 0 : index
      %13 = vector.load %arg8[%c0_11, %c0_12] : memref<8x128xf32, #tpu.memory_space<vmem>>, vector<8x128xf32>
      %c0_13 = arith.constant 0 : index
      %c0_14 = arith.constant 0 : index
      %14 = vector.load %arg6[%c0_13, %c0_14] : memref<1x128xf32, #tpu.memory_space<vmem>>, vector<1x128xf32>
      %15 = vector.broadcast %14 : vector<1x128xf32> to vector<8x128xf32>
      %16 = arith.addf %13, %15 : vector<8x128xf32>
      %c0_15 = arith.constant 0 : index
      %c0_16 = arith.constant 0 : index
      %c0_17 = arith.constant 0 : index
      %17 = vector.load %arg7[%c0_15, %c0_16, %c0_17] : memref<1x8x128xf32, #tpu.memory_space<vmem>>, vector<1x8x128xf32>
      %18 = vector.shape_cast %17 : vector<1x8x128xf32> to vector<8x128xf32>
      %19 = vector.shape_cast %16 : vector<8x128xf32> to vector<1x8x128xf32>
      tpu.vector_store %arg7[%c0_15, %c0_16, %c0_17], %19 {strides = array<i32>} : memref<1x8x128xf32, #tpu.memory_space<vmem>>, vector<1x8x128xf32>,
    } else {
    }
    return
  }
  func.func @transform_0(%arg0: i32, %arg1: i32, %arg2: i32, %arg3: i32) -> (i32, i32, i32) {
    %c0_i32 = arith.constant 0 : i32
    return %arg0, %arg1, %arg3 : i32, i32, i32
  }
  func.func @transform_1(%arg0: i32, %arg1: i32, %arg2: i32, %arg3: i32) -> (i32, i32) {
    %c0_i32 = arith.constant 0 : i32
    return %arg3, %arg2 : i32, i32
  }
  func.func @transform_2(%arg0: i32, %arg1: i32, %arg2: i32, %arg3: i32) -> (i32, i32) {
    %c0_i32 = arith.constant 0 : i32
    %c0_i32_0 = arith.constant 0 : i32
    return %c0_i32, %arg2 : i32, i32
  }
  func.func @transform_3(%arg0: i32, %arg1: i32, %arg2: i32, %arg3: i32) -> (i32, i32, i32) {
    %c0_i32 = arith.constant 0 : i32
    return %arg0, %arg1, %arg2 : i32, i32, i32
  }
}

</mosaic_0001>

<bundles_post_ra>
// kernel: _lambda_.19
= control target key start
LH: loop header
LB: loop body
LE: loop exit
PB: predicated region body
PF: predicated region fallthrough
CT: control target
= control target key end

     0   :  { %8 = vsyncpa [#allocation4], 0  ;;  %s1128_s0 = inlined_call_operand.hbm [shape: bf16[1,128,128], index: 0, kind: input, shape index: {}]   ;;  %s1129_s1 = inlined_call_operand.hbm [shape: bf16[128,128], index: 1, kind: input, shape index: {}]   ;;  %s1130_s2 = inlined_call_operand.hbm [shape: f32[1,128], index: 2, kind: input, shape index: {}]   ;;  %s1131_s3 = inlined_call_operand.hbm [shape: bf16[1,128,128], index: 3, kind: output, shape index: {}]  }
   0x1   :  { %9 = vsyncpa [#allocation7], 0 }
   0x2   :  { %10 = vsyncpa [#allocation5], 0  ;;  %s956_s12 = smov [#allocation6]   ;;  %s957_s14 = smov [#allocation3]  }
   0x3   :  { %s28_s13 = sshll.u32 %s956_s12, 4  ;;  %s16_s15 = sshll.u32 %s957_s14, 4  ;;  %s29_s13 = int_to_ptr.vmem [resolvable:$true] %s28_s13  ;;  %s982_s15 = int_to_ptr.vmem [resolvable:$true] %s16_s15 }
   0x4   :  { %s862_s18 = scalar_lea.hbm %s1129_s1, 1024 }
   0x5   :  { %p863_p0 = scmp.ne.s32.totalorder %s1129_s1, %s862_s18  ;;  %p866_p1 = scmp.lt.u32.totalorder %s862_s18, %s1129_s1 }
   0x7   :  { %p868_p2 = pnand %p866_p1, %p863_p0 }
   0x9   :  { %871 = shalt.err (!%p868_p2)
}
   0xa   :  { %s872_s23 = scalar_lea.vmem %s29_s13, 1024  ;;  %p877_p4 = scmp.lt.s32.totalorder %s29_s13, %s29_s13 }
   0xb   :  { %p873_p3 = scmp.ne.s32.totalorder %s29_s13, %s872_s23  ;;  %p878_p5 = scmp.lt.s32.totalorder %s872_s23, %s872_s23 }
   0xd   :  { %p879_p6 = por %p878_p5, %p877_p4 }
   0xf   :  { %p880_p7 = pnand %p879_p6, %p873_p3 }
  0x11   :  { %883 = shalt.err (!%p880_p7)
}
  0x12   :  { %s958_s24 = smov 64   ;;  %s959_s25 = smov 4  }
  0x13   :  { %34 = dma.hbm_to_vmem [thread:$0]  %s1129_s1, 1024, %s29_s13, [#allocation7], %s958_s24, %s958_s24, %s959_s25  }
  0x14   :  { %s884_s30 = scalar_lea.hbm %s1128_s0, 1024 }
  0x15   :  { %p885_p8 = scmp.ne.s32.totalorder %s1128_s0, %s884_s30  ;;  %p888_p9 = scmp.lt.u32.totalorder %s884_s30, %s1128_s0 }
  0x17   :  { %p890_p10 = pnand %p888_p9, %p885_p8 }
  0x19   :  { %893 = shalt.err (!%p890_p10)
}
  0x1a   :  { %s894_s8 = scalar_lea.vmem %s982_s15, 1024  ;;  %p899_p12 = scmp.lt.s32.totalorder %s982_s15, %s982_s15 }
  0x1b   :  { %p895_p11 = scmp.ne.s32.totalorder %s982_s15, %s894_s8  ;;  %p900_p13 = scmp.lt.s32.totalorder %s894_s8, %s894_s8 }
  0x1d   :  { %p901_p0 = por %p900_p13, %p899_p12 }
  0x1f   :  { %p902_p1 = pnand %p901_p0, %p895_p11 }
  0x21   :  { %905 = shalt.err (!%p902_p1)
}
  0x22   :  { %22 = dma.hbm_to_vmem [thread:$0]  %s1128_s0, 1024, %s982_s15, [#allocation4], %s958_s24, %s958_s24, %s959_s25  }
  0x23   :  { %s960_s10 = smov [#allocation8]   ;;  %s906_s14 = scalar_lea.hbm %s1130_s2, 16 }
  0x24   :  { %s41_s11 = sshll.u32 %s960_s10, 4  ;;  %p907_p2 = scmp.ne.s32.totalorder %s1130_s2, %s906_s14  ;;  %s42_s11 = int_to_ptr.vmem [resolvable:$true] %s41_s11 }
  0x25   :  { %p910_p3 = scmp.lt.u32.totalorder %s906_s14, %s1130_s2 }
  0x27   :  { %p912_p4 = pnand %p910_p3, %p907_p2 }
  0x29   :  { %915 = shalt.err (!%p912_p4)
}
  0x2a   :  { %s916_s20 = scalar_lea.vmem %s42_s11, 16  ;;  %s920_s0 = scalar_lea.vmem %s42_s11, 32 }
  0x2b   :  { %p917_p5 = scmp.ne.s32.totalorder %s42_s11, %s916_s20  ;;  %p921_p6 = scmp.lt.s32.totalorder %s42_s11, %s42_s11 }
  0x2c   :  { %p922_p7 = scmp.lt.s32.totalorder %s920_s0, %s916_s20 }
  0x2e   :  { %p923_p8 = por %p922_p7, %p921_p6 }
  0x30   :  { %p924_p9 = pnand %p923_p8, %p917_p5 }
  0x32   :  { %927 = shalt.err (!%p924_p9)
}
  0x33   :  { %44 = dma.hbm_to_vmem [thread:$0]  %s1130_s2, 16, %s42_s11, [#allocation7]  }
  0x34   :  { %950 = dma.done.wait [#allocation4], 1024  }
  0x35   :  { %951 = vsyncadd [#allocation4], 4294966272 }
  0x36   :  { %952 = dma.done.wait [#allocation7], 1040  }
  0x37   :  { %953 = vsyncadd [#allocation7], 4294966256  ;;  %v782_v0 = vld [vmem:[#allocation6] sm:$0xff]   ;;  %v783_v1 = vld [vmem:[#allocation6 + $0x8] sm:$0xff]   ;;  %s961_s2 = smov [#allocation9]  }
  0x38   :  { %728 = vmatprep.subr.bf16.mxu0 %v782_v0  ;;  %760 = vmatprep.subr.bf16.mxu1 %v782_v0  ;;  %v784_v2 = vld [vmem:[#allocation6 + $0x10] sm:$0xff]   ;;  %v785_v3 = vld [vmem:[#allocation6 + $0x18] sm:$0xff]   ;;  %v790_v4 = vld [vmem:[#allocation3] sm:$0xff]   ;;  %s587_s22 = sshll.u32 %s961_s2, 4  ;;  %s588_s22 = int_to_ptr.vmem [resolvable:$true] %s587_s22 }
  0x39   :  { %729 = vmatpush3.bf16.msra.mxu0 %v782_v0  ;;  %768 = vmatpush3.bf16.msra.mxu1 %v782_v0  ;;  %v791_v5 = vld [vmem:[#allocation3 + $0x20] sm:$0xff]   ;;  %v787_v7 = vld [vmem:[#allocation6 + $0x28] sm:$0xff]   ;;  %v788_v8 = vld [vmem:[#allocation6 + $0x30] sm:$0xff]   ;;  %s928_s23 = scalar_lea.vmem %s588_s22, 1024  ;;  %p933_p11 = scmp.lt.s32.totalorder %s588_s22, %s588_s22 }
  0x3a   :  { %730 = vmatprep.subr.bf16.mxu0 %v783_v1  ;;  %761 = vmatprep.subr.bf16.mxu1 %v783_v1  ;;  %v786_v6 = vld [vmem:[#allocation6 + $0x20] sm:$0xff]   ;;  %v789_v9 = vld [vmem:[#allocation6 + $0x38] sm:$0xff]   ;;  %v792_v10 = vld [vmem:[#allocation3 + $0x8] sm:$0xff]   ;;  %p929_p10 = scmp.ne.s32.totalorder %s588_s22, %s928_s23  ;;  %p934_p12 = scmp.lt.s32.totalorder %s928_s23, %s928_s23 }
  0x3b   :  { %744 = vmatprep.mubr.bf16.mxu0 %v790_v4  ;;  %752 = vmatprep.mubr.bf16.mxu1 %v791_v5  ;;  %v793_v11 = vld [vmem:[#allocation3 + $0x28] sm:$0xff]   ;;  %v794_v12 = vld [vmem:[#allocation3 + $0x10] sm:$0xff]   ;;  %v796_v14 = vld [vmem:[#allocation3 + $0x18] sm:$0xff]  }
  0x3c   :  { %v795_v13 = vld [vmem:[#allocation3 + $0x30] sm:$0xff]   ;;  %v797_v15 = vld [vmem:[#allocation3 + $0x38] sm:$0xff]   ;;  %v1031_v16 = vld [vmem:[#allocation8] ss:$0 sm:$0xff]  ;;  %p935_p13 = por %p934_p12, %p933_p11 }
  0x3d   :  { %731 = vmatpush3.bf16.msra.mxu0 %v783_v1  ;;  %769 = vmatpush3.bf16.msra.mxu1 %v783_v1 }
  0x3e   :  { %732 = vmatprep.subr.bf16.mxu0 %v784_v2  ;;  %762 = vmatprep.subr.bf16.mxu1 %v784_v2  ;;  %p936_p0 = pnand %p935_p13, %p929_p10 }
  0x41   :  { %733 = vmatpush3.bf16.msra.mxu0 %v784_v2  ;;  %770 = vmatpush3.bf16.msra.mxu1 %v784_v2 }
  0x42   :  { %734 = vmatprep.subr.bf16.mxu0 %v785_v3  ;;  %763 = vmatprep.subr.bf16.mxu1 %v785_v3 }
  0x45   :  { %735 = vmatpush3.bf16.msra.mxu0 %v785_v3  ;;  %771 = vmatpush3.bf16.msra.mxu1 %v785_v3 }
  0x46   :  { %736 = vmatprep.subr.bf16.mxu0 %v786_v6  ;;  %764 = vmatprep.subr.bf16.mxu1 %v786_v6 }
  0x49   :  { %737 = vmatpush3.bf16.msra.mxu0 %v786_v6  ;;  %772 = vmatpush3.bf16.msra.mxu1 %v786_v6 }
  0x4a   :  { %738 = vmatprep.subr.bf16.mxu0 %v787_v7  ;;  %765 = vmatprep.subr.bf16.mxu1 %v787_v7 }
  0x4d   :  { %739 = vmatpush3.bf16.msra.mxu0 %v787_v7  ;;  %773 = vmatpush3.bf16.msra.mxu1 %v787_v7 }
  0x4e   :  { %740 = vmatprep.subr.bf16.mxu0 %v788_v8  ;;  %766 = vmatprep.subr.bf16.mxu1 %v788_v8 }
  0x51   :  { %741 = vmatpush3.bf16.msra.mxu0 %v788_v8  ;;  %774 = vmatpush3.bf16.msra.mxu1 %v788_v8 }
  0x52   :  { %742 = vmatprep.subr.bf16.mxu0 %v789_v9  ;;  %767 = vmatprep.subr.bf16.mxu1 %v789_v9 }
  0x55   :  { %743 = vmatpush3.bf16.msra.mxu0 %v789_v9  ;;  %775 = vmatpush3.bf16.msra.mxu1 %v789_v9 }
  0x58   :  { %745 = vmatmul.mubr.bf16.vlgmr.msra.gmra.mrb[0].mxu0 %v792_v10  ;;  %753 = vmatmul.mubr.bf16.vlgmr.msra.gmra.mrb[0].mxu1 %v793_v11 }
  0x59   :  { %748 = vmatprep.mubr.bf16.mxu0 %v794_v12  ;;  %756 = vmatprep.mubr.bf16.mxu1 %v795_v13 }
  0x60   :  { %749 = vmatmul.mubr.bf16.gmra.mrb[4].mxu0 %v796_v14  ;;  %757 = vmatmul.mubr.bf16.gmra.mrb[4].mxu1 %v797_v15 }
 0x12b   :  { %v746_v17 = vpop.f32.mrb[0].mxu0  ;;  %v754_v18 = vpop.f32.mrb[0].mxu1 }
 0x12c   :  { %v1034_v19 = vadd.f32 %v746_v17, %v1031_v16  ;;  %v1037_v20 = vadd.f32 %v754_v18, %v1031_v16  ;;  %v253_v21 = vpop.f32.mrb[1].mxu0  ;;  %v285_v22 = vpop.f32.mrb[1].mxu1 }
 0x12d   :  { %v1040_v23 = vadd.f32 %v1031_v16, %v253_v21  ;;  %v1043_v24 = vadd.f32 %v1031_v16, %v285_v22  ;;  %v747_v25 = vpop.f32.mrb[2].mxu0  ;;  %v755_v26 = vpop.f32.mrb[2].mxu1 }
 0x12e   :  { %v619_v27 = vmul.f32 -1.442695, %v1034_v19  ;;  %v627_v28 = vmul.f32 -1.442695, %v1037_v20  ;;  %v1048_v29 = vadd.f32 %v747_v25, %v1031_v16  ;;  %v1051_v30 = vadd.f32 %v755_v26, %v1031_v16  ;;  %v256_v31 = vpop.f32.mrb[3].mxu0  ;;  %v288_v32 = vpop.f32.mrb[3].mxu1 }
 0x12f   :  { %v617_v33 = vmul.f32 -1.442695, %v1040_v23  ;;  %v625_v34 = vmul.f32 -1.442695, %v1043_v24  ;;  %v1056_v35 = vadd.f32 %v1031_v16, %v256_v31  ;;  %v1059_v36 = vadd.f32 %v1031_v16, %v288_v32 }
 0x130   :  { %798 = vpow2.f32 %v619_v27  ;;  %v620_v37 = vmul.f32 -1.442695, %v1048_v29  ;;  %v628_v38 = vmul.f32 -1.442695, %v1051_v30 }
 0x131   :  { %800 = vpow2.f32 %v627_v28  ;;  %v618_v39 = vmul.f32 -1.442695, %v1056_v35  ;;  %v626_v40 = vmul.f32 -1.442695, %v1059_v36 }
 0x132   :  { %802 = vpow2.f32 %v617_v33 }
 0x133   :  { %804 = vpow2.f32 %v625_v34  ;;  %v750_v41 = vpop.f32.mrb[4].mxu0  ;;  %v758_v42 = vpop.f32.mrb[4].mxu1 }
 0x134   :  { %806 = vpow2.f32 %v620_v37  ;;  %v1066_v43 = vadd.f32 %v750_v41, %v1031_v16  ;;  %v1069_v44 = vadd.f32 %v758_v42, %v1031_v16  ;;  %v269_v45 = vpop.f32.mrb[5].mxu0  ;;  %v301_v46 = vpop.f32.mrb[5].mxu1 }
 0x135   :  { %808 = vpow2.f32 %v628_v38  ;;  %v1072_v47 = vadd.f32 %v1031_v16, %v269_v45  ;;  %v751_v48 = vpop.f32.mrb[6].mxu0  ;;  %v759_v49 = vpop.f32.mrb[6].mxu1  ;;  %v1082_v0 = vadd.f32 %v1031_v16, %v301_v46 }
 0x136   :  { %810 = vpow2.f32 %v618_v39  ;;  %v623_v50 = vmul.f32 -1.442695, %v1066_v43  ;;  %v631_v51 = vmul.f32 -1.442695, %v1069_v44  ;;  %v1077_v52 = vadd.f32 %v751_v48, %v1031_v16  ;;  %v272_v53 = vpop.f32.mrb[7].mxu0  ;;  %v304_v54 = vpop.f32.mrb[7].mxu1 }
 0x137   :  { %812 = vpow2.f32 %v626_v40  ;;  %v621_v55 = vmul.f32 -1.442695, %v1072_v47  ;;  %v629_v9 = vmul.f32 -1.442695, %v1082_v0  ;;  %v1086_v12 = vadd.f32 %v759_v49, %v1031_v16 }
 0x138   :  { %814 = vpow2.f32 %v623_v50  ;;  %v624_v56 = vmul.f32 -1.442695, %v1077_v52  ;;  %v1089_v14 = vadd.f32 %v1031_v16, %v272_v53  ;;  %v1092_v17 = vadd.f32 %v1031_v16, %v304_v54 }
 0x139   :  { %816 = vpow2.f32 %v631_v51  ;;  %v632_v22 = vmul.f32 -1.442695, %v1086_v12 }
 0x13a   :  { %v799_v57 = vpop.eup %798  ;;  %818 = vpow2.f32 %v621_v55  ;;  %v622_v27 = vmul.f32 -1.442695, %v1089_v14  ;;  %v630_v31 = vmul.f32 -1.442695, %v1092_v17 }
 0x13b   :  { %v801_v58 = vpop.eup %800  ;;  %v440_v59 = vadd.f32 1.0, %v799_v57  ;;  %820 = vpow2.f32 %v624_v56 }
 0x13c   :  { %v803_v60 = vpop.eup %802  ;;  %v448_v61 = vadd.f32 1.0, %v801_v58 }
 0x13d   :  { %v805_v62 = vpop.eup %804  ;;  %822 = vrcp.f32 %v440_v59  ;;  %v438_v63 = vadd.f32 1.0, %v803_v60 }
 0x13e   :  { %v807_v1 = vpop.eup %806  ;;  %824 = vrcp.f32 %v448_v61  ;;  %v446_v2 = vadd.f32 1.0, %v805_v62 }
 0x13f   :  { %v809_v3 = vpop.eup %808  ;;  %826 = vrcp.f32 %v438_v63  ;;  %v441_v4 = vadd.f32 1.0, %v807_v1 }
 0x140   :  { %v811_v5 = vpop.eup %810  ;;  %828 = vrcp.f32 %v446_v2  ;;  %v449_v6 = vadd.f32 1.0, %v809_v3 }
 0x141   :  { %v813_v7 = vpop.eup %812  ;;  %830 = vrcp.f32 %v441_v4  ;;  %v439_v8 = vadd.f32 1.0, %v811_v5 }
 0x142   :  { %v815_v10 = vpop.eup %814  ;;  %832 = vrcp.f32 %v449_v6  ;;  %v447_v11 = vadd.f32 1.0, %v813_v7 }
 0x143   :  { %834 = vrcp.f32 %v439_v8  ;;  %v444_v13 = vadd.f32 1.0, %v815_v10  ;;  %v817_v15 = vpop.eup %816 }
 0x144   :  { %836 = vrcp.f32 %v447_v11  ;;  %v819_v18 = vpop.eup %818  ;;  %v452_v53 = vadd.f32 1.0, %v817_v15 }
 0x145   :  { %838 = vpow2.f32 %v629_v9  ;;  %v821_v21 = vpop.eup %820  ;;  %v442_v55 = vadd.f32 1.0, %v819_v18 }
 0x146   :  { %840 = vrcp.f32 %v444_v13  ;;  %v445_v26 = vadd.f32 1.0, %v821_v21 }
 0x147   :  { %v823_v25 = vpop.eup %822 }
 0x148   :  { %v825_v28 = vpop.eup %824  ;;  %842 = vrcp.f32 %v445_v26  ;;  %v488_v37 = vmul.f32 %v823_v25, %v1034_v19 }
 0x149   :  { %v827_v32 = vpop.eup %826  ;;  %844 = vpow2.f32 %v632_v22  ;;  %v496_v40 = vmul.f32 %v825_v28, %v1037_v20 }
 0x14a   :  { %v829_v33 = vpop.eup %828  ;;  %846 = vpow2.f32 %v622_v27  ;;  %v486_v45 = vmul.f32 %v827_v32, %v1040_v23 }
 0x14b   :  { %v831_v34 = vpop.eup %830  ;;  %848 = vpow2.f32 %v630_v31  ;;  %v494_v50 = vmul.f32 %v829_v33, %v1043_v24 }
 0x14c   :  { %v833_v16 = vpop.eup %832  ;;  %v489_v38 = vmul.f32 %v831_v34, %v1048_v29  ;;  %850 = vrcp.f32 %v452_v53 }
 0x14d   :  { %v835_v39 = vpop.eup %834  ;;  %v497_v41 = vmul.f32 %v833_v16, %v1051_v30  ;;  %852 = vrcp.f32 %v442_v55 }
 0x14e   :  { %v837_v42 = vpop.eup %836  ;;  %v673_v46 = vpack.c.bf16 %v489_v38, %v488_v37  ;;  %v487_v48 = vmul.f32 %v835_v39, %v1056_v35 }
 0x14f   :  { %v839_v49 = vpop.eup %838  ;;  %v693_v51 = vpack.c.bf16 %v497_v41, %v496_v40  ;;  %v495_v19 = vmul.f32 %v837_v42, %v1059_v36 }
 0x150   :  { %705 = vst [vmem:[#allocation9 + $0x8] sm:$0xff] %v673_v46   ;;  %v668_v29 = vpack.c.bf16 %v487_v48, %v486_v45  ;;  %v841_v54 = vpop.eup %840  ;;  %v450_v30 = vadd.f32 1.0, %v839_v49 }
 0x151   :  { %709 = vst [vmem:[#allocation9 + $0x28] sm:$0xff] %v693_v51   ;;  %v688_v20 = vpack.c.bf16 %v495_v19, %v494_v50  ;;  %v492_v35 = vmul.f32 %v841_v54, %v1066_v43 }
 0x152   :  { %669 = vst [vmem:[#allocation9] sm:$0xff] %v668_v29   ;;  %v843_v56 = vpop.eup %842  ;;  %854 = vrcp.f32 %v450_v30 }
 0x153   :  { %708 = vst [vmem:[#allocation9 + $0x20] sm:$0xff] %v688_v20   ;;  %v845_v23 = vpop.eup %844  ;;  %v493_v24 = vmul.f32 %v843_v56, %v1077_v52 }
 0x154   :  { %v847_v57 = vpop.eup %846  ;;  %v453_v36 = vadd.f32 1.0, %v845_v23 }
 0x155   :  { %v849_v58 = vpop.eup %848  ;;  %v683_v59 = vpack.c.bf16 %v493_v24, %v492_v35  ;;  %v443_v60 = vadd.f32 1.0, %v847_v57 }
 0x156   :  { %856 = vrcp.f32 %v453_v36  ;;  %v451_v61 = vadd.f32 1.0, %v849_v58  ;;  %v851_v62 = vpop.eup %850 }
 0x157   :  { %707 = vst [vmem:[#allocation9 + $0x18] sm:$0xff] %v683_v59   ;;  %858 = vrcp.f32 %v443_v60  ;;  %v853_v63 = vpop.eup %852  ;;  %v500_v3 = vmul.f32 %v851_v62, %v1069_v44 }
 0x158   :  { %860 = vrcp.f32 %v451_v61  ;;  %v490_v5 = vmul.f32 %v853_v63, %v1072_v47 }
 0x15c   :  { %v855_v1 = vpop.eup %854 }
 0x15d   :  { %v498_v7 = vmul.f32 %v855_v1, %v1082_v0 }
 0x160   :  { %v857_v2 = vpop.eup %856 }
 0x161   :  { %v859_v43 = vpop.eup %858  ;;  %v501_v52 = vmul.f32 %v857_v2, %v1086_v12 }
 0x162   :  { %v861_v4 = vpop.eup %860  ;;  %v491_v6 = vmul.f32 %v859_v43, %v1089_v14 }
 0x163   :  { %v703_v8 = vpack.c.bf16 %v501_v52, %v500_v3  ;;  %v499_v9 = vmul.f32 %v861_v4, %v1092_v17 }
 0x164   :  { %v678_v10 = vpack.c.bf16 %v491_v6, %v490_v5 }
 0x165   :  { %711 = vst [vmem:[#allocation9 + $0x38] sm:$0xff] %v703_v8   ;;  %v698_v11 = vpack.c.bf16 %v499_v9, %v498_v7 }
 0x166   :  { %706 = vst [vmem:[#allocation9 + $0x10] sm:$0xff] %v678_v10  }
 0x167   :  { %710 = vst [vmem:[#allocation9 + $0x30] sm:$0xff] %v698_v11  }
 0x168   :  { %939 = shalt.err (!%p936_p0)
}
 0x169   :  { %s940_s28 = scalar_lea.hbm %s1131_s3, 1024 }
 0x16a   :  { %p941_p1 = scmp.ne.s32.totalorder %s1131_s3, %s940_s28  ;;  %p944_p2 = scmp.lt.u32.totalorder %s940_s28, %s1131_s3 }
 0x16c   :  { %p946_p3 = pnand %p944_p2, %p941_p1 }
 0x16e   :  { %949 = shalt.err (!%p946_p3)
}
 0x16f   :  { %593 = dma.vmem_to_hbm [thread:$0]  %s588_s22, 1024, %s1131_s3, [#allocation5], %s958_s24, %s958_s24, %s959_s25  }
 0x170   :  { %954 = dma.done.wait [#allocation5], 1024  }
 0x171   :  { %955 = vsyncadd [#allocation5], 4294966272 }
 0x172   :  { %597 = vsyncpa [#allocation4], 1 }
 0x173   :  { %598 = vsyncpa [#allocation7], 1 }
 0x174   :  { %599 = vsyncpa [#allocation5], 1 }

// kernel: _lambda_.21
= control target key start
LH: loop header
LB: loop body
LE: loop exit
PB: predicated region body
PF: predicated region fallthrough
CT: control target
= control target key end

     0   :  { %10 = vsyncpa [#allocation3], 0  ;;  %s511_s0 = inlined_call_operand.vmem [shape: f32[8,128], index: 0, kind: input, shape index: {}]   ;;  %s512_s1 = inlined_call_operand.hbm [shape: bf16[128,128], index: 1, kind: input, shape index: {}]   ;;  %s513_s2 = inlined_call_operand.vmem [shape: f32[1,128], index: 2, kind: input, shape index: {}]   ;;  %s514_s3 = inlined_call_operand.hbm [shape: bf16[128,128], index: 3, kind: input, shape index: {}]   ;;  %s515_s4 = inlined_call_operand.vmem [shape: f32[1,128], index: 4, kind: input, shape index: {}]   ;;  %s516_s5 = inlined_call_operand.vmem [shape: f32[8,128], index: 5, kind: output, shape index: {}]  }
   0x1   :  { %11 = vsyncpa [#allocation5], 0  ;;  %s439_s18 = smov [#allocation2]   ;;  %s391_s22 = scalar_lea.hbm %s512_s1, 1024 }
   0x2   :  { %s19_s19 = sshll.u32 %s439_s18, 4  ;;  %p392_p0 = scmp.ne.s32.totalorder %s512_s1, %s391_s22  ;;  %s20_s19 = int_to_ptr.vmem [resolvable:$true] %s19_s19 }
   0x3   :  { %p395_p1 = scmp.lt.u32.totalorder %s391_s22, %s512_s1 }
   0x5   :  { %p397_p2 = pnand %p395_p1, %p392_p0 }
   0x7   :  { %400 = shalt.err (!%p397_p2)
}
   0x8   :  { %s401_s27 = scalar_lea.vmem %s20_s19, 1024  ;;  %p406_p4 = scmp.lt.s32.totalorder %s20_s19, %s20_s19 }
   0x9   :  { %p402_p3 = scmp.ne.s32.totalorder %s20_s19, %s401_s27  ;;  %p407_p5 = scmp.lt.s32.totalorder %s401_s27, %s401_s27 }
   0xb   :  { %p408_p6 = por %p407_p5, %p406_p4 }
   0xd   :  { %p409_p7 = pnand %p408_p6, %p402_p3 }
   0xf   :  { %412 = shalt.err (!%p409_p7)
}
  0x10   :  { %s440_s28 = smov 64   ;;  %s441_s29 = smov 4  }
  0x11   :  { %25 = dma.hbm_to_vmem [thread:$0]  %s512_s1, 1024, %s20_s19, [#allocation3], %s440_s28, %s440_s28, %s441_s29  }
  0x12   :  { %s442_s7 = smov [#allocation4]   ;;  %s413_s11 = scalar_lea.hbm %s514_s3, 1024 }
  0x13   :  { %s33_s8 = sshll.u32 %s442_s7, 4  ;;  %p414_p8 = scmp.ne.s32.totalorder %s514_s3, %s413_s11  ;;  %s34_s8 = int_to_ptr.vmem [resolvable:$true] %s33_s8 }
  0x14   :  { %p417_p9 = scmp.lt.u32.totalorder %s413_s11, %s514_s3 }
  0x16   :  { %p419_p10 = pnand %p417_p9, %p414_p8 }
  0x18   :  { %422 = shalt.err (!%p419_p10)
}
  0x19   :  { %s423_s16 = scalar_lea.vmem %s34_s8, 1024  ;;  %p428_p12 = scmp.lt.s32.totalorder %s34_s8, %s34_s8 }
  0x1a   :  { %p424_p11 = scmp.ne.s32.totalorder %s34_s8, %s423_s16  ;;  %p429_p13 = scmp.lt.s32.totalorder %s423_s16, %s423_s16 }
  0x1c   :  { %p430_p0 = por %p429_p13, %p428_p12 }
  0x1e   :  { %p431_p1 = pnand %p430_p0, %p424_p11 }
  0x20   :  { %434 = shalt.err (!%p431_p1)
}
  0x21   :  { %39 = dma.hbm_to_vmem [thread:$0]  %s514_s3, 1024, %s34_s8, [#allocation5], %s440_s28, %s440_s28, %s441_s29  }
  0x22   :  { %435 = dma.done.wait [#allocation3], 1024  }
  0x23   :  { %436 = vsyncadd [#allocation3], 4294966272 }
  0x24   :  { %437 = dma.done.wait [#allocation5], 1024  }
  0x25   :  { %438 = vsyncadd [#allocation5], 4294966272  ;;  %v443_v0 = vmov 0.0   ;;  %vm444_vm0 = vmmov 0   ;;  %v371_v1 = vld [vmem:[#allocation2] sm:$0xff]   ;;  %v372_v2 = vld [vmem:[#allocation2 + $0x8] sm:$0xff]  }
  0x26   :  { %325 = vmatprep.subr.bf16.mxu0 %v443_v0  ;;  %341 = vmatprep.mubr.msk.bf16.mxu0 %vm444_vm0, %v443_v0  ;;  %v373_v3 = vld [vmem:[#allocation2 + $0x10] sm:$0xff]   ;;  %v374_v4 = vld [vmem:[#allocation2 + $0x18] sm:$0xff]   ;;  %v375_v5 = vld [vmem:[#allocation2 + $0x20] sm:$0xff]  }
  0x27   :  { %345 = vmatprep.subr.bf16.mxu1 %v443_v0  ;;  %361 = vmatprep.mubr.msk.bf16.mxu1 %vm444_vm0, %v443_v0  ;;  %v376_v6 = vld [vmem:[#allocation2 + $0x28] sm:$0xff]   ;;  %v377_v7 = vld [vmem:[#allocation2 + $0x30] sm:$0xff]   ;;  %v378_v8 = vld [vmem:[#allocation2 + $0x38] sm:$0xff]  }
  0x28   :  { %326 = vmatpush3.bf16.msra.mxu0 %v371_v1  ;;  %v49_v9 = vld [vmem:[%s511_s0] sm:$0xff]  ;;  %v380_v12 = vld [vmem:[#allocation4 + $0x8] sm:$0xff]   ;;  %v381_v13 = vld [vmem:[#allocation4 + $0x10] sm:$0xff]  }
  0x29   :  { %327 = vmatprep.subr.bf16.mxu0 %v443_v0  ;;  %v50_v10 = vpack.c.bf16 %v49_v9, %v49_v9  ;;  %v379_v11 = vld [vmem:[#allocation4] sm:$0xff]   ;;  %v382_v14 = vld [vmem:[#allocation4 + $0x18] sm:$0xff]   ;;  %v384_v16 = vld [vmem:[#allocation4 + $0x28] sm:$0xff]  }
  0x2a   :  { %346 = vmatpush3.bf16.msra.mxu1 %v379_v11  ;;  %v383_v15 = vld [vmem:[#allocation4 + $0x20] sm:$0xff]   ;;  %v385_v17 = vld [vmem:[#allocation4 + $0x30] sm:$0xff]   ;;  %v386_v18 = vld [vmem:[#allocation4 + $0x38] sm:$0xff]  }
  0x2b   :  { %347 = vmatprep.subr.bf16.mxu1 %v443_v0  ;;  %v288_v19 = vld [vmem:[%s513_s2] ss:$0 sm:$0xff] }
  0x2c   :  { %328 = vmatpush3.bf16.msra.mxu0 %v372_v2  ;;  %v298_v31 = vld [vmem:[%s515_s4] ss:$0 sm:$0xff] }
  0x2d   :  { %329 = vmatprep.subr.bf16.mxu0 %v443_v0 }
  0x2e   :  { %348 = vmatpush3.bf16.msra.mxu1 %v380_v12 }
  0x2f   :  { %349 = vmatprep.subr.bf16.mxu1 %v443_v0 }
  0x30   :  { %330 = vmatpush3.bf16.msra.mxu0 %v373_v3 }
  0x31   :  { %331 = vmatprep.subr.bf16.mxu0 %v443_v0 }
  0x32   :  { %350 = vmatpush3.bf16.msra.mxu1 %v381_v13 }
  0x33   :  { %351 = vmatprep.subr.bf16.mxu1 %v443_v0 }
  0x34   :  { %332 = vmatpush3.bf16.msra.mxu0 %v374_v4 }
  0x35   :  { %333 = vmatprep.subr.bf16.mxu0 %v443_v0 }
  0x36   :  { %352 = vmatpush3.bf16.msra.mxu1 %v382_v14 }
  0x37   :  { %353 = vmatprep.subr.bf16.mxu1 %v443_v0 }
  0x38   :  { %334 = vmatpush3.bf16.msra.mxu0 %v375_v5 }
  0x39   :  { %335 = vmatprep.subr.bf16.mxu0 %v443_v0 }
  0x3a   :  { %354 = vmatpush3.bf16.msra.mxu1 %v383_v15 }
  0x3b   :  { %355 = vmatprep.subr.bf16.mxu1 %v443_v0 }
  0x3c   :  { %336 = vmatpush3.bf16.msra.mxu0 %v376_v6 }
  0x3d   :  { %337 = vmatprep.subr.bf16.mxu0 %v443_v0 }
  0x3e   :  { %356 = vmatpush3.bf16.msra.mxu1 %v384_v16 }
  0x3f   :  { %357 = vmatprep.subr.bf16.mxu1 %v443_v0 }
  0x40   :  { %338 = vmatpush3.bf16.msra.mxu0 %v377_v7 }
  0x41   :  { %339 = vmatprep.subr.bf16.mxu0 %v443_v0 }
  0x42   :  { %358 = vmatpush3.bf16.msra.mxu1 %v385_v17 }
  0x43   :  { %359 = vmatprep.subr.bf16.mxu1 %v443_v0 }
  0x44   :  { %340 = vmatpush3.bf16.msra.mxu0 %v378_v8 }
  0x46   :  { %360 = vmatpush3.bf16.msra.mxu1 %v386_v18 }
  0x47   :  { %342 = vmatmul.mubr.bf16.vlgmr.msra.gmra.mrb[0].mxu0 %v50_v10 }
 0x11a   :  { %v156_v20 = vpop.f32.mrb[0].mxu0 }
 0x11b   :  { %v157_v21 = vadd.f32 %v288_v19, %v156_v20  ;;  %v343_v22 = vpop.f32.mrb[1].mxu0 }
 0x11c   :  { %v159_v23 = vpop.f32.mrb[2].mxu0 }
 0x11d   :  { %v297_v24 = vmul.f32 -1.442695, %v157_v21  ;;  %v344_v25 = vpop.f32.mrb[3].mxu0 }
 0x11f   :  { %387 = vpow2.f32 %v297_v24 }
 0x129   :  { %v388_v26 = vpop.eup %387 }
 0x12a   :  { %v165_v27 = vadd.f32 1.0, %v388_v26 }
 0x12c   :  { %389 = vrcp.f32 %v165_v27 }
 0x136   :  { %v390_v28 = vpop.eup %389 }
 0x137   :  { %v168_v29 = vmul.f32 %v390_v28, %v157_v21 }
 0x139   :  { %v169_v30 = vpack.c.bf16 %v168_v29, %v168_v29 }
 0x13b   :  { %362 = vmatmul.mubr.bf16.vlgmr.msra.gmra.mrb[0].mxu1 %v169_v30 }
 0x20e   :  { %v275_v32 = vpop.f32.mrb[0].mxu1 }
 0x20f   :  { %v276_v33 = vadd.f32 %v298_v31, %v275_v32  ;;  %v363_v34 = vpop.f32.mrb[1].mxu1 }
 0x210   :  { %v278_v35 = vpop.f32.mrb[2].mxu1 }
 0x211   :  { %281 = vst [vmem:[%s516_s5] sm:$0xff] %v276_v33  ;;  %v364_v36 = vpop.f32.mrb[3].mxu1 }
 0x212   :  { %286 = vsyncpa [#allocation3], 1 }
 0x213   :  { %287 = vsyncpa [#allocation5], 1 }

// kernel: _lambda_.22
= control target key start
LH: loop header
LB: loop body
LE: loop exit
PB: predicated region body
PF: predicated region fallthrough
CT: control target
= control target key end

     0   :  { %s1577_s0 = inlined_call_operand.hbm [shape: bf16[2,64,128], index: 0, kind: input, shape index: {}]   ;;  %s1578_s1 = inlined_call_operand.hbm [shape: bf16[128,128], index: 1, kind: input, shape index: {}]   ;;  %s1579_s2 = inlined_call_operand.hbm [shape: f32[1,128], index: 2, kind: input, shape index: {}]   ;;  %s1580_s3 = inlined_call_operand.hbm [shape: f32[2,1,128], index: 3, kind: input, shape index: {}]   ;;  %s1581_s4 = inlined_call_operand.hbm [shape: bf16[2,64,128], index: 4, kind: output, shape index: {}]  }
   0x1   :  { %1588 = sst [smem:[#allocation16_spill]] %s1577_s0 }
   0x2   :  { %1589 = sst [smem:[#allocation17_spill]] %s1578_s1 }
   0x3   :  { %9 = vsyncpa [#allocation4], 0 }
   0x4   :  { %11 = vsyncpa [#allocation4 + $0x1], 0 }
   0x5   :  { %12 = vsyncpa [#allocation7], 0 }
   0x6   :  { %13 = vsyncpa [#allocation10], 0 }
   0x7   :  { %15 = vsyncpa [#allocation10 + $0x1], 0 }
   0x8   :  { %16 = vsyncpa [#allocation5], 0 }
   0x9   :  { %18 = vsyncpa [#allocation5 + $0x1], 0  ;;  %s1261_s15 = smov 0   ;;  %s1263_s16 = smov 0  }
   0xa   :  { %s1265_s17 = smov 0   ;;  %s1267_s18 = smov 0  }
   0xb   :  { %s1269_s19 = smov 0   ;;  %s1271_s20 = smov 0  }
   0xc LB: > { %s787_s21 = sadd.s32 4294967295, %s1225_s20   ;;  %s788_s22 = sadd.s32 4294967294, %s1225_s20   ;;  %s1225_s20 = sphi %s1271_s20, %s24_s20   ;;  %s1221_s19 = sphi %s1269_s19, %s1614_s19   ;;  %s1217_s18 = sphi %s1267_s18, %s1613_s18   ;;  %s1213_s17 = sphi %s1265_s17, %s1612_s17   ;;  %s1209_s16 = sphi %s1263_s16, %s1611_s16   ;;  %s1205_s15 = sphi %s1261_s15, %s1610_s15  }
   0xd   : > { %p68_p0 = scmp.ne.s32.totalorder %s1213_s17, %s1209_s16  ;;  %p69_p1 = scmp.eq.s32.totalorder %s1225_s20, 0 }
   0xe   : > { %p74_p2 = scmp.ne.s32.totalorder %s1209_s16, %s1205_s15  ;;  %p1299_p3 = scmp.eq.s32.totalorder %s787_s21, 0 }
   0xf   : > { %p184_p4 = scmp.eq.s32.totalorder %s787_s21, 1  ;;  %p1303_p5 = por %p69_p1, %p68_p0 }
  0x10   : > { %s1590_s24 = scalar_select %p1299_p3, 1, 0 }
  0x11   : > { %p190_p6 = scmp.eq.s32.totalorder %s788_s22, 1  ;;  %p1309_p7 = por %p1299_p3, %p74_p2 }
  0x12   : > { %p1313_p8 = por %p184_p4, %p68_p0  ;;  %p789_p10 = scmp.ge.s32.totalorder %s1225_s20, 1 }
  0x13   : > { %s1592_s26 = scalar_select %p1309_p7, 1, 0 }
  0x14   : > { %s1593_s27 = scalar_select %p1313_p8, 1, 0 }
  0x15   : > { %p1317_p9 = por %p190_p6, %p74_p2  ;;  %p197_p11 = scmp.lt.s32.totalorder %s1225_s20, 3 }
  0x16   : > { %s1227_s30 = smov [#allocation6]   ;;  %s1228_s7 = smov [#allocation8]  }
  0x17   : > { %s1594_s28 = scalar_select %p1317_p9, 1, 0 }
  0x18   : > { %p1323_p12 = pnand %p789_p10, %p197_p11  ;;  %s213_s5 = sshll.u32 %s1227_s30, 4  ;;  %s1327_s5 = int_to_ptr.vmem [resolvable:$true] %s213_s5 }
  0x19   : > { %s229_s8 = sshll.u32 %s1228_s7, 4  ;;  %s1597_s1 = sld [smem:[#allocation17_spill]]  ;;  %s1338_s8 = int_to_ptr.vmem [resolvable:$true] %s229_s8 }
  0x1a   : > { %s1595_s29 = scalar_select %p1323_p12, 1, 0 }
  0x1b   : > { %p929_p13 = pneg %p1323_p12 }
  0x1d   : > { %p1334_p1 = pnand %p929_p13, %p1299_p3 }
  0x1f   : > { %s1019_s12 = scalar_lea.hbm %s1597_s1, 1024  ;;  %p1021_p4 = pneg %p1334_p1 }
  0x20   : > { %p1020_p2 = scmp.ne.s32.totalorder %s1597_s1, %s1019_s12  ;;  %p1026_p11 = scmp.lt.u32.totalorder %s1019_s12, %s1597_s1 }
  0x22   : > { %p1022_p6 = pnand %p1021_p4, %p1020_p2 }
  0x24   : > { %p1023_p10 = pneg %p1022_p6 }
  0x26   : > { %p1028_p13 = pnand %p1026_p11, %p1023_p10 }
  0x28   : > { %1031 = shalt.err (!%p1028_p13)
}
  0x29   : > { %s1032_s30 = scalar_lea.vmem %s1327_s5, 1024  ;;  %p1040_p3 = scmp.lt.s32.totalorder %s1327_s5, %s1327_s5 }
  0x2a   : > { %p1033_p0 = scmp.ne.s32.totalorder %s1327_s5, %s1032_s30  ;;  %p1041_p2 = scmp.lt.s32.totalorder %s1032_s30, %s1032_s30 }
  0x2c   : > { %p1035_p9 = pnand %p1033_p0, %p1021_p4  ;;  %p1042_p6 = por %p1041_p2, %p1040_p3 }
  0x2e   : > { %p1036_p8 = pneg %p1035_p9 }
  0x30   : > { %p1043_p7 = pnand %p1042_p6, %p1036_p8 }
  0x32   : > { %1046 = shalt.err (!%p1043_p7)
}
  0x33   : > { %s1586_s7 = smov 64   ;;  %s1230_s10 = smov 4  }
  0x34   : > { %932 = dma.hbm_to_vmem [thread:$0]  (!%p1334_p1), %s1597_s1, 1024, %s1327_s5, [#allocation7], %s1586_s7, %s1586_s7, %s1230_s10  }
  0x35   : > { %s1047_s21 = scalar_lea.hbm %s1579_s2, 16 }
  0x36   : > { %p1048_p3 = scmp.ne.s32.totalorder %s1579_s2, %s1047_s21  ;;  %p1054_p9 = scmp.lt.u32.totalorder %s1047_s21, %s1579_s2 }
  0x38   : > { %p1050_p7 = pnand %p1048_p3, %p1021_p4 }
  0x3a   : > { %p1051_p8 = pneg %p1050_p7 }
  0x3c   : > { %p1056_p0 = pnand %p1054_p9, %p1051_p8 }
  0x3e   : > { %1059 = shalt.err (!%p1056_p0)
}
  0x3f   : > { %s1060_s5 = scalar_lea.vmem %s1338_s8, 16  ;;  %s1067_s11 = scalar_lea.vmem %s1338_s8, 32 }
  0x40   : > { %p1061_p10 = scmp.ne.s32.totalorder %s1338_s8, %s1060_s5  ;;  %p1068_p2 = scmp.lt.s32.totalorder %s1338_s8, %s1338_s8 }
  0x41   : > { %p1069_p6 = scmp.lt.s32.totalorder %s1067_s11, %s1060_s5 }
  0x42   : > { %p1063_p11 = pnand %p1061_p10, %p1021_p4 }
  0x43   : > { %p1070_p3 = por %p1069_p6, %p1068_p2 }
  0x44   : > { %p1064_p13 = pneg %p1063_p11 }
  0x46   : > { %p1071_p7 = pnand %p1070_p3, %p1064_p13 }
  0x48   : > { %1074 = shalt.err (!%p1071_p7)
}
  0x49   : > { %935 = dma.hbm_to_vmem [thread:$0]  (!%p1334_p1), %s1579_s2, 16, %s1338_s8, [#allocation7]  }
  0x4a   : > { %s1598_s12 = sadd.s32 1, %s1221_s19  ;;  %p949_p8 = scmp.lt.s32.totalorder %s1225_s20, 2 }
  0x4b   : > { %p52_p4 = scmp.ge.s32.totalorder %s1598_s12, 2  ;;  %s1401_s13 = sand.u32 1, %s1213_s17  }
  0x4c   : > { %s830_s6 = sshll.u32 %s1221_s19, 9  ;;  %s1599_s14 = smov %s1598_s12 }
  0x4d   : > { %s1616_s14 = smov (%p52_p4, %s1599_s14), 0  ;;  %s793_s21 = sshll.u32 %s1401_s13, 5 }
  0x4e   : > { %s54_s22 = ssub.s32 %s1221_s19, %s1616_s14  ;;  %s1600_s0 = sld [smem:[#allocation16_spill]] }
  0x4f   : > { %p59_p9 = scmp.eq.s32.totalorder %s54_s22, 0  ;;  %s244_s8 = scalar_lea.vmem [#allocation3], %s793_s21 }
  0x50   : > { %s254_s23 = sshll.u32 %s244_s8, 4  ;;  %p1418_p1 = pnand %p949_p8, %p1303_p5  ;;  %s1427_s23 = int_to_ptr.vmem [resolvable:$true] %s254_s23 }
  0x51   : > { %s1602_s12 = sadd.s32 1, %s1213_s17 }
  0x52   : > { %s1425_s22 = scalar_select %p59_p9, %s1213_s17, %s1602_s12  }
  0x53   : > { %p1077_p10 = pneg %p1418_p1 }
  0x54   : > { %s1414_s11 = scalar_lea.hbm %s1600_s0, %s830_s6  ;;  %s241_s6 = scalar_lea.sflag [#allocation4], %s1401_s13 }
  0x55   : > { %s1075_s30 = scalar_lea.hbm %s1414_s11, 512  ;;  %s1080_s5 = scalar_lea.hbm %s1600_s0, 1024 }
  0x56   : > { %p1076_p0 = scmp.ne.s32.totalorder %s1414_s11, %s1075_s30  ;;  %p1081_p5 = scmp.lt.u32.totalorder %s1414_s11, %s1600_s0 }
  0x57   : > { %p1082_p2 = scmp.lt.u32.totalorder %s1080_s5, %s1075_s30  ;;  %p1084_p3 = scmp.lt.u32.totalorder %s1075_s30, %s1414_s11 }
  0x58   : > { %p1078_p11 = pnand %p1077_p10, %p1076_p0 }
  0x59   : > { %p1083_p6 = por %p1082_p2, %p1081_p5 }
  0x5a   : > { %p1079_p13 = pneg %p1078_p11 }
  0x5b   : > { %p1085_p7 = por %p1084_p3, %p1083_p6 }
  0x5d   : > { %p1086_p4 = pnand %p1085_p7, %p1079_p13 }
  0x5f   : > { %1089 = shalt.err (!%p1086_p4)
}
  0x60   : > { %s1090_s12 = scalar_lea.vmem %s1427_s23, 512  ;;  %s1231_s25 = smov [#allocation3]  }
  0x61   : > { %p1091_p8 = scmp.ne.s32.totalorder %s1427_s23, %s1090_s12  ;;  %s1095_s21 = sshll.u32 %s1231_s25, 4  ;;  %s1096_s21 = int_to_ptr.vmem [resolvable:$false] %s1095_s21 }
  0x62   : > { %s1097_s7 = scalar_lea.vmem %s1096_s21, 1024  ;;  %p1098_p11 = scmp.lt.s32.totalorder %s1427_s23, %s1096_s21 }
  0x63   : > { %p1093_p9 = pnand %p1091_p8, %p1077_p10  ;;  %p1099_p5 = scmp.lt.s32.totalorder %s1097_s7, %s1090_s12 }
  0x65   : > { %p1094_p0 = pneg %p1093_p9  ;;  %p1100_p2 = por %p1099_p5, %p1098_p11 }
  0x67   : > { %p1101_p6 = pnand %p1100_p2, %p1094_p0 }
  0x69   : > { %1104 = shalt.err (!%p1101_p6)
}
  0x6a   : > { %s1603_s30 = smov 64   ;;  %s796_s5 = sshll.u32 %s1221_s19, 4 }
  0x6b   : > { %939 = dma.hbm_to_vmem [thread:$0]  (!%p1418_p1), %s1414_s11, 512, %s1427_s23, %s241_s6, %s1603_s30, %s1603_s30, %s1230_s10  }
  0x6c   : > { %s267_s8 = scalar_lea.vmem [#allocation9], %s1401_s13  ;;  %s1465_s7 = scalar_lea.hbm %s1580_s3, %s796_s5 }
  0x6d   : > { %s275_s12 = sshll.u32 %s267_s8, 4  ;;  %s265_s0 = scalar_lea.sflag [#allocation10], %s1401_s13  ;;  %s276_s12 = int_to_ptr.vmem [resolvable:$true] %s275_s12 }
  0x6e   : > { %s1105_s1 = scalar_lea.hbm %s1465_s7, 16  ;;  %s1110_s23 = scalar_lea.hbm %s1580_s3, 32 }
  0x6f   : > { %p1106_p13 = scmp.ne.s32.totalorder %s1465_s7, %s1105_s1  ;;  %p1111_p4 = scmp.lt.u32.totalorder %s1465_s7, %s1580_s3 }
  0x70   : > { %p1112_p8 = scmp.lt.u32.totalorder %s1110_s23, %s1105_s1  ;;  %p1114_p0 = scmp.lt.u32.totalorder %s1105_s1, %s1465_s7 }
  0x71   : > { %p1108_p3 = pnand %p1106_p13, %p1077_p10 }
  0x72   : > { %p1113_p9 = por %p1112_p8, %p1111_p4 }
  0x73   : > { %p1109_p7 = pneg %p1108_p3 }
  0x74   : > { %p1115_p11 = por %p1114_p0, %p1113_p9 }
  0x76   : > { %p1116_p5 = pnand %p1115_p11, %p1109_p7 }
  0x78   : > { %1119 = shalt.err (!%p1116_p5)
}
  0x79   : > { %s1120_s13 = scalar_lea.vmem %s276_s12, 16  ;;  %s1232_s5 = smov [#allocation9]  }
  0x7a   : > { %p1121_p2 = scmp.ne.s32.totalorder %s276_s12, %s1120_s13  ;;  %s1125_s8 = sshll.u32 %s1232_s5, 4  ;;  %s1126_s8 = int_to_ptr.vmem [resolvable:$false] %s1125_s8 }
  0x7b   : > { %s1127_s25 = scalar_lea.vmem %s1126_s8, 32  ;;  %p1128_p3 = scmp.lt.s32.totalorder %s276_s12, %s1126_s8 }
  0x7c   : > { %p1123_p6 = pnand %p1121_p2, %p1077_p10  ;;  %p1129_p12 = scmp.lt.s32.totalorder %s1127_s25, %s1120_s13 }
  0x7e   : > { %p1124_p13 = pneg %p1123_p6  ;;  %p1130_p4 = por %p1129_p12, %p1128_p3 }
  0x80   : > { %p1131_p8 = pnand %p1130_p4, %p1124_p13 }
  0x82   : > { %1134 = shalt.err (!%p1131_p8)
}
  0x83   : > { %942 = dma.hbm_to_vmem [thread:$0]  (!%p1418_p1), %s1465_s7, 16, %s276_s12, %s265_s0  }
  0x84   : > { %p1604_p7 = scmp.ne.s32.totalorder %s1595_s29, 0 }
  0x85   : > { %s1490_s1 = sand.u32 (!%p1604_p7), 1, %s1209_s16   ;;  %p1605_p12 = scmp.ne.s32.totalorder (!%p1604_p7), %s1592_s26, 0 }
  0x86   : > { %284 = sbr.rel (%p1604_p7) target bundleno = 422 (0x1a6), region = 36  ;;  %s798_s21 = sshll.u32 (!%p1604_p7), %s1490_s1, 5 }
  0x87   : > { %s287_s10 = scalar_lea.sflag (!%p1604_p7), [#allocation4], %s1490_s1  ;;  %s1496_s11 = scalar_lea.vmem (!%p1604_p7), [#allocation3], %s798_s21 }
  0x8d   : > { %1188 = dma.done.wait (%p1605_p12), %s287_s10, 512  }
  0x8e   : > { %1190 = vsyncadd (%p1605_p12), %s287_s10, 4294966784  ;;  %p1606_p1 = scmp.ne.s32.totalorder %s1590_s24, 0 }
  0x90   : > { %1192 = dma.done.wait (%p1606_p1), [#allocation7], 1040  }
  0x91   : > { %1194 = vsyncadd (%p1606_p1), [#allocation7], 4294966256  ;;  %s304_s0 = scalar_lea.sflag [#allocation10], %s1490_s1  ;;  %s306_s29 = scalar_lea.vmem [#allocation9], %s1490_s1 }
  0x92   : > { %1196 = dma.done.wait (%p1605_p12), %s304_s0, 16  }
  0x93   : > { %1198 = vsyncadd (%p1605_p12), %s304_s0, 4294967280  ;;  %v1007_v0 = vld [vmem:[#allocation6] sm:$0xff]   ;;  %v1008_v1 = vld [vmem:[#allocation6 + $0x8] sm:$0xff]   ;;  %v370_v12 = vlaneseq  ;;  %s334_s24 = scalar_lea.vmem [#allocation11], %s798_s21  ;;  %s839_s9 = sshll.u32 %s1217_s18, 9 }
  0x94   : > { %875 = vmatprep.subr.bf16.mxu0 %v1007_v0  ;;  %899 = vmatprep.subr.bf16.mxu1 %v1007_v0  ;;  %v1009_v2 = vld [vmem:[#allocation6 + $0x10] sm:$0xff]   ;;  %v1010_v3 = vld [vmem:[#allocation6 + $0x18] sm:$0xff]   ;;  %v359_v4 = vld [vmem:[%s306_s29] sm:$0x1]  ;;  %s646_s26 = sshll.u32 %s334_s24, 4  ;;  %s1528_s7 = scalar_lea.hbm %s1581_s4, %s839_s9  ;;  %s1523_s26 = int_to_ptr.vmem [resolvable:$true] %s646_s26 }
  0x95   : > { %876 = vmatpush3.bf16.msra.mxu0 %v1007_v0  ;;  %907 = vmatpush3.bf16.msra.mxu1 %v1007_v0  ;;  %v802_v5 = vmul.f32 -1.442695, %v359_v4  ;;  %v1011_v6 = vld [vmem:[#allocation6 + $0x20] sm:$0xff]   ;;  %v1012_v7 = vld [vmem:[#allocation6 + $0x28] sm:$0xff]   ;;  %v1013_v8 = vld [vmem:[#allocation6 + $0x30] sm:$0xff]   ;;  %v371_v13 = vshrl.u32 %v370_v12, 7 }
  0x96   : > { %877 = vmatprep.subr.bf16.mxu0 %v1008_v1  ;;  %900 = vmatprep.subr.bf16.mxu1 %v1008_v1  ;;  %v1014_v11 = vld [vmem:[#allocation6 + $0x38] sm:$0xff]   ;;  %v351_v18 = vld [vmem:[%s1496_s11] sm:$0xf]  ;;  %v352_v19 = vld [vmem:[%s1496_s11 + $0x4] sm:$0xf]  ;;  %s630_s23 = scalar_lea.sflag [#allocation5], %s1490_s1 }
  0x97   : > { %1015 = vpow2.f32 %v802_v5  ;;  %v372_v16 = vsub.s32 0, %v371_v13  ;;  %v355_v21 = vld [vmem:[%s1496_s11 + $0x10] sm:$0xf]  ;;  %v356_v22 = vld [vmem:[%s1496_s11 + $0x14] sm:$0xf]  ;;  %s1135_s6 = scalar_lea.vmem %s1523_s26, 512 }
  0x98   : > { %v353_v23 = vld [vmem:[%s1496_s11 + $0x8] sm:$0xf]  ;;  %v354_v25 = vld [vmem:[%s1496_s11 + $0xc] sm:$0xf]  ;;  %v357_v26 = vld [vmem:[%s1496_s11 + $0x18] sm:$0xf]  ;;  %p1136_p10 = scmp.ne.s32.totalorder %s1523_s26, %s1135_s6 }
  0x99   : > { %878 = vmatpush3.bf16.msra.mxu0 %v1008_v1  ;;  %908 = vmatpush3.bf16.msra.mxu1 %v1008_v1  ;;  %v358_v27 = vld [vmem:[%s1496_s11 + $0x1c] sm:$0xf]  ;;  %v816_v41 = vld [vmem:[#allocation8] ss:$0 sm:$0xff]  ;;  %p1607_p9 = scmp.ne.s32.totalorder %s1593_s27, 0  ;;  %s1233_s30 = smov [#allocation11]  }
  0x9a   : > { %879 = vmatprep.subr.bf16.mxu0 %v1009_v2  ;;  %901 = vmatprep.subr.bf16.mxu1 %v1009_v2  ;;  %s1139_s13 = sshll.u32 %s1233_s30, 4  ;;  %s1140_s13 = int_to_ptr.vmem [resolvable:$false] %s1139_s13 }
  0x9b   : > { %p1137_p0 = pnand %p1136_p10, %p1607_p9  ;;  %s1141_s5 = scalar_lea.vmem %s1140_s13, 1024 }
  0x9c   : > { %p1142_p5 = scmp.lt.s32.totalorder %s1523_s26, %s1140_s13  ;;  %p1143_p2 = scmp.lt.s32.totalorder %s1141_s5, %s1135_s6 }
  0x9d   : > { %880 = vmatpush3.bf16.msra.mxu0 %v1009_v2  ;;  %909 = vmatpush3.bf16.msra.mxu1 %v1009_v2  ;;  %p1138_p11 = pneg %p1137_p0 }
  0x9e   : > { %881 = vmatprep.subr.bf16.mxu0 %v1010_v3  ;;  %902 = vmatprep.subr.bf16.mxu1 %v1010_v3  ;;  %p1144_p6 = por %p1143_p2, %p1142_p5 }
  0xa0   : > { %p1145_p13 = pnand %p1144_p6, %p1138_p11 }
  0xa1   : > { %882 = vmatpush3.bf16.msra.mxu0 %v1010_v3  ;;  %910 = vmatpush3.bf16.msra.mxu1 %v1010_v3  ;;  %v1016_v9 = vpop.eup %1015 }
  0xa2   : > { %883 = vmatprep.subr.bf16.mxu0 %v1011_v6  ;;  %903 = vmatprep.subr.bf16.mxu1 %v1011_v6  ;;  %v363_v10 = vadd.f32 1.0, %v1016_v9 }
  0xa4   : > { %1017 = vrcp.f32 %v363_v10 }
  0xa5   : > { %884 = vmatpush3.bf16.msra.mxu0 %v1011_v6  ;;  %911 = vmatpush3.bf16.msra.mxu1 %v1011_v6 }
  0xa6   : > { %885 = vmatprep.subr.bf16.mxu0 %v1012_v7  ;;  %904 = vmatprep.subr.bf16.mxu1 %v1012_v7 }
  0xa9   : > { %886 = vmatpush3.bf16.msra.mxu0 %v1012_v7  ;;  %912 = vmatpush3.bf16.msra.mxu1 %v1012_v7 }
  0xaa   : > { %887 = vmatprep.subr.bf16.mxu0 %v1013_v8  ;;  %905 = vmatprep.subr.bf16.mxu1 %v1013_v8 }
  0xad   : > { %888 = vmatpush3.bf16.msra.mxu0 %v1013_v8  ;;  %913 = vmatpush3.bf16.msra.mxu1 %v1013_v8 }
  0xae   : > { %889 = vmatprep.subr.bf16.mxu0 %v1014_v11  ;;  %906 = vmatprep.subr.bf16.mxu1 %v1014_v11  ;;  %v1018_v14 = vpop.eup %1017 }
  0xaf   : > { %v366_v15 = vpack.c.bf16 %v1018_v14, %v1018_v14 }
  0xb1   : > { %890 = vmatpush3.bf16.msra.mxu0 %v1014_v11  ;;  %914 = vmatpush3.bf16.msra.mxu1 %v1014_v11  ;;  %v368_v17 = vpack.i.b16 %v366_v15, %v366_v15 }
  0xb3   : > { %v373_v20 = vrot.slane %v368_v17, %v372_v16 }
  0xb5   : > { %v803_v24 = vcombine.low %v373_v20, %v373_v20 }
  0xb7   : > { %v378_v28 = vmul.bf16 %v803_v24, %v351_v18  ;;  %v379_v29 = vmul.bf16 %v803_v24, %v352_v19  ;;  %v382_v30 = vmul.bf16 %v803_v24, %v355_v21  ;;  %v383_v31 = vmul.bf16 %v803_v24, %v356_v22 }
  0xb8   : > { %v380_v32 = vmul.bf16 %v803_v24, %v353_v23  ;;  %v381_v33 = vmul.bf16 %v803_v24, %v354_v25  ;;  %v384_v34 = vmul.bf16 %v803_v24, %v357_v26  ;;  %v385_v35 = vmul.bf16 %v803_v24, %v358_v27 }
  0xb9   : > { %v804_v36 = vcombine.low %v378_v28, %v379_v29  ;;  %v806_v37 = vcombine.low %v382_v30, %v383_v31 }
  0xba   : > { %v805_v38 = vcombine.low %v380_v32, %v381_v33  ;;  %v807_v39 = vcombine.low %v384_v34, %v385_v35 }
  0xbb   : > { %891 = vmatprep.mubr.bf16.mxu0 %v804_v36  ;;  %895 = vmatprep.mubr.bf16.mxu1 %v806_v37 }
  0xbc   : > { %892 = vmatmul.mubr.bf16.vlgmr.msra.gmra.mrb[0].mxu0 %v805_v38  ;;  %896 = vmatmul.mubr.bf16.vlgmr.msra.gmra.mrb[0].mxu1 %v807_v39 }
 0x18f   : > { %v893_v40 = vpop.f32.mrb[0].mxu0  ;;  %v897_v42 = vpop.f32.mrb[0].mxu1 }
 0x190   : > { %v516_v43 = vpop.f32.mrb[1].mxu0  ;;  %v532_v44 = vpop.f32.mrb[1].mxu1  ;;  %v583_v47 = vadd.f32 %v893_v40, %v816_v41  ;;  %v587_v48 = vadd.f32 %v897_v42, %v816_v41 }
 0x191   : > { %v894_v45 = vpop.f32.mrb[2].mxu0  ;;  %v898_v46 = vpop.f32.mrb[2].mxu1  ;;  %v581_v53 = vadd.f32 %v816_v41, %v516_v43  ;;  %v585_v54 = vadd.f32 %v816_v41, %v532_v44 }
 0x192   : > { %v584_v49 = vadd.f32 %v894_v45, %v816_v41  ;;  %v588_v50 = vadd.f32 %v898_v46, %v816_v41  ;;  %v519_v51 = vpop.f32.mrb[3].mxu0  ;;  %v535_v52 = vpop.f32.mrb[3].mxu1 }
 0x193   : > { %v582_v55 = vadd.f32 %v816_v41, %v519_v51  ;;  %v586_v56 = vadd.f32 %v816_v41, %v535_v52 }
 0x194   : > { %v848_v57 = vpack.c.bf16 %v584_v49, %v583_v47  ;;  %v858_v58 = vpack.c.bf16 %v588_v50, %v587_v48 }
 0x195   : > { %v843_v59 = vpack.c.bf16 %v582_v55, %v581_v53  ;;  %v853_v60 = vpack.c.bf16 %v586_v56, %v585_v54 }
 0x196   : > { %860 = vst [vmem:[%s334_s24 + $0x8] sm:$0xff] %v848_v57   ;;  %862 = vst [vmem:[%s334_s24 + $0x18] sm:$0xff] %v858_v58  }
 0x197   : > { %844 = vst [vmem:[%s334_s24] sm:$0xff] %v843_v59   ;;  %861 = vst [vmem:[%s334_s24 + $0x10] sm:$0xff] %v853_v60  }
 0x198   : > { %1148 = shalt.err (!%p1145_p13)
}
 0x199   : > { %s1149_s8 = scalar_lea.hbm %s1528_s7, 512  ;;  %s1153_s10 = scalar_lea.hbm %s1581_s4, 1024 }
 0x19a   : > { %p1150_p3 = scmp.ne.s32.totalorder %s1528_s7, %s1149_s8  ;;  %p1154_p7 = scmp.lt.u32.totalorder %s1528_s7, %s1581_s4 }
 0x19b   : > { %p1155_p12 = scmp.lt.u32.totalorder %s1153_s10, %s1149_s8  ;;  %p1157_p10 = scmp.lt.u32.totalorder %s1149_s8, %s1528_s7 }
 0x19c   : > { %p1151_p4 = pnand %p1150_p3, %p1607_p9 }
 0x19d   : > { %p1156_p1 = por %p1155_p12, %p1154_p7 }
 0x19e   : > { %p1152_p8 = pneg %p1151_p4 }
 0x19f   : > { %p1158_p0 = por %p1157_p10, %p1156_p1 }
 0x1a1   : > { %p1159_p11 = pnand %p1158_p0, %p1152_p8 }
 0x1a3   : > { %1162 = shalt.err (!%p1159_p11)
}
 0x1a4   : > { %s1234_s29 = smov 64   ;;  %s1235_s24 = smov 4  }
 0x1a5   : > { %927 = dma.vmem_to_hbm [thread:$0]  (%p1607_p9), %s1523_s26, 512, %s1528_s7, %s630_s23, %s1234_s29, %s1234_s29, %s1235_s24  }
 0x1a6 PF: > { %s661_s9 = sand.u32 1, %s1205_s15   ;;  %p1608_p5 = scmp.ne.s32.totalorder %s1594_s28, 0 }
 0x1a7   : > { %p1609_p2 = scmp.ge.s32.totalorder %s1225_s20, 2  ;;  %s662_s12 = scalar_lea.sflag [#allocation5], %s661_s9 }
 0x1a9   : > { %p944_p6 = pnand %p1609_p2, %p1608_p5 }
 0x1ab   : > { %1200 = dma.done.wait (!%p944_p6), %s662_s12, 512  }
 0x1ac   : > { %1202 = vsyncadd (!%p944_p6), %s662_s12, 4294966784  ;;  %s24_s20 = sadd.s32 1, %s1225_s20   ;;  %s1610_s15 = smov %s1209_s16 }
 0x1ad   : > { %p21_p13 = scmp.ge.s32.totalorder %s24_s20, 4   ;;  %s1611_s16 = smov %s1213_s17 }
 0x1ae   : > { %s1612_s17 = smov %s1425_s22  ;;  %s1613_s18 = smov %s1221_s19 }
 0x1af   : > { %s1614_s19 = smov %s1616_s14  ;;  %23 = sbr.rel (!%p21_p13) target bundleno = 12 (0xc), region = 112 }
 0x1b6   :  { %667 = vsyncpa [#allocation4], 1 }
 0x1b7   :  { %669 = vsyncpa [#allocation4 + $0x1], 1 }
 0x1b8   :  { %670 = vsyncpa [#allocation7], 1 }
 0x1b9   :  { %671 = vsyncpa [#allocation10], 1 }
 0x1ba   :  { %673 = vsyncpa [#allocation10 + $0x1], 1 }
 0x1bb   :  { %674 = vsyncpa [#allocation5], 1 }
 0x1bc   :  { %676 = vsyncpa [#allocation5 + $0x1], 1 }

// kernel: _lambda_.20
= control target key start
LH: loop header
LB: loop body
LE: loop exit
PB: predicated region body
PF: predicated region fallthrough
CT: control target
= control target key end

     0   :  { %10 = vsyncpa [#allocation3], 0  ;;  %s2618_s0 = inlined_call_operand.hbm [shape: bf16[2,10,1,10,128], index: 0, kind: input, shape index: {}]   ;;  %s2619_s1 = inlined_call_operand.hbm [shape: bf16[9,128], index: 1, kind: input, shape index: {}]   ;;  %s2620_s2 = inlined_call_operand.hbm [shape: f32[1,128], index: 2, kind: input, shape index: {}]   ;;  %s2621_s3 = inlined_call_operand.hbm [shape: bf16[2,8,8,128], index: 3, kind: output, shape index: {0}]   ;;  %s2622_s4 = inlined_call_operand.hbm [shape: f32[2,1,128], index: 4, kind: output, shape index: {1}]  }
   0x1   :  { %12 = vsyncpa [#allocation3 + $0x1], 0 }
   0x2   :  { %13 = vsyncpa [#allocation6], 0 }
   0x3   :  { %14 = vsyncpa [#allocation4], 0 }
   0x4   :  { %16 = vsyncpa [#allocation4 + $0x1], 0 }
   0x5   :  { %17 = vsyncpa [#allocation10], 0 }
   0x6   :  { %19 = vsyncpa [#allocation10 + $0x1], 0  ;;  %s1712_s15 = smov 0   ;;  %s1714_s16 = smov 0  }
   0x7   :  { %s1716_s17 = smov 0   ;;  %s1718_s18 = smov 0  }
   0x8 LB: > { %s1733_s19 = sadd.s32 4294967295, %s1676_s18   ;;  %s1274_s20 = sadd.s32 4294967294, %s1676_s18   ;;  %s1676_s18 = sphi %s1718_s18, %s2652_s18   ;;  %s1672_s17 = sphi %s1716_s17, %s2651_s17   ;;  %s1668_s16 = sphi %s1714_s16, %s2650_s16   ;;  %s1664_s15 = sphi %s1712_s15, %s2649_s15  }
   0x9   : > { %p45_p0 = scmp.ne.s32.totalorder %s1668_s16, %s1664_s15  ;;  %p2623_p1 = scmp.eq.s32.totalorder %s1733_s19, 0 }
   0xa   : > { %p117_p3 = scmp.eq.s32.totalorder %s1274_s20, 1  ;;  %p1275_p5 = scmp.ge.s32.totalorder %s1676_s18, 1 }
   0xb   : > { %p1742_p4 = por %p2623_p1, %p45_p0  ;;  %p150_p7 = scmp.lt.s32.totalorder %s1676_s18, 3 }
   0xc   : > { %p1747_p6 = por %p117_p3, %p45_p0  ;;  %s1678_s24 = smov [#allocation5]  }
   0xd   : > { %s2628_s21 = scalar_select %p1742_p4, 1, 0 }
   0xe   : > { %s2629_s22 = scalar_select %p1747_p6, 1, 0 }
   0xf   : > { %p1752_p8 = pnand %p1275_p5, %p150_p7  ;;  %s162_s25 = sshll.u32 %s1678_s24, 4  ;;  %s1756_s25 = int_to_ptr.vmem [resolvable:$true] %s162_s25 }
  0x10   : > { %s1679_s27 = smov [#allocation7]   ;;  %s1488_s5 = scalar_lea.hbm %s2619_s1, 128 }
  0x11   : > { %p1394_p9 = pneg %p1752_p8  ;;  %s176_s28 = sshll.u32 %s1679_s27, 4  ;;  %s1767_s28 = int_to_ptr.vmem [resolvable:$true] %s176_s28 }
  0x12   : > { %p1489_p12 = scmp.ne.s32.totalorder %s2619_s1, %s1488_s5  ;;  %p1495_p5 = scmp.lt.u32.totalorder %s1488_s5, %s2619_s1 }
  0x13   : > { %p1763_p11 = pnand %p1394_p9, %p2623_p1 }
  0x15   : > { %p1490_p13 = pneg %p1763_p11 }
  0x17   : > { %p1491_p0 = pnand %p1490_p13, %p1489_p12 }
  0x19   : > { %p1492_p3 = pneg %p1491_p0 }
  0x1b   : > { %p1497_p7 = pnand %p1495_p5, %p1492_p3 }
  0x1d   : > { %1500 = shalt.err (!%p1497_p7)
}
  0x1e   : > { %s1501_s10 = scalar_lea.vmem %s1756_s25, 128  ;;  %p1509_p2 = scmp.lt.s32.totalorder %s1756_s25, %s1756_s25 }
  0x1f   : > { %p1502_p9 = scmp.ne.s32.totalorder %s1756_s25, %s1501_s10  ;;  %p1510_p12 = scmp.lt.s32.totalorder %s1501_s10, %s1501_s10 }
  0x21   : > { %p1504_p10 = pnand %p1502_p9, %p1490_p13  ;;  %p1511_p0 = por %p1510_p12, %p1509_p2 }
  0x23   : > { %p1505_p1 = pneg %p1504_p10 }
  0x25   : > { %p1512_p6 = pnand %p1511_p0, %p1505_p1 }
  0x27   : > { %1515 = shalt.err (!%p1512_p6)
}
  0x28   : > { %s1680_s11 = smov 64   ;;  %s1681_s12 = smov 4  }
  0x29   : > { %1397 = dma.hbm_to_vmem [thread:$0]  (!%p1763_p11), %s2619_s1, 128, %s1756_s25, [#allocation6], %s1680_s11, %s1680_s11, %s1681_s12  }
  0x2a   : > { %s1516_s27 = scalar_lea.hbm %s2620_s2, 16 }
  0x2b   : > { %p1517_p1 = scmp.ne.s32.totalorder %s2620_s2, %s1516_s27  ;;  %p1523_p10 = scmp.lt.u32.totalorder %s1516_s27, %s2620_s2 }
  0x2d   : > { %p1519_p2 = pnand %p1517_p1, %p1490_p13 }
  0x2f   : > { %p1520_p6 = pneg %p1519_p2 }
  0x31   : > { %p1525_p3 = pnand %p1523_p10, %p1520_p6 }
  0x33   : > { %1528 = shalt.err (!%p1525_p3)
}
  0x34   : > { %s1529_s25 = scalar_lea.vmem %s1767_s28, 16  ;;  %s1536_s7 = scalar_lea.vmem %s1767_s28, 32 }
  0x35   : > { %p1530_p5 = scmp.ne.s32.totalorder %s1767_s28, %s1529_s25  ;;  %p1537_p12 = scmp.lt.s32.totalorder %s1767_s28, %s1767_s28 }
  0x36   : > { %p1538_p0 = scmp.lt.s32.totalorder %s1536_s7, %s1529_s25 }
  0x37   : > { %p1532_p7 = pnand %p1530_p5, %p1490_p13 }
  0x38   : > { %p1539_p1 = por %p1538_p0, %p1537_p12 }
  0x39   : > { %p1533_p9 = pneg %p1532_p7 }
  0x3b   : > { %p1540_p2 = pnand %p1539_p1, %p1533_p9 }
  0x3d   : > { %1543 = shalt.err (!%p1540_p2)
}
  0x3e   : > { %1400 = dma.hbm_to_vmem [thread:$0]  (!%p1763_p11), %s2620_s2, 16, %s1767_s28, [#allocation6]  }
  0x3f   : > { %s1826_s10 = sadd.s32 1, %s1676_s18   ;;  %s32_s26 = sadd.s32 1, %s1672_s17 }
  0x40   : > { %s29_s13 = ssub.s32 %s1676_s18, %s1826_s10  ;;  %p39_p13 = scmp.ne.s32.totalorder %s1672_s17, %s1668_s16 }
  0x41   : > { %p30_p6 = scmp.eq.s32.totalorder %s29_s13, 0  ;;  %p40_p10 = scmp.eq.s32.totalorder %s1676_s18, 0 }
  0x42   : > { %p2632_p3 = scmp.eq.s32.totalorder %s1733_s19, 1  ;;  %p1414_p7 = scmp.lt.s32.totalorder %s1676_s18, 2 }
  0x43   : > { %s1842_s20 = scalar_select %p30_p6, %s1672_s17, %s32_s26  }
  0x44   : > { %p1836_p5 = por %p2632_p3, %p39_p13  ;;  %p41_p9 = por %p40_p10, %p39_p13 }
  0x45   : > { %s187_s24 = sand.u32 1, %s1672_s17   ;;  %s1378_s28 = smul.u32 1280, %s1676_s18 }
  0x46   : > { %s2633_s14 = scalar_select %p1836_p5, 1, 0 }
  0x47   : > { %s1377_s27 = smul.u32 80, %s187_s24  ;;  %p1846_p11 = pnand %p1414_p7, %p41_p9 }
  0x48   : > { %s1853_s6 = scalar_lea.hbm %s2618_s0, %s1378_s28  ;;  %s1857_s8 = scalar_lea.sflag [#allocation3], %s187_s24 }
  0x49   : > { %s191_s25 = scalar_lea.vmem [#allocation2], %s1377_s27  ;;  %s1544_s9 = scalar_lea.hbm %s1853_s6, 1280 }
  0x4a   : > { %s198_s7 = sshll.u32 %s191_s25, 4  ;;  %p1545_p12 = scmp.ne.s32.totalorder %s1853_s6, %s1544_s9  ;;  %s1855_s7 = int_to_ptr.vmem [resolvable:$true] %s198_s7 }
  0x4b   : > { %p1546_p0 = pneg %p1846_p11  ;;  %s1549_s28 = scalar_lea.hbm %s2618_s0, 2560 }
  0x4c   : > { %p1550_p13 = scmp.lt.u32.totalorder %s1853_s6, %s2618_s0  ;;  %p1551_p6 = scmp.lt.u32.totalorder %s1549_s28, %s1544_s9 }
  0x4d   : > { %p1547_p1 = pnand %p1546_p0, %p1545_p12  ;;  %p1553_p3 = scmp.lt.u32.totalorder %s1544_s9, %s1853_s6 }
  0x4e   : > { %p1552_p10 = por %p1551_p6, %p1550_p13 }
  0x4f   : > { %p1548_p2 = pneg %p1547_p1 }
  0x50   : > { %p1554_p7 = por %p1553_p3, %p1552_p10 }
  0x52   : > { %p1555_p9 = pnand %p1554_p7, %p1548_p2 }
  0x54   : > { %1558 = shalt.err (!%p1555_p9)
}
  0x55   : > { %s1559_s24 = scalar_lea.vmem %s1855_s7, 1280  ;;  %s1682_s27 = smov [#allocation2]  }
  0x56   : > { %p1560_p12 = scmp.ne.s32.totalorder %s1855_s7, %s1559_s24  ;;  %s1564_s25 = sshll.u32 %s1682_s27, 4  ;;  %s1565_s25 = int_to_ptr.vmem [resolvable:$false] %s1564_s25 }
  0x57   : > { %s1566_s26 = scalar_lea.vmem %s1565_s25, 2560  ;;  %p1567_p4 = scmp.lt.s32.totalorder %s1855_s7, %s1565_s25 }
  0x58   : > { %p1562_p1 = pnand %p1560_p12, %p1546_p0  ;;  %p1568_p13 = scmp.lt.s32.totalorder %s1566_s26, %s1559_s24 }
  0x5a   : > { %p1563_p5 = pneg %p1562_p1  ;;  %p1569_p6 = por %p1568_p13, %p1567_p4 }
  0x5c   : > { %p1570_p10 = pnand %p1569_p6, %p1563_p5 }
  0x5e   : > { %1573 = shalt.err (!%p1570_p10)
}
  0x5f   : > { %1404 = dma.hbm_to_vmem [thread:$0]  (!%p1846_p11), %s1853_s6, 1280, %s1855_s7, %s1857_s8, %s1680_s11, %s1680_s11, %s1681_s12  }
  0x60   : > { %210 = sbr.rel (%p1752_p8) target bundleno = 319 (0x13f), region = 32  ;;  %s1891_s9 = sand.u32 (!%p1752_p8), 1, %s1668_s16  }
  0x61   : > { %s1379_s13 = smul.u32 (!%p1752_p8), 80, %s1891_s9  ;;  %s213_s28 = scalar_lea.sflag (!%p1752_p8), [#allocation3], %s1891_s9 }
  0x62   : > { %p2635_p4 = scmp.ne.s32.totalorder (!%p1752_p8), %s2628_s21, 0 }
  0x63   : > { %s1895_s30 = scalar_lea.vmem (!%p1752_p8), [#allocation2], %s1379_s13 }
  0x67   : > { %1647 = dma.done.wait (%p2635_p4), %s213_s28, 1280  }
  0x68   : > { %1649 = vsyncadd (%p2635_p4), %s213_s28, 4294966016  ;;  %p2636_p5 = scmp.eq.s32.totalorder %s1733_s19, 0 }
  0x6a   : > { %1651 = dma.done.wait (%p2636_p5), [#allocation6], 144   ;;  %p2637_p8 = pmov %p2636_p5 }
  0x6b   : > { %v265_v0 = vlaneseq  ;;  %v253_v2 = vld [vmem:[#allocation5] sm:$0x1]  ;;  %v1916_v8 = vld [vmem:[%s1895_s30 + $0x8] sm:$0xf]  ;;  %v401_v9 = vld [vmem:[#allocation5] sm:$0x2] }
  0x6c   : > { %1653 = vsyncadd (%p2637_p8), [#allocation6], 4294967152  ;;  %v263_v3 = vpack.i.b16 %v253_v2, %v253_v2  ;;  %v1913_v7 = vld [vmem:[%s1895_s30] sm:$0xf]  ;;  %v1919_v10 = vld [vmem:[%s1895_s30 + $0x10] sm:$0xf]  ;;  %v411_v23 = vpack.i.b16 %v401_v9, %v401_v9 }
  0x6d   : > { %v1905_v1 = vshrl.u32 %v265_v0, 7  ;;  %v1922_v11 = vld [vmem:[%s1895_s30 + $0x18] sm:$0xf]  ;;  %v1925_v12 = vld [vmem:[%s1895_s30 + $0x20] sm:$0xf]  ;;  %v301_v22 = vshrl.u32 %v253_v2, 16 }
  0x6e   : > { %v1929_v14 = vld [vmem:[%s1895_s30 + $0x28] sm:$0xf]  ;;  %v1936_v19 = vld [vmem:[%s1895_s30 + $0x30] sm:$0xf]  ;;  %v1939_v20 = vld [vmem:[%s1895_s30 + $0x38] sm:$0xf] }
  0x6f   : > { %v1908_v4 = vsub.s32 0, %v1905_v1  ;;  %v415_v6 = vsub.s32 1, %v1905_v1  ;;  %v519_v24 = vshrl.u32 %v401_v9, 16  ;;  %v2626_v27 = vsub.s32 2, %v1905_v1  ;;  %v1947_v32 = vld [vmem:[#allocation5] sm:$0x4] }
  0x70   : > { %v302_v29 = vpack.i.b16 %v301_v22, %v301_v22  ;;  %v1956_v36 = vld [vmem:[%s1895_s30] sm:$0xe]  ;;  %v1959_v37 = vld [vmem:[%s1895_s30 + $0x8] sm:$0xe]  ;;  %v560_v38 = vpack.i.b16 %v1947_v32, %v1947_v32  ;;  %v1969_v42 = vld [vmem:[%s1895_s30 + $0x10] sm:$0xe] }
  0x71   : > { %v268_v5 = vrot.slane %v263_v3, %v1908_v4  ;;  %v416_v30 = vrot.slane %v411_v23, %v415_v6  ;;  %v520_v31 = vpack.i.b16 %v519_v24, %v519_v24  ;;  %v1972_v43 = vld [vmem:[%s1895_s30 + $0x18] sm:$0xe]  ;;  %v1981_v47 = vld [vmem:[%s1895_s30 + $0x4] sm:$0x1]  ;;  %v1984_v48 = vld [vmem:[%s1895_s30 + $0xc] sm:$0x1] }
  0x72   : > { %v307_v41 = vrot.slane %v302_v29, %v1908_v4  ;;  %v1990_v50 = vrot.slane %v560_v38, %v2626_v27  ;;  %v1993_v51 = vld [vmem:[%s1895_s30 + $0x14] sm:$0x1]  ;;  %v1996_v52 = vld [vmem:[%s1895_s30 + $0x1c] sm:$0x1]  ;;  %v2005_v57 = vld [vmem:[%s1895_s30 + $0x24] sm:$0x1] }
  0x73   : > { %v269_v13 = vmul.bf16 %v268_v5, %v1913_v7  ;;  %v270_v15 = vmul.bf16 %v268_v5, %v1916_v8  ;;  %v271_v16 = vmul.bf16 %v268_v5, %v1919_v10  ;;  %v272_v17 = vmul.bf16 %v268_v5, %v1922_v11  ;;  %v2008_v58 = vld [vmem:[%s1895_s30 + $0x2c] sm:$0x1]  ;;  %v2019_v63 = vld [vmem:[%s1895_s30 + $0x34] sm:$0x1]  ;;  %v2022_v0 = vld [vmem:[%s1895_s30 + $0x3c] sm:$0x1] }
  0x74   : > { %v273_v18 = vmul.bf16 %v268_v5, %v1925_v12  ;;  %v274_v21 = vmul.bf16 %v268_v5, %v1929_v14  ;;  %v275_v25 = vmul.bf16 %v268_v5, %v1936_v19  ;;  %v276_v26 = vmul.bf16 %v268_v5, %v1939_v20  ;;  %s1283_s21 = sshll.u32 %s1891_s9, 5  ;;  %s1353_s11 = sshll.u32 %s1733_s19, 9 }
  0x75   : > { %v1945_v28 = vunpack.c.l.bf16 %v269_v13  ;;  %v1949_v33 = vunpack.c.l.bf16 %v270_v15  ;;  %v1951_v34 = vunpack.c.l.bf16 %v271_v16  ;;  %v1953_v35 = vunpack.c.l.bf16 %v272_v17  ;;  %s246_s23 = scalar_lea.vmem [#allocation8], %s1283_s21  ;;  %s2541_s7 = scalar_lea.hbm %s2621_s3, %s1353_s11 }
  0x76   : > { %v1963_v39 = vunpack.c.l.bf16 %v273_v18  ;;  %v1965_v40 = vunpack.c.l.bf16 %v274_v21  ;;  %v1974_v44 = vcombine.low %v416_v30, %v416_v30  ;;  %v1976_v45 = vunpack.c.l.bf16 %v275_v25  ;;  %s1141_s12 = sshll.u32 %s246_s23, 4  ;;  %s1124_s8 = scalar_lea.sflag [#allocation4], %s1891_s9  ;;  %s2543_s12 = int_to_ptr.vmem [resolvable:$true] %s1141_s12 }
  0x77   : > { %v1978_v46 = vunpack.c.l.bf16 %v276_v26  ;;  %v1986_v49 = vrot.slane %v520_v31, %v415_v6  ;;  %v1284_v53 = vcombine.low %v307_v41, %v307_v41  ;;  %vm360_vm0 = vcmask 1046528   ;;  %s1574_s5 = scalar_lea.vmem %s2543_s12, 512  ;;  %p2646_p0 = scmp.ne.s32.totalorder %s2633_s14, 0 }
  0x78   : > { %v421_v54 = vmul.bf16 %v1974_v44, %v1956_v36  ;;  %v422_v55 = vmul.bf16 %v1974_v44, %v1981_v47  ;;  %vm469_vm1 = vcmask 1045504   ;;  %v2641_v36 = vmul.bf16 %v1974_v44, %v1993_v51  ;;  %p1575_p11 = scmp.ne.s32.totalorder %s2543_s12, %s1574_s5  ;;  %s1683_s24 = smov [#allocation8]  }
  0x79   : > { %v312_v2 = vmul.bf16 %v1284_v53, %v1913_v7  ;;  %v313_v3 = vmul.bf16 %v1284_v53, %v1981_v47  ;;  %v314_v5 = vmul.bf16 %v1284_v53, %v1916_v8  ;;  %v315_v6 = vmul.bf16 %v1284_v53, %v1984_v48  ;;  %s1578_s27 = sshll.u32 %s1683_s24, 4  ;;  %s1579_s27 = int_to_ptr.vmem [resolvable:$false] %s1578_s27 }
  0x7a   : > { %v316_v9 = vmul.bf16 %v1284_v53, %v1919_v10  ;;  %v317_v13 = vmul.bf16 %v1284_v53, %v1993_v51  ;;  %v318_v15 = vmul.bf16 %v1284_v53, %v1922_v11  ;;  %v319_v16 = vmul.bf16 %v1284_v53, %v1996_v52  ;;  %p1576_p2 = pnand %p1575_p11, %p2646_p0  ;;  %s1580_s25 = scalar_lea.vmem %s1579_s27, 1024 }
  0x7b   : > { %v320_v17 = vmul.bf16 %v1284_v53, %v1925_v12  ;;  %v321_v18 = vmul.bf16 %v1284_v53, %v2005_v57  ;;  %v322_v7 = vmul.bf16 %v1284_v53, %v1929_v14  ;;  %v323_v21 = vmul.bf16 %v1284_v53, %v2008_v58  ;;  %p1581_p7 = scmp.lt.s32.totalorder %s2543_s12, %s1579_s27  ;;  %p1582_p9 = scmp.lt.s32.totalorder %s1580_s25, %s1574_s5 }
  0x7c   : > { %v324_v8 = vmul.bf16 %v1284_v53, %v1936_v19  ;;  %v325_v22 = vmul.bf16 %v1284_v53, %v2019_v63  ;;  %v326_v10 = vmul.bf16 %v1284_v53, %v1939_v20  ;;  %v327_v23 = vmul.bf16 %v1284_v53, %v2022_v0  ;;  %p1577_p3 = pneg %p1576_p2 }
  0x7d   : > { %v328_v24 = vunpack.c.l.bf16 %v312_v2  ;;  %v329_v11 = vunpack.c.l.bf16 %v313_v3  ;;  %v330_v25 = vunpack.c.l.bf16 %v314_v5  ;;  %v331_v26 = vunpack.c.l.bf16 %v315_v6  ;;  %p1583_p12 = por %p1582_p9, %p1581_p7 }
  0x7e   : > { %v332_v29 = vunpack.c.l.bf16 %v316_v9  ;;  %v333_v12 = vunpack.c.l.bf16 %v317_v13  ;;  %v334_v30 = vunpack.c.l.bf16 %v318_v15  ;;  %v335_v31 = vunpack.c.l.bf16 %v319_v16 }
  0x7f   : > { %v336_v38 = vunpack.c.l.bf16 %v320_v17  ;;  %v337_v14 = vunpack.c.l.bf16 %v321_v18  ;;  %v338_v41 = vunpack.c.l.bf16 %v322_v7  ;;  %v339_v27 = vunpack.c.l.bf16 %v323_v21  ;;  %p1584_p1 = pnand %p1583_p12, %p1577_p3 }
  0x80   : > { %v340_v62 = vunpack.c.l.bf16 %v324_v8  ;;  %v341_v19 = vunpack.c.l.bf16 %v325_v22  ;;  %v342_v61 = vunpack.c.l.bf16 %v326_v10  ;;  %v343_v60 = vunpack.c.l.bf16 %v327_v23 }
  0x81   : > { %v361_v59 = vrot.slane %v328_v24, 1  ;;  %v362_v20 = vrot.slane %v329_v11, 1  ;;  %v364_v56 = vrot.slane %v330_v25, 1  ;;  %v365_v53 = vrot.slane %v331_v26, 1  ;;  %v406_v25 = vld [vmem:[%s1895_s30 + $0x20] sm:$0xe] }
  0x82   : > { %v367_v2 = vrot.slane %v332_v29, 1  ;;  %v368_v3 = vrot.slane %v333_v12, 1  ;;  %v370_v5 = vrot.slane %v334_v30, 1  ;;  %v371_v6 = vrot.slane %v335_v31, 1  ;;  %v407_v26 = vld [vmem:[%s1895_s30 + $0x28] sm:$0xe] }
  0x83   : > { %v363_v9 = vsel %vm360_vm0, %v361_v59, %v362_v20  ;;  %v366_v13 = vsel %vm360_vm0, %v364_v56, %v365_v53  ;;  %v373_v15 = vrot.slane %v336_v38, 1  ;;  %v374_v16 = vrot.slane %v337_v14, 1 }
  0x84   : > { %v369_v17 = vsel %vm360_vm0, %v367_v2, %v368_v3  ;;  %v372_v18 = vsel %vm360_vm0, %v370_v5, %v371_v6  ;;  %v376_v7 = vrot.slane %v338_v41, 1  ;;  %v377_v21 = vrot.slane %v339_v27, 1 }
  0x85   : > { %v375_v8 = vsel %vm360_vm0, %v373_v15, %v374_v16  ;;  %v379_v22 = vrot.slane %v340_v62, 1  ;;  %v380_v10 = vrot.slane %v341_v19, 1  ;;  %v382_v23 = vrot.slane %v342_v61, 1 }
  0x86   : > { %v378_v59 = vsel %vm360_vm0, %v376_v7, %v377_v21  ;;  %v383_v24 = vrot.slane %v343_v60, 1  ;;  %v2047_v56 = vadd.f32 %v363_v9, %v1945_v28  ;;  %v2050_v11 = vadd.f32 %v366_v13, %v1949_v33  ;;  %v408_v60 = vld [vmem:[%s1895_s30 + $0x30] sm:$0xe]  ;;  %v409_v28 = vld [vmem:[%s1895_s30 + $0x38] sm:$0xe] }
  0x87   : > { %v381_v27 = vsel %vm360_vm0, %v379_v22, %v380_v10  ;;  %v2056_v29 = vadd.f32 %v369_v17, %v1951_v34  ;;  %v2059_v62 = vadd.f32 %v372_v18, %v1953_v35  ;;  %v2062_v61 = vadd.f32 %v375_v8, %v1963_v39 }
  0x88   : > { %v384_v12 = vsel %vm360_vm0, %v382_v23, %v383_v24  ;;  %v2068_v33 = vadd.f32 %v378_v59, %v1965_v40  ;;  %v2071_v30 = vadd.f32 %v381_v27, %v1976_v45  ;;  %v428_v34 = vmul.bf16 %v1974_v44, %v1996_v52 }
  0x89   : > { %v2076_v31 = vadd.f32 %v384_v12, %v1978_v46  ;;  %v429_v35 = vmul.bf16 %v1974_v44, %v406_v25  ;;  %v430_v39 = vmul.bf16 %v1974_v44, %v2005_v57  ;;  %v431_v38 = vmul.bf16 %v1974_v44, %v407_v26  ;;  %v2120_v12 = vld [vmem:[%s1895_s30 + $0x10] sm:$0xf] }
  0x8a   : > { %v432_v40 = vmul.bf16 %v1974_v44, %v2008_v58  ;;  %v433_v14 = vmul.bf16 %v1974_v44, %v408_v60  ;;  %v434_v45 = vmul.bf16 %v1974_v44, %v2019_v63  ;;  %v435_v52 = vmul.bf16 %v1974_v44, %v409_v28  ;;  %v2117_v28 = vld [vmem:[%s1895_s30 + $0x8] sm:$0xf] }
  0x8b   : > { %v436_v46 = vmul.bf16 %v1974_v44, %v2022_v0  ;;  %v437_v41 = vunpack.c.l.bf16 %v421_v54  ;;  %v438_v57 = vunpack.c.l.bf16 %v422_v55  ;;  %v2638_v58 = vmul.bf16 %v1974_v44, %v1959_v37 }
  0x8c   : > { %v2639_v63 = vmul.bf16 %v1974_v44, %v1984_v48  ;;  %v2640_v53 = vmul.bf16 %v1974_v44, %v1969_v42  ;;  %v442_v54 = vunpack.c.l.bf16 %v2641_v36  ;;  %v2642_v47 = vmul.bf16 %v1974_v44, %v1972_v43 }
  0x8d   : > { %v439_v19 = vunpack.c.l.bf16 %v2638_v58  ;;  %v444_v2 = vunpack.c.l.bf16 %v428_v34  ;;  %v445_v3 = vunpack.c.l.bf16 %v429_v35  ;;  %v446_v37 = vunpack.c.l.bf16 %v430_v39  ;;  %v2138_v58 = vld [vmem:[%s1895_s30 + $0x30] sm:$0xf] }
  0x8e   : > { %v440_v20 = vunpack.c.l.bf16 %v2639_v63  ;;  %v441_v0 = vunpack.c.l.bf16 %v2640_v53  ;;  %v443_v55 = vunpack.c.l.bf16 %v2642_v47  ;;  %v447_v5 = vunpack.c.l.bf16 %v431_v38 }
  0x8f   : > { %v448_v6 = vunpack.c.l.bf16 %v432_v40  ;;  %v449_v9 = vunpack.c.l.bf16 %v433_v14  ;;  %v450_v48 = vunpack.c.l.bf16 %v434_v45  ;;  %v451_v13 = vunpack.c.l.bf16 %v435_v52  ;;  %v2125_v40 = vld [vmem:[%s1895_s30 + $0x18] sm:$0xf]  ;;  %v2128_v14 = vld [vmem:[%s1895_s30 + $0x20] sm:$0xf] }
  0x90   : > { %v452_v15 = vunpack.c.l.bf16 %v436_v46  ;;  %v470_v16 = vrot.slane %v437_v41, 2  ;;  %v471_v42 = vrot.slane %v438_v57, 2  ;;  %v473_v17 = vrot.slane %v439_v19, 2  ;;  %v2135_v57 = vld [vmem:[%s1895_s30 + $0x28] sm:$0xf] }
  0x91   : > { %v474_v18 = vrot.slane %v440_v20, 2  ;;  %v476_v51 = vrot.slane %v441_v0, 2  ;;  %v477_v7 = vrot.slane %v442_v54, 2  ;;  %v479_v21 = vrot.slane %v443_v55, 2  ;;  %v2141_v19 = vld [vmem:[%s1895_s30 + $0x38] sm:$0xf] }
  0x92   : > { %v472_v43 = vsel %vm469_vm1, %v470_v16, %v471_v42  ;;  %v480_v44 = vrot.slane %v444_v2, 2  ;;  %v482_v8 = vrot.slane %v445_v3, 2  ;;  %v483_v22 = vrot.slane %v446_v37, 2  ;;  %v2148_v0 = vld [vmem:[%s1895_s30 + $0x40] sm:$0xf] }
  0x93   : > { %v475_v10 = vsel %vm469_vm1, %v473_v17, %v474_v18  ;;  %v478_v23 = vsel %vm469_vm1, %v476_v51, %v477_v7  ;;  %v485_v59 = vrot.slane %v447_v5, 2  ;;  %v486_v24 = vrot.slane %v448_v6, 2  ;;  %v2177_v16 = vld [vmem:[%s1895_s30 + $0x14] sm:$0x1]  ;;  %v2186_v51 = vld [vmem:[%s1895_s30 + $0x1c] sm:$0x1] }
  0x94   : > { %v481_v25 = vsel %vm469_vm1, %v479_v21, %v480_v44  ;;  %v484_v26 = vsel %vm469_vm1, %v482_v8, %v483_v22  ;;  %v488_v27 = vrot.slane %v449_v9, 2  ;;  %v489_v60 = vrot.slane %v450_v48, 2  ;;  %v2189_v7 = vld [vmem:[%s1895_s30 + $0x24] sm:$0x1]  ;;  %v2200_v22 = vld [vmem:[%s1895_s30 + $0x2c] sm:$0x1] }
  0x95   : > { %v487_v34 = vsel %vm469_vm1, %v485_v59, %v486_v24  ;;  %v491_v35 = vrot.slane %v451_v13, 2  ;;  %v492_v39 = vrot.slane %v452_v15, 2  ;;  %v502_v38 = vadd.f32 %v472_v43, %v2047_v56  ;;  %v2193_v43 = vld [vmem:[#allocation5] sm:$0x8]  ;;  %v2209_v24 = vld [vmem:[%s1895_s30 + $0x3c] sm:$0x1] }
  0x96   : > { %v490_v45 = vsel %vm469_vm1, %v488_v27, %v489_v60  ;;  %v503_v52 = vadd.f32 %v475_v10, %v2050_v11  ;;  %v504_v46 = vadd.f32 %v478_v23, %v2056_v29  ;;  %v505_v41 = vadd.f32 %v481_v25, %v2059_v62  ;;  %v2203_v10 = vld [vmem:[%s1895_s30 + $0x34] sm:$0x1]  ;;  %v2212_v25 = vld [vmem:[%s1895_s30 + $0x44] sm:$0x1] }
  0x97   : > { %v493_v56 = vsel %vm469_vm1, %v491_v35, %v492_v39  ;;  %v506_v63 = vadd.f32 %v484_v26, %v2062_v61  ;;  %v507_v20 = vadd.f32 %v487_v34, %v2068_v33  ;;  %v508_v53 = vadd.f32 %v490_v45, %v2071_v30 }
  0x98   : > { %v509_v11 = vadd.f32 %v493_v56, %v2076_v31  ;;  %v526_v29 = vmul.bf16 %v2117_v28, %v1986_v49  ;;  %v527_v62 = vmul.bf16 %v2120_v12, %v1986_v49  ;;  %v528_v36 = vmul.bf16 %v2125_v40, %v1986_v49 }
  0x99   : > { %v529_v61 = vmul.bf16 %v2128_v14, %v1986_v49  ;;  %v530_v33 = vmul.bf16 %v2135_v57, %v1986_v49  ;;  %v531_v30 = vmul.bf16 %v2138_v58, %v1986_v49  ;;  %v532_v31 = vmul.bf16 %v2141_v19, %v1986_v49 }
  0x9a   : > { %v533_v54 = vmul.bf16 %v2148_v0, %v1986_v49  ;;  %v534_v47 = vunpack.c.l.bf16 %v526_v29  ;;  %v535_v55 = vunpack.c.l.bf16 %v527_v62  ;;  %v536_v2 = vunpack.c.l.bf16 %v528_v36  ;;  %v2174_v49 = vld [vmem:[%s1895_s30 + $0xc] sm:$0x1] }
  0x9b   : > { %v537_v3 = vunpack.c.l.bf16 %v529_v61  ;;  %v538_v37 = vunpack.c.l.bf16 %v530_v33  ;;  %v539_v5 = vunpack.c.l.bf16 %v531_v30  ;;  %v540_v6 = vunpack.c.l.bf16 %v532_v31 }
  0x9c   : > { %v541_v9 = vunpack.c.l.bf16 %v533_v54  ;;  %v2167_v48 = vadd.f32 %v534_v47, %v502_v38  ;;  %v2169_v13 = vadd.f32 %v535_v55, %v503_v52  ;;  %v2171_v15 = vadd.f32 %v536_v2, %v504_v46 }
  0x9d   : > { %v2179_v42 = vadd.f32 %v537_v3, %v505_v41  ;;  %v2181_v17 = vadd.f32 %v538_v37, %v506_v63  ;;  %v2183_v18 = vadd.f32 %v539_v5, %v507_v20  ;;  %v1302_v21 = vcombine.low %v1990_v50, %v1990_v50 }
  0x9e   : > { %v2195_v44 = vadd.f32 %v540_v6, %v508_v53  ;;  %v2197_v8 = vadd.f32 %v541_v9, %v509_v11  ;;  %v666_v23 = vshrl.u32 %v1947_v32, 16  ;;  %v776_v59 = vpack.i.b16 %v2193_v43, %v2193_v43  ;;  %v2277_v32 = vld [vmem:[%s1895_s30 + $0x30] sm:$0xf] }
  0x9f   : > { %v570_v50 = vmul.bf16 %v1302_v21, %v2117_v28  ;;  %v571_v26 = vmul.bf16 %v1302_v21, %v2174_v49  ;;  %v572_v27 = vmul.bf16 %v1302_v21, %v2120_v12  ;;  %v573_v60 = vmul.bf16 %v1302_v21, %v2177_v16 }
  0xa0   : > { %v574_v34 = vmul.bf16 %v1302_v21, %v2125_v40  ;;  %v575_v35 = vmul.bf16 %v1302_v21, %v2186_v51  ;;  %v576_v39 = vmul.bf16 %v1302_v21, %v2128_v14  ;;  %v577_v38 = vmul.bf16 %v1302_v21, %v2189_v7 }
  0xa1   : > { %v578_v45 = vmul.bf16 %v1302_v21, %v2135_v57  ;;  %v579_v52 = vmul.bf16 %v1302_v21, %v2200_v22  ;;  %v580_v28 = vmul.bf16 %v1302_v21, %v2138_v58  ;;  %v581_v46 = vmul.bf16 %v1302_v21, %v2203_v10 }
  0xa2   : > { %v582_v12 = vmul.bf16 %v1302_v21, %v2141_v19  ;;  %v583_v41 = vmul.bf16 %v1302_v21, %v2209_v24  ;;  %v584_v40 = vmul.bf16 %v1302_v21, %v2148_v0  ;;  %v585_v56 = vmul.bf16 %v1302_v21, %v2212_v25 }
  0xa3   : > { %v586_v63 = vunpack.c.l.bf16 %v570_v50  ;;  %v587_v14 = vunpack.c.l.bf16 %v571_v26  ;;  %v588_v20 = vunpack.c.l.bf16 %v572_v27  ;;  %v589_v53 = vunpack.c.l.bf16 %v573_v60  ;;  %v913_v27 = vld [vmem:[#allocation5 + $0x4] sm:$0x1] }
  0xa4   : > { %v590_v11 = vunpack.c.l.bf16 %v574_v34  ;;  %v591_v57 = vunpack.c.l.bf16 %v575_v35  ;;  %v592_v29 = vunpack.c.l.bf16 %v576_v39  ;;  %v593_v62 = vunpack.c.l.bf16 %v577_v38 }
  0xa5   : > { %v594_v36 = vunpack.c.l.bf16 %v578_v45  ;;  %v595_v58 = vunpack.c.l.bf16 %v579_v52  ;;  %v596_v61 = vunpack.c.l.bf16 %v580_v28  ;;  %v597_v33 = vunpack.c.l.bf16 %v581_v46 }
  0xa6   : > { %v598_v30 = vunpack.c.l.bf16 %v582_v12  ;;  %v599_v19 = vunpack.c.l.bf16 %v583_v41  ;;  %v600_v31 = vunpack.c.l.bf16 %v584_v40  ;;  %v601_v54 = vunpack.c.l.bf16 %v585_v56 }
  0xa7   : > { %v618_v47 = vrot.slane %v586_v63, 1  ;;  %v619_v0 = vrot.slane %v587_v14, 1  ;;  %v621_v55 = vrot.slane %v588_v20, 1  ;;  %v622_v2 = vrot.slane %v589_v53, 1  ;;  %v2245_v20 = vld [vmem:[%s1895_s30 + $0x10] sm:$0xf] }
  0xa8   : > { %v624_v3 = vrot.slane %v590_v11, 1  ;;  %v625_v37 = vrot.slane %v591_v57, 1  ;;  %v627_v5 = vrot.slane %v592_v29, 1  ;;  %v628_v6 = vrot.slane %v593_v62, 1  ;;  %v2262_v62 = vld [vmem:[%s1895_s30 + $0x20] sm:$0xf] }
  0xa9   : > { %v620_v9 = vsel %vm360_vm0, %v618_v47, %v619_v0  ;;  %v630_v21 = vrot.slane %v594_v36, 1  ;;  %v631_v50 = vrot.slane %v595_v58, 1  ;;  %v814_v26 = vshrl.u32 %v2193_v43, 16  ;;  %v2265_v36 = vld [vmem:[%s1895_s30 + $0x28] sm:$0xf] }
  0xaa   : > { %v623_v60 = vsel %vm360_vm0, %v621_v55, %v622_v2  ;;  %v626_v34 = vsel %vm360_vm0, %v624_v3, %v625_v37  ;;  %v633_v35 = vrot.slane %v596_v61, 1  ;;  %v634_v39 = vrot.slane %v597_v33, 1  ;;  %v2283_v61 = vld [vmem:[%s1895_s30 + $0x40] sm:$0xf]  ;;  %v1304_v47 = vld [vmem:[%s1895_s30 + $0x10] sm:$0xe] }
  0xab   : > { %v629_v38 = vsel %vm360_vm0, %v627_v5, %v628_v6  ;;  %v636_v45 = vrot.slane %v598_v30, 1  ;;  %v637_v52 = vrot.slane %v599_v19, 1  ;;  %v639_v28 = vrot.slane %v600_v31, 1  ;;  %v2298_v30 = vld [vmem:[%s1895_s30 + $0x48] sm:$0xf] }
  0xac   : > { %v632_v46 = vsel %vm360_vm0, %v630_v21, %v631_v50  ;;  %v635_v12 = vsel %vm360_vm0, %v633_v35, %v634_v39  ;;  %v640_v41 = vrot.slane %v601_v54, 1  ;;  %v923_v40 = vpack.i.b16 %v913_v27, %v913_v27  ;;  %v1303_v54 = vld [vmem:[%s1895_s30 + $0x8] sm:$0xe]  ;;  %v1305_v55 = vld [vmem:[%s1895_s30 + $0x18] sm:$0xe] }
  0xad   : > { %v638_v56 = vsel %vm360_vm0, %v636_v45, %v637_v52  ;;  %v2239_v63 = vadd.f32 %v620_v9, %v2167_v48  ;;  %v2242_v14 = vadd.f32 %v623_v60, %v2169_v13  ;;  %v2627_v53 = vsub.s32 3, %v1905_v1  ;;  %v2259_v13 = vld [vmem:[%s1895_s30 + $0x18] sm:$0xf]  ;;  %v1306_v2 = vld [vmem:[%s1895_s30 + $0x20] sm:$0xe] }
  0xae   : > { %v641_v11 = vsel %vm360_vm0, %v639_v28, %v640_v41  ;;  %v2250_v57 = vadd.f32 %v626_v34, %v2171_v15  ;;  %v2253_v29 = vadd.f32 %v629_v38, %v2179_v42  ;;  %v667_v48 = vpack.i.b16 %v666_v23, %v666_v23  ;;  %v2280_v23 = vld [vmem:[%s1895_s30 + $0x38] sm:$0xf]  ;;  %v1307_v6 = vld [vmem:[%s1895_s30 + $0x28] sm:$0xe]  ;;  %v1308_v9 = vld [vmem:[%s1895_s30 + $0x30] sm:$0xe] }
  0xaf   : > { %v2268_v58 = vadd.f32 %v632_v46, %v2181_v17  ;;  %v2271_v15 = vadd.f32 %v635_v12, %v2183_v18  ;;  %v2274_v42 = vadd.f32 %v638_v56, %v2195_v44  ;;  %v2290_v17 = vrot.slane %v776_v59, %v2627_v53  ;;  %v1309_v60 = vld [vmem:[%s1895_s30 + $0x38] sm:$0xe]  ;;  %v1310_v34 = vld [vmem:[%s1895_s30 + $0x40] sm:$0xe] }
  0xb0   : > { %v2293_v18 = vadd.f32 %v641_v11, %v2197_v8  ;;  %v2643_v44 = vsub.s32 2, %v1905_v1  ;;  %v2300_v19 = vpack.i.b16 %v814_v26, %v814_v26  ;;  %v2303_v31 = vrot.slane %v923_v40, %v1908_v4 }
  0xb1   : > { %v782_v43 = vmul.bf16 %v2245_v20, %v2290_v17  ;;  %v783_v8 = vmul.bf16 %v2259_v13, %v2290_v17  ;;  %v784_v59 = vmul.bf16 %v2262_v62, %v2290_v17  ;;  %v785_v0 = vmul.bf16 %v2265_v36, %v2290_v17 }
  0xb2   : > { %v672_v33 = vrot.slane %v667_v48, %v2643_v44  ;;  %v786_v3 = vmul.bf16 %v2277_v32, %v2290_v17  ;;  %v787_v37 = vmul.bf16 %v2280_v23, %v2290_v17  ;;  %v788_v5 = vmul.bf16 %v2283_v61, %v2290_v17 }
  0xb3   : > { %v2327_v50 = vunpack.c.l.bf16 %v782_v43  ;;  %v2329_v26 = vunpack.c.l.bf16 %v783_v8  ;;  %v2331_v27 = vunpack.c.l.bf16 %v784_v59 }
  0xb4   : > { %v1311_v4 = vcombine.low %v672_v33, %v672_v33 }
  0xb6   : > { %v677_v35 = vmul.bf16 %v1311_v4, %v1303_v54  ;;  %v678_v39 = vmul.bf16 %v1311_v4, %v2174_v49  ;;  %v679_v38 = vmul.bf16 %v1311_v4, %v1304_v47  ;;  %v680_v45 = vmul.bf16 %v1311_v4, %v2177_v16 }
  0xb7   : > { %v681_v52 = vmul.bf16 %v1311_v4, %v1305_v55  ;;  %v682_v28 = vmul.bf16 %v1311_v4, %v2186_v51  ;;  %v683_v46 = vmul.bf16 %v1311_v4, %v1306_v2  ;;  %v684_v12 = vmul.bf16 %v1311_v4, %v2189_v7 }
  0xb8   : > { %v685_v41 = vmul.bf16 %v1311_v4, %v1307_v6  ;;  %v686_v40 = vmul.bf16 %v1311_v4, %v2200_v22  ;;  %v687_v56 = vmul.bf16 %v1311_v4, %v1308_v9  ;;  %v688_v11 = vmul.bf16 %v1311_v4, %v2203_v10 }
  0xb9   : > { %v689_v48 = vmul.bf16 %v1311_v4, %v1309_v60  ;;  %v690_v44 = vmul.bf16 %v1311_v4, %v2209_v24  ;;  %v691_v33 = vmul.bf16 %v1311_v4, %v1310_v34  ;;  %v692_v49 = vmul.bf16 %v1311_v4, %v2212_v25 }
  0xba   : > { %v693_v54 = vunpack.c.l.bf16 %v677_v35  ;;  %v694_v16 = vunpack.c.l.bf16 %v678_v39  ;;  %v695_v47 = vunpack.c.l.bf16 %v679_v38  ;;  %v696_v43 = vunpack.c.l.bf16 %v680_v45 }
  0xbb   : > { %v697_v51 = vunpack.c.l.bf16 %v681_v52  ;;  %v698_v8 = vunpack.c.l.bf16 %v682_v28  ;;  %v699_v59 = vunpack.c.l.bf16 %v683_v46  ;;  %v700_v7 = vunpack.c.l.bf16 %v684_v12 }
  0xbc   : > { %v701_v55 = vunpack.c.l.bf16 %v685_v41  ;;  %v702_v2 = vunpack.c.l.bf16 %v686_v40  ;;  %v703_v22 = vunpack.c.l.bf16 %v687_v56  ;;  %v704_v6 = vunpack.c.l.bf16 %v688_v11 }
  0xbd   : > { %v705_v9 = vunpack.c.l.bf16 %v689_v48  ;;  %v706_v10 = vunpack.c.l.bf16 %v690_v44  ;;  %v707_v60 = vunpack.c.l.bf16 %v691_v33  ;;  %v708_v53 = vunpack.c.l.bf16 %v692_v49 }
  0xbe   : > { %v725_v24 = vrot.slane %v693_v54, 2  ;;  %v726_v34 = vrot.slane %v694_v16, 2  ;;  %v728_v21 = vrot.slane %v695_v47, 2  ;;  %v729_v25 = vrot.slane %v696_v43, 2 }
  0xbf   : > { %v731_v4 = vrot.slane %v697_v51, 2  ;;  %v732_v35 = vrot.slane %v698_v8, 2  ;;  %v734_v39 = vrot.slane %v699_v59, 2  ;;  %v735_v38 = vrot.slane %v700_v7, 2 }
  0xc0   : > { %v727_v45 = vsel %vm469_vm1, %v725_v24, %v726_v34  ;;  %v730_v52 = vsel %vm469_vm1, %v728_v21, %v729_v25  ;;  %v737_v28 = vrot.slane %v701_v55, 2  ;;  %v738_v46 = vrot.slane %v702_v2, 2  ;;  %v2422_v24 = vld [vmem:[%s1895_s30 + $0x2c] sm:$0x1] }
  0xc1   : > { %v733_v12 = vsel %vm469_vm1, %v731_v4, %v732_v35  ;;  %v736_v41 = vsel %vm469_vm1, %v734_v39, %v735_v38  ;;  %v740_v40 = vrot.slane %v703_v22, 2  ;;  %v741_v56 = vrot.slane %v704_v6, 2  ;;  %v2431_v35 = vld [vmem:[%s1895_s30 + $0x34] sm:$0x1]  ;;  %v2434_v39 = vld [vmem:[%s1895_s30 + $0x3c] sm:$0x1] }
  0xc2   : > { %v739_v11 = vsel %vm469_vm1, %v737_v28, %v738_v46  ;;  %v743_v48 = vrot.slane %v705_v9, 2  ;;  %v744_v44 = vrot.slane %v706_v10, 2  ;;  %v746_v33 = vrot.slane %v707_v60, 2  ;;  %v2416_v10 = vld [vmem:[%s1895_s30 + $0x1c] sm:$0x1] }
  0xc3   : > { %v742_v49 = vsel %vm469_vm1, %v740_v40, %v741_v56  ;;  %v747_v54 = vrot.slane %v708_v53, 2  ;;  %v757_v16 = vadd.f32 %v727_v45, %v2239_v63  ;;  %v758_v21 = vadd.f32 %v730_v52, %v2242_v14  ;;  %v2419_v60 = vld [vmem:[%s1895_s30 + $0x24] sm:$0x1] }
  0xc4   : > { %v745_v47 = vsel %vm469_vm1, %v743_v48, %v744_v44  ;;  %v759_v43 = vadd.f32 %v733_v12, %v2250_v57  ;;  %v760_v51 = vadd.f32 %v736_v41, %v2253_v29  ;;  %v761_v8 = vadd.f32 %v739_v11, %v2268_v58  ;;  %v2445_v46 = vld [vmem:[%s1895_s30 + $0x44] sm:$0x1]  ;;  %v2448_v12 = vld [vmem:[%s1895_s30 + $0x4c] sm:$0x1] }
  0xc5   : > { %v748_v59 = vsel %vm469_vm1, %v746_v33, %v747_v54  ;;  %v762_v7 = vadd.f32 %v742_v49, %v2271_v15  ;;  %v763_v63 = vadd.f32 %v745_v47, %v2274_v42  ;;  %v793_v14 = vunpack.c.l.bf16 %v785_v0 }
  0xc6   : > { %v764_v53 = vadd.f32 %v748_v59, %v2293_v18  ;;  %v794_v57 = vunpack.c.l.bf16 %v786_v3  ;;  %v795_v29 = vunpack.c.l.bf16 %v787_v37  ;;  %v796_v58 = vunpack.c.l.bf16 %v788_v5  ;;  %v2381_v3 = vld [vmem:[%s1895_s30 + $0x10] sm:$0xe]  ;;  %v2384_v37 = vld [vmem:[%s1895_s30 + $0x18] sm:$0xe] }
  0xc7   : > { %v2644_v15 = vmul.bf16 %v2298_v30, %v2290_v17  ;;  %v2375_v18 = vadd.f32 %v2327_v50, %v757_v16  ;;  %v2378_v0 = vadd.f32 %v2329_v26, %v758_v21  ;;  %v2387_v5 = vadd.f32 %v2331_v27, %v759_v43  ;;  %v2395_v50 = vld [vmem:[%s1895_s30 + $0x20] sm:$0xe]  ;;  %v2398_v26 = vld [vmem:[%s1895_s30 + $0x28] sm:$0xe] }
  0xc8   : > { %v2389_v55 = vadd.f32 %v793_v14, %v760_v51  ;;  %v2645_v17 = vsub.s32 3, %v1905_v1  ;;  %v2402_v22 = vcombine.low %v2303_v31, %v2303_v31  ;;  %v2404_v6 = vadd.f32 %v794_v57, %v761_v8 }
  0xc9   : > { %v797_v42 = vunpack.c.l.bf16 %v2644_v15  ;;  %v2406_v27 = vadd.f32 %v795_v29, %v762_v7  ;;  %v2408_v9 = vadd.f32 %v796_v58, %v763_v63 }
  0xca   : > { %v820_v2 = vrot.slane %v2300_v19, %v2645_v17  ;;  %v2413_v19 = vld [vmem:[%s1895_s30 + $0x14] sm:$0x1]  ;;  %v933_v34 = vmul.bf16 %v2402_v22, %v2381_v3  ;;  %v935_v4 = vmul.bf16 %v2402_v22, %v2384_v37  ;;  %v936_v38 = vmul.bf16 %v2402_v22, %v2416_v10 }
  0xcb   : > { %v2410_v1 = vadd.f32 %v797_v42, %v764_v53  ;;  %v934_v25 = vmul.bf16 %v2402_v22, %v2413_v19  ;;  %v937_v45 = vmul.bf16 %v2402_v22, %v2395_v50  ;;  %v938_v52 = vmul.bf16 %v2402_v22, %v2419_v60 }
  0xcc   : > { %v1328_v31 = vcombine.low %v820_v2, %v820_v2  ;;  %v939_v28 = vmul.bf16 %v2402_v22, %v2398_v26 }
  0xcd   : > { %v954_v3 = vunpack.c.l.bf16 %v938_v52 }
  0xce   : > { %v825_v41 = vmul.bf16 %v1328_v31, %v2245_v20  ;;  %v826_v40 = vmul.bf16 %v1328_v31, %v2413_v19  ;;  %v827_v56 = vmul.bf16 %v1328_v31, %v2259_v13  ;;  %v828_v11 = vmul.bf16 %v1328_v31, %v2416_v10 }
  0xcf   : > { %v829_v48 = vmul.bf16 %v1328_v31, %v2262_v62  ;;  %v830_v44 = vmul.bf16 %v1328_v31, %v2419_v60  ;;  %v831_v33 = vmul.bf16 %v1328_v31, %v2265_v36  ;;  %v832_v49 = vmul.bf16 %v1328_v31, %v2422_v24 }
  0xd0   : > { %v833_v54 = vmul.bf16 %v1328_v31, %v2277_v32  ;;  %v834_v16 = vmul.bf16 %v1328_v31, %v2431_v35  ;;  %v835_v20 = vmul.bf16 %v1328_v31, %v2280_v23  ;;  %v836_v21 = vmul.bf16 %v1328_v31, %v2434_v39 }
  0xd1   : > { %v837_v13 = vmul.bf16 %v1328_v31, %v2283_v61  ;;  %v838_v47 = vmul.bf16 %v1328_v31, %v2445_v46  ;;  %v839_v62 = vmul.bf16 %v1328_v31, %v2298_v30  ;;  %v840_v43 = vmul.bf16 %v1328_v31, %v2448_v12 }
  0xd2   : > { %v841_v51 = vunpack.c.l.bf16 %v825_v41  ;;  %v842_v36 = vunpack.c.l.bf16 %v826_v40  ;;  %v843_v8 = vunpack.c.l.bf16 %v827_v56  ;;  %v844_v59 = vunpack.c.l.bf16 %v828_v11 }
  0xd3   : > { %v845_v7 = vunpack.c.l.bf16 %v829_v48  ;;  %v846_v32 = vunpack.c.l.bf16 %v830_v44  ;;  %v847_v63 = vunpack.c.l.bf16 %v831_v33  ;;  %v848_v14 = vunpack.c.l.bf16 %v832_v49 }
  0xd4   : > { %v849_v53 = vunpack.c.l.bf16 %v833_v54  ;;  %v850_v23 = vunpack.c.l.bf16 %v834_v16  ;;  %v851_v57 = vunpack.c.l.bf16 %v835_v20  ;;  %v852_v29 = vunpack.c.l.bf16 %v836_v21 }
  0xd5   : > { %v853_v58 = vunpack.c.l.bf16 %v837_v13  ;;  %v854_v61 = vunpack.c.l.bf16 %v838_v47  ;;  %v855_v15 = vunpack.c.l.bf16 %v839_v62  ;;  %v856_v42 = vunpack.c.l.bf16 %v840_v43 }
  0xd6   : > { %v873_v17 = vrot.slane %v841_v51, 1  ;;  %v874_v30 = vrot.slane %v842_v36, 1  ;;  %v876_v2 = vrot.slane %v843_v8, 1  ;;  %v877_v31 = vrot.slane %v844_v59, 1 }
  0xd7   : > { %v879_v41 = vrot.slane %v845_v7, 1  ;;  %v880_v40 = vrot.slane %v846_v32, 1  ;;  %v882_v56 = vrot.slane %v847_v63, 1  ;;  %v883_v11 = vrot.slane %v848_v14, 1  ;;  %v1333_v7 = vld [vmem:[%s1895_s30 + $0x30] sm:$0xe] }
  0xd8   : > { %v875_v48 = vsel %vm360_vm0, %v873_v17, %v874_v30  ;;  %v878_v44 = vsel %vm360_vm0, %v876_v2, %v877_v31  ;;  %v885_v33 = vrot.slane %v849_v53, 1  ;;  %v886_v49 = vrot.slane %v850_v23, 1  ;;  %v1334_v32 = vld [vmem:[%s1895_s30 + $0x38] sm:$0xe] }
  0xd9   : > { %v881_v54 = vsel %vm360_vm0, %v879_v41, %v880_v40  ;;  %v884_v16 = vsel %vm360_vm0, %v882_v56, %v883_v11  ;;  %v888_v20 = vrot.slane %v851_v57, 1  ;;  %v889_v21 = vrot.slane %v852_v29, 1  ;;  %v1335_v57 = vld [vmem:[%s1895_s30 + $0x40] sm:$0xe]  ;;  %v1336_v29 = vld [vmem:[%s1895_s30 + $0x48] sm:$0xe] }
  0xda   : > { %v887_v13 = vsel %vm360_vm0, %v885_v33, %v886_v49  ;;  %v891_v47 = vrot.slane %v853_v58, 1  ;;  %v892_v62 = vrot.slane %v854_v61, 1  ;;  %v894_v43 = vrot.slane %v855_v15, 1 }
  0xdb   : > { %v890_v51 = vsel %vm360_vm0, %v888_v20, %v889_v21  ;;  %v895_v36 = vrot.slane %v856_v42, 1  ;;  %v905_v8 = vadd.f32 %v875_v48, %v2375_v18  ;;  %v2474_v59 = vadd.f32 %v878_v44, %v2378_v0 }
  0xdc   : > { %v893_v63 = vsel %vm360_vm0, %v891_v47, %v892_v62  ;;  %v907_v14 = vadd.f32 %v881_v54, %v2387_v5  ;;  %v908_v53 = vadd.f32 %v884_v16, %v2389_v55  ;;  %v909_v23 = vadd.f32 %v887_v13, %v2404_v6 }
  0xdd   : > { %v896_v58 = vsel %vm360_vm0, %v894_v43, %v895_v36  ;;  %v910_v61 = vadd.f32 %v890_v51, %v2406_v27  ;;  %v911_v18 = vadd.f32 %v893_v63, %v2408_v9  ;;  %v940_v0 = vmul.bf16 %v2402_v22, %v2422_v24  ;;  %v1338_v51 = vld [vmem:[#allocation7] ss:$0 sm:$0xff] }
  0xde   : > { %v912_v15 = vadd.f32 %v896_v58, %v2410_v1  ;;  %v941_v42 = vmul.bf16 %v2402_v22, %v1333_v7  ;;  %v942_v5 = vmul.bf16 %v2402_v22, %v2431_v35  ;;  %v943_v55 = vmul.bf16 %v2402_v22, %v1334_v32 }
  0xdf   : > { %v944_v6 = vmul.bf16 %v2402_v22, %v2434_v39  ;;  %v945_v17 = vmul.bf16 %v2402_v22, %v1335_v57  ;;  %v946_v27 = vmul.bf16 %v2402_v22, %v2445_v46  ;;  %v947_v9 = vmul.bf16 %v2402_v22, %v1336_v29 }
  0xe0   : > { %v948_v1 = vmul.bf16 %v2402_v22, %v2448_v12  ;;  %v949_v24 = vunpack.c.l.bf16 %v933_v34  ;;  %v950_v35 = vunpack.c.l.bf16 %v934_v25  ;;  %v951_v39 = vunpack.c.l.bf16 %v935_v4 }
  0xe1   : > { %v952_v46 = vunpack.c.l.bf16 %v936_v38  ;;  %v953_v12 = vunpack.c.l.bf16 %v937_v45  ;;  %v955_v19 = vunpack.c.l.bf16 %v939_v28  ;;  %v956_v34 = vunpack.c.l.bf16 %v940_v0 }
  0xe2   : > { %v957_v25 = vunpack.c.l.bf16 %v941_v42  ;;  %v958_v37 = vunpack.c.l.bf16 %v942_v5  ;;  %v959_v4 = vunpack.c.l.bf16 %v943_v55  ;;  %v960_v30 = vunpack.c.l.bf16 %v944_v6 }
  0xe3   : > { %v961_v2 = vunpack.c.l.bf16 %v945_v17  ;;  %v962_v10 = vunpack.c.l.bf16 %v946_v27  ;;  %v963_v38 = vunpack.c.l.bf16 %v947_v9  ;;  %v964_v31 = vunpack.c.l.bf16 %v948_v1 }
  0xe4   : > { %v981_v41 = vrot.slane %v949_v24, 2  ;;  %v982_v50 = vrot.slane %v950_v35, 2  ;;  %v984_v45 = vrot.slane %v951_v39, 2  ;;  %v985_v40 = vrot.slane %v952_v46, 2 }
  0xe5   : > { %v987_v56 = vrot.slane %v953_v12, 2  ;;  %v988_v60 = vrot.slane %v954_v3, 2  ;;  %v990_v52 = vrot.slane %v955_v19, 2  ;;  %v991_v26 = vrot.slane %v956_v34, 2 }
  0xe6   : > { %v983_v11 = vsel %vm469_vm1, %v981_v41, %v982_v50  ;;  %v993_v22 = vrot.slane %v957_v25, 2  ;;  %v994_v28 = vrot.slane %v958_v37, 2  ;;  %v986_v48 = vsel %vm469_vm1, %v984_v45, %v985_v40 }
  0xe7   : > { %v989_v44 = vsel %vm469_vm1, %v987_v56, %v988_v60  ;;  %v996_v33 = vrot.slane %v959_v4, 2  ;;  %v997_v49 = vrot.slane %v960_v30, 2  ;;  %v992_v54 = vsel %vm469_vm1, %v990_v52, %v991_v26 }
  0xe8   : > { %v995_v16 = vsel %vm469_vm1, %v993_v22, %v994_v28  ;;  %v999_v20 = vrot.slane %v961_v2, 2  ;;  %v1000_v21 = vrot.slane %v962_v10, 2  ;;  %v1002_v47 = vrot.slane %v963_v38, 2 }
  0xe9   : > { %v998_v13 = vsel %vm469_vm1, %v996_v33, %v997_v49  ;;  %v1003_v62 = vrot.slane %v964_v31, 2  ;;  %v1013_v43 = vadd.f32 %v983_v11, %v905_v8  ;;  %v1014_v7 = vadd.f32 %v986_v48, %v2474_v59 }
  0xea   : > { %v1001_v36 = vsel %vm469_vm1, %v999_v20, %v1000_v21  ;;  %v1015_v32 = vadd.f32 %v989_v44, %v907_v14  ;;  %v1016_v63 = vadd.f32 %v992_v54, %v908_v53  ;;  %v1017_v29 = vadd.f32 %v995_v16, %v909_v23 }
  0xeb   : > { %v1004_v57 = vsel %vm469_vm1, %v1002_v47, %v1003_v62  ;;  %v1018_v58 = vadd.f32 %v998_v13, %v910_v61  ;;  %v1019_v0 = vadd.f32 %v1001_v36, %v911_v18  ;;  %v1028_v5 = vadd.f32 %v1338_v51, %v1013_v43 }
  0xec   : > { %v1020_v42 = vadd.f32 %v1004_v57, %v912_v15  ;;  %v1029_v55 = vadd.f32 %v1338_v51, %v1014_v7  ;;  %v1030_v6 = vadd.f32 %v1338_v51, %v1015_v32  ;;  %v1031_v17 = vadd.f32 %v1338_v51, %v1016_v63 }
  0xed   : > { %v1032_v27 = vadd.f32 %v1338_v51, %v1017_v29  ;;  %v1033_v9 = vadd.f32 %v1338_v51, %v1018_v58  ;;  %v2532_v8 = vadd.f32 %v1338_v51, %v1019_v0  ;;  %v1339_v1 = vmul.f32 -1.442695, %v1028_v5 }
  0xee   : > { %v1340_v24 = vmul.f32 -1.442695, %v1029_v55  ;;  %v1341_v35 = vmul.f32 -1.442695, %v1030_v6  ;;  %v1035_v59 = vadd.f32 %v1338_v51, %v1020_v42  ;;  %v1342_v14 = vmul.f32 -1.442695, %v1031_v17 }
  0xef   : > { %1456 = vpow2.f32 %v1339_v1  ;;  %v1343_v53 = vmul.f32 -1.442695, %v1032_v27  ;;  %v1344_v23 = vmul.f32 -1.442695, %v1033_v9  ;;  %v1345_v61 = vmul.f32 -1.442695, %v2532_v8 }
  0xf0   : > { %1458 = vpow2.f32 %v1340_v24  ;;  %v1346_v18 = vmul.f32 -1.442695, %v1035_v59 }
  0xf1   : > { %1460 = vpow2.f32 %v1341_v35 }
  0xf2   : > { %1462 = vpow2.f32 %v1342_v14 }
  0xf3   : > { %1464 = vpow2.f32 %v1343_v53 }
  0xf4   : > { %1466 = vpow2.f32 %v1344_v23 }
  0xf5   : > { %1468 = vpow2.f32 %v1345_v61 }
  0xf6   : > { %1470 = vpow2.f32 %v1346_v18 }
  0xf9   : > { %v1457_v15 = vpop.eup %1456 }
  0xfa   : > { %v1459_v39 = vpop.eup %1458  ;;  %v1060_v46 = vadd.f32 1.0, %v1457_v15 }
  0xfb   : > { %v1461_v12 = vpop.eup %1460  ;;  %v1061_v3 = vadd.f32 1.0, %v1459_v39 }
  0xfc   : > { %v1463_v19 = vpop.eup %1462  ;;  %v1062_v34 = vadd.f32 1.0, %v1461_v12  ;;  %1472 = vrcp.f32 %v1060_v46 }
  0xfd   : > { %v1465_v25 = vpop.eup %1464  ;;  %v1063_v37 = vadd.f32 1.0, %v1463_v19  ;;  %1474 = vrcp.f32 %v1061_v3 }
  0xfe   : > { %v1467_v4 = vpop.eup %1466  ;;  %v1064_v30 = vadd.f32 1.0, %v1465_v25  ;;  %1476 = vrcp.f32 %v1062_v34 }
  0xff   : > { %v1469_v2 = vpop.eup %1468  ;;  %v1065_v10 = vadd.f32 1.0, %v1467_v4  ;;  %1478 = vrcp.f32 %v1063_v37 }
 0x100   : > { %v1471_v38 = vpop.eup %1470  ;;  %v1066_v31 = vadd.f32 1.0, %v1469_v2  ;;  %1480 = vrcp.f32 %v1064_v30 }
 0x101   : > { %v1067_v41 = vadd.f32 1.0, %v1471_v38  ;;  %1482 = vrcp.f32 %v1065_v10 }
 0x102   : > { %1484 = vrcp.f32 %v1066_v31 }
 0x103   : > { %1486 = vrcp.f32 %v1067_v41 }
 0x106   : > { %v1473_v50 = vpop.eup %1472 }
 0x107   : > { %v1475_v45 = vpop.eup %1474  ;;  %v1084_v40 = vmul.f32 %v1473_v50, %v1028_v5 }
 0x108   : > { %v1477_v56 = vpop.eup %1476  ;;  %v1085_v60 = vmul.f32 %v1475_v45, %v1029_v55 }
 0x109   : > { %v1479_v52 = vpop.eup %1478  ;;  %v1086_v11 = vmul.f32 %v1477_v56, %v1030_v6 }
 0x10a   : > { %v1481_v26 = vpop.eup %1480  ;;  %v1087_v22 = vmul.f32 %v1479_v52, %v1031_v17  ;;  %v1357_v28 = vpack.c.bf16 %v1085_v60, %v1084_v40  ;;  %v1108_v48 = vadd.f32 %v1085_v60, %v1084_v40 }
 0x10b   : > { %v1483_v44 = vpop.eup %1482  ;;  %v1088_v49 = vmul.f32 %v1481_v26, %v1032_v27 }
 0x10c   : > { %v1485_v33 = vpop.eup %1484  ;;  %v1089_v54 = vmul.f32 %v1483_v44, %v1033_v9  ;;  %1358 = vst [vmem:[%s246_s23] sm:$0xff] %v1357_v28   ;;  %v1362_v16 = vpack.c.bf16 %v1087_v22, %v1086_v11  ;;  %v1109_v20 = vadd.f32 %v1108_v48, %v1086_v11 }
 0x10d   : > { %v1487_v21 = vpop.eup %1486  ;;  %v1090_v13 = vmul.f32 %v1485_v33, %v2532_v8 }
 0x10e   : > { %v1091_v47 = vmul.f32 %v1487_v21, %v1035_v59  ;;  %1374 = vst [vmem:[%s246_s23 + $0x8] sm:$0xff] %v1362_v16   ;;  %v1367_v62 = vpack.c.bf16 %v1089_v54, %v1088_v49  ;;  %v1110_v43 = vadd.f32 %v1109_v20, %v1087_v22 }
 0x110   : > { %1375 = vst [vmem:[%s246_s23 + $0x10] sm:$0xff] %v1367_v62   ;;  %v1372_v51 = vpack.c.bf16 %v1091_v47, %v1090_v13  ;;  %v1111_v36 = vadd.f32 %v1110_v43, %v1088_v49 }
 0x112   : > { %1376 = vst [vmem:[%s246_s23 + $0x18] sm:$0xff] %v1372_v51   ;;  %v1112_v7 = vadd.f32 %v1111_v36, %v1089_v54 }
 0x113   : > { %1587 = shalt.err (!%p1584_p1)
}
 0x114   : > { %s1588_s26 = scalar_lea.hbm %s2541_s7, 512  ;;  %s1592_s30 = scalar_lea.hbm %s2621_s3, 1024 }
 0x115   : > { %p1589_p13 = scmp.ne.s32.totalorder %s2541_s7, %s1588_s26  ;;  %p1593_p4 = scmp.lt.u32.totalorder %s2541_s7, %s2621_s3 }
 0x116   : > { %p1594_p5 = scmp.lt.u32.totalorder %s1592_s30, %s1588_s26  ;;  %p1596_p11 = scmp.lt.u32.totalorder %s1588_s26, %s2541_s7 }
 0x117   : > { %p1590_p6 = pnand %p1589_p13, %p2646_p0 }
 0x118   : > { %p1595_p8 = por %p1594_p5, %p1593_p4 }
 0x119   : > { %p1591_p10 = pneg %p1590_p6 }
 0x11a   : > { %p1597_p2 = por %p1596_p11, %p1595_p8 }
 0x11c   : > { %p1598_p3 = pnand %p1597_p2, %p1591_p10 }
 0x11e   : > { %1601 = shalt.err (!%p1598_p3)
}
 0x11f   : > { %s1684_s11 = smov 64   ;;  %s1685_s29 = smov 4   ;;  %v1113_v32 = vadd.f32 %v1112_v7, %v1090_v13 }
 0x120   : > { %1390 = dma.vmem_to_hbm [thread:$0]  (%p2646_p0), %s2543_s12, 512, %s2541_s7, %s1124_s8, %s1684_s11, %s1684_s11, %s1685_s29  }
 0x121   : > { %v1114_v63 = vadd.f32 %v1113_v32, %v1091_v47  ;;  %s1350_s6 = sshll.u32 %s1733_s19, 4  ;;  %s252_s5 = scalar_lea.vmem [#allocation9], %s1891_s9 }
 0x122   : > { %s1157_s24 = sshll.u32 %s252_s5, 4  ;;  %s2574_s26 = scalar_lea.hbm %s2622_s4, %s1350_s6  ;;  %s2576_s24 = int_to_ptr.vmem [resolvable:$true] %s1157_s24 }
 0x123   : > { %v1115_v57 = vrot.slane %v1114_v63, 4  ;;  %s1129_s12 = scalar_lea.sflag [#allocation10], %s1891_s9  ;;  %s1602_s7 = scalar_lea.vmem %s2576_s24, 16 }
 0x124   : > { %p1603_p7 = scmp.ne.s32.totalorder %s2576_s24, %s1602_s7  ;;  %s1686_s19 = smov [#allocation9]  }
 0x125   : > { %v1116_v29 = vadd.f32 %v1115_v57, %v1114_v63  ;;  %s1606_s8 = sshll.u32 %s1686_s19, 4  ;;  %s1607_s8 = int_to_ptr.vmem [resolvable:$false] %s1606_s8 }
 0x126   : > { %p1604_p9 = pnand %p1603_p7, %p2646_p0  ;;  %s1608_s13 = scalar_lea.vmem %s1607_s8, 32 }
 0x127   : > { %v1117_v58 = vrot.slane %v1116_v29, 2  ;;  %p1609_p1 = scmp.lt.s32.totalorder %s2576_s24, %s1607_s8  ;;  %p1610_p13 = scmp.lt.s32.totalorder %s1608_s13, %s1602_s7 }
 0x128   : > { %p1605_p12 = pneg %p1604_p9 }
 0x129   : > { %v1118_v0 = vadd.f32 %v1117_v58, %v1116_v29  ;;  %p1611_p6 = por %p1610_p13, %p1609_p1 }
 0x12b   : > { %v1119_v42 = vrot.slane %v1118_v0, 1  ;;  %p1612_p10 = pnand %p1611_p6, %p1605_p12 }
 0x12d   : > { %v1120_v5 = vadd.f32 %v1119_v42, %v1118_v0 }
 0x12f   : > { %v1121_v55 = vmul.f32 0.015625, %v1120_v5 }
 0x131   : > { %1122 = vst [vmem:[%s252_s5] sm:$0x1] %v1121_v55 }
 0x132   : > { %1615 = shalt.err (!%p1612_p10)
}
 0x133   : > { %s1616_s9 = scalar_lea.hbm %s2574_s26, 16  ;;  %s1620_s21 = scalar_lea.hbm %s2622_s4, 32 }
 0x134   : > { %p1617_p4 = scmp.ne.s32.totalorder %s2574_s26, %s1616_s9  ;;  %p1621_p11 = scmp.lt.u32.totalorder %s2574_s26, %s2622_s4 }
 0x135   : > { %p1622_p2 = scmp.lt.u32.totalorder %s1620_s21, %s1616_s9  ;;  %p1624_p7 = scmp.lt.u32.totalorder %s1616_s9, %s2574_s26 }
 0x136   : > { %p1618_p5 = pnand %p1617_p4, %p2646_p0 }
 0x137   : > { %p1623_p3 = por %p1622_p2, %p1621_p11 }
 0x138   : > { %p1619_p8 = pneg %p1618_p5 }
 0x139   : > { %p1625_p9 = por %p1624_p7, %p1623_p3 }
 0x13b   : > { %p1626_p12 = pnand %p1625_p9, %p1619_p8 }
 0x13d   : > { %1629 = shalt.err (!%p1626_p12)
}
 0x13e   : > { %1391 = dma.vmem_to_hbm [thread:$0]  (%p2646_p0), %s2576_s24, 16, %s2574_s26, %s1129_s12  }
 0x13f PF: > { %s1169_s29 = sand.u32 1, %s1664_s15   ;;  %p2647_p1 = scmp.ne.s32.totalorder %s2629_s22, 0 }
 0x140   : > { %p2648_p13 = scmp.ge.s32.totalorder %s1676_s18, 2  ;;  %s1170_s6 = scalar_lea.sflag [#allocation4], %s1169_s29 }
 0x142   : > { %p1406_p6 = pnand %p2648_p13, %p2647_p1 }
 0x144   : > { %1655 = dma.done.wait (!%p1406_p6), %s1170_s6, 512  }
 0x145   : > { %1657 = vsyncadd (!%p1406_p6), %s1170_s6, 4294966784  ;;  %s1179_s5 = scalar_lea.sflag [#allocation10], %s1169_s29 }
 0x146   : > { %1659 = dma.done.wait (!%p1406_p6), %s1179_s5, 16  }
 0x147   : > { %1661 = vsyncadd (!%p1406_p6), %s1179_s5, 4294967280  ;;  %p22_p0 = scmp.ge.s32.totalorder %s1826_s10, 4   ;;  %s2649_s15 = smov %s1668_s16 }
 0x148   : > { %s2650_s16 = smov %s1672_s17  ;;  %s2651_s17 = smov %s1842_s20 }
 0x149   : > { %s2652_s18 = smov %s1826_s10  ;;  %24 = sbr.rel (!%p22_p0) target bundleno = 8 (0x8), region = 104 }
 0x150   :  { %1183 = vsyncpa [#allocation3], 1 }
 0x151   :  { %1185 = vsyncpa [#allocation3 + $0x1], 1 }
 0x152   :  { %1186 = vsyncpa [#allocation6], 1 }
 0x153   :  { %1187 = vsyncpa [#allocation4], 1 }
 0x154   :  { %1189 = vsyncpa [#allocation4 + $0x1], 1 }
 0x155   :  { %1190 = vsyncpa [#allocation10], 1 }
 0x156   :  { %1192 = vsyncpa [#allocation10 + $0x1], 1 }

// kernel: _lambda_.26
= control target key start
LH: loop header
LB: loop body
LE: loop exit
PB: predicated region body
PF: predicated region fallthrough
CT: control target
= control target key end

     0   :  { %s1399_s0 = inlined_call_operand.hbm [shape: bf16[2,16,128], index: 0, kind: input, shape index: {}]   ;;  %s1400_s1 = inlined_call_operand.hbm [shape: bf16[128,128], index: 1, kind: input, shape index: {}]   ;;  %s1401_s2 = inlined_call_operand.hbm [shape: f32[1,128], index: 2, kind: input, shape index: {}]   ;;  %s1402_s3 = inlined_call_operand.hbm [shape: f32[2,1,128], index: 3, kind: input, shape index: {}]   ;;  %s1403_s4 = inlined_call_operand.hbm [shape: bf16[2,16,128], index: 4, kind: output, shape index: {}]  }
   0x1   :  { %1410 = sst [smem:[#allocation16_spill]] %s1399_s0 }
   0x2   :  { %1411 = sst [smem:[#allocation17_spill]] %s1400_s1 }
   0x3   :  { %9 = vsyncpa [#allocation4], 0 }
   0x4   :  { %11 = vsyncpa [#allocation4 + $0x1], 0 }
   0x5   :  { %12 = vsyncpa [#allocation7], 0 }
   0x6   :  { %13 = vsyncpa [#allocation10], 0 }
   0x7   :  { %15 = vsyncpa [#allocation10 + $0x1], 0 }
   0x8   :  { %16 = vsyncpa [#allocation5], 0 }
   0x9   :  { %18 = vsyncpa [#allocation5 + $0x1], 0  ;;  %s1089_s15 = smov 0   ;;  %s1091_s16 = smov 0  }
   0xa   :  { %s1093_s17 = smov 0   ;;  %s1095_s18 = smov 0  }
   0xb   :  { %s1097_s19 = smov 0   ;;  %s1099_s20 = smov 0  }
   0xc LB: > { %s667_s21 = sadd.s32 4294967295, %s1051_s20   ;;  %s668_s22 = sadd.s32 4294967294, %s1051_s20   ;;  %s1051_s20 = sphi %s1099_s20, %s24_s20   ;;  %s1047_s19 = sphi %s1097_s19, %s1436_s19   ;;  %s1043_s18 = sphi %s1095_s18, %s1435_s18   ;;  %s1039_s17 = sphi %s1093_s17, %s1434_s17   ;;  %s1035_s16 = sphi %s1091_s16, %s1433_s16   ;;  %s1031_s15 = sphi %s1089_s15, %s1432_s15  }
   0xd   : > { %p68_p0 = scmp.ne.s32.totalorder %s1039_s17, %s1035_s16  ;;  %p69_p1 = scmp.eq.s32.totalorder %s1051_s20, 0 }
   0xe   : > { %p74_p2 = scmp.ne.s32.totalorder %s1035_s16, %s1031_s15  ;;  %p1127_p3 = scmp.eq.s32.totalorder %s667_s21, 0 }
   0xf   : > { %p184_p4 = scmp.eq.s32.totalorder %s667_s21, 1  ;;  %p1131_p5 = por %p69_p1, %p68_p0 }
  0x10   : > { %s1412_s24 = scalar_select %p1127_p3, 1, 0 }
  0x11   : > { %p190_p6 = scmp.eq.s32.totalorder %s668_s22, 1  ;;  %p1137_p7 = por %p1127_p3, %p74_p2 }
  0x12   : > { %p1141_p8 = por %p184_p4, %p68_p0  ;;  %p669_p10 = scmp.ge.s32.totalorder %s1051_s20, 1 }
  0x13   : > { %s1414_s26 = scalar_select %p1137_p7, 1, 0 }
  0x14   : > { %s1415_s27 = scalar_select %p1141_p8, 1, 0 }
  0x15   : > { %p1145_p9 = por %p190_p6, %p74_p2  ;;  %p197_p11 = scmp.lt.s32.totalorder %s1051_s20, 3 }
  0x16   : > { %s1053_s30 = smov [#allocation6]   ;;  %s1054_s7 = smov [#allocation8]  }
  0x17   : > { %s1416_s28 = scalar_select %p1145_p9, 1, 0 }
  0x18   : > { %p1151_p12 = pnand %p669_p10, %p197_p11  ;;  %s213_s5 = sshll.u32 %s1053_s30, 4  ;;  %s1155_s5 = int_to_ptr.vmem [resolvable:$true] %s213_s5 }
  0x19   : > { %s229_s8 = sshll.u32 %s1054_s7, 4  ;;  %s1419_s1 = sld [smem:[#allocation17_spill]]  ;;  %s1166_s8 = int_to_ptr.vmem [resolvable:$true] %s229_s8 }
  0x1a   : > { %s1417_s29 = scalar_select %p1151_p12, 1, 0 }
  0x1b   : > { %p753_p13 = pneg %p1151_p12 }
  0x1d   : > { %p1162_p1 = pnand %p753_p13, %p1127_p3 }
  0x1f   : > { %s845_s12 = scalar_lea.hbm %s1419_s1, 1024  ;;  %p847_p4 = pneg %p1162_p1 }
  0x20   : > { %p846_p2 = scmp.ne.s32.totalorder %s1419_s1, %s845_s12  ;;  %p852_p11 = scmp.lt.u32.totalorder %s845_s12, %s1419_s1 }
  0x22   : > { %p848_p6 = pnand %p847_p4, %p846_p2 }
  0x24   : > { %p849_p10 = pneg %p848_p6 }
  0x26   : > { %p854_p13 = pnand %p852_p11, %p849_p10 }
  0x28   : > { %857 = shalt.err (!%p854_p13)
}
  0x29   : > { %s858_s30 = scalar_lea.vmem %s1155_s5, 1024  ;;  %p866_p3 = scmp.lt.s32.totalorder %s1155_s5, %s1155_s5 }
  0x2a   : > { %p859_p0 = scmp.ne.s32.totalorder %s1155_s5, %s858_s30  ;;  %p867_p2 = scmp.lt.s32.totalorder %s858_s30, %s858_s30 }
  0x2c   : > { %p861_p9 = pnand %p859_p0, %p847_p4  ;;  %p868_p6 = por %p867_p2, %p866_p3 }
  0x2e   : > { %p862_p8 = pneg %p861_p9 }
  0x30   : > { %p869_p7 = pnand %p868_p6, %p862_p8 }
  0x32   : > { %872 = shalt.err (!%p869_p7)
}
  0x33   : > { %s1408_s7 = smov 64   ;;  %s1056_s10 = smov 4  }
  0x34   : > { %756 = dma.hbm_to_vmem [thread:$0]  (!%p1162_p1), %s1419_s1, 1024, %s1155_s5, [#allocation7], %s1408_s7, %s1408_s7, %s1056_s10  }
  0x35   : > { %s873_s21 = scalar_lea.hbm %s1401_s2, 16 }
  0x36   : > { %p874_p3 = scmp.ne.s32.totalorder %s1401_s2, %s873_s21  ;;  %p880_p9 = scmp.lt.u32.totalorder %s873_s21, %s1401_s2 }
  0x38   : > { %p876_p7 = pnand %p874_p3, %p847_p4 }
  0x3a   : > { %p877_p8 = pneg %p876_p7 }
  0x3c   : > { %p882_p0 = pnand %p880_p9, %p877_p8 }
  0x3e   : > { %885 = shalt.err (!%p882_p0)
}
  0x3f   : > { %s886_s5 = scalar_lea.vmem %s1166_s8, 16  ;;  %s893_s11 = scalar_lea.vmem %s1166_s8, 32 }
  0x40   : > { %p887_p10 = scmp.ne.s32.totalorder %s1166_s8, %s886_s5  ;;  %p894_p2 = scmp.lt.s32.totalorder %s1166_s8, %s1166_s8 }
  0x41   : > { %p895_p6 = scmp.lt.s32.totalorder %s893_s11, %s886_s5 }
  0x42   : > { %p889_p11 = pnand %p887_p10, %p847_p4 }
  0x43   : > { %p896_p3 = por %p895_p6, %p894_p2 }
  0x44   : > { %p890_p13 = pneg %p889_p11 }
  0x46   : > { %p897_p7 = pnand %p896_p3, %p890_p13 }
  0x48   : > { %900 = shalt.err (!%p897_p7)
}
  0x49   : > { %759 = dma.hbm_to_vmem [thread:$0]  (!%p1162_p1), %s1401_s2, 16, %s1166_s8, [#allocation7]  }
  0x4a   : > { %s1420_s12 = sadd.s32 1, %s1047_s19  ;;  %p773_p8 = scmp.lt.s32.totalorder %s1051_s20, 2 }
  0x4b   : > { %p52_p4 = scmp.ge.s32.totalorder %s1420_s12, 2  ;;  %s1229_s13 = sand.u32 1, %s1039_s17  }
  0x4c   : > { %s701_s6 = sshll.u32 %s1047_s19, 7  ;;  %s1421_s14 = smov %s1420_s12 }
  0x4d   : > { %s1438_s14 = smov (%p52_p4, %s1421_s14), 0  ;;  %s673_s21 = sshll.u32 %s1229_s13, 3 }
  0x4e   : > { %s54_s22 = ssub.s32 %s1047_s19, %s1438_s14  ;;  %s1422_s0 = sld [smem:[#allocation16_spill]] }
  0x4f   : > { %p59_p9 = scmp.eq.s32.totalorder %s54_s22, 0  ;;  %s244_s8 = scalar_lea.vmem [#allocation3], %s673_s21 }
  0x50   : > { %s254_s23 = sshll.u32 %s244_s8, 4  ;;  %p1246_p1 = pnand %p773_p8, %p1131_p5  ;;  %s1255_s23 = int_to_ptr.vmem [resolvable:$true] %s254_s23 }
  0x51   : > { %s1424_s12 = sadd.s32 1, %s1039_s17 }
  0x52   : > { %s1253_s22 = scalar_select %p59_p9, %s1039_s17, %s1424_s12  }
  0x53   : > { %p903_p10 = pneg %p1246_p1 }
  0x54   : > { %s1242_s11 = scalar_lea.hbm %s1422_s0, %s701_s6  ;;  %s241_s6 = scalar_lea.sflag [#allocation4], %s1229_s13 }
  0x55   : > { %s901_s30 = scalar_lea.hbm %s1242_s11, 128  ;;  %s906_s5 = scalar_lea.hbm %s1422_s0, 256 }
  0x56   : > { %p902_p0 = scmp.ne.s32.totalorder %s1242_s11, %s901_s30  ;;  %p907_p5 = scmp.lt.u32.totalorder %s1242_s11, %s1422_s0 }
  0x57   : > { %p908_p2 = scmp.lt.u32.totalorder %s906_s5, %s901_s30  ;;  %p910_p3 = scmp.lt.u32.totalorder %s901_s30, %s1242_s11 }
  0x58   : > { %p904_p11 = pnand %p903_p10, %p902_p0 }
  0x59   : > { %p909_p6 = por %p908_p2, %p907_p5 }
  0x5a   : > { %p905_p13 = pneg %p904_p11 }
  0x5b   : > { %p911_p7 = por %p910_p3, %p909_p6 }
  0x5d   : > { %p912_p4 = pnand %p911_p7, %p905_p13 }
  0x5f   : > { %915 = shalt.err (!%p912_p4)
}
  0x60   : > { %s916_s12 = scalar_lea.vmem %s1255_s23, 128  ;;  %s1057_s25 = smov [#allocation3]  }
  0x61   : > { %p917_p8 = scmp.ne.s32.totalorder %s1255_s23, %s916_s12  ;;  %s921_s21 = sshll.u32 %s1057_s25, 4  ;;  %s922_s21 = int_to_ptr.vmem [resolvable:$false] %s921_s21 }
  0x62   : > { %s923_s7 = scalar_lea.vmem %s922_s21, 256  ;;  %p924_p11 = scmp.lt.s32.totalorder %s1255_s23, %s922_s21 }
  0x63   : > { %p919_p9 = pnand %p917_p8, %p903_p10  ;;  %p925_p5 = scmp.lt.s32.totalorder %s923_s7, %s916_s12 }
  0x65   : > { %p920_p0 = pneg %p919_p9  ;;  %p926_p2 = por %p925_p5, %p924_p11 }
  0x67   : > { %p927_p6 = pnand %p926_p2, %p920_p0 }
  0x69   : > { %930 = shalt.err (!%p927_p6)
}
  0x6a   : > { %s1425_s30 = smov 64   ;;  %s676_s5 = sshll.u32 %s1047_s19, 4 }
  0x6b   : > { %763 = dma.hbm_to_vmem [thread:$0]  (!%p1246_p1), %s1242_s11, 128, %s1255_s23, %s241_s6, %s1425_s30, %s1425_s30, %s1056_s10  }
  0x6c   : > { %s267_s8 = scalar_lea.vmem [#allocation9], %s1229_s13  ;;  %s1293_s7 = scalar_lea.hbm %s1402_s3, %s676_s5 }
  0x6d   : > { %s275_s12 = sshll.u32 %s267_s8, 4  ;;  %s265_s0 = scalar_lea.sflag [#allocation10], %s1229_s13  ;;  %s276_s12 = int_to_ptr.vmem [resolvable:$true] %s275_s12 }
  0x6e   : > { %s931_s1 = scalar_lea.hbm %s1293_s7, 16  ;;  %s936_s23 = scalar_lea.hbm %s1402_s3, 32 }
  0x6f   : > { %p932_p13 = scmp.ne.s32.totalorder %s1293_s7, %s931_s1  ;;  %p937_p4 = scmp.lt.u32.totalorder %s1293_s7, %s1402_s3 }
  0x70   : > { %p938_p8 = scmp.lt.u32.totalorder %s936_s23, %s931_s1  ;;  %p940_p0 = scmp.lt.u32.totalorder %s931_s1, %s1293_s7 }
  0x71   : > { %p934_p3 = pnand %p932_p13, %p903_p10 }
  0x72   : > { %p939_p9 = por %p938_p8, %p937_p4 }
  0x73   : > { %p935_p7 = pneg %p934_p3 }
  0x74   : > { %p941_p11 = por %p940_p0, %p939_p9 }
  0x76   : > { %p942_p5 = pnand %p941_p11, %p935_p7 }
  0x78   : > { %945 = shalt.err (!%p942_p5)
}
  0x79   : > { %s946_s13 = scalar_lea.vmem %s276_s12, 16  ;;  %s1058_s5 = smov [#allocation9]  }
  0x7a   : > { %p947_p2 = scmp.ne.s32.totalorder %s276_s12, %s946_s13  ;;  %s951_s8 = sshll.u32 %s1058_s5, 4  ;;  %s952_s8 = int_to_ptr.vmem [resolvable:$false] %s951_s8 }
  0x7b   : > { %s953_s25 = scalar_lea.vmem %s952_s8, 32  ;;  %p954_p3 = scmp.lt.s32.totalorder %s276_s12, %s952_s8 }
  0x7c   : > { %p949_p6 = pnand %p947_p2, %p903_p10  ;;  %p955_p12 = scmp.lt.s32.totalorder %s953_s25, %s946_s13 }
  0x7e   : > { %p950_p13 = pneg %p949_p6  ;;  %p956_p4 = por %p955_p12, %p954_p3 }
  0x80   : > { %p957_p8 = pnand %p956_p4, %p950_p13 }
  0x82   : > { %960 = shalt.err (!%p957_p8)
}
  0x83   : > { %766 = dma.hbm_to_vmem [thread:$0]  (!%p1246_p1), %s1293_s7, 16, %s276_s12, %s265_s0  }
  0x84   : > { %p1426_p7 = scmp.ne.s32.totalorder %s1417_s29, 0 }
  0x85   : > { %s1318_s1 = sand.u32 (!%p1426_p7), 1, %s1035_s16   ;;  %p1427_p12 = scmp.ne.s32.totalorder (!%p1426_p7), %s1414_s26, 0 }
  0x86   : > { %284 = sbr.rel (%p1426_p7) target bundleno = 421 (0x1a5), region = 36  ;;  %s678_s21 = sshll.u32 (!%p1426_p7), %s1318_s1, 3 }
  0x87   : > { %s287_s10 = scalar_lea.sflag (!%p1426_p7), [#allocation4], %s1318_s1  ;;  %s1324_s11 = scalar_lea.vmem (!%p1426_p7), [#allocation3], %s678_s21 }
  0x8d   : > { %1014 = dma.done.wait (%p1427_p12), %s287_s10, 128  }
  0x8e   : > { %1016 = vsyncadd (%p1427_p12), %s287_s10, 4294967168  ;;  %p1428_p1 = scmp.ne.s32.totalorder %s1412_s24, 0 }
  0x90   : > { %1018 = dma.done.wait (%p1428_p1), [#allocation7], 1040  }
  0x91   : > { %1020 = vsyncadd (%p1428_p1), [#allocation7], 4294966256  ;;  %s304_s0 = scalar_lea.sflag [#allocation10], %s1318_s1  ;;  %s306_s29 = scalar_lea.vmem [#allocation9], %s1318_s1 }
  0x92   : > { %1022 = dma.done.wait (%p1427_p12), %s304_s0, 16  }
  0x93   : > { %1024 = vsyncadd (%p1427_p12), %s304_s0, 4294967280  ;;  %v1059_v0 = vmov 0.0   ;;  %vm1060_vm0 = vmmov 0   ;;  %v833_v1 = vld [vmem:[#allocation6] sm:$0xff]   ;;  %v834_v2 = vld [vmem:[#allocation6 + $0x8] sm:$0xff]   ;;  %v358_v13 = vlaneseq  ;;  %s334_s24 = scalar_lea.vmem [#allocation11], %s678_s21 }
  0x94   : > { %719 = vmatprep.subr.bf16.mxu0 %v1059_v0  ;;  %735 = vmatprep.mubr.msk.bf16.mxu0 %vm1060_vm0, %v1059_v0  ;;  %v835_v3 = vld [vmem:[#allocation6 + $0x10] sm:$0xff]   ;;  %v836_v6 = vld [vmem:[#allocation6 + $0x18] sm:$0xff]   ;;  %v837_v7 = vld [vmem:[#allocation6 + $0x20] sm:$0xff]   ;;  %s526_s26 = sshll.u32 %s334_s24, 4  ;;  %s704_s9 = sshll.u32 %s1043_s18, 7  ;;  %s1345_s26 = int_to_ptr.vmem [resolvable:$true] %s526_s26 }
  0x95   : > { %720 = vmatpush3.bf16.msra.mxu0 %v833_v1  ;;  %v347_v4 = vld [vmem:[%s306_s29] sm:$0x1]  ;;  %v838_v8 = vld [vmem:[#allocation6 + $0x28] sm:$0xff]   ;;  %v840_v12 = vld [vmem:[#allocation6 + $0x38] sm:$0xff]   ;;  %v359_v14 = vshrl.u32 %v358_v13, 7  ;;  %s1350_s23 = scalar_lea.hbm %s1403_s4, %s704_s9  ;;  %s510_s6 = scalar_lea.sflag [#allocation5], %s1318_s1 }
  0x96   : > { %721 = vmatprep.subr.bf16.mxu0 %v1059_v0  ;;  %v682_v5 = vmul.f32 -1.442695, %v347_v4  ;;  %v839_v10 = vld [vmem:[#allocation6 + $0x30] sm:$0xff]   ;;  %v693_v27 = vld [vmem:[#allocation8] ss:$0 sm:$0xff]  ;;  %s961_s30 = scalar_lea.vmem %s1345_s26, 128 }
  0x97   : > { %v360_v17 = vsub.s32 0, %v359_v14  ;;  %v345_v20 = vld [vmem:[%s1324_s11] sm:$0xf]  ;;  %v346_v21 = vld [vmem:[%s1324_s11 + $0x4] sm:$0xf]  ;;  %p962_p10 = scmp.ne.s32.totalorder %s1345_s26, %s961_s30  ;;  %p1429_p9 = scmp.ne.s32.totalorder %s1415_s27, 0 }
  0x98   : > { %841 = vpow2.f32 %v682_v5  ;;  %s1061_s18 = smov [#allocation11]  }
  0x99   : > { %722 = vmatpush3.bf16.msra.mxu0 %v834_v2  ;;  %p963_p0 = pnand %p962_p10, %p1429_p9  ;;  %s965_s13 = sshll.u32 %s1061_s18, 4  ;;  %s966_s13 = int_to_ptr.vmem [resolvable:$false] %s965_s13 }
  0x9a   : > { %723 = vmatprep.subr.bf16.mxu0 %v1059_v0  ;;  %s967_s5 = scalar_lea.vmem %s966_s13, 256  ;;  %p968_p5 = scmp.lt.s32.totalorder %s1345_s26, %s966_s13 }
  0x9b   : > { %p964_p11 = pneg %p963_p0  ;;  %p969_p2 = scmp.lt.s32.totalorder %s967_s5, %s961_s30 }
  0x9d   : > { %724 = vmatpush3.bf16.msra.mxu0 %v835_v3  ;;  %p970_p6 = por %p969_p2, %p968_p5 }
  0x9e   : > { %725 = vmatprep.subr.bf16.mxu0 %v1059_v0 }
  0x9f   : > { %p971_p13 = pnand %p970_p6, %p964_p11 }
  0xa1   : > { %726 = vmatpush3.bf16.msra.mxu0 %v836_v6 }
  0xa2   : > { %727 = vmatprep.subr.bf16.mxu0 %v1059_v0  ;;  %v842_v9 = vpop.eup %841 }
  0xa3   : > { %v351_v11 = vadd.f32 1.0, %v842_v9 }
  0xa5   : > { %728 = vmatpush3.bf16.msra.mxu0 %v837_v7  ;;  %843 = vrcp.f32 %v351_v11 }
  0xa6   : > { %729 = vmatprep.subr.bf16.mxu0 %v1059_v0 }
  0xa9   : > { %730 = vmatpush3.bf16.msra.mxu0 %v838_v8 }
  0xaa   : > { %731 = vmatprep.subr.bf16.mxu0 %v1059_v0 }
  0xad   : > { %732 = vmatpush3.bf16.msra.mxu0 %v839_v10 }
  0xae   : > { %733 = vmatprep.subr.bf16.mxu0 %v1059_v0 }
  0xaf   : > { %v844_v15 = vpop.eup %843 }
  0xb0   : > { %v354_v16 = vpack.c.bf16 %v844_v15, %v844_v15 }
  0xb1   : > { %734 = vmatpush3.bf16.msra.mxu0 %v840_v12 }
  0xb2   : > { %v356_v18 = vpack.i.b16 %v354_v16, %v354_v16 }
  0xb4   : > { %v361_v19 = vrot.slane %v356_v18, %v360_v17 }
  0xb6   : > { %v683_v22 = vcombine.low %v361_v19, %v361_v19 }
  0xb8   : > { %v366_v23 = vmul.bf16 %v683_v22, %v345_v20  ;;  %v367_v24 = vmul.bf16 %v683_v22, %v346_v21 }
  0xba   : > { %v684_v25 = vcombine.low %v366_v23, %v367_v24 }
  0xbc   : > { %736 = vmatmul.mubr.bf16.vlgmr.msra.gmra.mrb[0].mxu0 %v684_v25 }
 0x18f   : > { %v474_v26 = vpop.f32.mrb[0].mxu0 }
 0x190   : > { %v737_v28 = vpop.f32.mrb[1].mxu0  ;;  %v497_v30 = vadd.f32 %v693_v27, %v474_v26 }
 0x191   : > { %v477_v29 = vpop.f32.mrb[2].mxu0 }
 0x192   : > { %v498_v31 = vadd.f32 %v693_v27, %v477_v29  ;;  %v738_v32 = vpop.f32.mrb[3].mxu0 }
 0x194   : > { %v708_v33 = vpack.c.bf16 %v498_v31, %v497_v30 }
 0x196   : > { %709 = vst [vmem:[%s334_s24] sm:$0xff] %v708_v33  }
 0x197   : > { %974 = shalt.err (!%p971_p13)
}
 0x198   : > { %s975_s8 = scalar_lea.hbm %s1350_s23, 128  ;;  %s979_s10 = scalar_lea.hbm %s1403_s4, 256 }
 0x199   : > { %p976_p3 = scmp.ne.s32.totalorder %s1350_s23, %s975_s8  ;;  %p980_p7 = scmp.lt.u32.totalorder %s1350_s23, %s1403_s4 }
 0x19a   : > { %p981_p12 = scmp.lt.u32.totalorder %s979_s10, %s975_s8  ;;  %p983_p10 = scmp.lt.u32.totalorder %s975_s8, %s1350_s23 }
 0x19b   : > { %p977_p4 = pnand %p976_p3, %p1429_p9 }
 0x19c   : > { %p982_p1 = por %p981_p12, %p980_p7 }
 0x19d   : > { %p978_p8 = pneg %p977_p4 }
 0x19e   : > { %p984_p0 = por %p983_p10, %p982_p1 }
 0x1a0   : > { %p985_p11 = pnand %p984_p0, %p978_p8 }
 0x1a2   : > { %988 = shalt.err (!%p985_p11)
}
 0x1a3   : > { %s1062_s29 = smov 64   ;;  %s1063_s24 = smov 4  }
 0x1a4   : > { %751 = dma.vmem_to_hbm [thread:$0]  (%p1429_p9), %s1345_s26, 128, %s1350_s23, %s510_s6, %s1062_s29, %s1062_s29, %s1063_s24  }
 0x1a5 PF: > { %s541_s9 = sand.u32 1, %s1031_s15   ;;  %p1430_p5 = scmp.ne.s32.totalorder %s1416_s28, 0 }
 0x1a6   : > { %p1431_p2 = scmp.ge.s32.totalorder %s1051_s20, 2  ;;  %s542_s12 = scalar_lea.sflag [#allocation5], %s541_s9 }
 0x1a8   : > { %p768_p6 = pnand %p1431_p2, %p1430_p5 }
 0x1aa   : > { %1026 = dma.done.wait (!%p768_p6), %s542_s12, 128  }
 0x1ab   : > { %1028 = vsyncadd (!%p768_p6), %s542_s12, 4294967168  ;;  %s24_s20 = sadd.s32 1, %s1051_s20   ;;  %s1432_s15 = smov %s1035_s16 }
 0x1ac   : > { %p21_p13 = scmp.ge.s32.totalorder %s24_s20, 4   ;;  %s1433_s16 = smov %s1039_s17 }
 0x1ad   : > { %s1434_s17 = smov %s1253_s22  ;;  %s1435_s18 = smov %s1047_s19 }
 0x1ae   : > { %s1436_s19 = smov %s1438_s14  ;;  %23 = sbr.rel (!%p21_p13) target bundleno = 12 (0xc), region = 112 }
 0x1b5   :  { %547 = vsyncpa [#allocation4], 1 }
 0x1b6   :  { %549 = vsyncpa [#allocation4 + $0x1], 1 }
 0x1b7   :  { %550 = vsyncpa [#allocation7], 1 }
 0x1b8   :  { %551 = vsyncpa [#allocation10], 1 }
 0x1b9   :  { %553 = vsyncpa [#allocation10 + $0x1], 1 }
 0x1ba   :  { %554 = vsyncpa [#allocation5], 1 }
 0x1bb   :  { %556 = vsyncpa [#allocation5 + $0x1], 1 }

// kernel: _lambda_.27
= control target key start
LH: loop header
LB: loop body
LE: loop exit
PB: predicated region body
PF: predicated region fallthrough
CT: control target
= control target key end

     0   :  { %8 = vsyncpa [#allocation4], 0  ;;  %s568_s0 = inlined_call_operand.hbm [shape: bf16[1,32,128], index: 0, kind: input, shape index: {}]   ;;  %s569_s1 = inlined_call_operand.hbm [shape: bf16[128,128], index: 1, kind: input, shape index: {}]   ;;  %s570_s2 = inlined_call_operand.hbm [shape: f32[1,128], index: 2, kind: input, shape index: {}]   ;;  %s571_s3 = inlined_call_operand.hbm [shape: bf16[1,32,128], index: 3, kind: output, shape index: {}]  }
   0x1   :  { %9 = vsyncpa [#allocation7], 0 }
   0x2   :  { %10 = vsyncpa [#allocation5], 0  ;;  %s478_s12 = smov [#allocation6]   ;;  %s479_s14 = smov [#allocation3]  }
   0x3   :  { %s28_s13 = sshll.u32 %s478_s12, 4  ;;  %s16_s15 = sshll.u32 %s479_s14, 4  ;;  %s29_s13 = int_to_ptr.vmem [resolvable:$true] %s28_s13  ;;  %s504_s15 = int_to_ptr.vmem [resolvable:$true] %s16_s15 }
   0x4   :  { %s384_s18 = scalar_lea.hbm %s569_s1, 1024 }
   0x5   :  { %p385_p0 = scmp.ne.s32.totalorder %s569_s1, %s384_s18  ;;  %p388_p1 = scmp.lt.u32.totalorder %s384_s18, %s569_s1 }
   0x7   :  { %p390_p2 = pnand %p388_p1, %p385_p0 }
   0x9   :  { %393 = shalt.err (!%p390_p2)
}
   0xa   :  { %s394_s23 = scalar_lea.vmem %s29_s13, 1024  ;;  %p399_p4 = scmp.lt.s32.totalorder %s29_s13, %s29_s13 }
   0xb   :  { %p395_p3 = scmp.ne.s32.totalorder %s29_s13, %s394_s23  ;;  %p400_p5 = scmp.lt.s32.totalorder %s394_s23, %s394_s23 }
   0xd   :  { %p401_p6 = por %p400_p5, %p399_p4 }
   0xf   :  { %p402_p7 = pnand %p401_p6, %p395_p3 }
  0x11   :  { %405 = shalt.err (!%p402_p7)
}
  0x12   :  { %s480_s24 = smov 64   ;;  %s481_s25 = smov 4  }
  0x13   :  { %34 = dma.hbm_to_vmem [thread:$0]  %s569_s1, 1024, %s29_s13, [#allocation7], %s480_s24, %s480_s24, %s481_s25  }
  0x14   :  { %s406_s30 = scalar_lea.hbm %s568_s0, 256 }
  0x15   :  { %p407_p8 = scmp.ne.s32.totalorder %s568_s0, %s406_s30  ;;  %p410_p9 = scmp.lt.u32.totalorder %s406_s30, %s568_s0 }
  0x17   :  { %p412_p10 = pnand %p410_p9, %p407_p8 }
  0x19   :  { %415 = shalt.err (!%p412_p10)
}
  0x1a   :  { %s416_s8 = scalar_lea.vmem %s504_s15, 256  ;;  %p421_p12 = scmp.lt.s32.totalorder %s504_s15, %s504_s15 }
  0x1b   :  { %p417_p11 = scmp.ne.s32.totalorder %s504_s15, %s416_s8  ;;  %p422_p13 = scmp.lt.s32.totalorder %s416_s8, %s416_s8 }
  0x1d   :  { %p423_p0 = por %p422_p13, %p421_p12 }
  0x1f   :  { %p424_p1 = pnand %p423_p0, %p417_p11 }
  0x21   :  { %427 = shalt.err (!%p424_p1)
}
  0x22   :  { %22 = dma.hbm_to_vmem [thread:$0]  %s568_s0, 256, %s504_s15, [#allocation4], %s480_s24, %s480_s24, %s481_s25  }
  0x23   :  { %s482_s10 = smov [#allocation8]   ;;  %s428_s14 = scalar_lea.hbm %s570_s2, 16 }
  0x24   :  { %s41_s11 = sshll.u32 %s482_s10, 4  ;;  %p429_p2 = scmp.ne.s32.totalorder %s570_s2, %s428_s14  ;;  %s42_s11 = int_to_ptr.vmem [resolvable:$true] %s41_s11 }
  0x25   :  { %p432_p3 = scmp.lt.u32.totalorder %s428_s14, %s570_s2 }
  0x27   :  { %p434_p4 = pnand %p432_p3, %p429_p2 }
  0x29   :  { %437 = shalt.err (!%p434_p4)
}
  0x2a   :  { %s438_s20 = scalar_lea.vmem %s42_s11, 16  ;;  %s442_s0 = scalar_lea.vmem %s42_s11, 32 }
  0x2b   :  { %p439_p5 = scmp.ne.s32.totalorder %s42_s11, %s438_s20  ;;  %p443_p6 = scmp.lt.s32.totalorder %s42_s11, %s42_s11 }
  0x2c   :  { %p444_p7 = scmp.lt.s32.totalorder %s442_s0, %s438_s20 }
  0x2e   :  { %p445_p8 = por %p444_p7, %p443_p6 }
  0x30   :  { %p446_p9 = pnand %p445_p8, %p439_p5 }
  0x32   :  { %449 = shalt.err (!%p446_p9)
}
  0x33   :  { %44 = dma.hbm_to_vmem [thread:$0]  %s570_s2, 16, %s42_s11, [#allocation7]  }
  0x34   :  { %472 = dma.done.wait [#allocation4], 256  }
  0x35   :  { %473 = vsyncadd [#allocation4], 4294967040 }
  0x36   :  { %474 = dma.done.wait [#allocation7], 1040  }
  0x37   :  { %475 = vsyncadd [#allocation7], 4294966256  ;;  %v358_v0 = vld [vmem:[#allocation6] sm:$0xff]   ;;  %v359_v1 = vld [vmem:[#allocation6 + $0x8] sm:$0xff]   ;;  %s483_s2 = smov [#allocation9]  }
  0x38   :  { %332 = vmatprep.subr.bf16.mxu0 %v358_v0  ;;  %v360_v2 = vld [vmem:[#allocation6 + $0x10] sm:$0xff]   ;;  %v361_v3 = vld [vmem:[#allocation6 + $0x18] sm:$0xff]   ;;  %v362_v5 = vld [vmem:[#allocation6 + $0x20] sm:$0xff]   ;;  %s275_s22 = sshll.u32 %s483_s2, 4  ;;  %s276_s22 = int_to_ptr.vmem [resolvable:$true] %s275_s22 }
  0x39   :  { %333 = vmatpush3.bf16.msra.mxu0 %v358_v0  ;;  %v366_v4 = vld [vmem:[#allocation3] sm:$0xff]   ;;  %v363_v6 = vld [vmem:[#allocation6 + $0x28] sm:$0xff]   ;;  %v365_v8 = vld [vmem:[#allocation6 + $0x38] sm:$0xff]   ;;  %s450_s23 = scalar_lea.vmem %s276_s22, 256  ;;  %p455_p11 = scmp.lt.s32.totalorder %s276_s22, %s276_s22 }
  0x3a   :  { %334 = vmatprep.subr.bf16.mxu0 %v359_v1  ;;  %348 = vmatprep.mubr.bf16.mxu0 %v366_v4  ;;  %v364_v7 = vld [vmem:[#allocation6 + $0x30] sm:$0xff]   ;;  %v367_v9 = vld [vmem:[#allocation3 + $0x8] sm:$0xff]   ;;  %v298_v10 = vld [vmem:[#allocation8] ss:$0 sm:$0xff]  ;;  %p451_p10 = scmp.ne.s32.totalorder %s276_s22, %s450_s23  ;;  %p456_p12 = scmp.lt.s32.totalorder %s450_s23, %s450_s23 }
  0x3c   :  { %p457_p13 = por %p456_p12, %p455_p11 }
  0x3d   :  { %335 = vmatpush3.bf16.msra.mxu0 %v359_v1 }
  0x3e   :  { %336 = vmatprep.subr.bf16.mxu0 %v360_v2  ;;  %p458_p0 = pnand %p457_p13, %p451_p10 }
  0x41   :  { %337 = vmatpush3.bf16.msra.mxu0 %v360_v2 }
  0x42   :  { %338 = vmatprep.subr.bf16.mxu0 %v361_v3 }
  0x45   :  { %339 = vmatpush3.bf16.msra.mxu0 %v361_v3 }
  0x46   :  { %340 = vmatprep.subr.bf16.mxu0 %v362_v5 }
  0x49   :  { %341 = vmatpush3.bf16.msra.mxu0 %v362_v5 }
  0x4a   :  { %342 = vmatprep.subr.bf16.mxu0 %v363_v6 }
  0x4d   :  { %343 = vmatpush3.bf16.msra.mxu0 %v363_v6 }
  0x4e   :  { %344 = vmatprep.subr.bf16.mxu0 %v364_v7 }
  0x51   :  { %345 = vmatpush3.bf16.msra.mxu0 %v364_v7 }
  0x52   :  { %346 = vmatprep.subr.bf16.mxu0 %v365_v8 }
  0x55   :  { %347 = vmatpush3.bf16.msra.mxu0 %v365_v8 }
  0x58   :  { %349 = vmatmul.mubr.bf16.vlgmr.msra.gmra.mrb[0].mxu0 %v367_v9 }
 0x12b   :  { %v350_v11 = vpop.f32.mrb[0].mxu0 }
 0x12c   :  { %v220_v12 = vadd.f32 %v350_v11, %v298_v10  ;;  %v181_v13 = vpop.f32.mrb[1].mxu0 }
 0x12d   :  { %v218_v14 = vadd.f32 %v298_v10, %v181_v13  ;;  %v351_v15 = vpop.f32.mrb[2].mxu0 }
 0x12e   :  { %v301_v16 = vmul.f32 -1.442695, %v220_v12  ;;  %v221_v17 = vadd.f32 %v351_v15, %v298_v10  ;;  %v184_v18 = vpop.f32.mrb[3].mxu0 }
 0x12f   :  { %v299_v19 = vmul.f32 -1.442695, %v218_v14  ;;  %v219_v20 = vadd.f32 %v298_v10, %v184_v18 }
 0x130   :  { %368 = vpow2.f32 %v301_v16  ;;  %v302_v21 = vmul.f32 -1.442695, %v221_v17 }
 0x131   :  { %370 = vpow2.f32 %v299_v19  ;;  %v300_v22 = vmul.f32 -1.442695, %v219_v20 }
 0x132   :  { %372 = vpow2.f32 %v302_v21 }
 0x133   :  { %374 = vpow2.f32 %v300_v22 }
 0x13a   :  { %v369_v23 = vpop.eup %368 }
 0x13b   :  { %v371_v24 = vpop.eup %370  ;;  %v236_v25 = vadd.f32 1.0, %v369_v23 }
 0x13c   :  { %v373_v26 = vpop.eup %372  ;;  %v234_v27 = vadd.f32 1.0, %v371_v24 }
 0x13d   :  { %v375_v28 = vpop.eup %374  ;;  %376 = vrcp.f32 %v236_v25  ;;  %v237_v29 = vadd.f32 1.0, %v373_v26 }
 0x13e   :  { %378 = vrcp.f32 %v234_v27  ;;  %v235_v30 = vadd.f32 1.0, %v375_v28 }
 0x13f   :  { %380 = vrcp.f32 %v237_v29 }
 0x140   :  { %382 = vrcp.f32 %v235_v30 }
 0x147   :  { %v377_v31 = vpop.eup %376 }
 0x148   :  { %v379_v32 = vpop.eup %378  ;;  %v248_v35 = vmul.f32 %v377_v31, %v220_v12 }
 0x149   :  { %v381_v33 = vpop.eup %380  ;;  %v246_v37 = vmul.f32 %v379_v32, %v218_v14 }
 0x14a   :  { %v383_v34 = vpop.eup %382  ;;  %v249_v36 = vmul.f32 %v381_v33, %v221_v17 }
 0x14b   :  { %v247_v38 = vmul.f32 %v383_v34, %v219_v20 }
 0x14c   :  { %v319_v39 = vpack.c.bf16 %v249_v36, %v248_v35 }
 0x14d   :  { %v314_v40 = vpack.c.bf16 %v247_v38, %v246_v37 }
 0x14e   :  { %321 = vst [vmem:[#allocation9 + $0x8] sm:$0xff] %v319_v39  }
 0x14f   :  { %315 = vst [vmem:[#allocation9] sm:$0xff] %v314_v40  }
 0x150   :  { %461 = shalt.err (!%p458_p0)
}
 0x151   :  { %s462_s28 = scalar_lea.hbm %s571_s3, 256 }
 0x152   :  { %p463_p1 = scmp.ne.s32.totalorder %s571_s3, %s462_s28  ;;  %p466_p2 = scmp.lt.u32.totalorder %s462_s28, %s571_s3 }
 0x154   :  { %p468_p3 = pnand %p466_p2, %p463_p1 }
 0x156   :  { %471 = shalt.err (!%p468_p3)
}
 0x157   :  { %281 = dma.vmem_to_hbm [thread:$0]  %s276_s22, 256, %s571_s3, [#allocation5], %s480_s24, %s480_s24, %s481_s25  }
 0x158   :  { %476 = dma.done.wait [#allocation5], 256  }
 0x159   :  { %477 = vsyncadd [#allocation5], 4294967040 }
 0x15a   :  { %285 = vsyncpa [#allocation4], 1 }
 0x15b   :  { %286 = vsyncpa [#allocation7], 1 }
 0x15c   :  { %287 = vsyncpa [#allocation5], 1 }

// kernel: _lambda_.30
= control target key start
LH: loop header
LB: loop body
LE: loop exit
PB: predicated region body
PF: predicated region fallthrough
CT: control target
= control target key end

     0   :  { %s1576_s0 = inlined_call_operand.hbm [shape: bf16[2,16,128], index: 0, kind: input, shape index: {}]   ;;  %s1577_s1 = inlined_call_operand.hbm [shape: bf16[128,128], index: 1, kind: input, shape index: {}]   ;;  %s1578_s2 = inlined_call_operand.hbm [shape: f32[1,128], index: 2, kind: input, shape index: {}]   ;;  %s1579_s3 = inlined_call_operand.hbm [shape: f32[2,1,128], index: 3, kind: input, shape index: {}]   ;;  %s1580_s4 = inlined_call_operand.hbm [shape: bf16[2,16,128], index: 4, kind: input, shape index: {}]   ;;  %s1581_s5 = inlined_call_operand.hbm [shape: bf16[2,16,128], index: 5, kind: output, shape index: {}]  }
   0x1   :  { %1599 = sst [smem:[#allocation20_spill]] %s1577_s1 }
   0x2   :  { %1600 = sst [smem:[#allocation21_spill]] %s1579_s3 }
   0x3   :  { %10 = vsyncpa [#allocation4], 0 }
   0x4   :  { %12 = vsyncpa [#allocation4 + $0x1], 0 }
   0x5   :  { %13 = vsyncpa [#allocation7], 0 }
   0x6   :  { %14 = vsyncpa [#allocation10], 0 }
   0x7   :  { %16 = vsyncpa [#allocation10 + $0x1], 0 }
   0x8   :  { %17 = vsyncpa [#allocation5], 0 }
   0x9   :  { %19 = vsyncpa [#allocation5 + $0x1], 0  ;;  %s1241_s18 = smov 0   ;;  %s1243_s19 = smov 0  }
   0xa   :  { %s1245_s20 = smov 0   ;;  %s1247_s21 = smov 0  }
   0xb   :  { %s1249_s22 = smov 0   ;;  %s1251_s23 = smov 0  }
   0xc LB: > { %1601 = sst [smem:[#allocation17_spill]] %s1185_s20  ;;  %s1272_s24 = sadd.s32 4294967295, %s1197_s23   ;;  %s1197_s23 = sphi %s1251_s23, %s25_s23   ;;  %s1193_s22 = sphi %s1249_s22, %s1636_s22   ;;  %s1189_s21 = sphi %s1247_s21, %s1635_s21   ;;  %s1185_s20 = sphi %s1245_s20, %s1631_s20   ;;  %s1181_s19 = sphi %s1243_s19, %s1634_s19   ;;  %s1177_s18 = sphi %s1241_s18, %s1633_s18  }
   0xd   : > { %s770_s25 = sadd.s32 4294967294, %s1197_s23   ;;  %p75_p0 = scmp.ne.s32.totalorder %s1181_s19, %s1177_s18 }
   0xe   : > { %p1582_p1 = scmp.eq.s32.totalorder %s1272_s24, 0  ;;  %p221_p3 = scmp.eq.s32.totalorder %s770_s25, 1 }
   0xf   : > { %p771_p5 = scmp.ge.s32.totalorder %s1197_s23, 1  ;;  %p228_p7 = scmp.lt.s32.totalorder %s1197_s23, 3 }
  0x10   : > { %p1281_p4 = por %p1582_p1, %p75_p0  ;;  %p1286_p6 = por %p221_p3, %p75_p0 }
  0x11   : > { %p1291_p8 = pnand %p771_p5, %p228_p7  ;;  %s1199_s29 = smov [#allocation6]  }
  0x12   : > { %s1602_s26 = scalar_select %p1281_p4, 1, 0 }
  0x13   : > { %s1603_s27 = scalar_select %p1286_p6, 1, 0 }
  0x14   : > { %s1604_s28 = scalar_select %p1291_p8, 1, 0 }
  0x15   : > { %s244_s30 = sshll.u32 %s1199_s29, 4  ;;  %p866_p9 = pneg %p1291_p8  ;;  %s245_s30 = int_to_ptr.vmem [resolvable:$true] %s244_s30 }
  0x16   : > { %s51_s7 = sadd.s32 1, %s1193_s22  ;;  %s1606_s1 = sld [smem:[#allocation20_spill]] }
  0x17   : > { %p1300_p11 = pnand %p866_p9, %p1582_p1 }
  0x19   : > { %s1605_s6 = scalar_select %p1300_p11, 1, 0 }
  0x1a   : > { %p1590_p13 = pneg %p1300_p11 }
  0x1c   : > { %s961_s10 = scalar_lea.hbm %s1606_s1, 1024 }
  0x1d   : > { %p962_p12 = scmp.ne.s32.totalorder %s1606_s1, %s961_s10  ;;  %p968_p5 = scmp.lt.u32.totalorder %s961_s10, %s1606_s1 }
  0x1f   : > { %p964_p0 = pnand %p1590_p13, %p962_p12 }
  0x21   : > { %p965_p3 = pneg %p964_p0 }
  0x23   : > { %p970_p7 = pnand %p968_p5, %p965_p3 }
  0x25   : > { %973 = shalt.err (!%p970_p7)
}
  0x26   : > { %s974_s15 = scalar_lea.vmem %s245_s30, 1024  ;;  %p982_p2 = scmp.lt.s32.totalorder %s245_s30, %s245_s30 }
  0x27   : > { %p975_p9 = scmp.ne.s32.totalorder %s245_s30, %s974_s15  ;;  %p983_p6 = scmp.lt.s32.totalorder %s974_s15, %s974_s15 }
  0x29   : > { %p977_p10 = pnand %p975_p9, %p1590_p13  ;;  %p984_p4 = por %p983_p6, %p982_p2 }
  0x2b   : > { %p978_p1 = pneg %p977_p10 }
  0x2d   : > { %p985_p8 = pnand %p984_p4, %p978_p1 }
  0x2f   : > { %988 = shalt.err (!%p985_p8)
}
  0x30   : > { %s1585_s16 = smov 64   ;;  %s1587_s17 = smov 4  }
  0x31   : > { %869 = dma.hbm_to_vmem [thread:$0]  (!%p1300_p11), %s1606_s1, 1024, %s245_s30, [#allocation7], %s1585_s16, %s1585_s16, %s1587_s17  }
  0x32   : > { %p53_p1 = scmp.ge.s32.totalorder %s51_s7, 2  ;;  %s62_s8 = sadd.s32 1, %s1185_s20 }
  0x33   : > { %p69_p2 = scmp.ne.s32.totalorder %s1185_s20, %s1181_s19  ;;  %p70_p4 = scmp.eq.s32.totalorder %s1197_s23, 0 }
  0x34   : > { %s1638_s7 = smov (%p53_p1, %s51_s7), 0  ;;  %p1608_p8 = scmp.eq.s32.totalorder %s1272_s24, 1 }
  0x35   : > { %1607 = sst [smem:[#allocation18_spill]] %s1638_s7  ;;  %p71_p6 = por %p70_p4, %p69_p2 }
  0x36   : > { %p1338_p10 = por %p1608_p8, %p69_p2  ;;  %s55_s10 = ssub.s32 %s1193_s22, %s1638_s7 }
  0x37   : > { %p889_p12 = scmp.lt.s32.totalorder %s1197_s23, 2  ;;  %p60_p0 = scmp.eq.s32.totalorder %s55_s10, 0 }
  0x38   : > { %s1609_s9 = scalar_select %p1338_p10, 1, 0 }
  0x39   : > { %s1346_s11 = sand.u32 1, %s1185_s20   ;;  %p1349_p3 = pnand %p889_p12, %p71_p6 }
  0x3a   : > { %s1354_s13 = scalar_select %p60_p0, %s1185_s20, %s62_s8  }
  0x3b   : > { %s1610_s12 = scalar_select %p1349_p3, 1, 0 }
  0x3c   : > { %1611 = sst [smem:[#allocation19_spill]] %s1354_s13  ;;  %s295_s14 = sand.u32 1, %s1197_s23  }
  0x3d   : > { %s778_s15 = sshll.u32 %s1193_s22, 4  ;;  %s298_s25 = scalar_lea.vmem [#allocation9], %s1346_s11 }
  0x3e   : > { %s306_s29 = sshll.u32 %s298_s25, 4  ;;  %s1612_s3 = sld [smem:[#allocation21_spill]]  ;;  %s1364_s29 = int_to_ptr.vmem [resolvable:$true] %s306_s29 }
  0x3f   : > { %s1366_s30 = scalar_lea.sflag [#allocation10], %s295_s14  ;;  %p1372_p7 = pneg %p1349_p3 }
  0x41   : > { %s1613_s8 = scalar_select %p1372_p7, 1, 0 }
  0x44   : > { %s1362_s10 = scalar_lea.hbm %s1612_s3, %s778_s15  ;;  %s994_s15 = scalar_lea.hbm %s1612_s3, 32 }
  0x45   : > { %s989_s1 = scalar_lea.hbm %s1362_s10, 16  ;;  %p995_p2 = scmp.lt.u32.totalorder %s1362_s10, %s1612_s3 }
  0x46   : > { %p990_p5 = scmp.ne.s32.totalorder %s1362_s10, %s989_s1  ;;  %p996_p4 = scmp.lt.u32.totalorder %s994_s15, %s989_s1 }
  0x47   : > { %p998_p8 = scmp.lt.u32.totalorder %s989_s1, %s1362_s10 }
  0x48   : > { %p992_p9 = pnand %p1372_p7, %p990_p5  ;;  %p997_p6 = por %p996_p4, %p995_p2 }
  0x4a   : > { %p993_p1 = pneg %p992_p9  ;;  %p999_p12 = por %p998_p8, %p997_p6 }
  0x4c   : > { %p1000_p0 = pnand %p999_p12, %p993_p1 }
  0x4e   : > { %1003 = shalt.err (!%p1000_p0)
}
  0x4f   : > { %s1004_s14 = scalar_lea.vmem %s1364_s29, 16  ;;  %s1202_s16 = smov [#allocation9]  }
  0x50   : > { %p1005_p5 = scmp.ne.s32.totalorder %s1364_s29, %s1004_s14  ;;  %s1009_s17 = sshll.u32 %s1202_s16, 4  ;;  %s1010_s17 = int_to_ptr.vmem [resolvable:$false] %s1009_s17 }
  0x51   : > { %s1011_s7 = scalar_lea.vmem %s1010_s17, 32  ;;  %p1012_p10 = scmp.lt.s32.totalorder %s1364_s29, %s1010_s17 }
  0x52   : > { %p1007_p9 = pnand %p1005_p5, %p1372_p7  ;;  %p1013_p11 = scmp.lt.s32.totalorder %s1011_s7, %s1004_s14 }
  0x54   : > { %p1008_p13 = pneg %p1007_p9  ;;  %p1014_p2 = por %p1013_p11, %p1012_p10 }
  0x56   : > { %p1015_p4 = pnand %p1014_p2, %p1008_p13 }
  0x58   : > { %1018 = shalt.err (!%p1015_p4)
}
  0x59   : > { %879 = dma.hbm_to_vmem [thread:$0]  (!%p1349_p3), %s1362_s10, 16, %s1364_s29, %s1366_s30  }
  0x5a   : > { %s1614_s1 = sshll.u32 %s1346_s11, 3  ;;  %s1203_s3 = smov [#allocation8]  }
  0x5b   : > { %s317_s15 = scalar_lea.vmem [#allocation11], %s1614_s1  ;;  %s260_s16 = sshll.u32 %s1203_s3, 4  ;;  %s261_s16 = int_to_ptr.vmem [resolvable:$true] %s260_s16 }
  0x5c   : > { %s327_s25 = sshll.u32 %s317_s15, 4  ;;  %s1019_s7 = scalar_lea.hbm %s1578_s2, 16  ;;  %s1398_s25 = int_to_ptr.vmem [resolvable:$true] %s327_s25 }
  0x5d   : > { %p1020_p11 = scmp.ne.s32.totalorder %s1578_s2, %s1019_s7  ;;  %p1615_p13 = scmp.ne.s32.totalorder %s1605_s6, 0 }
  0x5e   : > { %p1026_p8 = scmp.lt.u32.totalorder %s1019_s7, %s1578_s2 }
  0x5f   : > { %p1616_p10 = pneg %p1615_p13 }
  0x61   : > { %p1022_p1 = pnand %p1020_p11, %p1616_p10 }
  0x63   : > { %p1023_p6 = pneg %p1022_p1 }
  0x65   : > { %p1028_p12 = pnand %p1026_p8, %p1023_p6 }
  0x67   : > { %1031 = shalt.err (!%p1028_p12)
}
  0x68   : > { %s1032_s3 = scalar_lea.vmem %s261_s16, 16  ;;  %p1617_p5 = pmov %p1616_p10 }
  0x69   : > { %p1033_p0 = scmp.ne.s32.totalorder %s261_s16, %s1032_s3  ;;  %s1039_s1 = scalar_lea.vmem %s261_s16, 32 }
  0x6a   : > { %p1040_p4 = scmp.lt.s32.totalorder %s261_s16, %s261_s16  ;;  %p1041_p3 = scmp.lt.s32.totalorder %s1039_s1, %s1032_s3 }
  0x6b   : > { %p1035_p9 = pnand %p1033_p0, %p1617_p5 }
  0x6c   : > { %p1042_p7 = por %p1041_p3, %p1040_p4 }
  0x6d   : > { %p1036_p2 = pneg %p1035_p9 }
  0x6f   : > { %p1043_p10 = pnand %p1042_p7, %p1036_p2 }
  0x71   : > { %1046 = shalt.err (!%p1043_p10)
}
  0x72   : > { %872 = dma.hbm_to_vmem [thread:$0]  (!%p1615_p13), %s1578_s2, 16, %s261_s16, [#allocation7]  }
  0x73   : > { %s807_s15 = sshll.u32 %s1193_s22, 7  ;;  %s1618_s14 = sshll.u32 %s1346_s11, 3 }
  0x74   : > { %s275_s17 = scalar_lea.vmem [#allocation3], %s1618_s14  ;;  %s1428_s3 = scalar_lea.hbm %s1576_s0, %s807_s15 }
  0x75   : > { %s285_s7 = sshll.u32 %s275_s17, 4  ;;  %s272_s6 = scalar_lea.sflag [#allocation4], %s1346_s11  ;;  %s1430_s7 = int_to_ptr.vmem [resolvable:$true] %s285_s7 }
  0x76   : > { %s1047_s1 = scalar_lea.hbm %s1428_s3, 128  ;;  %p1619_p7 = scmp.ne.s32.totalorder %s1613_s8, 0 }
  0x77   : > { %p1048_p3 = scmp.ne.s32.totalorder %s1428_s3, %s1047_s1  ;;  %s1052_s13 = scalar_lea.hbm %s1576_s0, 256 }
  0x78   : > { %p1053_p1 = scmp.lt.u32.totalorder %s1428_s3, %s1576_s0  ;;  %p1054_p6 = scmp.lt.u32.totalorder %s1052_s13, %s1047_s1 }
  0x79   : > { %p1050_p11 = pnand %p1048_p3, %p1619_p7  ;;  %p1056_p12 = scmp.lt.u32.totalorder %s1047_s1, %s1428_s3 }
  0x7a   : > { %p1055_p8 = por %p1054_p6, %p1053_p1 }
  0x7b   : > { %p1051_p13 = pneg %p1050_p11 }
  0x7c   : > { %p1057_p0 = por %p1056_p12, %p1055_p8 }
  0x7e   : > { %p1058_p5 = pnand %p1057_p0, %p1051_p13 }
  0x80   : > { %1061 = shalt.err (!%p1058_p5)
}
  0x81   : > { %s1062_s29 = scalar_lea.vmem %s1430_s7, 128  ;;  %s1204_s10 = smov [#allocation3]  }
  0x82   : > { %p1063_p9 = scmp.ne.s32.totalorder %s1430_s7, %s1062_s29  ;;  %s1067_s16 = sshll.u32 %s1204_s10, 4  ;;  %s1068_s16 = int_to_ptr.vmem [resolvable:$false] %s1067_s16 }
  0x83   : > { %s1069_s20 = scalar_lea.vmem %s1068_s16, 256  ;;  %p1070_p10 = scmp.lt.s32.totalorder %s1430_s7, %s1068_s16 }
  0x84   : > { %p1065_p2 = pnand %p1063_p9, %p1619_p7  ;;  %p1071_p3 = scmp.lt.s32.totalorder %s1069_s20, %s1062_s29 }
  0x86   : > { %p1066_p4 = pneg %p1065_p2  ;;  %p1072_p11 = por %p1071_p3, %p1070_p10 }
  0x88   : > { %p1073_p1 = pnand %p1072_p11, %p1066_p4 }
  0x8a   : > { %1076 = shalt.err (!%p1073_p1)
}
  0x8b   : > { %p1620_p13 = scmp.ne.s32.totalorder %s1610_s12, 0  ;;  %s1621_s1 = smov 4  }
  0x8c   : > { %s1622_s13 = smov 64   ;;  %s1464_s29 = scalar_lea.hbm %s1580_s4, %s807_s15 }
  0x8d   : > { %876 = dma.hbm_to_vmem [thread:$0]  (!%p1620_p13), %s1428_s3, 128, %s1430_s7, %s272_s6, %s1622_s13, %s1622_s13, %s1621_s1  }
  0x8e   : > { %s1077_s10 = scalar_lea.hbm %s1464_s29, 128  ;;  %s1082_s20 = scalar_lea.hbm %s1580_s4, 256 }
  0x8f   : > { %p1078_p6 = scmp.ne.s32.totalorder %s1464_s29, %s1077_s10  ;;  %p1083_p0 = scmp.lt.u32.totalorder %s1464_s29, %s1580_s4 }
  0x90   : > { %p1084_p5 = scmp.lt.u32.totalorder %s1082_s20, %s1077_s10  ;;  %p1086_p2 = scmp.lt.u32.totalorder %s1077_s10, %s1464_s29 }
  0x91   : > { %p1080_p8 = pnand %p1078_p6, %p1619_p7 }
  0x92   : > { %p1085_p9 = por %p1084_p5, %p1083_p0 }
  0x93   : > { %p1081_p12 = pneg %p1080_p8 }
  0x94   : > { %p1087_p4 = por %p1086_p2, %p1085_p9 }
  0x96   : > { %p1088_p10 = pnand %p1087_p4, %p1081_p12 }
  0x98   : > { %1091 = shalt.err (!%p1088_p10)
}
  0x99   : > { %s1092_s15 = scalar_lea.vmem %s1398_s25, 128  ;;  %s1205_s6 = smov [#allocation11]  }
  0x9a   : > { %p1093_p3 = scmp.ne.s32.totalorder %s1398_s25, %s1092_s15  ;;  %s1097_s14 = sshll.u32 %s1205_s6, 4  ;;  %s1098_s14 = int_to_ptr.vmem [resolvable:$false] %s1097_s14 }
  0x9b   : > { %s1099_s17 = scalar_lea.vmem %s1098_s14, 256  ;;  %p1100_p6 = scmp.lt.s32.totalorder %s1398_s25, %s1098_s14 }
  0x9c   : > { %p1095_p11 = pnand %p1093_p3, %p1619_p7  ;;  %p1101_p8 = scmp.lt.s32.totalorder %s1099_s17, %s1092_s15 }
  0x9e   : > { %p1096_p1 = pneg %p1095_p11  ;;  %p1102_p0 = por %p1101_p8, %p1100_p6 }
  0xa0   : > { %p1103_p5 = pnand %p1102_p0, %p1096_p1 }
  0xa2   : > { %1106 = shalt.err (!%p1103_p5)
}
  0xa3   : > { %882 = dma.hbm_to_vmem [thread:$0]  (!%p1620_p13), %s1464_s29, 128, %s1398_s25, %s1366_s30, %s1622_s13, %s1622_s13, %s1621_s1  }
  0xa4   : > { %p1623_p7 = scmp.ne.s32.totalorder %s1604_s28, 0 }
  0xa5   : > { %s1494_s8 = sand.u32 (!%p1623_p7), 1, %s1181_s19   ;;  %p1624_p12 = scmp.ne.s32.totalorder (!%p1623_p7), %s1602_s26, 0 }
  0xa6   : > { %339 = sbr.rel (%p1623_p7) target bundleno = 456 (0x1c8), region = 40  ;;  %s1497_s10 = sshll.u32 (!%p1623_p7), %s1494_s8, 3 }
  0xa7   : > { %s342_s12 = scalar_lea.sflag (!%p1623_p7), [#allocation4], %s1494_s8  ;;  %s345_s11 = scalar_lea.vmem (!%p1623_p7), [#allocation3], %s1497_s10 }
  0xad   : > { %1160 = dma.done.wait (%p1624_p12), %s342_s12, 128  }
  0xae   : > { %1162 = vsyncadd (%p1624_p12), %s342_s12, 4294967168  ;;  %p1625_p13 = scmp.eq.s32.totalorder %s1272_s24, 0 }
  0xb0   : > { %1164 = dma.done.wait (%p1625_p13), [#allocation7], 1040   ;;  %p1626_p9 = pmov %p1625_p13 }
  0xb1   : > { %s358_s28 = sand.u32 1, %s1272_s24   ;;  %s361_s25 = scalar_lea.vmem [#allocation9], %s1494_s8 }
  0xb2   : > { %1166 = vsyncadd (%p1626_p9), [#allocation7], 4294966256  ;;  %s359_s30 = scalar_lea.sflag [#allocation10], %s358_s28 }
  0xb3   : > { %1168 = dma.done.wait (%p1624_p12), %s359_s30, 144  }
  0xb4   : > { %1170 = vsyncadd (%p1624_p12), %s359_s30, 4294967152  ;;  %v1206_v0 = vmov 0.0   ;;  %vm1207_vm0 = vmmov 0   ;;  %v949_v1 = vld [vmem:[#allocation6] sm:$0xff]   ;;  %v950_v2 = vld [vmem:[#allocation6 + $0x8] sm:$0xff]   ;;  %v430_v13 = vlaneseq  ;;  %s370_s24 = scalar_lea.vmem [#allocation11], %s1497_s10 }
  0xb5   : > { %830 = vmatprep.subr.bf16.mxu0 %v1206_v0  ;;  %846 = vmatprep.mubr.msk.bf16.mxu0 %vm1207_vm0, %v1206_v0  ;;  %v951_v3 = vld [vmem:[#allocation6 + $0x10] sm:$0xff]   ;;  %v952_v6 = vld [vmem:[#allocation6 + $0x18] sm:$0xff]   ;;  %v953_v7 = vld [vmem:[#allocation6 + $0x20] sm:$0xff]   ;;  %s811_s26 = sshll.u32 %s1189_s21, 7  ;;  %s405_s1 = scalar_lea.vmem [#allocation12], %s1497_s10 }
  0xb6   : > { %831 = vmatpush3.bf16.msra.mxu0 %v949_v1  ;;  %v419_v4 = vld [vmem:[%s361_s25] sm:$0x1]  ;;  %v954_v8 = vld [vmem:[#allocation6 + $0x28] sm:$0xff]   ;;  %v956_v12 = vld [vmem:[#allocation6 + $0x38] sm:$0xff]   ;;  %v431_v14 = vshrl.u32 %v430_v13, 7  ;;  %s604_s13 = sshll.u32 %s405_s1, 4  ;;  %s1525_s20 = scalar_lea.hbm %s1581_s5, %s811_s26  ;;  %s1527_s13 = int_to_ptr.vmem [resolvable:$true] %s604_s13 }
  0xb7   : > { %832 = vmatprep.subr.bf16.mxu0 %v1206_v0  ;;  %v788_v5 = vmul.f32 -1.442695, %v419_v4  ;;  %v955_v10 = vld [vmem:[#allocation6 + $0x30] sm:$0xff]   ;;  %v799_v26 = vld [vmem:[#allocation8] ss:$0 sm:$0xff]  ;;  %s588_s7 = scalar_lea.sflag [#allocation5], %s1494_s8 }
  0xb8   : > { %v432_v17 = vsub.s32 0, %v431_v14  ;;  %v417_v20 = vld [vmem:[%s345_s11] sm:$0xf]  ;;  %v418_v21 = vld [vmem:[%s345_s11 + $0x4] sm:$0xf]  ;;  %v813_v27 = vld [vmem:[%s370_s24] sm:$0xff]  }
  0xb9   : > { %957 = vpow2.f32 %v788_v5  ;;  %v814_v30 = vunpack.c.l.bf16 %v813_v27  ;;  %v815_v32 = vunpack.c.h.bf16 %v813_v27  ;;  %s1107_s3 = scalar_lea.vmem %s1527_s13, 128  ;;  %p1627_p4 = scmp.ne.s32.totalorder %s1609_s9, 0 }
  0xba   : > { %833 = vmatpush3.bf16.msra.mxu0 %v950_v2  ;;  %p1108_p2 = scmp.ne.s32.totalorder %s1527_s13, %s1107_s3  ;;  %s1208_s21 = smov [#allocation12]  }
  0xbb   : > { %834 = vmatprep.subr.bf16.mxu0 %v1206_v0  ;;  %s1111_s15 = sshll.u32 %s1208_s21, 4  ;;  %s1112_s15 = int_to_ptr.vmem [resolvable:$false] %s1111_s15 }
  0xbc   : > { %p1109_p10 = pnand %p1108_p2, %p1627_p4  ;;  %s1113_s6 = scalar_lea.vmem %s1112_s15, 256 }
  0xbd   : > { %p1114_p11 = scmp.lt.s32.totalorder %s1527_s13, %s1112_s15  ;;  %p1115_p1 = scmp.lt.s32.totalorder %s1113_s6, %s1107_s3 }
  0xbe   : > { %835 = vmatpush3.bf16.msra.mxu0 %v951_v3  ;;  %p1110_p3 = pneg %p1109_p10 }
  0xbf   : > { %836 = vmatprep.subr.bf16.mxu0 %v1206_v0  ;;  %p1116_p6 = por %p1115_p1, %p1114_p11 }
  0xc1   : > { %p1117_p8 = pnand %p1116_p6, %p1110_p3 }
  0xc2   : > { %837 = vmatpush3.bf16.msra.mxu0 %v952_v6 }
  0xc3   : > { %838 = vmatprep.subr.bf16.mxu0 %v1206_v0  ;;  %v958_v9 = vpop.eup %957 }
  0xc4   : > { %v423_v11 = vadd.f32 1.0, %v958_v9 }
  0xc6   : > { %839 = vmatpush3.bf16.msra.mxu0 %v953_v7  ;;  %959 = vrcp.f32 %v423_v11 }
  0xc7   : > { %840 = vmatprep.subr.bf16.mxu0 %v1206_v0 }
  0xca   : > { %841 = vmatpush3.bf16.msra.mxu0 %v954_v8 }
  0xcb   : > { %842 = vmatprep.subr.bf16.mxu0 %v1206_v0 }
  0xce   : > { %843 = vmatpush3.bf16.msra.mxu0 %v955_v10 }
  0xcf   : > { %844 = vmatprep.subr.bf16.mxu0 %v1206_v0 }
  0xd0   : > { %v960_v15 = vpop.eup %959 }
  0xd1   : > { %v426_v16 = vpack.c.bf16 %v960_v15, %v960_v15 }
  0xd2   : > { %845 = vmatpush3.bf16.msra.mxu0 %v956_v12 }
  0xd3   : > { %v428_v18 = vpack.i.b16 %v426_v16, %v426_v16 }
  0xd5   : > { %v433_v19 = vrot.slane %v428_v18, %v432_v17 }
  0xd7   : > { %v789_v22 = vcombine.low %v433_v19, %v433_v19 }
  0xd9   : > { %v438_v23 = vmul.bf16 %v789_v22, %v417_v20  ;;  %v439_v24 = vmul.bf16 %v789_v22, %v418_v21 }
  0xdb   : > { %v790_v25 = vcombine.low %v438_v23, %v439_v24 }
  0xdd   : > { %847 = vmatmul.mubr.bf16.vlgmr.msra.gmra.mrb[0].mxu0 %v790_v25 }
 0x1b0   : > { %v546_v28 = vpop.f32.mrb[0].mxu0 }
 0x1b1   : > { %v569_v29 = vadd.f32 %v799_v26, %v546_v28  ;;  %v848_v31 = vpop.f32.mrb[1].mxu0 }
 0x1b2   : > { %v549_v33 = vpop.f32.mrb[2].mxu0 }
 0x1b3   : > { %v570_v34 = vadd.f32 %v799_v26, %v549_v33  ;;  %v849_v35 = vpop.f32.mrb[3].mxu0  ;;  %v575_v36 = vadd.f32 %v814_v30, %v569_v29 }
 0x1b5   : > { %v576_v37 = vadd.f32 %v815_v32, %v570_v34 }
 0x1b7   : > { %v819_v38 = vpack.c.bf16 %v576_v37, %v575_v36 }
 0x1b9   : > { %820 = vst [vmem:[%s405_s1] sm:$0xff] %v819_v38  }
 0x1ba   : > { %1120 = shalt.err (!%p1117_p8)
}
 0x1bb   : > { %s1121_s14 = scalar_lea.hbm %s1525_s20, 128  ;;  %s1125_s12 = scalar_lea.hbm %s1581_s5, 256 }
 0x1bc   : > { %p1122_p0 = scmp.ne.s32.totalorder %s1525_s20, %s1121_s14  ;;  %p1126_p12 = scmp.lt.u32.totalorder %s1525_s20, %s1581_s5 }
 0x1bd   : > { %p1127_p13 = scmp.lt.u32.totalorder %s1125_s12, %s1121_s14  ;;  %p1129_p2 = scmp.lt.u32.totalorder %s1121_s14, %s1525_s20 }
 0x1be   : > { %p1123_p5 = pnand %p1122_p0, %p1627_p4 }
 0x1bf   : > { %p1128_p9 = por %p1127_p13, %p1126_p12 }
 0x1c0   : > { %p1124_p7 = pneg %p1123_p5 }
 0x1c1   : > { %p1130_p10 = por %p1129_p2, %p1128_p9 }
 0x1c3   : > { %p1131_p3 = pnand %p1130_p10, %p1124_p7 }
 0x1c5   : > { %1134 = shalt.err (!%p1131_p3)
}
 0x1c6   : > { %s1209_s30 = smov 64   ;;  %s1210_s25 = smov 4  }
 0x1c7   : > { %864 = dma.vmem_to_hbm [thread:$0]  (%p1627_p4), %s1527_s13, 128, %s1525_s20, %s588_s7, %s1209_s30, %s1209_s30, %s1210_s25  }
 0x1c8 PF: > { %s619_s24 = sand.u32 1, %s1177_s18   ;;  %p1628_p11 = scmp.ne.s32.totalorder %s1603_s27, 0 }
 0x1c9   : > { %p1629_p1 = scmp.ge.s32.totalorder %s1197_s23, 2  ;;  %s620_s26 = scalar_lea.sflag [#allocation5], %s619_s24 }
 0x1cb   : > { %p884_p6 = pnand %p1629_p1, %p1628_p11 }
 0x1cd   : > { %1172 = dma.done.wait (!%p884_p6), %s620_s26, 128  }
 0x1ce   : > { %1174 = vsyncadd (!%p884_p6), %s620_s26, 4294967168  ;;  %s25_s23 = sadd.s32 1, %s1197_s23   ;;  %s1630_s1 = sld [smem:[#allocation17_spill]] }
 0x1cf   : > { %p22_p8 = scmp.ge.s32.totalorder %s25_s23, 4   ;;  %s1631_s20 = sld [smem:[#allocation19_spill]] }
 0x1d0   : > { %s1632_s9 = sld [smem:[#allocation18_spill]]  ;;  %s1633_s18 = smov %s1181_s19 }
 0x1d1   : > { %s1635_s21 = smov %s1193_s22  ;;  %24 = sbr.rel (!%p22_p8) target bundleno = 12 (0xc), region = 127 }
 0x1d4   : > { %s1634_s19 = smov %s1630_s1 }
 0x1d6   : > { %s1636_s22 = smov %s1632_s9 }
 0x1d8   :  { %625 = vsyncpa [#allocation4], 1 }
 0x1d9   :  { %627 = vsyncpa [#allocation4 + $0x1], 1 }
 0x1da   :  { %628 = vsyncpa [#allocation7], 1 }
 0x1db   :  { %629 = vsyncpa [#allocation10], 1 }
 0x1dc   :  { %631 = vsyncpa [#allocation10 + $0x1], 1 }
 0x1dd   :  { %632 = vsyncpa [#allocation5], 1 }
 0x1de   :  { %634 = vsyncpa [#allocation5 + $0x1], 1 }

// kernel: _lambda_.24
= control target key start
LH: loop header
LB: loop body
LE: loop exit
PB: predicated region body
PF: predicated region fallthrough
CT: control target
= control target key end

     0   :  { %10 = vsyncpa [#allocation3], 0  ;;  %s1459_s0 = inlined_call_operand.hbm [shape: bf16[2,5,2,5,256], index: 0, kind: input, shape index: {}]   ;;  %s1460_s1 = inlined_call_operand.hbm [shape: bf16[9,128], index: 1, kind: input, shape index: {}]   ;;  %s1461_s2 = inlined_call_operand.hbm [shape: f32[1,128], index: 2, kind: input, shape index: {}]   ;;  %s1462_s3 = inlined_call_operand.hbm [shape: bf16[2,4,4,128], index: 3, kind: output, shape index: {0}]   ;;  %s1463_s4 = inlined_call_operand.hbm [shape: f32[2,1,128], index: 4, kind: output, shape index: {1}]  }
   0x1   :  { %12 = vsyncpa [#allocation3 + $0x1], 0 }
   0x2   :  { %13 = vsyncpa [#allocation6], 0 }
   0x3   :  { %14 = vsyncpa [#allocation4], 0 }
   0x4   :  { %16 = vsyncpa [#allocation4 + $0x1], 0 }
   0x5   :  { %17 = vsyncpa [#allocation10], 0 }
   0x6   :  { %19 = vsyncpa [#allocation10 + $0x1], 0  ;;  %s1086_s15 = smov 0   ;;  %s1088_s16 = smov 0  }
   0x7   :  { %s1090_s17 = smov 0   ;;  %s1092_s18 = smov 0  }
   0x8 LB: > { %s1107_s19 = sadd.s32 4294967295, %s1048_s18   ;;  %s717_s20 = sadd.s32 4294967294, %s1048_s18   ;;  %s1048_s18 = sphi %s1092_s18, %s1483_s18   ;;  %s1044_s17 = sphi %s1090_s17, %s1482_s17   ;;  %s1040_s16 = sphi %s1088_s16, %s1481_s16   ;;  %s1036_s15 = sphi %s1086_s15, %s1480_s15  }
   0x9   : > { %p45_p0 = scmp.ne.s32.totalorder %s1040_s16, %s1036_s15  ;;  %p1464_p1 = scmp.eq.s32.totalorder %s1107_s19, 0 }
   0xa   : > { %p117_p3 = scmp.eq.s32.totalorder %s717_s20, 1  ;;  %p718_p5 = scmp.ge.s32.totalorder %s1048_s18, 1 }
   0xb   : > { %p1116_p4 = por %p1464_p1, %p45_p0  ;;  %p150_p7 = scmp.lt.s32.totalorder %s1048_s18, 3 }
   0xc   : > { %p1121_p6 = por %p117_p3, %p45_p0  ;;  %s1050_s24 = smov [#allocation5]  }
   0xd   : > { %s1467_s21 = scalar_select %p1116_p4, 1, 0 }
   0xe   : > { %s1468_s22 = scalar_select %p1121_p6, 1, 0 }
   0xf   : > { %p1126_p8 = pnand %p718_p5, %p150_p7  ;;  %s162_s25 = sshll.u32 %s1050_s24, 4  ;;  %s1130_s25 = int_to_ptr.vmem [resolvable:$true] %s162_s25 }
  0x10   : > { %s1051_s27 = smov [#allocation7]   ;;  %s860_s5 = scalar_lea.hbm %s1460_s1, 128 }
  0x11   : > { %p780_p9 = pneg %p1126_p8  ;;  %s176_s28 = sshll.u32 %s1051_s27, 4  ;;  %s1141_s28 = int_to_ptr.vmem [resolvable:$true] %s176_s28 }
  0x12   : > { %p861_p12 = scmp.ne.s32.totalorder %s1460_s1, %s860_s5  ;;  %p867_p5 = scmp.lt.u32.totalorder %s860_s5, %s1460_s1 }
  0x13   : > { %p1137_p11 = pnand %p780_p9, %p1464_p1 }
  0x15   : > { %p862_p13 = pneg %p1137_p11 }
  0x17   : > { %p863_p0 = pnand %p862_p13, %p861_p12 }
  0x19   : > { %p864_p3 = pneg %p863_p0 }
  0x1b   : > { %p869_p7 = pnand %p867_p5, %p864_p3 }
  0x1d   : > { %872 = shalt.err (!%p869_p7)
}
  0x1e   : > { %s873_s10 = scalar_lea.vmem %s1130_s25, 128  ;;  %p881_p2 = scmp.lt.s32.totalorder %s1130_s25, %s1130_s25 }
  0x1f   : > { %p874_p9 = scmp.ne.s32.totalorder %s1130_s25, %s873_s10  ;;  %p882_p12 = scmp.lt.s32.totalorder %s873_s10, %s873_s10 }
  0x21   : > { %p876_p10 = pnand %p874_p9, %p862_p13  ;;  %p883_p0 = por %p882_p12, %p881_p2 }
  0x23   : > { %p877_p1 = pneg %p876_p10 }
  0x25   : > { %p884_p6 = pnand %p883_p0, %p877_p1 }
  0x27   : > { %887 = shalt.err (!%p884_p6)
}
  0x28   : > { %s1052_s11 = smov 64   ;;  %s1053_s12 = smov 4  }
  0x29   : > { %783 = dma.hbm_to_vmem [thread:$0]  (!%p1137_p11), %s1460_s1, 128, %s1130_s25, [#allocation6], %s1052_s11, %s1052_s11, %s1053_s12  }
  0x2a   : > { %s888_s27 = scalar_lea.hbm %s1461_s2, 16 }
  0x2b   : > { %p889_p2 = scmp.ne.s32.totalorder %s1461_s2, %s888_s27  ;;  %p895_p10 = scmp.lt.u32.totalorder %s888_s27, %s1461_s2 }
  0x2d   : > { %p891_p1 = pnand %p889_p2, %p862_p13 }
  0x2f   : > { %p892_p6 = pneg %p891_p1 }
  0x31   : > { %p897_p3 = pnand %p895_p10, %p892_p6 }
  0x33   : > { %900 = shalt.err (!%p897_p3)
}
  0x34   : > { %s901_s25 = scalar_lea.vmem %s1141_s28, 16  ;;  %s908_s7 = scalar_lea.vmem %s1141_s28, 32 }
  0x35   : > { %p902_p5 = scmp.ne.s32.totalorder %s1141_s28, %s901_s25  ;;  %p909_p12 = scmp.lt.s32.totalorder %s1141_s28, %s1141_s28 }
  0x36   : > { %p910_p0 = scmp.lt.s32.totalorder %s908_s7, %s901_s25 }
  0x37   : > { %p904_p7 = pnand %p902_p5, %p862_p13 }
  0x38   : > { %p911_p2 = por %p910_p0, %p909_p12 }
  0x39   : > { %p905_p9 = pneg %p904_p7 }
  0x3b   : > { %p912_p1 = pnand %p911_p2, %p905_p9 }
  0x3d   : > { %915 = shalt.err (!%p912_p1)
}
  0x3e   : > { %786 = dma.hbm_to_vmem [thread:$0]  (!%p1137_p11), %s1461_s2, 16, %s1141_s28, [#allocation6]  }
  0x3f   : > { %s1197_s10 = sadd.s32 1, %s1048_s18   ;;  %s32_s26 = sadd.s32 1, %s1044_s17 }
  0x40   : > { %s29_s11 = ssub.s32 %s1048_s18, %s1197_s10  ;;  %p39_p13 = scmp.ne.s32.totalorder %s1044_s17, %s1040_s16 }
  0x41   : > { %p30_p6 = scmp.eq.s32.totalorder %s29_s11, 0  ;;  %p40_p10 = scmp.eq.s32.totalorder %s1048_s18, 0 }
  0x42   : > { %p1471_p3 = scmp.eq.s32.totalorder %s1107_s19, 1  ;;  %p800_p7 = scmp.lt.s32.totalorder %s1048_s18, 2 }
  0x43   : > { %s1213_s13 = scalar_select %p30_p6, %s1044_s17, %s32_s26  }
  0x44   : > { %p1207_p5 = por %p1471_p3, %p39_p13  ;;  %p41_p9 = por %p40_p10, %p39_p13 }
  0x45   : > { %s187_s14 = sand.u32 1, %s1044_s17   ;;  %s764_s28 = smul.u32 1280, %s1048_s18 }
  0x46   : > { %s1472_s12 = scalar_select %p1207_p5, 1, 0 }
  0x47   : > { %s763_s20 = smul.u32 80, %s187_s14  ;;  %p1217_p11 = pnand %p800_p7, %p41_p9 }
  0x48   : > { %s1224_s30 = scalar_lea.hbm %s1459_s0, %s764_s28  ;;  %s1228_s25 = scalar_lea.sflag [#allocation3], %s187_s14 }
  0x49   : > { %s191_s5 = scalar_lea.vmem [#allocation2], %s763_s20  ;;  %s916_s7 = scalar_lea.hbm %s1224_s30, 1280 }
  0x4a   : > { %s198_s6 = sshll.u32 %s191_s5, 4  ;;  %p917_p12 = scmp.ne.s32.totalorder %s1224_s30, %s916_s7  ;;  %s1226_s6 = int_to_ptr.vmem [resolvable:$true] %s198_s6 }
  0x4b   : > { %p918_p0 = pneg %p1217_p11  ;;  %s921_s26 = scalar_lea.hbm %s1459_s0, 2560 }
  0x4c   : > { %p922_p13 = scmp.lt.u32.totalorder %s1224_s30, %s1459_s0  ;;  %p923_p6 = scmp.lt.u32.totalorder %s921_s26, %s916_s7 }
  0x4d   : > { %p919_p2 = pnand %p918_p0, %p917_p12  ;;  %p925_p3 = scmp.lt.u32.totalorder %s916_s7, %s1224_s30 }
  0x4e   : > { %p924_p10 = por %p923_p6, %p922_p13 }
  0x4f   : > { %p920_p1 = pneg %p919_p2 }
  0x50   : > { %p926_p7 = por %p925_p3, %p924_p10 }
  0x52   : > { %p927_p9 = pnand %p926_p7, %p920_p1 }
  0x54   : > { %930 = shalt.err (!%p927_p9)
}
  0x55   : > { %s931_s14 = scalar_lea.vmem %s1226_s6, 1280  ;;  %s1054_s20 = smov [#allocation2]  }
  0x56   : > { %p932_p12 = scmp.ne.s32.totalorder %s1226_s6, %s931_s14  ;;  %s936_s27 = sshll.u32 %s1054_s20, 4  ;;  %s937_s27 = int_to_ptr.vmem [resolvable:$false] %s936_s27 }
  0x57   : > { %s938_s29 = scalar_lea.vmem %s937_s27, 2560  ;;  %p939_p4 = scmp.lt.s32.totalorder %s1226_s6, %s937_s27 }
  0x58   : > { %p934_p2 = pnand %p932_p12, %p918_p0  ;;  %p940_p13 = scmp.lt.s32.totalorder %s938_s29, %s931_s14 }
  0x5a   : > { %p935_p5 = pneg %p934_p2  ;;  %p941_p6 = por %p940_p13, %p939_p4 }
  0x5c   : > { %p942_p10 = pnand %p941_p6, %p935_p5 }
  0x5e   : > { %945 = shalt.err (!%p942_p10)
}
  0x5f   : > { %s1055_s5 = smov 128   ;;  %s1056_s7 = smov 8  }
  0x60   : > { %790 = dma.hbm_to_vmem [thread:$0]  (!%p1217_p11), %s1224_s30, 1280, %s1226_s6, %s1228_s25, %s1055_s5, %s1055_s5, %s1056_s7  }
  0x61   : > { %210 = sbr.rel (%p1126_p8) target bundleno = 230 (0xe6), region = 32  ;;  %s1259_s8 = sand.u32 (!%p1126_p8), 1, %s1040_s16  }
  0x62   : > { %s765_s9 = smul.u32 (!%p1126_p8), 80, %s1259_s8  ;;  %s213_s26 = scalar_lea.sflag (!%p1126_p8), [#allocation3], %s1259_s8 }
  0x63   : > { %p1474_p4 = scmp.ne.s32.totalorder (!%p1126_p8), %s1467_s21, 0 }
  0x64   : > { %s1263_s11 = scalar_lea.vmem (!%p1126_p8), [#allocation2], %s765_s9 }
  0x68   : > { %1019 = dma.done.wait (%p1474_p4), %s213_s26, 1280  }
  0x69   : > { %1021 = vsyncadd (%p1474_p4), %s213_s26, 4294966016  ;;  %p1475_p5 = scmp.eq.s32.totalorder %s1107_s19, 0 }
  0x6b   : > { %1023 = dma.done.wait (%p1475_p5), [#allocation6], 144   ;;  %p1476_p8 = pmov %p1475_p5 }
  0x6c   : > { %v261_v0 = vlaneseq  ;;  %v253_v3 = vld [vmem:[#allocation5] sm:$0x1]  ;;  %v300_v7 = vld [vmem:[#allocation5] sm:$0x2]  ;;  %v360_v12 = vld [vmem:[#allocation5] sm:$0x4] }
  0x6d   : > { %1025 = vsyncadd (%p1476_p8), [#allocation6], 4294967152  ;;  %v259_v5 = vpack.i.b16 %v253_v3, %v253_v3  ;;  %v281_v6 = vshrl.u32 %v253_v3, 16  ;;  %v254_v9 = vld [vmem:[%s1263_s11] sm:$0x3]  ;;  %v306_v10 = vpack.i.b16 %v300_v7, %v300_v7  ;;  %v341_v11 = vshrl.u32 %v300_v7, 16 }
  0x6e   : > { %v262_v1 = vshrl.u32 %v261_v0, 7  ;;  %v301_v16 = vld [vmem:[%s1263_s11] sm:$0x7]  ;;  %v366_v17 = vpack.i.b16 %v360_v12, %v360_v12  ;;  %v388_v18 = vshrl.u32 %v360_v12, 16  ;;  %v277_v19 = vld [vmem:[%s1263_s11 + $0x4] sm:$0x3] }
  0x6f   : > { %v282_v15 = vpack.i.b16 %v281_v6, %v281_v6  ;;  %v342_v21 = vpack.i.b16 %v341_v11, %v341_v11  ;;  %v731_v22 = vld [vmem:[%s1263_s11 + $0xc] sm:$0x3]  ;;  %v419_v23 = vld [vmem:[#allocation5] sm:$0x8]  ;;  %v727_v26 = vld [vmem:[%s1263_s11 + $0x8] sm:$0x3] }
  0x70   : > { %v263_v2 = vsub.s32 0, %v262_v1  ;;  %v310_v4 = vsub.s32 1, %v262_v1  ;;  %v370_v8 = vsub.s32 2, %v262_v1  ;;  %v430_v13 = vsub.s32 3, %v262_v1  ;;  %v735_v31 = vld [vmem:[%s1263_s11 + $0x8] sm:$0x7] }
  0x71   : > { %v389_v28 = vpack.i.b16 %v388_v18, %v388_v18  ;;  %v426_v32 = vpack.i.b16 %v419_v23, %v419_v23  ;;  %v448_v33 = vshrl.u32 %v419_v23, 16  ;;  %v467_v34 = vld [vmem:[#allocation5 + $0x4] sm:$0x1]  ;;  %v255_v43 = vld [vmem:[%s1263_s11 + $0x10] sm:$0x3]  ;;  %s726_s21 = sshll.u32 %s1259_s8, 3 }
  0x72   : > { %v1274_v14 = vrot.slane %v259_v5, %v263_v2  ;;  %v1278_v20 = vrot.slane %v306_v10, %v310_v4  ;;  %v1282_v25 = vrot.slane %v282_v15, %v263_v2  ;;  %v1285_v27 = vrot.slane %v366_v17, %v370_v8  ;;  %v739_v46 = vld [vmem:[%s1263_s11 + $0x10] sm:$0x3]  ;;  %v278_v48 = vld [vmem:[%s1263_s11 + $0x14] sm:$0x3]  ;;  %v728_v59 = vld [vmem:[%s1263_s11 + $0x18] sm:$0x3] }
  0x73   : > { %v1288_v30 = vrot.slane %v342_v21, %v310_v4  ;;  %v1293_v38 = vrot.slane %v389_v28, %v370_v8  ;;  %v1296_v41 = vrot.slane %v426_v32, %v430_v13  ;;  %v449_v42 = vpack.i.b16 %v448_v33, %v448_v33  ;;  %v302_v49 = vld [vmem:[%s1263_s11 + $0x10] sm:$0x7]  ;;  %v743_v52 = vld [vmem:[%s1263_s11 + $0x14] sm:$0x3]  ;;  %v732_v0 = vld [vmem:[%s1263_s11 + $0x1c] sm:$0x3] }
  0x74   : > { %v265_v24 = vmul.bf16 %v1274_v14, %v254_v9  ;;  %v312_v29 = vmul.bf16 %v1278_v20, %v301_v16  ;;  %v288_v36 = vmul.bf16 %v1282_v25, %v277_v19  ;;  %v372_v37 = vmul.bf16 %v731_v22, %v1285_v27  ;;  %v747_v54 = vld [vmem:[%s1263_s11 + $0x10] sm:$0x7]  ;;  %v736_v1 = vld [vmem:[%s1263_s11 + $0x18] sm:$0x7]  ;;  %v740_v10 = vld [vmem:[%s1263_s11 + $0x20] sm:$0x3] }
  0x75   : > { %v348_v40 = vmul.bf16 %v727_v26, %v1288_v30  ;;  %v395_v45 = vmul.bf16 %v735_v31, %v1293_v38  ;;  %v473_v47 = vpack.i.b16 %v467_v34, %v467_v34  ;;  %v1304_v53 = vrot.slane %v449_v42, %v430_v13  ;;  %v744_v16 = vld [vmem:[%s1263_s11 + $0x24] sm:$0x3]  ;;  %v748_v17 = vld [vmem:[%s1263_s11 + $0x20] sm:$0x7]  ;;  %s246_s23 = scalar_lea.vmem [#allocation8], %s726_s21  ;;  %s762_s30 = sshll.u32 %s1107_s19, 7 }
  0x76   : > { %v269_v35 = vunpack.c.l.bf16 %v265_v24  ;;  %v316_v39 = vunpack.c.l.bf16 %v312_v29  ;;  %v292_v44 = vunpack.c.l.bf16 %v288_v36  ;;  %v266_v58 = vmul.bf16 %v1274_v14, %v255_v43  ;;  %v256_v23 = vld [vmem:[%s1263_s11 + $0x20] sm:$0x3]  ;;  %v279_v24 = vld [vmem:[%s1263_s11 + $0x24] sm:$0x3]  ;;  %s584_s24 = sshll.u32 %s246_s23, 4  ;;  %s1384_s28 = scalar_lea.hbm %s1462_s3, %s762_s30  ;;  %s1378_s24 = int_to_ptr.vmem [resolvable:$true] %s584_s24 }
  0x77   : > { %v352_v51 = vunpack.c.l.bf16 %v348_v40  ;;  %v399_v56 = vunpack.c.l.bf16 %v395_v45  ;;  %v1307_v57 = vrot.slane %v473_v47, %v263_v2  ;;  %v376_v60 = vunpack.c.l.bf16 %v372_v37  ;;  %v303_v32 = vld [vmem:[%s1263_s11 + $0x20] sm:$0x7]  ;;  %v729_v37 = vld [vmem:[%s1263_s11 + $0x28] sm:$0x3]  ;;  %s567_s14 = scalar_lea.sflag [#allocation4], %s1259_s8  ;;  %s946_s20 = scalar_lea.vmem %s1378_s24, 128 }
  0x78   : > { %v324_v50 = vrot.slane %v316_v39, 1  ;;  %v296_v55 = vadd.f32 %v292_v44, %v269_v35  ;;  %v432_v61 = vmul.bf16 %v739_v46, %v1296_v41  ;;  %v289_v62 = vmul.bf16 %v1282_v25, %v278_v48  ;;  %v733_v44 = vld [vmem:[%s1263_s11 + $0x2c] sm:$0x3]  ;;  %p947_p11 = scmp.ne.s32.totalorder %s1378_s24, %s946_s20  ;;  %p1477_p0 = scmp.ne.s32.totalorder %s1472_s12, 0 }
  0x79   : > { %v313_v63 = vmul.bf16 %v1278_v20, %v302_v49  ;;  %v455_v4 = vmul.bf16 %v743_v52, %v1304_v53  ;;  %v479_v2 = vmul.bf16 %v747_v54, %v1307_v57  ;;  %v270_v5 = vunpack.c.l.bf16 %v266_v58  ;;  %v737_v49 = vld [vmem:[%s1263_s11 + $0x28] sm:$0x7]  ;;  %s1057_s27 = smov [#allocation8]  }
  0x7a   : > { %v332_v3 = vadd.f32 %v324_v50, %v296_v55  ;;  %v407_v6 = vrot.slane %v399_v56, 1  ;;  %v293_v7 = vunpack.c.l.bf16 %v289_v62  ;;  %v349_v9 = vmul.bf16 %v728_v59, %v1288_v30  ;;  %p948_p1 = pnand %p947_p11, %p1477_p0  ;;  %s950_s29 = sshll.u32 %s1057_s27, 4  ;;  %s951_s29 = int_to_ptr.vmem [resolvable:$false] %s950_s29 }
  0x7b   : > { %v317_v8 = vunpack.c.l.bf16 %v313_v63  ;;  %v483_v12 = vunpack.c.l.bf16 %v479_v2  ;;  %v373_v13 = vmul.bf16 %v732_v0, %v1285_v27  ;;  %v396_v15 = vmul.bf16 %v736_v1, %v1293_v38  ;;  %v749_v1 = vld [vmem:[%s1263_s11 + $0x30] sm:$0x7]  ;;  %s952_s5 = scalar_lea.vmem %s951_s29, 256  ;;  %p953_p7 = scmp.lt.s32.totalorder %s1378_s24, %s951_s29 }
  0x7c   : > { %v356_v11 = vadd.f32 %v352_v51, %v332_v3  ;;  %v436_v18 = vunpack.c.l.bf16 %v432_v61  ;;  %v297_v19 = vadd.f32 %v293_v7, %v270_v5  ;;  %v353_v22 = vunpack.c.l.bf16 %v349_v9  ;;  %v257_v3 = vld [vmem:[%s1263_s11 + $0x30] sm:$0x3]  ;;  %p949_p3 = pneg %p948_p1  ;;  %p954_p9 = scmp.lt.s32.totalorder %s952_s5, %s946_s20 }
  0x7d   : > { %v325_v21 = vrot.slane %v317_v8, 1  ;;  %v459_v28 = vunpack.c.l.bf16 %v455_v4  ;;  %v400_v29 = vunpack.c.l.bf16 %v396_v15  ;;  %v433_v31 = vmul.bf16 %v740_v10, %v1296_v41  ;;  %v1342_v4 = vld [vmem:[#allocation7] ss:$0 sm:$0xff]  ;;  %v745_v8 = vld [vmem:[%s1263_s11 + $0x34] sm:$0x3] }
  0x7e   : > { %v380_v26 = vadd.f32 %v376_v60, %v356_v11  ;;  %v491_v33 = vrot.slane %v483_v12, 1  ;;  %v377_v35 = vunpack.c.l.bf16 %v373_v13  ;;  %v480_v36 = vmul.bf16 %v748_v17, %v1307_v57  ;;  %v741_v60 = vld [vmem:[%s1263_s11 + $0x30] sm:$0x3]  ;;  %v280_v13 = vld [vmem:[%s1263_s11 + $0x34] sm:$0x3]  ;;  %p955_p12 = por %p954_p9, %p953_p7 }
  0x7f   : > { %v333_v34 = vadd.f32 %v325_v21, %v297_v19  ;;  %v456_v40 = vmul.bf16 %v744_v16, %v1304_v53  ;;  %v267_v42 = vmul.bf16 %v1274_v14, %v256_v23  ;;  %v290_v43 = vmul.bf16 %v1282_v25, %v279_v24  ;;  %v304_v19 = vld [vmem:[%s1263_s11 + $0x30] sm:$0x7]  ;;  %v730_v21 = vld [vmem:[%s1263_s11 + $0x38] sm:$0x3] }
  0x80   : > { %v415_v39 = vadd.f32 %v407_v6, %v380_v26  ;;  %v408_v46 = vrot.slane %v400_v29, 1  ;;  %v484_v47 = vunpack.c.l.bf16 %v480_v36  ;;  %v314_v48 = vmul.bf16 %v1278_v20, %v303_v32  ;;  %v734_v32 = vld [vmem:[%s1263_s11 + $0x3c] sm:$0x3]  ;;  %p956_p2 = pnand %p955_p12, %p949_p3 }
  0x81   : > { %v357_v45 = vadd.f32 %v353_v22, %v333_v34  ;;  %v271_v51 = vunpack.c.l.bf16 %v267_v42  ;;  %v294_v52 = vunpack.c.l.bf16 %v290_v43  ;;  %v350_v54 = vmul.bf16 %v729_v37, %v1288_v30 }
  0x82   : > { %v440_v50 = vadd.f32 %v436_v18, %v415_v39  ;;  %v437_v56 = vunpack.c.l.bf16 %v433_v31  ;;  %v318_v58 = vunpack.c.l.bf16 %v314_v48  ;;  %v374_v59 = vmul.bf16 %v733_v44, %v1285_v27 }
  0x83   : > { %v381_v55 = vadd.f32 %v377_v35, %v357_v45  ;;  %v460_v62 = vunpack.c.l.bf16 %v456_v40  ;;  %v298_v63 = vadd.f32 %v294_v52, %v271_v51  ;;  %v397_v0 = vmul.bf16 %v737_v49, %v1293_v38  ;;  %v742_v49 = vld [vmem:[%s1263_s11 + $0x40] sm:$0x3] }
  0x84   : > { %v463_v61 = vadd.f32 %v459_v28, %v440_v50  ;;  %v492_v5 = vrot.slane %v484_v47, 1  ;;  %v326_v6 = vrot.slane %v318_v58, 1  ;;  %v354_v7 = vunpack.c.l.bf16 %v350_v54 }
  0x85   : > { %v416_v2 = vadd.f32 %v408_v46, %v381_v55  ;;  %v378_v10 = vunpack.c.l.bf16 %v374_v59  ;;  %v401_v11 = vunpack.c.l.bf16 %v397_v0  ;;  %v434_v12 = vmul.bf16 %v741_v60, %v1296_v41 }
  0x86   : > { %v499_v9 = vadd.f32 %v491_v33, %v463_v61  ;;  %v334_v16 = vadd.f32 %v326_v6, %v298_v63  ;;  %v481_v17 = vmul.bf16 %v749_v1, %v1307_v57  ;;  %v268_v18 = vmul.bf16 %v1274_v14, %v257_v3  ;;  %v738_v33 = vld [vmem:[%s1263_s11 + $0x38] sm:$0x7] }
  0x87   : > { %v441_v15 = vadd.f32 %v437_v56, %v416_v2  ;;  %v409_v23 = vrot.slane %v401_v11, 1  ;;  %v457_v24 = vmul.bf16 %v745_v8, %v1304_v53  ;;  %v291_v31 = vmul.bf16 %v1282_v25, %v280_v13  ;;  %v746_v56 = vld [vmem:[%s1263_s11 + $0x44] sm:$0x3] }
  0x88   : > { %v1352_v22 = vadd.f32 %v1342_v4, %v499_v9  ;;  %v358_v28 = vadd.f32 %v354_v7, %v334_v16  ;;  %v272_v29 = vunpack.c.l.bf16 %v268_v18  ;;  %v438_v35 = vunpack.c.l.bf16 %v434_v12 }
  0x89   : > { %v464_v26 = vadd.f32 %v460_v62, %v441_v15  ;;  %v315_v14 = vmul.bf16 %v1278_v20, %v304_v19  ;;  %v351_v36 = vmul.bf16 %v730_v21, %v1288_v30  ;;  %v485_v40 = vunpack.c.l.bf16 %v481_v17  ;;  %v750_v20 = vld [vmem:[%s1263_s11 + $0x40] sm:$0x7] }
  0x8a   : > { %v752_v34 = vmul.f32 -1.442695, %v1352_v22  ;;  %v382_v39 = vadd.f32 %v378_v10, %v358_v28  ;;  %v295_v42 = vunpack.c.l.bf16 %v291_v31  ;;  %v375_v25 = vmul.bf16 %v734_v32, %v1285_v27 }
  0x8b   : > { %v500_v37 = vadd.f32 %v492_v5, %v464_v26  ;;  %v319_v43 = vunpack.c.l.bf16 %v315_v14  ;;  %v398_v44 = vmul.bf16 %v738_v33, %v1293_v38  ;;  %v461_v47 = vunpack.c.l.bf16 %v457_v24 }
  0x8c   : > { %844 = vpow2.f32 %v752_v34  ;;  %v417_v46 = vadd.f32 %v409_v23, %v382_v39  ;;  %v299_v48 = vadd.f32 %v295_v42, %v272_v29  ;;  %v355_v30 = vunpack.c.l.bf16 %v351_v36 }
  0x8d   : > { %v511_v45 = vadd.f32 %v1342_v4, %v500_v37  ;;  %v327_v50 = vrot.slane %v319_v43, 1  ;;  %v402_v51 = vunpack.c.l.bf16 %v398_v44  ;;  %v493_v55 = vrot.slane %v485_v40, 1 }
  0x8e   : > { %v442_v54 = vadd.f32 %v438_v35, %v417_v46  ;;  %v379_v59 = vunpack.c.l.bf16 %v375_v25  ;;  %v435_v27 = vmul.bf16 %v742_v49, %v1296_v41  ;;  %v482_v38 = vmul.bf16 %v750_v20, %v1307_v57 }
  0x8f   : > { %v753_v52 = vmul.f32 -1.442695, %v511_v45  ;;  %v335_v58 = vadd.f32 %v327_v50, %v299_v48  ;;  %v410_v62 = vrot.slane %v402_v51, 1  ;;  %v458_v63 = vmul.bf16 %v746_v56, %v1304_v53 }
  0x90   : > { %v465_v60 = vadd.f32 %v461_v47, %v442_v54  ;;  %v439_v3 = vunpack.c.l.bf16 %v435_v27  ;;  %v486_v2 = vunpack.c.l.bf16 %v482_v38  ;;  %vm550_vm0 = vcmask 1043456  }
  0x91   : > { %846 = vpow2.f32 %v753_v52  ;;  %v359_v61 = vadd.f32 %v355_v30, %v335_v58  ;;  %v462_v8 = vunpack.c.l.bf16 %v458_v63 }
  0x92   : > { %v501_v0 = vadd.f32 %v493_v55, %v465_v60  ;;  %v494_v57 = vrot.slane %v486_v2, 1 }
  0x93   : > { %v383_v1 = vadd.f32 %v379_v59, %v359_v61 }
  0x94   : > { %v512_v5 = vadd.f32 %v1342_v4, %v501_v0 }
  0x95   : > { %v418_v7 = vadd.f32 %v410_v62, %v383_v1 }
  0x96   : > { %v845_v6 = vpop.eup %844  ;;  %v754_v41 = vmul.f32 -1.442695, %v512_v5 }
  0x97   : > { %v526_v9 = vadd.f32 1.0, %v845_v6  ;;  %v443_v10 = vadd.f32 %v439_v3, %v418_v7 }
  0x99   : > { %848 = vrcp.f32 %v526_v9  ;;  %v466_v11 = vadd.f32 %v462_v8, %v443_v10 }
  0x9a   : > { %850 = vpow2.f32 %v754_v41 }
  0x9b   : > { %v847_v12 = vpop.eup %846  ;;  %v502_v53 = vadd.f32 %v494_v57, %v466_v11 }
  0x9c   : > { %v527_v13 = vadd.f32 1.0, %v847_v12 }
  0x9d   : > { %v513_v15 = vadd.f32 %v1342_v4, %v502_v53 }
  0x9e   : > { %852 = vrcp.f32 %v527_v13 }
  0x9f   : > { %v755_v16 = vmul.f32 -1.442695, %v513_v15 }
  0xa1   : > { %854 = vpow2.f32 %v755_v16 }
  0xa3   : > { %v849_v17 = vpop.eup %848 }
  0xa4   : > { %v851_v18 = vpop.eup %850  ;;  %v538_v19 = vmul.f32 %v849_v17, %v1352_v22 }
  0xa5   : > { %v528_v21 = vadd.f32 1.0, %v851_v18 }
  0xa6   : > { %v542_v23 = vpack.c.bf16 %v538_v19, %v538_v19  ;;  %v551_v32 = vsel %vm550_vm0, %v538_v19, 0.0 }
  0xa7   : > { %856 = vrcp.f32 %v528_v21 }
  0xa8   : > { %v853_v24 = vpop.eup %852  ;;  %546 = vst [vmem:[%s246_s23] sm:$0x3] %v542_v23 }
  0xa9   : > { %v539_v26 = vmul.f32 %v853_v24, %v511_v45 }
  0xab   : > { %v543_v28 = vpack.c.bf16 %v539_v26, %v539_v26  ;;  %v855_v29 = vpop.eup %854  ;;  %v552_v33 = vsel %vm550_vm0, %v539_v26, 0.0 }
  0xac   : > { %v529_v31 = vadd.f32 1.0, %v855_v29  ;;  %v553_v35 = vadd.f32 %v552_v33, %v551_v32 }
  0xad   : > { %547 = vst [vmem:[%s246_s23 + $0x2] sm:$0x3] %v543_v28 }
  0xae   : > { %858 = vrcp.f32 %v529_v31 }
  0xb1   : > { %v857_v4 = vpop.eup %856 }
  0xb2   : > { %v540_v22 = vmul.f32 %v857_v4, %v512_v5 }
  0xb4   : > { %v544_v34 = vpack.c.bf16 %v540_v22, %v540_v22  ;;  %v554_v14 = vsel %vm550_vm0, %v540_v22, 0.0 }
  0xb5   : > { %v555_v37 = vadd.f32 %v554_v14, %v553_v35 }
  0xb6   : > { %548 = vst [vmem:[%s246_s23 + $0x4] sm:$0x3] %v544_v34 }
  0xb8   : > { %v859_v36 = vpop.eup %858 }
  0xb9   : > { %v541_v39 = vmul.f32 %v859_v36, %v513_v15 }
  0xbb   : > { %v545_v40 = vpack.c.bf16 %v541_v39, %v541_v39  ;;  %v556_v42 = vsel %vm550_vm0, %v541_v39, 0.0 }
  0xbc   : > { %v557_v43 = vadd.f32 %v556_v42, %v555_v37 }
  0xbd   : > { %549 = vst [vmem:[%s246_s23 + $0x6] sm:$0x3] %v545_v40 }
  0xbe   : > { %v558_v25 = vrot.slane %v557_v43, 4 }
  0xbf   : > { %959 = shalt.err (!%p956_p2)
}
  0xc0   : > { %s960_s7 = scalar_lea.hbm %s1384_s28, 128  ;;  %s964_s11 = scalar_lea.hbm %s1462_s3, 256 }
  0xc1   : > { %p961_p13 = scmp.ne.s32.totalorder %s1384_s28, %s960_s7  ;;  %p965_p4 = scmp.lt.u32.totalorder %s1384_s28, %s1462_s3 }
  0xc2   : > { %p966_p5 = scmp.lt.u32.totalorder %s964_s11, %s960_s7  ;;  %p968_p11 = scmp.lt.u32.totalorder %s960_s7, %s1384_s28 }
  0xc3   : > { %p962_p6 = pnand %p961_p13, %p1477_p0 }
  0xc4   : > { %p967_p8 = por %p966_p5, %p965_p4 }
  0xc5   : > { %p963_p10 = pneg %p962_p6 }
  0xc6   : > { %p969_p1 = por %p968_p11, %p967_p8 }
  0xc8   : > { %p970_p3 = pnand %p969_p1, %p963_p10 }
  0xca   : > { %973 = shalt.err (!%p970_p3)
}
  0xcb   : > { %s1058_s30 = smov 32   ;;  %s1059_s6 = smov 2   ;;  %v559_v44 = vadd.f32 %v558_v25, %v557_v43 }
  0xcc   : > { %776 = dma.vmem_to_hbm [thread:$0]  (%p1477_p0), %s1378_s24, 128, %s1384_s28, %s567_s14, %s1058_s30, %s1058_s30, %s1059_s6  }
  0xcd   : > { %v560_v45 = vrot.slane %v559_v44, 2  ;;  %s252_s25 = scalar_lea.vmem [#allocation9], %s1259_s8  ;;  %s759_s27 = sshll.u32 %s1107_s19, 4 }
  0xce   : > { %s600_s20 = sshll.u32 %s252_s25, 4  ;;  %s1417_s7 = scalar_lea.hbm %s1463_s4, %s759_s27  ;;  %s1412_s20 = int_to_ptr.vmem [resolvable:$true] %s600_s20 }
  0xcf   : > { %v561_v46 = vadd.f32 %v560_v45, %v559_v44  ;;  %s572_s24 = scalar_lea.sflag [#allocation10], %s1259_s8  ;;  %s974_s28 = scalar_lea.vmem %s1412_s20, 16 }
  0xd0   : > { %p975_p7 = scmp.ne.s32.totalorder %s1412_s20, %s974_s28  ;;  %s1060_s19 = smov [#allocation9]  }
  0xd1   : > { %v562_v47 = vrot.slane %v561_v46, 1  ;;  %s978_s14 = sshll.u32 %s1060_s19, 4  ;;  %s979_s14 = int_to_ptr.vmem [resolvable:$false] %s978_s14 }
  0xd2   : > { %p976_p9 = pnand %p975_p7, %p1477_p0  ;;  %s980_s9 = scalar_lea.vmem %s979_s14, 32 }
  0xd3   : > { %v563_v48 = vadd.f32 %v562_v47, %v561_v46  ;;  %p981_p2 = scmp.lt.s32.totalorder %s1412_s20, %s979_s14  ;;  %p982_p13 = scmp.lt.s32.totalorder %s980_s9, %s974_s28 }
  0xd4   : > { %p977_p12 = pneg %p976_p9 }
  0xd5   : > { %v564_v49 = vmul.f32 0.0625, %v563_v48  ;;  %p983_p6 = por %p982_p13, %p981_p2 }
  0xd7   : > { %565 = vst [vmem:[%s252_s25] sm:$0x1] %v564_v49  ;;  %p984_p10 = pnand %p983_p6, %p977_p12 }
  0xd9   : > { %987 = shalt.err (!%p984_p10)
}
  0xda   : > { %s988_s8 = scalar_lea.hbm %s1417_s7, 16  ;;  %s992_s21 = scalar_lea.hbm %s1463_s4, 32 }
  0xdb   : > { %p989_p4 = scmp.ne.s32.totalorder %s1417_s7, %s988_s8  ;;  %p993_p11 = scmp.lt.u32.totalorder %s1417_s7, %s1463_s4 }
  0xdc   : > { %p994_p1 = scmp.lt.u32.totalorder %s992_s21, %s988_s8  ;;  %p996_p7 = scmp.lt.u32.totalorder %s988_s8, %s1417_s7 }
  0xdd   : > { %p990_p5 = pnand %p989_p4, %p1477_p0 }
  0xde   : > { %p995_p3 = por %p994_p1, %p993_p11 }
  0xdf   : > { %p991_p8 = pneg %p990_p5 }
  0xe0   : > { %p997_p9 = por %p996_p7, %p995_p3 }
  0xe2   : > { %p998_p12 = pnand %p997_p9, %p991_p8 }
  0xe4   : > { %1001 = shalt.err (!%p998_p12)
}
  0xe5   : > { %777 = dma.vmem_to_hbm [thread:$0]  (%p1477_p0), %s1412_s20, 16, %s1417_s7, %s572_s24  }
  0xe6 PF: > { %s612_s6 = sand.u32 1, %s1036_s15   ;;  %p1478_p2 = scmp.ne.s32.totalorder %s1468_s22, 0 }
  0xe7   : > { %p1479_p13 = scmp.ge.s32.totalorder %s1048_s18, 2  ;;  %s613_s25 = scalar_lea.sflag [#allocation4], %s612_s6 }
  0xe9   : > { %p792_p6 = pnand %p1479_p13, %p1478_p2 }
  0xeb   : > { %1027 = dma.done.wait (!%p792_p6), %s613_s25, 128  }
  0xec   : > { %1029 = vsyncadd (!%p792_p6), %s613_s25, 4294967168  ;;  %s622_s27 = scalar_lea.sflag [#allocation10], %s612_s6 }
  0xed   : > { %1031 = dma.done.wait (!%p792_p6), %s622_s27, 16  }
  0xee   : > { %1033 = vsyncadd (!%p792_p6), %s622_s27, 4294967280  ;;  %p22_p0 = scmp.ge.s32.totalorder %s1197_s10, 4   ;;  %s1480_s15 = smov %s1040_s16 }
  0xef   : > { %s1481_s16 = smov %s1044_s17  ;;  %s1482_s17 = smov %s1213_s13 }
  0xf0   : > { %s1483_s18 = smov %s1197_s10  ;;  %24 = sbr.rel (!%p22_p0) target bundleno = 8 (0x8), region = 104 }
  0xf7   :  { %626 = vsyncpa [#allocation3], 1 }
  0xf8   :  { %628 = vsyncpa [#allocation3 + $0x1], 1 }
  0xf9   :  { %629 = vsyncpa [#allocation6], 1 }
  0xfa   :  { %630 = vsyncpa [#allocation4], 1 }
  0xfb   :  { %632 = vsyncpa [#allocation4 + $0x1], 1 }
  0xfc   :  { %633 = vsyncpa [#allocation10], 1 }
  0xfd   :  { %635 = vsyncpa [#allocation10 + $0x1], 1 }

// kernel: _lambda_.28
= control target key start
LH: loop header
LB: loop body
LE: loop exit
PB: predicated region body
PF: predicated region fallthrough
CT: control target
= control target key end

     0   :  { %10 = vsyncpa [#allocation3], 0  ;;  %s1500_s0 = inlined_call_operand.hbm [shape: bf16[2,6,1,6,128], index: 0, kind: input, shape index: {}]   ;;  %s1501_s1 = inlined_call_operand.hbm [shape: bf16[9,128], index: 1, kind: input, shape index: {}]   ;;  %s1502_s2 = inlined_call_operand.hbm [shape: f32[1,128], index: 2, kind: input, shape index: {}]   ;;  %s1503_s3 = inlined_call_operand.hbm [shape: bf16[2,4,4,128], index: 3, kind: output, shape index: {0}]   ;;  %s1504_s4 = inlined_call_operand.hbm [shape: f32[2,1,128], index: 4, kind: output, shape index: {1}]  }
   0x1   :  { %12 = vsyncpa [#allocation3 + $0x1], 0 }
   0x2   :  { %13 = vsyncpa [#allocation6], 0 }
   0x3   :  { %14 = vsyncpa [#allocation4], 0 }
   0x4   :  { %16 = vsyncpa [#allocation4 + $0x1], 0 }
   0x5   :  { %17 = vsyncpa [#allocation10], 0 }
   0x6   :  { %19 = vsyncpa [#allocation10 + $0x1], 0  ;;  %s1118_s15 = smov 0   ;;  %s1120_s16 = smov 0  }
   0x7   :  { %s1122_s17 = smov 0   ;;  %s1124_s18 = smov 0  }
   0x8 LB: > { %s1139_s19 = sadd.s32 4294967295, %s1082_s18   ;;  %s753_s20 = sadd.s32 4294967294, %s1082_s18   ;;  %s1082_s18 = sphi %s1124_s18, %s1524_s18   ;;  %s1078_s17 = sphi %s1122_s17, %s1523_s17   ;;  %s1074_s16 = sphi %s1120_s16, %s1522_s16   ;;  %s1070_s15 = sphi %s1118_s15, %s1521_s15  }
   0x9   : > { %p45_p0 = scmp.ne.s32.totalorder %s1074_s16, %s1070_s15  ;;  %p1505_p1 = scmp.eq.s32.totalorder %s1139_s19, 0 }
   0xa   : > { %p117_p3 = scmp.eq.s32.totalorder %s753_s20, 1  ;;  %p754_p5 = scmp.ge.s32.totalorder %s1082_s18, 1 }
   0xb   : > { %p1148_p4 = por %p1505_p1, %p45_p0  ;;  %p150_p7 = scmp.lt.s32.totalorder %s1082_s18, 3 }
   0xc   : > { %p1153_p6 = por %p117_p3, %p45_p0  ;;  %s1084_s24 = smov [#allocation5]  }
   0xd   : > { %s1508_s21 = scalar_select %p1148_p4, 1, 0 }
   0xe   : > { %s1509_s22 = scalar_select %p1153_p6, 1, 0 }
   0xf   : > { %p1158_p8 = pnand %p754_p5, %p150_p7  ;;  %s162_s25 = sshll.u32 %s1084_s24, 4  ;;  %s1162_s25 = int_to_ptr.vmem [resolvable:$true] %s162_s25 }
  0x10   : > { %s1085_s27 = smov [#allocation7]   ;;  %s894_s5 = scalar_lea.hbm %s1501_s1, 128 }
  0x11   : > { %p816_p9 = pneg %p1158_p8  ;;  %s176_s28 = sshll.u32 %s1085_s27, 4  ;;  %s1173_s28 = int_to_ptr.vmem [resolvable:$true] %s176_s28 }
  0x12   : > { %p895_p12 = scmp.ne.s32.totalorder %s1501_s1, %s894_s5  ;;  %p901_p5 = scmp.lt.u32.totalorder %s894_s5, %s1501_s1 }
  0x13   : > { %p1169_p11 = pnand %p816_p9, %p1505_p1 }
  0x15   : > { %p896_p13 = pneg %p1169_p11 }
  0x17   : > { %p897_p0 = pnand %p896_p13, %p895_p12 }
  0x19   : > { %p898_p3 = pneg %p897_p0 }
  0x1b   : > { %p903_p7 = pnand %p901_p5, %p898_p3 }
  0x1d   : > { %906 = shalt.err (!%p903_p7)
}
  0x1e   : > { %s907_s10 = scalar_lea.vmem %s1162_s25, 128  ;;  %p915_p2 = scmp.lt.s32.totalorder %s1162_s25, %s1162_s25 }
  0x1f   : > { %p908_p9 = scmp.ne.s32.totalorder %s1162_s25, %s907_s10  ;;  %p916_p12 = scmp.lt.s32.totalorder %s907_s10, %s907_s10 }
  0x21   : > { %p910_p10 = pnand %p908_p9, %p896_p13  ;;  %p917_p0 = por %p916_p12, %p915_p2 }
  0x23   : > { %p911_p1 = pneg %p910_p10 }
  0x25   : > { %p918_p6 = pnand %p917_p0, %p911_p1 }
  0x27   : > { %921 = shalt.err (!%p918_p6)
}
  0x28   : > { %s1086_s11 = smov 64   ;;  %s1087_s12 = smov 4  }
  0x29   : > { %819 = dma.hbm_to_vmem [thread:$0]  (!%p1169_p11), %s1501_s1, 128, %s1162_s25, [#allocation6], %s1086_s11, %s1086_s11, %s1087_s12  }
  0x2a   : > { %s922_s27 = scalar_lea.hbm %s1502_s2, 16 }
  0x2b   : > { %p923_p1 = scmp.ne.s32.totalorder %s1502_s2, %s922_s27  ;;  %p929_p10 = scmp.lt.u32.totalorder %s922_s27, %s1502_s2 }
  0x2d   : > { %p925_p2 = pnand %p923_p1, %p896_p13 }
  0x2f   : > { %p926_p6 = pneg %p925_p2 }
  0x31   : > { %p931_p3 = pnand %p929_p10, %p926_p6 }
  0x33   : > { %934 = shalt.err (!%p931_p3)
}
  0x34   : > { %s935_s25 = scalar_lea.vmem %s1173_s28, 16  ;;  %s942_s7 = scalar_lea.vmem %s1173_s28, 32 }
  0x35   : > { %p936_p5 = scmp.ne.s32.totalorder %s1173_s28, %s935_s25  ;;  %p943_p12 = scmp.lt.s32.totalorder %s1173_s28, %s1173_s28 }
  0x36   : > { %p944_p0 = scmp.lt.s32.totalorder %s942_s7, %s935_s25 }
  0x37   : > { %p938_p7 = pnand %p936_p5, %p896_p13 }
  0x38   : > { %p945_p1 = por %p944_p0, %p943_p12 }
  0x39   : > { %p939_p9 = pneg %p938_p7 }
  0x3b   : > { %p946_p2 = pnand %p945_p1, %p939_p9 }
  0x3d   : > { %949 = shalt.err (!%p946_p2)
}
  0x3e   : > { %822 = dma.hbm_to_vmem [thread:$0]  (!%p1169_p11), %s1502_s2, 16, %s1173_s28, [#allocation6]  }
  0x3f   : > { %s1232_s10 = sadd.s32 1, %s1082_s18   ;;  %s32_s26 = sadd.s32 1, %s1078_s17 }
  0x40   : > { %s29_s13 = ssub.s32 %s1082_s18, %s1232_s10  ;;  %p39_p13 = scmp.ne.s32.totalorder %s1078_s17, %s1074_s16 }
  0x41   : > { %p30_p6 = scmp.eq.s32.totalorder %s29_s13, 0  ;;  %p40_p10 = scmp.eq.s32.totalorder %s1082_s18, 0 }
  0x42   : > { %p1512_p3 = scmp.eq.s32.totalorder %s1139_s19, 1  ;;  %p836_p7 = scmp.lt.s32.totalorder %s1082_s18, 2 }
  0x43   : > { %s1248_s20 = scalar_select %p30_p6, %s1078_s17, %s32_s26  }
  0x44   : > { %p1242_p5 = por %p1512_p3, %p39_p13  ;;  %p41_p9 = por %p40_p10, %p39_p13 }
  0x45   : > { %s187_s24 = sand.u32 1, %s1078_s17   ;;  %s800_s28 = smul.u32 384, %s1082_s18 }
  0x46   : > { %s1513_s14 = scalar_select %p1242_p5, 1, 0 }
  0x47   : > { %s799_s27 = smul.u32 24, %s187_s24  ;;  %p1252_p11 = pnand %p836_p7, %p41_p9 }
  0x48   : > { %s1259_s6 = scalar_lea.hbm %s1500_s0, %s800_s28  ;;  %s1263_s8 = scalar_lea.sflag [#allocation3], %s187_s24 }
  0x49   : > { %s191_s25 = scalar_lea.vmem [#allocation2], %s799_s27  ;;  %s950_s9 = scalar_lea.hbm %s1259_s6, 384 }
  0x4a   : > { %s198_s7 = sshll.u32 %s191_s25, 4  ;;  %p951_p12 = scmp.ne.s32.totalorder %s1259_s6, %s950_s9  ;;  %s1261_s7 = int_to_ptr.vmem [resolvable:$true] %s198_s7 }
  0x4b   : > { %p952_p0 = pneg %p1252_p11  ;;  %s955_s28 = scalar_lea.hbm %s1500_s0, 768 }
  0x4c   : > { %p956_p13 = scmp.lt.u32.totalorder %s1259_s6, %s1500_s0  ;;  %p957_p6 = scmp.lt.u32.totalorder %s955_s28, %s950_s9 }
  0x4d   : > { %p953_p1 = pnand %p952_p0, %p951_p12  ;;  %p959_p3 = scmp.lt.u32.totalorder %s950_s9, %s1259_s6 }
  0x4e   : > { %p958_p10 = por %p957_p6, %p956_p13 }
  0x4f   : > { %p954_p2 = pneg %p953_p1 }
  0x50   : > { %p960_p7 = por %p959_p3, %p958_p10 }
  0x52   : > { %p961_p9 = pnand %p960_p7, %p954_p2 }
  0x54   : > { %964 = shalt.err (!%p961_p9)
}
  0x55   : > { %s965_s24 = scalar_lea.vmem %s1261_s7, 384  ;;  %s1088_s27 = smov [#allocation2]  }
  0x56   : > { %p966_p12 = scmp.ne.s32.totalorder %s1261_s7, %s965_s24  ;;  %s970_s25 = sshll.u32 %s1088_s27, 4  ;;  %s971_s25 = int_to_ptr.vmem [resolvable:$false] %s970_s25 }
  0x57   : > { %s972_s26 = scalar_lea.vmem %s971_s25, 768  ;;  %p973_p4 = scmp.lt.s32.totalorder %s1261_s7, %s971_s25 }
  0x58   : > { %p968_p1 = pnand %p966_p12, %p952_p0  ;;  %p974_p13 = scmp.lt.s32.totalorder %s972_s26, %s965_s24 }
  0x5a   : > { %p969_p5 = pneg %p968_p1  ;;  %p975_p6 = por %p974_p13, %p973_p4 }
  0x5c   : > { %p976_p10 = pnand %p975_p6, %p969_p5 }
  0x5e   : > { %979 = shalt.err (!%p976_p10)
}
  0x5f   : > { %826 = dma.hbm_to_vmem [thread:$0]  (!%p1252_p11), %s1259_s6, 384, %s1261_s7, %s1263_s8, %s1086_s11, %s1086_s11, %s1087_s12  }
  0x60   : > { %210 = sbr.rel (%p1158_p8) target bundleno = 231 (0xe7), region = 32  ;;  %s1297_s9 = sand.u32 (!%p1158_p8), 1, %s1074_s16  }
  0x61   : > { %s801_s13 = smul.u32 (!%p1158_p8), 24, %s1297_s9  ;;  %s213_s28 = scalar_lea.sflag (!%p1158_p8), [#allocation3], %s1297_s9 }
  0x62   : > { %p1515_p4 = scmp.ne.s32.totalorder (!%p1158_p8), %s1508_s21, 0 }
  0x63   : > { %s1301_s30 = scalar_lea.vmem (!%p1158_p8), [#allocation2], %s801_s13 }
  0x67   : > { %1053 = dma.done.wait (%p1515_p4), %s213_s28, 384  }
  0x68   : > { %1055 = vsyncadd (%p1515_p4), %s213_s28, 4294966912  ;;  %p1516_p5 = scmp.eq.s32.totalorder %s1139_s19, 0 }
  0x6a   : > { %1057 = dma.done.wait (%p1516_p5), [#allocation6], 144   ;;  %p1517_p8 = pmov %p1516_p5 }
  0x6b   : > { %v261_v0 = vlaneseq  ;;  %v253_v2 = vld [vmem:[#allocation5] sm:$0x1]  ;;  %v312_v7 = vld [vmem:[#allocation5] sm:$0x2]  ;;  %v254_v9 = vld [vmem:[%s1301_s30] sm:$0x3] }
  0x6c   : > { %1059 = vsyncadd (%p1517_p8), [#allocation6], 4294967152  ;;  %v259_v4 = vpack.i.b16 %v253_v2, %v253_v2  ;;  %v281_v6 = vshrl.u32 %v253_v2, 16  ;;  %v318_v10 = vpack.i.b16 %v312_v7, %v312_v7  ;;  %v353_v11 = vshrl.u32 %v312_v7, 16  ;;  %v372_v12 = vld [vmem:[#allocation5] sm:$0x4] }
  0x6d   : > { %v262_v1 = vshrl.u32 %v261_v0, 7  ;;  %v313_v16 = vld [vmem:[%s1301_s30] sm:$0x6]  ;;  %v378_v17 = vpack.i.b16 %v372_v12, %v372_v12  ;;  %v412_v18 = vshrl.u32 %v372_v12, 16  ;;  %v767_v22 = vld [vmem:[%s1301_s30 + $0x4] sm:$0x7] }
  0x6e   : > { %v282_v15 = vpack.i.b16 %v281_v6, %v281_v6  ;;  %v277_v19 = vld [vmem:[%s1301_s30] sm:$0x7]  ;;  %v354_v21 = vpack.i.b16 %v353_v11, %v353_v11  ;;  %v443_v23 = vld [vmem:[#allocation5] sm:$0x8]  ;;  %v763_v26 = vld [vmem:[%s1301_s30 + $0x4] sm:$0x3] }
  0x6f   : > { %v322_v3 = vsub.s32 1, %v262_v1  ;;  %v263_v5 = vsub.s32 0, %v262_v1  ;;  %v382_v8 = vsub.s32 2, %v262_v1  ;;  %v454_v13 = vsub.s32 3, %v262_v1  ;;  %v771_v31 = vld [vmem:[%s1301_s30 + $0x4] sm:$0x6] }
  0x70   : > { %v413_v28 = vpack.i.b16 %v412_v18, %v412_v18  ;;  %v450_v32 = vpack.i.b16 %v443_v23, %v443_v23  ;;  %v472_v33 = vshrl.u32 %v443_v23, 16  ;;  %v503_v34 = vld [vmem:[#allocation5 + $0x4] sm:$0x1]  ;;  %v775_v39 = vld [vmem:[%s1301_s30 + $0x8] sm:$0x3]  ;;  %s762_s21 = sshll.u32 %s1297_s9, 3 }
  0x71   : > { %v1312_v14 = vrot.slane %v259_v4, %v263_v5  ;;  %v1316_v20 = vrot.slane %v318_v10, %v322_v3  ;;  %v1320_v25 = vrot.slane %v282_v15, %v263_v5  ;;  %v1323_v27 = vrot.slane %v378_v17, %v382_v8  ;;  %v779_v47 = vld [vmem:[%s1301_s30 + $0x8] sm:$0x7]  ;;  %v255_v49 = vld [vmem:[%s1301_s30 + $0x4] sm:$0x3]  ;;  %v780_v17 = vld [vmem:[%s1301_s30 + $0xc] sm:$0x7] }
  0x72   : > { %v1326_v30 = vrot.slane %v354_v21, %v322_v3  ;;  %v1331_v38 = vrot.slane %v413_v28, %v382_v8  ;;  %v1335_v42 = vrot.slane %v450_v32, %v454_v13  ;;  %v473_v43 = vpack.i.b16 %v472_v33, %v472_v33  ;;  %v278_v50 = vld [vmem:[%s1301_s30 + $0x4] sm:$0x7]  ;;  %v783_v54 = vld [vmem:[%s1301_s30 + $0x8] sm:$0x6]  ;;  %v784_v18 = vld [vmem:[%s1301_s30 + $0xc] sm:$0x6] }
  0x73   : > { %v265_v24 = vmul.bf16 %v1312_v14, %v254_v9  ;;  %v324_v29 = vmul.bf16 %v1316_v20, %v313_v16  ;;  %v288_v36 = vmul.bf16 %v1320_v25, %v277_v19  ;;  %v384_v37 = vmul.bf16 %v767_v22, %v1323_v27  ;;  %v314_v55 = vld [vmem:[%s1301_s30 + $0x4] sm:$0x6]  ;;  %v764_v60 = vld [vmem:[%s1301_s30 + $0x8] sm:$0x3]  ;;  %v776_v16 = vld [vmem:[%s1301_s30 + $0xc] sm:$0x3] }
  0x74   : > { %v360_v41 = vmul.bf16 %v763_v26, %v1326_v30  ;;  %v419_v46 = vmul.bf16 %v771_v31, %v1331_v38  ;;  %v509_v48 = vpack.i.b16 %v503_v34, %v503_v34  ;;  %v456_v52 = vmul.bf16 %v775_v39, %v1335_v42  ;;  %v768_v1 = vld [vmem:[%s1301_s30 + $0x8] sm:$0x7]  ;;  %s246_s23 = scalar_lea.vmem [#allocation8], %s762_s21  ;;  %s798_s12 = sshll.u32 %s1139_s19, 7 }
  0x75   : > { %v269_v35 = vunpack.c.l.bf16 %v265_v24  ;;  %v328_v40 = vunpack.c.l.bf16 %v324_v29  ;;  %v292_v44 = vunpack.c.l.bf16 %v288_v36  ;;  %v388_v45 = vunpack.c.l.bf16 %v384_v37  ;;  %v256_v24 = vld [vmem:[%s1301_s30 + $0x8] sm:$0x3]  ;;  %s620_s11 = sshll.u32 %s246_s23, 4  ;;  %s1425_s7 = scalar_lea.hbm %s1503_s3, %s798_s12  ;;  %s1419_s11 = int_to_ptr.vmem [resolvable:$true] %s620_s11 }
  0x76   : > { %v1342_v53 = vrot.slane %v473_v43, %v454_v13  ;;  %v364_v57 = vunpack.c.l.bf16 %v360_v41  ;;  %v1346_v59 = vrot.slane %v509_v48, %v263_v5  ;;  %v423_v61 = vunpack.c.l.bf16 %v419_v46  ;;  %v772_v5 = vld [vmem:[%s1301_s30 + $0x8] sm:$0x6]  ;;  %v765_v48 = vld [vmem:[%s1301_s30 + $0xc] sm:$0x3]  ;;  %s603_s8 = scalar_lea.sflag [#allocation4], %s1297_s9  ;;  %s980_s5 = scalar_lea.vmem %s1419_s11, 128 }
  0x77   : > { %v336_v51 = vrot.slane %v328_v40, 2  ;;  %v300_v56 = vrot.slane %v292_v44, 1  ;;  %v396_v58 = vrot.slane %v388_v45, 1  ;;  %v266_v63 = vmul.bf16 %v1312_v14, %v255_v49  ;;  %v279_v36 = vld [vmem:[%s1301_s30 + $0x8] sm:$0x7]  ;;  %p981_p11 = scmp.ne.s32.totalorder %s1419_s11, %s980_s5  ;;  %p1518_p0 = scmp.ne.s32.totalorder %s1513_s14, 0 }
  0x78   : > { %v479_v62 = vmul.bf16 %v779_v47, %v1342_v53  ;;  %v289_v0 = vmul.bf16 %v1320_v25, %v278_v50  ;;  %v460_v3 = vunpack.c.l.bf16 %v456_v52  ;;  %v515_v4 = vmul.bf16 %v783_v54, %v1346_v59  ;;  %v315_v43 = vld [vmem:[%s1301_s30 + $0x8] sm:$0x6]  ;;  %v769_v49 = vld [vmem:[%s1301_s30 + $0xc] sm:$0x7]  ;;  %s1089_s24 = smov [#allocation8]  }
  0x79   : > { %v308_v2 = vadd.f32 %v300_v56, %v269_v35  ;;  %v325_v6 = vmul.bf16 %v1316_v20, %v314_v55  ;;  %v270_v8 = vunpack.c.l.bf16 %v266_v63  ;;  %v361_v10 = vmul.bf16 %v764_v60, %v1326_v30  ;;  %v773_v55 = vld [vmem:[%s1301_s30 + $0xc] sm:$0x6]  ;;  %p982_p2 = pnand %p981_p11, %p1518_p0  ;;  %s984_s27 = sshll.u32 %s1089_s24, 4  ;;  %s985_s27 = int_to_ptr.vmem [resolvable:$false] %s984_s27 }
  0x7a   : > { %v483_v7 = vunpack.c.l.bf16 %v479_v62  ;;  %v293_v9 = vunpack.c.l.bf16 %v289_v0  ;;  %v1357_v12 = vunpack.c.l.bf16 %v515_v4  ;;  %v385_v15 = vmul.bf16 %v768_v1, %v1323_v27  ;;  %s986_s25 = scalar_lea.vmem %s985_s27, 256  ;;  %p987_p7 = scmp.lt.s32.totalorder %s1419_s11, %s985_s27 }
  0x7b   : > { %v344_v11 = vadd.f32 %v336_v51, %v308_v2  ;;  %v329_v13 = vunpack.c.l.bf16 %v325_v6  ;;  %v431_v19 = vrot.slane %v423_v61, 2  ;;  %v420_v23 = vmul.bf16 %v772_v5, %v1331_v38  ;;  %v777_v61 = vld [vmem:[%s1301_s30 + $0x10] sm:$0x3]  ;;  %p983_p3 = pneg %p982_p2  ;;  %p988_p9 = scmp.lt.s32.totalorder %s986_s25, %s980_s5 }
  0x7c   : > { %v491_v21 = vrot.slane %v483_v7, 1  ;;  %v301_v22 = vrot.slane %v293_v9, 1  ;;  %v365_v29 = vunpack.c.l.bf16 %v361_v10  ;;  %v389_v31 = vunpack.c.l.bf16 %v385_v15  ;;  %v781_v2 = vld [vmem:[%s1301_s30 + $0x10] sm:$0x7]  ;;  %v1382_v9 = vld [vmem:[#allocation7] ss:$0 sm:$0xff] }
  0x7d   : > { %v368_v26 = vadd.f32 %v364_v57, %v344_v11  ;;  %v337_v28 = vrot.slane %v329_v13, 2  ;;  %v424_v33 = vunpack.c.l.bf16 %v420_v23  ;;  %v457_v34 = vmul.bf16 %v776_v16, %v1335_v42  ;;  %p989_p12 = por %p988_p9, %p987_p7 }
  0x7e   : > { %v309_v32 = vadd.f32 %v301_v22, %v270_v8  ;;  %v480_v35 = vmul.bf16 %v780_v17, %v1342_v53  ;;  %v527_v39 = vrot.slane %v1357_v12, 2  ;;  %v516_v40 = vmul.bf16 %v784_v18, %v1346_v59  ;;  %v785_v12 = vld [vmem:[%s1301_s30 + $0x10] sm:$0x6]  ;;  %v257_v18 = vld [vmem:[%s1301_s30 + $0xc] sm:$0x3] }
  0x7f   : > { %v404_v37 = vadd.f32 %v396_v58, %v368_v26  ;;  %v267_v41 = vmul.bf16 %v1312_v14, %v256_v24  ;;  %v397_v45 = vrot.slane %v389_v31, 1  ;;  %v432_v46 = vrot.slane %v424_v33, 2  ;;  %v316_v26 = vld [vmem:[%s1301_s30 + $0xc] sm:$0x6]  ;;  %p990_p1 = pnand %p989_p12, %p983_p3 }
  0x80   : > { %v345_v44 = vadd.f32 %v337_v28, %v309_v32  ;;  %v484_v47 = vunpack.c.l.bf16 %v480_v35  ;;  %v461_v51 = vunpack.c.l.bf16 %v457_v34  ;;  %v520_v52 = vunpack.c.l.bf16 %v516_v40 }
  0x81   : > { %v439_v50 = vadd.f32 %v431_v19, %v404_v37  ;;  %v290_v54 = vmul.bf16 %v1320_v25, %v279_v36  ;;  %v271_v58 = vunpack.c.l.bf16 %v267_v41  ;;  %v326_v60 = vmul.bf16 %v1316_v20, %v315_v43  ;;  %v280_v19 = vld [vmem:[%s1301_s30 + $0xc] sm:$0x7]  ;;  %v766_v37 = vld [vmem:[%s1301_s30 + $0x10] sm:$0x3] }
  0x82   : > { %v369_v56 = vadd.f32 %v365_v29, %v345_v44  ;;  %v492_v57 = vrot.slane %v484_v47, 1  ;;  %v362_v0 = vmul.bf16 %v765_v48, %v1326_v30  ;;  %v386_v1 = vmul.bf16 %v769_v49, %v1323_v27  ;;  %v770_v44 = vld [vmem:[%s1301_s30 + $0x10] sm:$0x7] }
  0x83   : > { %v464_v62 = vadd.f32 %v460_v3, %v439_v50  ;;  %v294_v63 = vunpack.c.l.bf16 %v290_v54  ;;  %v528_v6 = vrot.slane %v520_v52, 2  ;;  %v330_v5 = vunpack.c.l.bf16 %v326_v60  ;;  %v774_v49 = vld [vmem:[%s1301_s30 + $0x10] sm:$0x6] }
  0x84   : > { %v405_v4 = vadd.f32 %v397_v45, %v369_v56  ;;  %v421_v7 = vmul.bf16 %v773_v55, %v1331_v38  ;;  %v390_v11 = vunpack.c.l.bf16 %v386_v1  ;;  %v458_v3 = vmul.bf16 %v777_v61, %v1335_v42  ;;  %v782_v56 = vld [vmem:[%s1301_s30 + $0x14] sm:$0x7] }
  0x85   : > { %v499_v8 = vadd.f32 %v491_v21, %v464_v62  ;;  %v302_v10 = vrot.slane %v294_v63, 1  ;;  %v338_v15 = vrot.slane %v330_v5, 2  ;;  %v481_v17 = vmul.bf16 %v781_v2, %v1342_v53  ;;  %v786_v62 = vld [vmem:[%s1301_s30 + $0x14] sm:$0x6] }
  0x86   : > { %v440_v13 = vadd.f32 %v432_v46, %v405_v4  ;;  %v425_v16 = vunpack.c.l.bf16 %v421_v7  ;;  %v366_v24 = vunpack.c.l.bf16 %v362_v0  ;;  %v398_v21 = vrot.slane %v390_v11, 1 }
  0x87   : > { %v535_v22 = vadd.f32 %v527_v39, %v499_v8  ;;  %v310_v23 = vadd.f32 %v302_v10, %v271_v58  ;;  %v462_v29 = vunpack.c.l.bf16 %v458_v3  ;;  %v485_v31 = vunpack.c.l.bf16 %v481_v17 }
  0x88   : > { %v465_v28 = vadd.f32 %v461_v51, %v440_v13  ;;  %v517_v32 = vmul.bf16 %v785_v12, %v1346_v59  ;;  %v268_v35 = vmul.bf16 %v1312_v14, %v257_v18  ;;  %v291_v36 = vmul.bf16 %v1320_v25, %v280_v19 }
  0x89   : > { %v1392_v33 = vadd.f32 %v1382_v9, %v535_v22  ;;  %v346_v34 = vadd.f32 %v338_v15, %v310_v23  ;;  %v433_v40 = vrot.slane %v425_v16, 2  ;;  %v327_v43 = vmul.bf16 %v1316_v20, %v316_v26  ;;  %v778_v20 = vld [vmem:[%s1301_s30 + $0x14] sm:$0x3] }
  0x8a   : > { %v500_v39 = vadd.f32 %v492_v57, %v465_v28  ;;  %v521_v41 = vunpack.c.l.bf16 %v517_v32  ;;  %v272_v47 = vunpack.c.l.bf16 %v268_v35  ;;  %v295_v48 = vunpack.c.l.bf16 %v291_v36 }
  0x8b   : > { %v788_v45 = vmul.f32 -1.442695, %v1392_v33  ;;  %v370_v46 = vadd.f32 %v366_v24, %v346_v34  ;;  %v493_v14 = vrot.slane %v485_v31, 1  ;;  %v331_v51 = vunpack.c.l.bf16 %v327_v43 }
  0x8c   : > { %v536_v50 = vadd.f32 %v528_v6, %v500_v39  ;;  %v363_v25 = vmul.bf16 %v766_v37, %v1326_v30  ;;  %v303_v54 = vrot.slane %v295_v48, 1  ;;  %v387_v55 = vmul.bf16 %v770_v44, %v1323_v27 }
  0x8d   : > { %878 = vpow2.f32 %v788_v45  ;;  %v406_v52 = vadd.f32 %v398_v21, %v370_v46  ;;  %v529_v58 = vrot.slane %v521_v41, 2  ;;  %v339_v60 = vrot.slane %v331_v51, 2 }
  0x8e   : > { %v547_v57 = vadd.f32 %v1382_v9, %v536_v50  ;;  %v422_v61 = vmul.bf16 %v774_v49, %v1331_v38  ;;  %v311_v0 = vadd.f32 %v303_v54, %v272_v47  ;;  %v367_v1 = vunpack.c.l.bf16 %v363_v25 }
  0x8f   : > { %v441_v63 = vadd.f32 %v433_v40, %v406_v52  ;;  %v391_v2 = vunpack.c.l.bf16 %v387_v55  ;;  %v459_v6 = vmul.bf16 %v778_v20, %v1335_v42  ;;  %v482_v5 = vmul.bf16 %v782_v56, %v1342_v53 }
  0x90   : > { %v789_v4 = vmul.f32 -1.442695, %v547_v57  ;;  %v426_v30 = vunpack.c.l.bf16 %v422_v61  ;;  %v347_v7 = vadd.f32 %v339_v60, %v311_v0  ;;  %v518_v10 = vmul.bf16 %v786_v62, %v1346_v59 }
  0x91   : > { %v466_v27 = vadd.f32 %v462_v29, %v441_v63  ;;  %v399_v8 = vrot.slane %v391_v2, 1  ;;  %v486_v12 = vunpack.c.l.bf16 %v482_v5  ;;  %v463_v16 = vunpack.c.l.bf16 %v459_v6 }
  0x92   : > { %880 = vpow2.f32 %v789_v4  ;;  %v371_v3 = vadd.f32 %v367_v1, %v347_v7  ;;  %v434_v38 = vrot.slane %v426_v30, 2  ;;  %v522_v17 = vunpack.c.l.bf16 %v518_v10 }
  0x93   : > { %v501_v11 = vadd.f32 %v493_v14, %v466_v27  ;;  %v494_v53 = vrot.slane %v486_v12, 1  ;;  %vm586_vm0 = vcmask 1043456  }
  0x94   : > { %v407_v15 = vadd.f32 %v399_v8, %v371_v3  ;;  %v530_v21 = vrot.slane %v522_v17, 2 }
  0x95   : > { %v537_v13 = vadd.f32 %v529_v58, %v501_v11 }
  0x96   : > { %v442_v42 = vadd.f32 %v434_v38, %v407_v15 }
  0x97   : > { %v879_v18 = vpop.eup %878  ;;  %v548_v19 = vadd.f32 %v1382_v9, %v537_v13 }
  0x98   : > { %v562_v22 = vadd.f32 1.0, %v879_v18  ;;  %v467_v24 = vadd.f32 %v463_v16, %v442_v42 }
  0x99   : > { %v790_v23 = vmul.f32 -1.442695, %v548_v19 }
  0x9a   : > { %882 = vrcp.f32 %v562_v22  ;;  %v502_v59 = vadd.f32 %v494_v53, %v467_v24 }
  0x9b   : > { %884 = vpow2.f32 %v790_v23 }
  0x9c   : > { %v881_v26 = vpop.eup %880  ;;  %v538_v29 = vadd.f32 %v530_v21, %v502_v59 }
  0x9d   : > { %v563_v28 = vadd.f32 1.0, %v881_v26 }
  0x9e   : > { %v549_v31 = vadd.f32 %v1382_v9, %v538_v29 }
  0x9f   : > { %886 = vrcp.f32 %v563_v28 }
  0xa0   : > { %v791_v32 = vmul.f32 -1.442695, %v549_v31 }
  0xa2   : > { %888 = vpow2.f32 %v791_v32 }
  0xa4   : > { %v883_v34 = vpop.eup %882 }
  0xa5   : > { %v885_v35 = vpop.eup %884  ;;  %v574_v36 = vmul.f32 %v883_v34, %v1392_v33 }
  0xa6   : > { %v564_v37 = vadd.f32 1.0, %v885_v35 }
  0xa7   : > { %v578_v39 = vpack.c.bf16 %v574_v36, %v574_v36  ;;  %v587_v46 = vsel %vm586_vm0, %v574_v36, 0.0 }
  0xa8   : > { %890 = vrcp.f32 %v564_v37 }
  0xa9   : > { %v887_v40 = vpop.eup %886  ;;  %582 = vst [vmem:[%s246_s23] sm:$0x3] %v578_v39 }
  0xaa   : > { %v575_v41 = vmul.f32 %v887_v40, %v547_v57 }
  0xac   : > { %v579_v43 = vpack.c.bf16 %v575_v41, %v575_v41  ;;  %v889_v44 = vpop.eup %888  ;;  %v588_v47 = vsel %vm586_vm0, %v575_v41, 0.0 }
  0xad   : > { %v565_v45 = vadd.f32 1.0, %v889_v44  ;;  %v589_v49 = vadd.f32 %v588_v47, %v587_v46 }
  0xae   : > { %583 = vst [vmem:[%s246_s23 + $0x2] sm:$0x3] %v579_v43 }
  0xaf   : > { %892 = vrcp.f32 %v565_v45 }
  0xb2   : > { %v891_v9 = vpop.eup %890 }
  0xb3   : > { %v576_v33 = vmul.f32 %v891_v9, %v548_v19 }
  0xb5   : > { %v580_v48 = vpack.c.bf16 %v576_v33, %v576_v33  ;;  %v590_v50 = vsel %vm586_vm0, %v576_v33, 0.0 }
  0xb6   : > { %v591_v51 = vadd.f32 %v590_v50, %v589_v49 }
  0xb7   : > { %584 = vst [vmem:[%s246_s23 + $0x4] sm:$0x3] %v580_v48 }
  0xb9   : > { %v893_v14 = vpop.eup %892 }
  0xba   : > { %v577_v25 = vmul.f32 %v893_v14, %v549_v31 }
  0xbc   : > { %v581_v52 = vpack.c.bf16 %v577_v25, %v577_v25  ;;  %v592_v54 = vsel %vm586_vm0, %v577_v25, 0.0 }
  0xbd   : > { %v593_v55 = vadd.f32 %v592_v54, %v591_v51 }
  0xbe   : > { %585 = vst [vmem:[%s246_s23 + $0x6] sm:$0x3] %v581_v52 }
  0xbf   : > { %v594_v20 = vrot.slane %v593_v55, 4 }
  0xc0   : > { %993 = shalt.err (!%p990_p1)
}
  0xc1   : > { %s994_s26 = scalar_lea.hbm %s1425_s7, 128  ;;  %s998_s30 = scalar_lea.hbm %s1503_s3, 256 }
  0xc2   : > { %p995_p13 = scmp.ne.s32.totalorder %s1425_s7, %s994_s26  ;;  %p999_p4 = scmp.lt.u32.totalorder %s1425_s7, %s1503_s3 }
  0xc3   : > { %p1000_p5 = scmp.lt.u32.totalorder %s998_s30, %s994_s26  ;;  %p1002_p11 = scmp.lt.u32.totalorder %s994_s26, %s1425_s7 }
  0xc4   : > { %p996_p6 = pnand %p995_p13, %p1518_p0 }
  0xc5   : > { %p1001_p8 = por %p1000_p5, %p999_p4 }
  0xc6   : > { %p997_p10 = pneg %p996_p6 }
  0xc7   : > { %p1003_p2 = por %p1002_p11, %p1001_p8 }
  0xc9   : > { %p1004_p3 = pnand %p1003_p2, %p997_p10 }
  0xcb   : > { %1007 = shalt.err (!%p1004_p3)
}
  0xcc   : > { %s1090_s12 = smov 32   ;;  %s1091_s29 = smov 2   ;;  %v595_v56 = vadd.f32 %v594_v20, %v593_v55 }
  0xcd   : > { %812 = dma.vmem_to_hbm [thread:$0]  (%p1518_p0), %s1419_s11, 128, %s1425_s7, %s603_s8, %s1090_s12, %s1090_s12, %s1091_s29  }
  0xce   : > { %v596_v57 = vrot.slane %v595_v56, 2  ;;  %s252_s6 = scalar_lea.vmem [#allocation9], %s1297_s9  ;;  %s795_s24 = sshll.u32 %s1139_s19, 4 }
  0xcf   : > { %s636_s5 = sshll.u32 %s252_s6, 4  ;;  %s1458_s26 = scalar_lea.hbm %s1504_s4, %s795_s24  ;;  %s1453_s5 = int_to_ptr.vmem [resolvable:$true] %s636_s5 }
  0xd0   : > { %v597_v58 = vadd.f32 %v596_v57, %v595_v56  ;;  %s608_s11 = scalar_lea.sflag [#allocation10], %s1297_s9  ;;  %s1008_s7 = scalar_lea.vmem %s1453_s5, 16 }
  0xd1   : > { %p1009_p7 = scmp.ne.s32.totalorder %s1453_s5, %s1008_s7  ;;  %s1092_s19 = smov [#allocation9]  }
  0xd2   : > { %v598_v60 = vrot.slane %v597_v58, 1  ;;  %s1012_s8 = sshll.u32 %s1092_s19, 4  ;;  %s1013_s8 = int_to_ptr.vmem [resolvable:$false] %s1012_s8 }
  0xd3   : > { %p1010_p9 = pnand %p1009_p7, %p1518_p0  ;;  %s1014_s13 = scalar_lea.vmem %s1013_s8, 32 }
  0xd4   : > { %v599_v61 = vadd.f32 %v598_v60, %v597_v58  ;;  %p1015_p1 = scmp.lt.s32.totalorder %s1453_s5, %s1013_s8  ;;  %p1016_p13 = scmp.lt.s32.totalorder %s1014_s13, %s1008_s7 }
  0xd5   : > { %p1011_p12 = pneg %p1010_p9 }
  0xd6   : > { %v600_v62 = vmul.f32 0.0625, %v599_v61  ;;  %p1017_p6 = por %p1016_p13, %p1015_p1 }
  0xd8   : > { %601 = vst [vmem:[%s252_s6] sm:$0x1] %v600_v62  ;;  %p1018_p10 = pnand %p1017_p6, %p1011_p12 }
  0xda   : > { %1021 = shalt.err (!%p1018_p10)
}
  0xdb   : > { %s1022_s9 = scalar_lea.hbm %s1458_s26, 16  ;;  %s1026_s21 = scalar_lea.hbm %s1504_s4, 32 }
  0xdc   : > { %p1023_p4 = scmp.ne.s32.totalorder %s1458_s26, %s1022_s9  ;;  %p1027_p11 = scmp.lt.u32.totalorder %s1458_s26, %s1504_s4 }
  0xdd   : > { %p1028_p2 = scmp.lt.u32.totalorder %s1026_s21, %s1022_s9  ;;  %p1030_p7 = scmp.lt.u32.totalorder %s1022_s9, %s1458_s26 }
  0xde   : > { %p1024_p5 = pnand %p1023_p4, %p1518_p0 }
  0xdf   : > { %p1029_p3 = por %p1028_p2, %p1027_p11 }
  0xe0   : > { %p1025_p8 = pneg %p1024_p5 }
  0xe1   : > { %p1031_p9 = por %p1030_p7, %p1029_p3 }
  0xe3   : > { %p1032_p12 = pnand %p1031_p9, %p1025_p8 }
  0xe5   : > { %1035 = shalt.err (!%p1032_p12)
}
  0xe6   : > { %813 = dma.vmem_to_hbm [thread:$0]  (%p1518_p0), %s1453_s5, 16, %s1458_s26, %s608_s11  }
  0xe7 PF: > { %s648_s29 = sand.u32 1, %s1070_s15   ;;  %p1519_p1 = scmp.ne.s32.totalorder %s1509_s22, 0 }
  0xe8   : > { %p1520_p13 = scmp.ge.s32.totalorder %s1082_s18, 2  ;;  %s649_s6 = scalar_lea.sflag [#allocation4], %s648_s29 }
  0xea   : > { %p828_p6 = pnand %p1520_p13, %p1519_p1 }
  0xec   : > { %1061 = dma.done.wait (!%p828_p6), %s649_s6, 128  }
  0xed   : > { %1063 = vsyncadd (!%p828_p6), %s649_s6, 4294967168  ;;  %s658_s24 = scalar_lea.sflag [#allocation10], %s648_s29 }
  0xee   : > { %1065 = dma.done.wait (!%p828_p6), %s658_s24, 16  }
  0xef   : > { %1067 = vsyncadd (!%p828_p6), %s658_s24, 4294967280  ;;  %p22_p0 = scmp.ge.s32.totalorder %s1232_s10, 4   ;;  %s1521_s15 = smov %s1074_s16 }
  0xf0   : > { %s1522_s16 = smov %s1078_s17  ;;  %s1523_s17 = smov %s1248_s20 }
  0xf1   : > { %s1524_s18 = smov %s1232_s10  ;;  %24 = sbr.rel (!%p22_p0) target bundleno = 8 (0x8), region = 104 }
  0xf8   :  { %662 = vsyncpa [#allocation3], 1 }
  0xf9   :  { %664 = vsyncpa [#allocation3 + $0x1], 1 }
  0xfa   :  { %665 = vsyncpa [#allocation6], 1 }
  0xfb   :  { %666 = vsyncpa [#allocation4], 1 }
  0xfc   :  { %668 = vsyncpa [#allocation4 + $0x1], 1 }
  0xfd   :  { %669 = vsyncpa [#allocation10], 1 }
  0xfe   :  { %671 = vsyncpa [#allocation10 + $0x1], 1 }

// kernel: _lambda_.34
= control target key start
LH: loop header
LB: loop body
LE: loop exit
PB: predicated region body
PF: predicated region fallthrough
CT: control target
= control target key end

     0   :  { %9 = vsyncpa [#allocation4], 0  ;;  %s1324_s0 = inlined_call_operand.hbm [shape: bf16[2,8,128], index: 0, kind: input, shape index: {}]   ;;  %s1325_s1 = inlined_call_operand.hbm [shape: bf16[128,128], index: 1, kind: input, shape index: {}]   ;;  %s1326_s2 = inlined_call_operand.hbm [shape: f32[1,128], index: 2, kind: input, shape index: {}]   ;;  %s1327_s3 = inlined_call_operand.hbm [shape: f32[2,1,128], index: 3, kind: input, shape index: {}]   ;;  %s1328_s4 = inlined_call_operand.hbm [shape: bf16[2,8,128], index: 4, kind: output, shape index: {}]  }
   0x1   :  { %11 = vsyncpa [#allocation4 + $0x1], 0 }
   0x2   :  { %12 = vsyncpa [#allocation7], 0 }
   0x3   :  { %13 = vsyncpa [#allocation10], 0 }
   0x4   :  { %15 = vsyncpa [#allocation10 + $0x1], 0 }
   0x5   :  { %16 = vsyncpa [#allocation5], 0 }
   0x6   :  { %18 = vsyncpa [#allocation5 + $0x1], 0  ;;  %s1029_s15 = smov 0   ;;  %s1031_s16 = smov 0  }
   0x7   :  { %s1033_s17 = smov 0   ;;  %s1035_s18 = smov 0  }
   0x8   :  { %s1037_s19 = smov 0   ;;  %s1039_s20 = smov 0  }
   0x9 LB: > { %s626_s21 = sadd.s32 4294967295, %s993_s20   ;;  %s627_s22 = sadd.s32 4294967294, %s993_s20   ;;  %s993_s20 = sphi %s1039_s20, %s24_s20   ;;  %s989_s19 = sphi %s1037_s19, %s1352_s19   ;;  %s985_s18 = sphi %s1035_s18, %s1351_s18   ;;  %s981_s17 = sphi %s1033_s17, %s1350_s17   ;;  %s977_s16 = sphi %s1031_s16, %s1349_s16   ;;  %s973_s15 = sphi %s1029_s15, %s1348_s15  }
   0xa   : > { %p74_p0 = scmp.ne.s32.totalorder %s977_s16, %s973_s15  ;;  %p1063_p1 = scmp.eq.s32.totalorder %s626_s21, 0 }
   0xb   : > { %p1067_p2 = scmp.eq.s32.totalorder %s626_s21, 1  ;;  %p190_p3 = scmp.eq.s32.totalorder %s627_s22, 1 }
   0xc   : > { %s1334_s23 = scalar_select %p1063_p1, 1, 0 }
   0xd   : > { %p1073_p4 = por %p1063_p1, %p74_p0  ;;  %p628_p5 = scmp.ge.s32.totalorder %s993_s20, 1 }
   0xe   : > { %p1078_p6 = por %p190_p3, %p74_p0  ;;  %p197_p7 = scmp.lt.s32.totalorder %s993_s20, 3 }
   0xf   : > { %s1336_s25 = scalar_select %p1073_p4, 1, 0 }
  0x10   : > { %s1337_s26 = scalar_select %p1078_p6, 1, 0 }
  0x11   : > { %p1083_p8 = pnand %p628_p5, %p197_p7  ;;  %s995_s28 = smov [#allocation6]  }
  0x12   : > { %s213_s29 = sshll.u32 %s995_s28, 4  ;;  %s996_s5 = smov [#allocation8]   ;;  %s1087_s29 = int_to_ptr.vmem [resolvable:$true] %s213_s29 }
  0x13   : > { %s1338_s27 = scalar_select %p1083_p8, 1, 0 }
  0x14   : > { %p697_p9 = pneg %p1083_p8  ;;  %s229_s6 = sshll.u32 %s996_s5, 4  ;;  %s1098_s6 = int_to_ptr.vmem [resolvable:$true] %s229_s6 }
  0x15   : > { %s787_s9 = scalar_lea.hbm %s1325_s1, 1024 }
  0x16   : > { %p1094_p11 = pnand %p697_p9, %p1063_p1  ;;  %p788_p12 = scmp.ne.s32.totalorder %s1325_s1, %s787_s9 }
  0x17   : > { %p794_p5 = scmp.lt.u32.totalorder %s787_s9, %s1325_s1 }
  0x18   : > { %p789_p13 = pneg %p1094_p11 }
  0x1a   : > { %p790_p0 = pnand %p789_p13, %p788_p12 }
  0x1c   : > { %p791_p3 = pneg %p790_p0 }
  0x1e   : > { %p796_p7 = pnand %p794_p5, %p791_p3 }
  0x20   : > { %799 = shalt.err (!%p796_p7)
}
  0x21   : > { %s800_s14 = scalar_lea.vmem %s1087_s29, 1024  ;;  %p808_p1 = scmp.lt.s32.totalorder %s1087_s29, %s1087_s29 }
  0x22   : > { %p801_p9 = scmp.ne.s32.totalorder %s1087_s29, %s800_s14  ;;  %p809_p12 = scmp.lt.s32.totalorder %s800_s14, %s800_s14 }
  0x24   : > { %p803_p10 = pnand %p801_p9, %p789_p13  ;;  %p810_p0 = por %p809_p12, %p808_p1 }
  0x26   : > { %p804_p6 = pneg %p803_p10 }
  0x28   : > { %p811_p4 = pnand %p810_p0, %p804_p6 }
  0x2a   : > { %814 = shalt.err (!%p811_p4)
}
  0x2b   : > { %s997_s21 = smov 64   ;;  %s998_s22 = smov 4  }
  0x2c   : > { %700 = dma.hbm_to_vmem [thread:$0]  (!%p1094_p11), %s1325_s1, 1024, %s1087_s29, [#allocation7], %s997_s21, %s997_s21, %s998_s22  }
  0x2d   : > { %s815_s9 = scalar_lea.hbm %s1326_s2, 16 }
  0x2e   : > { %p816_p1 = scmp.ne.s32.totalorder %s1326_s2, %s815_s9  ;;  %p822_p10 = scmp.lt.u32.totalorder %s815_s9, %s1326_s2 }
  0x30   : > { %p818_p4 = pnand %p816_p1, %p789_p13 }
  0x32   : > { %p819_p6 = pneg %p818_p4 }
  0x34   : > { %p824_p3 = pnand %p822_p10, %p819_p6 }
  0x36   : > { %827 = shalt.err (!%p824_p3)
}
  0x37   : > { %s828_s29 = scalar_lea.vmem %s1098_s6, 16  ;;  %s835_s14 = scalar_lea.vmem %s1098_s6, 32 }
  0x38   : > { %p829_p5 = scmp.ne.s32.totalorder %s1098_s6, %s828_s29  ;;  %p836_p12 = scmp.lt.s32.totalorder %s1098_s6, %s1098_s6 }
  0x39   : > { %p837_p0 = scmp.lt.s32.totalorder %s835_s14, %s828_s29 }
  0x3a   : > { %p831_p7 = pnand %p829_p5, %p789_p13 }
  0x3b   : > { %p838_p1 = por %p837_p0, %p836_p12 }
  0x3c   : > { %p832_p9 = pneg %p831_p7 }
  0x3e   : > { %p839_p4 = pnand %p838_p1, %p832_p9 }
  0x40   : > { %842 = shalt.err (!%p839_p4)
}
  0x41   : > { %703 = dma.hbm_to_vmem [thread:$0]  (!%p1094_p11), %s1326_s2, 16, %s1098_s6, [#allocation7]  }
  0x42   : > { %s50_s28 = sadd.s32 1, %s989_s19  ;;  %s61_s5 = sadd.s32 1, %s981_s17 }
  0x43   : > { %p52_p13 = scmp.ge.s32.totalorder %s50_s28, 2  ;;  %p68_p6 = scmp.ne.s32.totalorder %s981_s17, %s977_s16 }
  0x44   : > { %p69_p10 = scmp.eq.s32.totalorder %s993_s20, 0  ;;  %p717_p3 = scmp.lt.s32.totalorder %s993_s20, 2 }
  0x45   : > { %s1354_s28 = smov (%p52_p13, %s50_s28), 0  ;;  %p1163_p7 = por %p1067_p2, %p68_p6 }
  0x46   : > { %p70_p5 = por %p69_p10, %p68_p6  ;;  %s54_s7 = ssub.s32 %s989_s19, %s1354_s28 }
  0x47   : > { %s1340_s30 = scalar_select %p1163_p7, 1, 0 }
  0x48   : > { %s1170_s8 = sand.u32 1, %s981_s17   ;;  %p59_p11 = scmp.eq.s32.totalorder %s54_s7, 0 }
  0x49   : > { %s632_s6 = sshll.u32 %s1170_s8, 2  ;;  %s633_s9 = sshll.u32 %s989_s19, 6 }
  0x4a   : > { %s1175_s10 = scalar_select %p59_p11, %s981_s17, %s61_s5  }
  0x4b   : > { %s1180_s13 = scalar_lea.hbm %s1324_s0, %s633_s9  ;;  %s244_s24 = scalar_lea.vmem [#allocation3], %s632_s6 }
  0x4c   : > { %s253_s29 = sshll.u32 %s244_s24, 4  ;;  %p1184_p2 = pnand %p717_p3, %p70_p5  ;;  %s1188_s29 = int_to_ptr.vmem [resolvable:$true] %s253_s29 }
  0x4d   : > { %s241_s21 = scalar_lea.sflag [#allocation4], %s1170_s8  ;;  %s843_s22 = scalar_lea.hbm %s1180_s13, 64 }
  0x4e   : > { %p844_p9 = scmp.ne.s32.totalorder %s1180_s13, %s843_s22  ;;  %p845_p12 = pneg %p1184_p2 }
  0x4f   : > { %s848_s6 = scalar_lea.hbm %s1324_s0, 128  ;;  %p849_p4 = scmp.lt.u32.totalorder %s1180_s13, %s1324_s0 }
  0x50   : > { %p846_p0 = pnand %p845_p12, %p844_p9  ;;  %p850_p13 = scmp.lt.u32.totalorder %s848_s6, %s843_s22 }
  0x51   : > { %p852_p10 = scmp.lt.u32.totalorder %s843_s22, %s1180_s13 }
  0x52   : > { %p847_p1 = pneg %p846_p0  ;;  %p851_p6 = por %p850_p13, %p849_p4 }
  0x54   : > { %p853_p3 = por %p852_p10, %p851_p6 }
  0x56   : > { %p854_p5 = pnand %p853_p3, %p847_p1 }
  0x58   : > { %857 = shalt.err (!%p854_p5)
}
  0x59   : > { %s858_s12 = scalar_lea.vmem %s1188_s29, 64  ;;  %s999_s24 = smov [#allocation3]  }
  0x5a   : > { %p859_p11 = scmp.ne.s32.totalorder %s1188_s29, %s858_s12  ;;  %s863_s5 = sshll.u32 %s999_s24, 4  ;;  %s864_s5 = int_to_ptr.vmem [resolvable:$false] %s863_s5 }
  0x5b   : > { %s865_s7 = scalar_lea.vmem %s864_s5, 128  ;;  %p866_p7 = scmp.lt.s32.totalorder %s1188_s29, %s864_s5 }
  0x5c   : > { %p861_p9 = pnand %p859_p11, %p845_p12  ;;  %p867_p4 = scmp.lt.s32.totalorder %s865_s7, %s858_s12 }
  0x5e   : > { %p862_p0 = pneg %p861_p9  ;;  %p868_p13 = por %p867_p4, %p866_p7 }
  0x60   : > { %p869_p6 = pnand %p868_p13, %p862_p0 }
  0x62   : > { %872 = shalt.err (!%p869_p6)
}
  0x63   : > { %707 = dma.hbm_to_vmem [thread:$0]  (!%p1184_p2), %s1180_s13, 64, %s1188_s29, %s241_s21  }
  0x64   : > { %s634_s22 = sshll.u32 %s989_s19, 4  ;;  %s263_s6 = scalar_lea.vmem [#allocation9], %s1170_s8 }
  0x65   : > { %s271_s9 = sshll.u32 %s263_s6, 4  ;;  %s1221_s5 = scalar_lea.hbm %s1327_s3, %s634_s22  ;;  %s272_s9 = int_to_ptr.vmem [resolvable:$true] %s271_s9 }
  0x66   : > { %s261_s12 = scalar_lea.sflag [#allocation10], %s1170_s8  ;;  %s873_s7 = scalar_lea.hbm %s1221_s5, 16 }
  0x67   : > { %p874_p7 = scmp.ne.s32.totalorder %s1221_s5, %s873_s7  ;;  %s878_s21 = scalar_lea.hbm %s1327_s3, 32 }
  0x68   : > { %p879_p3 = scmp.lt.u32.totalorder %s1221_s5, %s1327_s3  ;;  %p880_p5 = scmp.lt.u32.totalorder %s878_s21, %s873_s7 }
  0x69   : > { %p876_p1 = pnand %p874_p7, %p845_p12  ;;  %p882_p9 = scmp.lt.u32.totalorder %s873_s7, %s1221_s5 }
  0x6a   : > { %p881_p11 = por %p880_p5, %p879_p3 }
  0x6b   : > { %p877_p10 = pneg %p876_p1 }
  0x6c   : > { %p883_p0 = por %p882_p9, %p881_p11 }
  0x6e   : > { %p884_p4 = pnand %p883_p0, %p877_p10 }
  0x70   : > { %887 = shalt.err (!%p884_p4)
}
  0x71   : > { %s888_s8 = scalar_lea.vmem %s272_s9, 16  ;;  %s1000_s22 = smov [#allocation9]  }
  0x72   : > { %p889_p13 = scmp.ne.s32.totalorder %s272_s9, %s888_s8  ;;  %s893_s24 = sshll.u32 %s1000_s22, 4  ;;  %s894_s24 = int_to_ptr.vmem [resolvable:$false] %s893_s24 }
  0x73   : > { %s895_s13 = scalar_lea.vmem %s894_s24, 32  ;;  %p896_p1 = scmp.lt.s32.totalorder %s272_s9, %s894_s24 }
  0x74   : > { %p891_p6 = pnand %p889_p13, %p845_p12  ;;  %p897_p8 = scmp.lt.s32.totalorder %s895_s13, %s888_s8 }
  0x76   : > { %p892_p7 = pneg %p891_p6  ;;  %p898_p3 = por %p897_p8, %p896_p1 }
  0x78   : > { %p899_p5 = pnand %p898_p3, %p892_p7 }
  0x7a   : > { %902 = shalt.err (!%p899_p5)
}
  0x7b   : > { %710 = dma.hbm_to_vmem [thread:$0]  (!%p1184_p2), %s1221_s5, 16, %s272_s9, %s261_s12  }
  0x7c   : > { %p1342_p10 = scmp.ne.s32.totalorder %s1338_s27, 0 }
  0x7d   : > { %s1246_s7 = sand.u32 (!%p1342_p10), 1, %s977_s16   ;;  %p1343_p8 = scmp.ne.s32.totalorder (!%p1342_p10), %s1336_s25, 0 }
  0x7e   : > { %280 = sbr.rel (%p1342_p10) target bundleno = 405 (0x195), region = 36  ;;  %s636_s29 = sshll.u32 (!%p1342_p10), %s1246_s7, 2 }
  0x7f   : > { %s283_s21 = scalar_lea.sflag (!%p1342_p10), [#allocation4], %s1246_s7  ;;  %s1252_s6 = scalar_lea.vmem (!%p1342_p10), [#allocation3], %s636_s29 }
  0x85   : > { %956 = dma.done.wait (%p1343_p8), %s283_s21, 64  }
  0x86   : > { %958 = vsyncadd (%p1343_p8), %s283_s21, 4294967232  ;;  %p1344_p2 = scmp.ne.s32.totalorder %s1334_s23, 0 }
  0x88   : > { %960 = dma.done.wait (%p1344_p2), [#allocation7], 1040  }
  0x89   : > { %962 = vsyncadd (%p1344_p2), [#allocation7], 4294966256  ;;  %s300_s27 = scalar_lea.sflag [#allocation10], %s1246_s7  ;;  %s302_s14 = scalar_lea.vmem [#allocation9], %s1246_s7 }
  0x8a   : > { %964 = dma.done.wait (%p1343_p8), %s300_s27, 16  }
  0x8b   : > { %966 = vsyncadd (%p1343_p8), %s300_s27, 4294967280  ;;  %v1001_v0 = vmov 0.0   ;;  %vm1002_vm0 = vmmov 0   ;;  %v775_v1 = vld [vmem:[#allocation6] sm:$0xff]   ;;  %v776_v2 = vld [vmem:[#allocation6 + $0x8] sm:$0xff]   ;;  %v350_v13 = vlaneseq  ;;  %s651_s23 = sshll.u32 %s985_s18, 6 }
  0x8c   : > { %663 = vmatprep.subr.bf16.mxu0 %v1001_v0  ;;  %679 = vmatprep.mubr.msk.bf16.mxu0 %vm1002_vm0, %v1001_v0  ;;  %v777_v3 = vld [vmem:[#allocation6 + $0x10] sm:$0xff]   ;;  %v339_v4 = vld [vmem:[%s302_s14] sm:$0x1]  ;;  %v779_v7 = vld [vmem:[#allocation6 + $0x20] sm:$0xff]   ;;  %s330_s25 = scalar_lea.vmem [#allocation11], %s636_s29  ;;  %s1275_s11 = scalar_lea.hbm %s1328_s4, %s651_s23 }
  0x8d   : > { %664 = vmatpush3.bf16.msra.mxu0 %v775_v1  ;;  %v640_v5 = vmul.f32 -1.442695, %v339_v4  ;;  %v778_v6 = vld [vmem:[#allocation6 + $0x18] sm:$0xff]   ;;  %v780_v8 = vld [vmem:[#allocation6 + $0x28] sm:$0xff]   ;;  %v781_v10 = vld [vmem:[#allocation6 + $0x30] sm:$0xff]   ;;  %v351_v14 = vshrl.u32 %v350_v13, 7 }
  0x8e   : > { %665 = vmatprep.subr.bf16.mxu0 %v1001_v0  ;;  %v782_v12 = vld [vmem:[#allocation6 + $0x38] sm:$0xff]   ;;  %v649_v22 = vld [vmem:[#allocation8] ss:$0 sm:$0xff]  ;;  %s492_s9 = sshll.u32 %s330_s25, 4  ;;  %s477_s18 = scalar_lea.sflag [#allocation5], %s1246_s7  ;;  %s1277_s9 = int_to_ptr.vmem [resolvable:$true] %s492_s9 }
  0x8f   : > { %783 = vpow2.f32 %v640_v5  ;;  %v352_v17 = vsub.s32 0, %v351_v14  ;;  %v338_v19 = vld [vmem:[%s1252_s6] sm:$0xf]  ;;  %s903_s8 = scalar_lea.vmem %s1277_s9, 64  ;;  %p1345_p11 = scmp.ne.s32.totalorder %s1340_s30, 0 }
  0x90   : > { %p904_p12 = scmp.ne.s32.totalorder %s1277_s9, %s903_s8  ;;  %s1003_s22 = smov [#allocation11]  }
  0x91   : > { %666 = vmatpush3.bf16.msra.mxu0 %v776_v2  ;;  %s907_s24 = sshll.u32 %s1003_s22, 4  ;;  %s908_s24 = int_to_ptr.vmem [resolvable:$false] %s907_s24 }
  0x92   : > { %667 = vmatprep.subr.bf16.mxu0 %v1001_v0  ;;  %p905_p9 = pnand %p904_p12, %p1345_p11  ;;  %s909_s13 = scalar_lea.vmem %s908_s24, 128 }
  0x93   : > { %p910_p4 = scmp.lt.s32.totalorder %s1277_s9, %s908_s24  ;;  %p911_p13 = scmp.lt.s32.totalorder %s909_s13, %s903_s8 }
  0x94   : > { %p906_p0 = pneg %p905_p9 }
  0x95   : > { %668 = vmatpush3.bf16.msra.mxu0 %v777_v3  ;;  %p912_p6 = por %p911_p13, %p910_p4 }
  0x96   : > { %669 = vmatprep.subr.bf16.mxu0 %v1001_v0 }
  0x97   : > { %p913_p7 = pnand %p912_p6, %p906_p0 }
  0x99   : > { %670 = vmatpush3.bf16.msra.mxu0 %v778_v6  ;;  %v784_v9 = vpop.eup %783 }
  0x9a   : > { %671 = vmatprep.subr.bf16.mxu0 %v1001_v0  ;;  %v343_v11 = vadd.f32 1.0, %v784_v9 }
  0x9c   : > { %785 = vrcp.f32 %v343_v11 }
  0x9d   : > { %672 = vmatpush3.bf16.msra.mxu0 %v779_v7 }
  0x9e   : > { %673 = vmatprep.subr.bf16.mxu0 %v1001_v0 }
  0xa1   : > { %674 = vmatpush3.bf16.msra.mxu0 %v780_v8 }
  0xa2   : > { %675 = vmatprep.subr.bf16.mxu0 %v1001_v0 }
  0xa5   : > { %676 = vmatpush3.bf16.msra.mxu0 %v781_v10 }
  0xa6   : > { %677 = vmatprep.subr.bf16.mxu0 %v1001_v0  ;;  %v786_v15 = vpop.eup %785 }
  0xa7   : > { %v346_v16 = vpack.c.bf16 %v786_v15, %v786_v15 }
  0xa9   : > { %678 = vmatpush3.bf16.msra.mxu0 %v782_v12  ;;  %v348_v18 = vpack.i.b16 %v346_v16, %v346_v16 }
  0xab   : > { %v353_v20 = vrot.slane %v348_v18, %v352_v17 }
  0xad   : > { %v354_v21 = vmul.bf16 %v353_v20, %v338_v19 }
  0xaf   : > { %680 = vmatmul.mubr.bf16.vlgmr.msra.gmra.mrb[0].mxu0 %v354_v21 }
 0x182   : > { %v454_v23 = vpop.f32.mrb[0].mxu0 }
 0x183   : > { %v473_v24 = vadd.f32 %v649_v22, %v454_v23  ;;  %v681_v25 = vpop.f32.mrb[1].mxu0 }
 0x184   : > { %v457_v26 = vpop.f32.mrb[2].mxu0 }
 0x185   : > { %v474_v27 = vpack.c.bf16 %v473_v24, %v473_v24  ;;  %v682_v28 = vpop.f32.mrb[3].mxu0 }
 0x187   : > { %475 = vst [vmem:[%s330_s25] sm:$0xf] %v474_v27 }
 0x188   : > { %916 = shalt.err (!%p913_p7)
}
 0x189   : > { %s917_s7 = scalar_lea.hbm %s1275_s11, 64  ;;  %s921_s6 = scalar_lea.hbm %s1328_s4, 128 }
 0x18a   : > { %p918_p1 = scmp.ne.s32.totalorder %s1275_s11, %s917_s7  ;;  %p922_p10 = scmp.lt.u32.totalorder %s1275_s11, %s1328_s4 }
 0x18b   : > { %p923_p8 = scmp.lt.u32.totalorder %s921_s6, %s917_s7  ;;  %p925_p12 = scmp.lt.u32.totalorder %s917_s7, %s1275_s11 }
 0x18c   : > { %p919_p3 = pnand %p918_p1, %p1345_p11 }
 0x18d   : > { %p924_p2 = por %p923_p8, %p922_p10 }
 0x18e   : > { %p920_p5 = pneg %p919_p3 }
 0x18f   : > { %p926_p9 = por %p925_p12, %p924_p2 }
 0x191   : > { %p927_p0 = pnand %p926_p9, %p920_p5 }
 0x193   : > { %930 = shalt.err (!%p927_p0)
}
 0x194   : > { %695 = dma.vmem_to_hbm [thread:$0]  (%p1345_p11), %s1277_s9, 64, %s1275_s11, %s477_s18  }
 0x195 PF: > { %s504_s23 = sand.u32 1, %s973_s15   ;;  %p1346_p4 = scmp.ne.s32.totalorder %s1337_s26, 0 }
 0x196   : > { %p1347_p13 = scmp.ge.s32.totalorder %s993_s20, 2  ;;  %s505_s25 = scalar_lea.sflag [#allocation5], %s504_s23 }
 0x198   : > { %p712_p6 = pnand %p1347_p13, %p1346_p4 }
 0x19a   : > { %968 = dma.done.wait (!%p712_p6), %s505_s25, 64  }
 0x19b   : > { %970 = vsyncadd (!%p712_p6), %s505_s25, 4294967232  ;;  %s24_s20 = sadd.s32 1, %s993_s20   ;;  %s1348_s15 = smov %s977_s16 }
 0x19c   : > { %p21_p7 = scmp.ge.s32.totalorder %s24_s20, 4   ;;  %s1349_s16 = smov %s981_s17 }
 0x19d   : > { %s1350_s17 = smov %s1175_s10  ;;  %s1351_s18 = smov %s989_s19 }
 0x19e   : > { %s1352_s19 = smov %s1354_s28  ;;  %23 = sbr.rel (!%p21_p7) target bundleno = 9 (0x9), region = 112 }
 0x1a5   :  { %510 = vsyncpa [#allocation4], 1 }
 0x1a6   :  { %512 = vsyncpa [#allocation4 + $0x1], 1 }
 0x1a7   :  { %513 = vsyncpa [#allocation7], 1 }
 0x1a8   :  { %514 = vsyncpa [#allocation10], 1 }
 0x1a9   :  { %516 = vsyncpa [#allocation10 + $0x1], 1 }
 0x1aa   :  { %517 = vsyncpa [#allocation5], 1 }
 0x1ab   :  { %519 = vsyncpa [#allocation5 + $0x1], 1 }

// kernel: _lambda_.36
= control target key start
LH: loop header
LB: loop body
LE: loop exit
PB: predicated region body
PF: predicated region fallthrough
CT: control target
= control target key end

     0   :  { %s270_s6 = smov 0   ;;  %s291_s0 = inlined_call_operand.vmem [shape: bf16[2,4,384], index: 0, kind: input, shape index: {}]   ;;  %s292_s1 = inlined_call_operand.vmem [shape: f32[2,1,384], index: 1, kind: output, shape index: {}]  }
   0x1 LB: > { %s232_s7 = sadd.s32 4294967295, %s257_s6   ;;  %p236_p0 = scmp.ge.s32.totalorder %s257_s6, 1  ;;  %s257_s6 = sphi %s270_s6, %s11_s6  }
   0x2   : > { %p87_p1 = scmp.lt.s32.totalorder %s257_s6, 3 }
   0x4   : > { %p88_p2 = pnand %p236_p0, %p87_p1 }
   0x5   : > { %p106_p3 = scmp.lt.s32.totalorder (!%p88_p2), %s232_s7, 1  ;;  %vm121_vm0 = vcmask (!%p88_p2), 1043456   ;;  %v154_v12 = vlaneseq (!%p88_p2)  ;;  %v259_v16 = vmov (!%p88_p2), 1966171168  }
   0x6   : > { %91 = sbr.rel (%p88_p2) target bundleno = 46 (0x2e), region = 24  ;;  %v152_v17 = vunpack.c.l.s4 (!%p88_p2), %v259_v16 }
   0x7   : > { %v155_v21 = vshrl.u32 (!%p88_p2), %v154_v12, 7  ;;  %vm176_vm1 = vcmp.lt.s32.totalorder (!%p88_p2), %v154_v12, 384 }
   0x8   : > { %v153_v25 = vunpack.c.0.s8 (!%p88_p2), %v152_v17 }
   0xa   : > { %v156_v32 = vsub.s32 (!%p88_p2), %v153_v25, %v155_v21 }
   0xd   : > { %s294_s7 = smov (!%p106_p3, %s232_s7), 1 }
   0xe   : > { %s240_s8 = smul.u32 6, %s294_s7 }
   0xf   : > { %s241_s12 = smul.u32 3, %s294_s7 }
  0x10   : > { %s110_s11 = scalar_lea.vmem %s291_s0, %s240_s8 }
  0x11   : > { %v115_v0 = vld [vmem:[%s110_s11] sm:$0x3f]  ;;  %s114_s15 = scalar_lea.vmem %s292_s1, %s241_s12 }
  0x12   : > { %v116_v1 = vunpack.c.l.bf16 %v115_v0  ;;  %v117_v2 = vunpack.c.h.bf16 %v115_v0 }
  0x14   : > { %v119_v3 = vcombine.high %v116_v1, %v116_v1  ;;  %v122_v4 = vsel %vm121_vm0, %v116_v1, 0.0  ;;  %v136_v5 = vsel %vm121_vm0, %v117_v2, 0.0 }
  0x15   : > { %v123_v6 = vrot.slane %v122_v4, 4  ;;  %v137_v7 = vrot.slane %v136_v5, 4 }
  0x16   : > { %v129_v8 = vsel %vm121_vm0, %v119_v3, 0.0 }
  0x17   : > { %v124_v9 = vadd.f32 %v123_v6, %v122_v4  ;;  %v130_v10 = vrot.slane %v129_v8, 4  ;;  %v138_v11 = vadd.f32 %v137_v7, %v136_v5 }
  0x19   : > { %v125_v13 = vrot.slane %v124_v9, 2  ;;  %v131_v14 = vadd.f32 %v130_v10, %v129_v8  ;;  %v139_v15 = vrot.slane %v138_v11, 2 }
  0x1b   : > { %v126_v18 = vadd.f32 %v125_v13, %v124_v9  ;;  %v132_v19 = vrot.slane %v131_v14, 2  ;;  %v140_v20 = vadd.f32 %v139_v15, %v138_v11 }
  0x1d   : > { %v127_v22 = vrot.slane %v126_v18, 1  ;;  %v133_v23 = vadd.f32 %v132_v19, %v131_v14  ;;  %v141_v24 = vrot.slane %v140_v20, 1 }
  0x1f   : > { %v128_v26 = vadd.f32 %v127_v22, %v126_v18  ;;  %v134_v27 = vrot.slane %v133_v23, 1  ;;  %v142_v28 = vadd.f32 %v141_v24, %v140_v20 }
  0x21   : > { %v135_v29 = vadd.f32 %v134_v27, %v133_v23  ;;  %v144_v30 = vmul.f32 0.25, %v128_v26  ;;  %v146_v31 = vmul.f32 0.25, %v142_v28 }
  0x23   : > { %v145_v33 = vmul.f32 0.25, %v135_v29  ;;  %v164_v35 = vrot.slane %v146_v31, %v156_v32 }
  0x25   : > { %v150_v34 = vcombine.low %v144_v30, %v145_v33 }
  0x27   : > { %v157_v36 = vrot.slane %v150_v34, %v156_v32 }
  0x29   : > { %v165_v37 = vcombine.low %v157_v36, %v164_v35 }
  0x2b   : > { %v172_v38 = vrot.slane %v165_v37, %v156_v32 }
  0x2d   : > { %178 = vst.msk [vmem:[%s114_s15] sm:$0x7] %vm176_vm1, %v172_v38 }
  0x2e PF: > { %s11_s6 = sadd.s32 1, %s257_s6  }
  0x2f   : > { %p8_p4 = scmp.ge.s32.totalorder %s11_s6, 4  }
  0x31   :  { %10 = sbr.rel (!%p8_p4) target bundleno = 1 (0x1), region = 54 }

// kernel: _lambda_.35
= control target key start
LH: loop header
LB: loop body
LE: loop exit
PB: predicated region body
PF: predicated region fallthrough
CT: control target
= control target key end

     0   :  { %8 = vsyncpa [#allocation4], 0  ;;  %s673_s0 = inlined_call_operand.hbm [shape: bf16[1,8,128], index: 0, kind: input, shape index: {}]   ;;  %s674_s1 = inlined_call_operand.hbm [shape: bf16[128,384], index: 1, kind: input, shape index: {}]   ;;  %s675_s2 = inlined_call_operand.hbm [shape: f32[1,384], index: 2, kind: input, shape index: {}]   ;;  %s676_s3 = inlined_call_operand.hbm [shape: bf16[1,8,384], index: 3, kind: output, shape index: {}]  }
   0x1   :  { %9 = vsyncpa [#allocation7], 0 }
   0x2   :  { %10 = vsyncpa [#allocation5], 0  ;;  %s596_s12 = smov [#allocation6]   ;;  %s502_s16 = scalar_lea.hbm %s674_s1, 3072 }
   0x3   :  { %s26_s13 = sshll.u32 %s596_s12, 4  ;;  %p503_p0 = scmp.ne.s32.totalorder %s674_s1, %s502_s16  ;;  %s27_s13 = int_to_ptr.vmem [resolvable:$true] %s26_s13 }
   0x4   :  { %p506_p1 = scmp.lt.u32.totalorder %s502_s16, %s674_s1 }
   0x6   :  { %p508_p2 = pnand %p506_p1, %p503_p0 }
   0x8   :  { %511 = shalt.err (!%p508_p2)
}
   0x9   :  { %s512_s21 = scalar_lea.vmem %s27_s13, 3072  ;;  %p517_p4 = scmp.lt.s32.totalorder %s27_s13, %s27_s13 }
   0xa   :  { %p513_p3 = scmp.ne.s32.totalorder %s27_s13, %s512_s21  ;;  %p518_p5 = scmp.lt.s32.totalorder %s512_s21, %s512_s21 }
   0xc   :  { %p519_p6 = por %p518_p5, %p517_p4 }
   0xe   :  { %p520_p7 = pnand %p519_p6, %p513_p3 }
  0x10   :  { %523 = shalt.err (!%p520_p7)
}
  0x11   :  { %s597_s22 = smov 192   ;;  %s598_s23 = smov 12  }
  0x12   :  { %32 = dma.hbm_to_vmem [thread:$0]  %s674_s1, 3072, %s27_s13, [#allocation7], %s597_s22, %s597_s22, %s598_s23  }
  0x13   :  { %s599_s26 = smov [#allocation3]   ;;  %s600_s28 = smov [#allocation8]  }
  0x14   :  { %s17_s27 = sshll.u32 %s599_s26, 4  ;;  %s39_s29 = sshll.u32 %s600_s28, 4  ;;  %s18_s27 = int_to_ptr.vmem [resolvable:$true] %s17_s27  ;;  %s40_s29 = int_to_ptr.vmem [resolvable:$true] %s39_s29 }
  0x15   :  { %s524_s5 = scalar_lea.hbm %s673_s0, 64 }
  0x16   :  { %p525_p8 = scmp.ne.s32.totalorder %s673_s0, %s524_s5  ;;  %p528_p9 = scmp.lt.u32.totalorder %s524_s5, %s673_s0 }
  0x18   :  { %p530_p10 = pnand %p528_p9, %p525_p8 }
  0x1a   :  { %533 = shalt.err (!%p530_p10)
}
  0x1b   :  { %s534_s1 = scalar_lea.vmem %s18_s27, 64  ;;  %p539_p12 = scmp.lt.s32.totalorder %s18_s27, %s18_s27 }
  0x1c   :  { %p535_p11 = scmp.ne.s32.totalorder %s18_s27, %s534_s1  ;;  %p540_p13 = scmp.lt.s32.totalorder %s534_s1, %s534_s1 }
  0x1e   :  { %p541_p0 = por %p540_p13, %p539_p12 }
  0x20   :  { %p542_p1 = pnand %p541_p0, %p535_p11 }
  0x22   :  { %545 = shalt.err (!%p542_p1)
}
  0x23   :  { %20 = dma.hbm_to_vmem [thread:$0]  %s673_s0, 64, %s18_s27, [#allocation4]  }
  0x24   :  { %s546_s14 = scalar_lea.hbm %s675_s2, 48 }
  0x25   :  { %p547_p2 = scmp.ne.s32.totalorder %s675_s2, %s546_s14  ;;  %p550_p3 = scmp.lt.u32.totalorder %s546_s14, %s675_s2 }
  0x27   :  { %p552_p4 = pnand %p550_p3, %p547_p2 }
  0x29   :  { %555 = shalt.err (!%p552_p4)
}
  0x2a   :  { %s556_s19 = scalar_lea.vmem %s40_s29, 48  ;;  %s560_s20 = scalar_lea.vmem %s40_s29, 64 }
  0x2b   :  { %p557_p5 = scmp.ne.s32.totalorder %s40_s29, %s556_s19  ;;  %p561_p6 = scmp.lt.s32.totalorder %s40_s29, %s40_s29 }
  0x2c   :  { %p562_p7 = scmp.lt.s32.totalorder %s560_s20, %s556_s19 }
  0x2e   :  { %p563_p8 = por %p562_p7, %p561_p6 }
  0x30   :  { %p564_p9 = pnand %p563_p8, %p557_p5 }
  0x32   :  { %567 = shalt.err (!%p564_p9)
}
  0x33   :  { %42 = dma.hbm_to_vmem [thread:$0]  %s675_s2, 48, %s40_s29, [#allocation7]  }
  0x34   :  { %590 = dma.done.wait [#allocation4], 64  }
  0x35   :  { %591 = vsyncadd [#allocation4], 4294967232 }
  0x36   :  { %592 = dma.done.wait [#allocation7], 3120  }
  0x37   :  { %593 = vsyncadd [#allocation7], 4294964176  ;;  %v601_v0 = vmov 0.0   ;;  %vm602_vm0 = vmmov 0   ;;  %v603_v1 = vmov 0   ;;  %v319_v27 = vlaneseq  ;;  %s604_s2 = smov [#allocation9]  }
  0x38   :  { %429 = vmatprep.subr.bf16.mxu1 %v601_v0  ;;  %445 = vmatprep.mubr.msk.bf16.mxu1 %vm602_vm0, %v601_v0  ;;  %v458_v2 = vld [vmem:[#allocation6 + $0x4] ss:$12 sps:$4 sm:$0xff]   ;;  %v460_v3 = vld [vmem:[#allocation6 + $0x8] ss:$12 sps:$4 sm:$0xff]   ;;  %v461_v4 = vld [vmem:[#allocation6] ss:$12 sps:$4 sm:$0xff]  }
  0x39   :  { %256 = vmatprep.mubr.bf16.mxu0 %v603_v1  ;;  %224 = vmatprep.subr.bf16.mxu0 %v458_v2  ;;  %v462_v5 = vld [vmem:[#allocation6 + $0x1c] ss:$12 sps:$4 sm:$0xff]   ;;  %v464_v6 = vld [vmem:[#allocation6 + $0x20] ss:$12 sps:$4 sm:$0xff]   ;;  %v465_v7 = vld [vmem:[#allocation6 + $0x18] ss:$12 sps:$4 sm:$0xff]  }
  0x3a   :  { %430 = vmatpush3.bf16.msra.mxu1 %v460_v3  ;;  %225 = vmatpush1.bf16.msra.mxu0 %v461_v4  ;;  %v466_v8 = vld [vmem:[#allocation6 + $0x34] ss:$12 sps:$4 sm:$0xff]   ;;  %v468_v9 = vld [vmem:[#allocation6 + $0x38] ss:$12 sps:$4 sm:$0xff]   ;;  %v469_v10 = vld [vmem:[#allocation6 + $0x30] ss:$12 sps:$4 sm:$0xff]  }
  0x3b   :  { %431 = vmatprep.subr.bf16.mxu1 %v601_v0  ;;  %226 = vmatprep.subr.bf16.mxu0 %v462_v5  ;;  %v470_v11 = vld [vmem:[#allocation6 + $0x4c] ss:$12 sps:$4 sm:$0xff]   ;;  %v472_v12 = vld [vmem:[#allocation6 + $0x50] ss:$12 sps:$4 sm:$0xff]   ;;  %v473_v13 = vld [vmem:[#allocation6 + $0x48] ss:$12 sps:$4 sm:$0xff]  }
  0x3c   :  { %v474_v14 = vld [vmem:[#allocation6 + $0x64] ss:$12 sps:$4 sm:$0xff]   ;;  %v476_v15 = vld [vmem:[#allocation6 + $0x68] ss:$12 sps:$4 sm:$0xff]   ;;  %v477_v16 = vld [vmem:[#allocation6 + $0x60] ss:$12 sps:$4 sm:$0xff]  }
  0x3d   :  { %v478_v17 = vld [vmem:[#allocation6 + $0x7c] ss:$12 sps:$4 sm:$0xff]   ;;  %v480_v18 = vld [vmem:[#allocation6 + $0x80] ss:$12 sps:$4 sm:$0xff]   ;;  %v481_v19 = vld [vmem:[#allocation6 + $0x78] ss:$12 sps:$4 sm:$0xff]  }
  0x3e   :  { %432 = vmatpush3.bf16.msra.mxu1 %v464_v6  ;;  %227 = vmatpush1.bf16.msra.mxu0 %v465_v7  ;;  %v482_v20 = vld [vmem:[#allocation6 + $0x94] ss:$12 sps:$4 sm:$0xff]   ;;  %v484_v21 = vld [vmem:[#allocation6 + $0x98] ss:$12 sps:$4 sm:$0xff]   ;;  %v485_v22 = vld [vmem:[#allocation6 + $0x90] ss:$12 sps:$4 sm:$0xff]  }
  0x3f   :  { %433 = vmatprep.subr.bf16.mxu1 %v601_v0  ;;  %228 = vmatprep.subr.bf16.mxu0 %v466_v8  ;;  %v486_v23 = vld [vmem:[#allocation6 + $0xac] ss:$12 sps:$4 sm:$0xff]   ;;  %v488_v24 = vld [vmem:[#allocation6 + $0xb0] ss:$12 sps:$4 sm:$0xff]   ;;  %v489_v25 = vld [vmem:[#allocation6 + $0xa8] ss:$12 sps:$4 sm:$0xff]  }
  0x40   :  { %v60_v26 = vld [vmem:[#allocation3] sm:$0xf]  ;;  %v320_v28 = vshrl.u32 %v319_v27, 7  ;;  %v317_v30 = vld [vmem:[#allocation8] sm:$0x7]  ;;  %s379_s22 = sshll.u32 %s604_s2, 4  ;;  %s380_s22 = int_to_ptr.vmem [resolvable:$true] %s379_s22 }
  0x41   :  { %s568_s23 = scalar_lea.vmem %s380_s22, 192  ;;  %p573_p11 = scmp.lt.s32.totalorder %s380_s22, %s380_s22 }
  0x42   :  { %434 = vmatpush3.bf16.msra.mxu1 %v468_v9  ;;  %229 = vmatpush1.bf16.msra.mxu0 %v469_v10  ;;  %v329_v29 = vsub.s32 2, %v320_v28  ;;  %v321_v31 = vsub.s32 0, %v320_v28  ;;  %v325_v32 = vsub.s32 1, %v320_v28  ;;  %p569_p10 = scmp.ne.s32.totalorder %s380_s22, %s568_s23  ;;  %p574_p12 = scmp.lt.s32.totalorder %s568_s23, %s568_s23 }
  0x43   :  { %435 = vmatprep.subr.bf16.mxu1 %v601_v0  ;;  %230 = vmatprep.subr.bf16.mxu0 %v470_v11 }
  0x44   :  { %v330_v33 = vrot.slane %v317_v30, %v329_v29  ;;  %v322_v34 = vrot.slane %v317_v30, %v321_v31  ;;  %v326_v35 = vrot.slane %v317_v30, %v325_v32  ;;  %p575_p13 = por %p574_p12, %p573_p11 }
  0x46   :  { %436 = vmatpush3.bf16.msra.mxu1 %v472_v12  ;;  %231 = vmatpush1.bf16.msra.mxu0 %v473_v13  ;;  %p576_p0 = pnand %p575_p13, %p569_p10 }
  0x47   :  { %437 = vmatprep.subr.bf16.mxu1 %v601_v0  ;;  %232 = vmatprep.subr.bf16.mxu0 %v474_v14 }
  0x4a   :  { %438 = vmatpush3.bf16.msra.mxu1 %v476_v15  ;;  %233 = vmatpush1.bf16.msra.mxu0 %v477_v16 }
  0x4b   :  { %439 = vmatprep.subr.bf16.mxu1 %v601_v0  ;;  %234 = vmatprep.subr.bf16.mxu0 %v478_v17 }
  0x4e   :  { %440 = vmatpush3.bf16.msra.mxu1 %v480_v18  ;;  %235 = vmatpush1.bf16.msra.mxu0 %v481_v19 }
  0x4f   :  { %441 = vmatprep.subr.bf16.mxu1 %v601_v0  ;;  %236 = vmatprep.subr.bf16.mxu0 %v482_v20 }
  0x52   :  { %442 = vmatpush3.bf16.msra.mxu1 %v484_v21  ;;  %237 = vmatpush1.bf16.msra.mxu0 %v485_v22 }
  0x53   :  { %443 = vmatprep.subr.bf16.mxu1 %v601_v0  ;;  %238 = vmatprep.subr.bf16.mxu0 %v486_v23 }
  0x56   :  { %444 = vmatpush3.bf16.msra.mxu1 %v488_v24  ;;  %239 = vmatpush1.bf16.msra.mxu0 %v489_v25 }
  0x59   :  { %446 = vmatmul.mubr.bf16.vlgmr.msra.gmra.mrb[0].mxu1 %v60_v26  ;;  %257 = vmatmul.mubr.bf16.vlgmr.msra.gmra.mrb[0].mxu0 %v60_v26 }
 0x12c   :  { %v299_v36 = vpop.f32.mrb[0].mxu1  ;;  %v258_v38 = vpop.f32.mrb[0].mxu0 }
 0x12d   :  { %v336_v37 = vadd.f32 %v330_v33, %v299_v36  ;;  %v447_v39 = vpop.f32.mrb[1].mxu1  ;;  %v334_v40 = vadd.f32 %v322_v34, %v258_v38  ;;  %v260_v41 = vpop.f32.mrb[1].mxu0 }
 0x12e   :  { %v302_v42 = vpop.f32.mrb[2].mxu1  ;;  %v335_v44 = vadd.f32 %v326_v35, %v260_v41  ;;  %v262_v45 = vpop.f32.mrb[2].mxu0 }
 0x12f   :  { %v415_v43 = vmul.f32 -1.442695, %v336_v37  ;;  %v448_v46 = vpop.f32.mrb[3].mxu1  ;;  %v413_v47 = vmul.f32 -1.442695, %v334_v40  ;;  %v263_v48 = vpop.f32.mrb[3].mxu0 }
 0x130   :  { %v414_v49 = vmul.f32 -1.442695, %v335_v44 }
 0x131   :  { %490 = vpow2.f32 %v415_v43 }
 0x132   :  { %492 = vpow2.f32 %v413_v47 }
 0x133   :  { %494 = vpow2.f32 %v414_v49 }
 0x13b   :  { %v491_v50 = vpop.eup %490 }
 0x13c   :  { %v493_v51 = vpop.eup %492  ;;  %v348_v52 = vadd.f32 1.0, %v491_v50 }
 0x13d   :  { %v495_v53 = vpop.eup %494  ;;  %v346_v54 = vadd.f32 1.0, %v493_v51 }
 0x13e   :  { %496 = vrcp.f32 %v348_v52  ;;  %v347_v55 = vadd.f32 1.0, %v495_v53 }
 0x13f   :  { %498 = vrcp.f32 %v346_v54 }
 0x140   :  { %500 = vrcp.f32 %v347_v55 }
 0x148   :  { %v497_v56 = vpop.eup %496 }
 0x149   :  { %v499_v57 = vpop.eup %498  ;;  %v357_v58 = vmul.f32 %v497_v56, %v336_v37 }
 0x14a   :  { %v501_v59 = vpop.eup %500  ;;  %v355_v60 = vmul.f32 %v499_v57, %v334_v40 }
 0x14b   :  { %v419_v61 = vpack.c.bf16 %v357_v58, %v357_v58  ;;  %v356_v62 = vmul.f32 %v501_v59, %v335_v44 }
 0x14d   :  { %372 = vst [vmem:[#allocation9 + $0x8] sm:$0xf] %v419_v61  ;;  %v418_v63 = vpack.c.bf16 %v356_v62, %v355_v60 }
 0x14f   :  { %371 = vst [vmem:[#allocation9] sm:$0xff] %v418_v63 }
 0x150   :  { %579 = shalt.err (!%p576_p0)
}
 0x151   :  { %s580_s26 = scalar_lea.hbm %s676_s3, 192 }
 0x152   :  { %p581_p1 = scmp.ne.s32.totalorder %s676_s3, %s580_s26  ;;  %p584_p2 = scmp.lt.u32.totalorder %s580_s26, %s676_s3 }
 0x154   :  { %p586_p3 = pnand %p584_p2, %p581_p1 }
 0x156   :  { %589 = shalt.err (!%p586_p3)
}
 0x157   :  { %382 = dma.vmem_to_hbm [thread:$0]  %s380_s22, 192, %s676_s3, [#allocation5]  }
 0x158   :  { %594 = dma.done.wait [#allocation5], 192  }
 0x159   :  { %595 = vsyncadd [#allocation5], 4294967104 }
 0x15a   :  { %386 = vsyncpa [#allocation4], 1 }
 0x15b   :  { %387 = vsyncpa [#allocation7], 1 }
 0x15c   :  { %388 = vsyncpa [#allocation5], 1 }

// kernel: _lambda_.32
= control target key start
LH: loop header
LB: loop body
LE: loop exit
PB: predicated region body
PF: predicated region fallthrough
CT: control target
= control target key end

     0   :  { %10 = vsyncpa [#allocation3], 0  ;;  %s1825_s0 = inlined_call_operand.hbm [shape: bf16[2,4,2,4,256], index: 0, kind: input, shape index: {}]   ;;  %s1826_s1 = inlined_call_operand.hbm [shape: bf16[25,128], index: 1, kind: input, shape index: {}]   ;;  %s1827_s2 = inlined_call_operand.hbm [shape: f32[1,128], index: 2, kind: input, shape index: {}]   ;;  %s1828_s3 = inlined_call_operand.hbm [shape: bf16[2,2,2,128], index: 3, kind: output, shape index: {0}]   ;;  %s1829_s4 = inlined_call_operand.hbm [shape: f32[2,1,128], index: 4, kind: output, shape index: {1}]  }
   0x1   :  { %12 = vsyncpa [#allocation3 + $0x1], 0 }
   0x2   :  { %13 = vsyncpa [#allocation6], 0 }
   0x3   :  { %14 = vsyncpa [#allocation4], 0 }
   0x4   :  { %16 = vsyncpa [#allocation4 + $0x1], 0 }
   0x5   :  { %17 = vsyncpa [#allocation10], 0 }
   0x6   :  { %19 = vsyncpa [#allocation10 + $0x1], 0  ;;  %s1357_s15 = smov 0   ;;  %s1359_s16 = smov 0  }
   0x7   :  { %s1361_s17 = smov 0   ;;  %s1363_s18 = smov 0  }
   0x8 LB: > { %s1378_s19 = sadd.s32 4294967295, %s1321_s18   ;;  %s955_s20 = sadd.s32 4294967294, %s1321_s18   ;;  %s1321_s18 = sphi %s1363_s18, %s1849_s18   ;;  %s1317_s17 = sphi %s1361_s17, %s1848_s17   ;;  %s1313_s16 = sphi %s1359_s16, %s1847_s16   ;;  %s1309_s15 = sphi %s1357_s15, %s1846_s15  }
   0x9   : > { %p45_p0 = scmp.ne.s32.totalorder %s1313_s16, %s1309_s15  ;;  %p1830_p1 = scmp.eq.s32.totalorder %s1378_s19, 0 }
   0xa   : > { %p117_p3 = scmp.eq.s32.totalorder %s955_s20, 1  ;;  %p956_p5 = scmp.ge.s32.totalorder %s1321_s18, 1 }
   0xb   : > { %p1387_p4 = por %p1830_p1, %p45_p0  ;;  %p150_p7 = scmp.lt.s32.totalorder %s1321_s18, 3 }
   0xc   : > { %p1392_p6 = por %p117_p3, %p45_p0  ;;  %s1323_s24 = smov [#allocation5]  }
   0xd   : > { %s1833_s21 = scalar_select %p1387_p4, 1, 0 }
   0xe   : > { %s1834_s22 = scalar_select %p1392_p6, 1, 0 }
   0xf   : > { %p1397_p8 = pnand %p956_p5, %p150_p7  ;;  %s162_s25 = sshll.u32 %s1323_s24, 4  ;;  %s1401_s25 = int_to_ptr.vmem [resolvable:$true] %s162_s25 }
  0x10   : > { %s1324_s27 = smov [#allocation7]   ;;  %s1133_s5 = scalar_lea.hbm %s1826_s1, 256 }
  0x11   : > { %p1063_p9 = pneg %p1397_p8  ;;  %s176_s28 = sshll.u32 %s1324_s27, 4  ;;  %s1412_s28 = int_to_ptr.vmem [resolvable:$true] %s176_s28 }
  0x12   : > { %p1134_p12 = scmp.ne.s32.totalorder %s1826_s1, %s1133_s5  ;;  %p1140_p5 = scmp.lt.u32.totalorder %s1133_s5, %s1826_s1 }
  0x13   : > { %p1408_p11 = pnand %p1063_p9, %p1830_p1 }
  0x15   : > { %p1135_p13 = pneg %p1408_p11 }
  0x17   : > { %p1136_p0 = pnand %p1135_p13, %p1134_p12 }
  0x19   : > { %p1137_p3 = pneg %p1136_p0 }
  0x1b   : > { %p1142_p7 = pnand %p1140_p5, %p1137_p3 }
  0x1d   : > { %1145 = shalt.err (!%p1142_p7)
}
  0x1e   : > { %s1146_s10 = scalar_lea.vmem %s1401_s25, 256  ;;  %p1154_p2 = scmp.lt.s32.totalorder %s1401_s25, %s1401_s25 }
  0x1f   : > { %p1147_p9 = scmp.ne.s32.totalorder %s1401_s25, %s1146_s10  ;;  %p1155_p12 = scmp.lt.s32.totalorder %s1146_s10, %s1146_s10 }
  0x21   : > { %p1149_p10 = pnand %p1147_p9, %p1135_p13  ;;  %p1156_p0 = por %p1155_p12, %p1154_p2 }
  0x23   : > { %p1150_p1 = pneg %p1149_p10 }
  0x25   : > { %p1157_p6 = pnand %p1156_p0, %p1150_p1 }
  0x27   : > { %1160 = shalt.err (!%p1157_p6)
}
  0x28   : > { %s1325_s11 = smov 64   ;;  %s1326_s12 = smov 4  }
  0x29   : > { %1066 = dma.hbm_to_vmem [thread:$0]  (!%p1408_p11), %s1826_s1, 256, %s1401_s25, [#allocation6], %s1325_s11, %s1325_s11, %s1326_s12  }
  0x2a   : > { %s1161_s27 = scalar_lea.hbm %s1827_s2, 16 }
  0x2b   : > { %p1162_p1 = scmp.ne.s32.totalorder %s1827_s2, %s1161_s27  ;;  %p1168_p10 = scmp.lt.u32.totalorder %s1161_s27, %s1827_s2 }
  0x2d   : > { %p1164_p2 = pnand %p1162_p1, %p1135_p13 }
  0x2f   : > { %p1165_p6 = pneg %p1164_p2 }
  0x31   : > { %p1170_p3 = pnand %p1168_p10, %p1165_p6 }
  0x33   : > { %1173 = shalt.err (!%p1170_p3)
}
  0x34   : > { %s1174_s25 = scalar_lea.vmem %s1412_s28, 16  ;;  %s1181_s7 = scalar_lea.vmem %s1412_s28, 32 }
  0x35   : > { %p1175_p5 = scmp.ne.s32.totalorder %s1412_s28, %s1174_s25  ;;  %p1182_p12 = scmp.lt.s32.totalorder %s1412_s28, %s1412_s28 }
  0x36   : > { %p1183_p0 = scmp.lt.s32.totalorder %s1181_s7, %s1174_s25 }
  0x37   : > { %p1177_p7 = pnand %p1175_p5, %p1135_p13 }
  0x38   : > { %p1184_p1 = por %p1183_p0, %p1182_p12 }
  0x39   : > { %p1178_p9 = pneg %p1177_p7 }
  0x3b   : > { %p1185_p2 = pnand %p1184_p1, %p1178_p9 }
  0x3d   : > { %1188 = shalt.err (!%p1185_p2)
}
  0x3e   : > { %1069 = dma.hbm_to_vmem [thread:$0]  (!%p1408_p11), %s1827_s2, 16, %s1412_s28, [#allocation6]  }
  0x3f   : > { %s1471_s10 = sadd.s32 1, %s1321_s18   ;;  %s32_s26 = sadd.s32 1, %s1317_s17 }
  0x40   : > { %s29_s13 = ssub.s32 %s1321_s18, %s1471_s10  ;;  %p39_p13 = scmp.ne.s32.totalorder %s1317_s17, %s1313_s16 }
  0x41   : > { %p30_p6 = scmp.eq.s32.totalorder %s29_s13, 0  ;;  %p40_p10 = scmp.eq.s32.totalorder %s1321_s18, 0 }
  0x42   : > { %p1837_p3 = scmp.eq.s32.totalorder %s1378_s19, 1  ;;  %p1083_p7 = scmp.lt.s32.totalorder %s1321_s18, 2 }
  0x43   : > { %s1487_s20 = scalar_select %p30_p6, %s1317_s17, %s32_s26  }
  0x44   : > { %p1481_p5 = por %p1837_p3, %p39_p13  ;;  %p41_p9 = por %p40_p10, %p39_p13 }
  0x45   : > { %s187_s24 = sand.u32 1, %s1317_s17   ;;  %s1047_s28 = sshll.u32 %s1321_s18, 9 }
  0x46   : > { %s1838_s14 = scalar_select %p1481_p5, 1, 0 }
  0x47   : > { %s960_s27 = sshll.u32 %s187_s24, 5  ;;  %s1494_s5 = scalar_lea.hbm %s1825_s0, %s1047_s28 }
  0x48   : > { %s191_s6 = scalar_lea.vmem [#allocation2], %s960_s27  ;;  %p1498_p11 = pnand %p1083_p7, %p41_p9 }
  0x49   : > { %s198_s25 = sshll.u32 %s191_s6, 4  ;;  %s1502_s8 = scalar_lea.sflag [#allocation3], %s187_s24  ;;  %s1496_s25 = int_to_ptr.vmem [resolvable:$true] %s198_s25 }
  0x4a   : > { %s1189_s9 = scalar_lea.hbm %s1494_s5, 512  ;;  %p1191_p0 = pneg %p1498_p11 }
  0x4b   : > { %p1190_p12 = scmp.ne.s32.totalorder %s1494_s5, %s1189_s9  ;;  %s1194_s27 = scalar_lea.hbm %s1825_s0, 1024 }
  0x4c   : > { %p1195_p13 = scmp.lt.u32.totalorder %s1494_s5, %s1825_s0  ;;  %p1196_p6 = scmp.lt.u32.totalorder %s1194_s27, %s1189_s9 }
  0x4d   : > { %p1192_p1 = pnand %p1191_p0, %p1190_p12  ;;  %p1198_p3 = scmp.lt.u32.totalorder %s1189_s9, %s1494_s5 }
  0x4e   : > { %p1197_p10 = por %p1196_p6, %p1195_p13 }
  0x4f   : > { %p1193_p2 = pneg %p1192_p1 }
  0x50   : > { %p1199_p7 = por %p1198_p3, %p1197_p10 }
  0x52   : > { %p1200_p9 = pnand %p1199_p7, %p1193_p2 }
  0x54   : > { %1203 = shalt.err (!%p1200_p9)
}
  0x55   : > { %s1204_s24 = scalar_lea.vmem %s1496_s25, 512  ;;  %s1327_s30 = smov [#allocation2]  }
  0x56   : > { %p1205_p12 = scmp.ne.s32.totalorder %s1496_s25, %s1204_s24  ;;  %s1209_s6 = sshll.u32 %s1327_s30, 4  ;;  %s1210_s6 = int_to_ptr.vmem [resolvable:$false] %s1209_s6 }
  0x57   : > { %s1211_s26 = scalar_lea.vmem %s1210_s6, 1024  ;;  %p1212_p4 = scmp.lt.s32.totalorder %s1496_s25, %s1210_s6 }
  0x58   : > { %p1207_p1 = pnand %p1205_p12, %p1191_p0  ;;  %p1213_p13 = scmp.lt.s32.totalorder %s1211_s26, %s1204_s24 }
  0x5a   : > { %p1208_p5 = pneg %p1207_p1  ;;  %p1214_p6 = por %p1213_p13, %p1212_p4 }
  0x5c   : > { %p1215_p10 = pnand %p1214_p6, %p1208_p5 }
  0x5e   : > { %1218 = shalt.err (!%p1215_p10)
}
  0x5f   : > { %1073 = dma.hbm_to_vmem [thread:$0]  (!%p1498_p11), %s1494_s5, 512, %s1496_s25, %s1502_s8, %s1325_s11, %s1325_s11, %s1326_s12  }
  0x60   : > { %210 = sbr.rel (%p1397_p8) target bundleno = 265 (0x109), region = 32  ;;  %s1536_s9 = sand.u32 (!%p1397_p8), 1, %s1313_s16  }
  0x61   : > { %s964_s13 = sshll.u32 (!%p1397_p8), %s1536_s9, 5  ;;  %s213_s27 = scalar_lea.sflag (!%p1397_p8), [#allocation3], %s1536_s9 }
  0x62   : > { %s1540_s28 = scalar_lea.vmem (!%p1397_p8), [#allocation2], %s964_s13  ;;  %p1840_p4 = scmp.ne.s32.totalorder (!%p1397_p8), %s1833_s21, 0 }
  0x67   : > { %1292 = dma.done.wait (%p1840_p4), %s213_s27, 512  }
  0x68   : > { %1294 = vsyncadd (%p1840_p4), %s213_s27, 4294966784  ;;  %p1841_p5 = scmp.eq.s32.totalorder %s1378_s19, 0 }
  0x6a   : > { %1296 = dma.done.wait (%p1841_p5), [#allocation6], 272   ;;  %p1842_p8 = pmov %p1841_p5 }
  0x6b   : > { %v259_v0 = vlaneseq  ;;  %v253_v3 = vld [vmem:[#allocation5] sm:$0x1]  ;;  %v284_v7 = vld [vmem:[#allocation5] sm:$0x2]  ;;  %v331_v12 = vld [vmem:[#allocation5] sm:$0x4] }
  0x6c   : > { %1298 = vsyncadd (%p1842_p8), [#allocation6], 4294967024  ;;  %v257_v5 = vpack.i.b16 %v253_v3, %v253_v3  ;;  %v271_v6 = vshrl.u32 %v253_v3, 16  ;;  %v254_v9 = vld [vmem:[%s1540_s28] sm:$0x1]  ;;  %v288_v10 = vpack.i.b16 %v284_v7, %v284_v7  ;;  %v310_v11 = vshrl.u32 %v284_v7, 16 }
  0x6d   : > { %v260_v1 = vshrl.u32 %v259_v0, 7  ;;  %v285_v16 = vld [vmem:[%s1540_s28] sm:$0x3]  ;;  %v335_v17 = vpack.i.b16 %v331_v12, %v331_v12  ;;  %v358_v18 = vshrl.u32 %v331_v12, 16  ;;  %v269_v19 = vld [vmem:[%s1540_s28 + $0x2] sm:$0x1] }
  0x6e   : > { %v272_v15 = vpack.i.b16 %v271_v6, %v271_v6  ;;  %v311_v21 = vpack.i.b16 %v310_v11, %v310_v11  ;;  %v332_v22 = vld [vmem:[%s1540_s28] sm:$0x2]  ;;  %v371_v23 = vld [vmem:[#allocation5] sm:$0x8]  ;;  %v410_v33 = vld [vmem:[#allocation5 + $0x4] sm:$0x1] }
  0x6f   : > { %v1550_v2 = vsub.s32 0, %v260_v1  ;;  %v1552_v4 = vsub.s32 1, %v260_v1  ;;  %v1554_v8 = vsub.s32 2, %v260_v1  ;;  %v1557_v13 = vsub.s32 3, %v260_v1  ;;  %v308_v26 = vld [vmem:[%s1540_s28 + $0x2] sm:$0x3] }
  0x70   : > { %v359_v28 = vpack.i.b16 %v358_v18, %v358_v18  ;;  %v375_v31 = vpack.i.b16 %v371_v23, %v371_v23  ;;  %v389_v32 = vshrl.u32 %v371_v23, 16  ;;  %v974_v40 = vld [vmem:[%s1540_s28 + $0x4] sm:$0x1]  ;;  %v976_v41 = vld [vmem:[%s1540_s28 + $0x6] sm:$0x1]  ;;  %v414_v47 = vpack.i.b16 %v410_v33, %v410_v33  ;;  %s967_s21 = sshll.u32 %s1536_s9, 1 }
  0x71   : > { %v1560_v14 = vrot.slane %v257_v5, %v1550_v2  ;;  %v1565_v20 = vrot.slane %v288_v10, %v1552_v4  ;;  %v1570_v25 = vrot.slane %v272_v15, %v1550_v2  ;;  %v1574_v27 = vrot.slane %v335_v17, %v1554_v8  ;;  %v978_v46 = vld [vmem:[%s1540_s28 + $0x4] sm:$0x3]  ;;  %v982_v51 = vld [vmem:[%s1540_s28 + $0x6] sm:$0x3]  ;;  %s246_s23 = scalar_lea.vmem [#allocation8], %s967_s21  ;;  %s1048_s12 = sshll.u32 %s1378_s19, 5 }
  0x72   : > { %v1578_v30 = vrot.slane %v311_v21, %v1552_v4  ;;  %v1583_v37 = vrot.slane %v359_v28, %v1554_v8  ;;  %v1589_v42 = vrot.slane %v375_v31, %v1557_v13  ;;  %v390_v43 = vpack.i.b16 %v389_v32, %v389_v32  ;;  %v457_v52 = vld [vmem:[#allocation5 + $0x4] sm:$0x2]  ;;  %v489_v57 = vld [vmem:[#allocation5 + $0x4] sm:$0x4]  ;;  %v536_v15 = vld [vmem:[#allocation5 + $0x4] sm:$0x8]  ;;  %s1750_s7 = scalar_lea.hbm %s1828_s3, %s1048_s12 }
  0x73   : > { %v263_v24 = vmul.bf16 %v1560_v14, %v254_v9  ;;  %v294_v29 = vmul.bf16 %v1565_v20, %v285_v16  ;;  %v278_v35 = vmul.bf16 %v1570_v25, %v269_v19  ;;  %v341_v36 = vmul.bf16 %v1574_v27, %v332_v22  ;;  %v986_v11 = vld [vmem:[%s1540_s28 + $0x4] sm:$0x2]  ;;  %s822_s11 = sshll.u32 %s246_s23, 4  ;;  %s805_s8 = scalar_lea.sflag [#allocation4], %s1536_s9  ;;  %s1745_s11 = int_to_ptr.vmem [resolvable:$true] %s822_s11 }
  0x74   : > { %v317_v39 = vmul.bf16 %v1578_v30, %v308_v26  ;;  %v1593_v50 = vrot.slane %v390_v43, %v1557_v13  ;;  %v365_v54 = vmul.bf16 %v974_v40, %v1583_v37  ;;  %v381_v55 = vmul.bf16 %v976_v41, %v1589_v42  ;;  %v994_v26 = vld [vmem:[%s1540_s28 + $0x8] sm:$0x3]  ;;  %v998_v41 = vld [vmem:[%s1540_s28 + $0xa] sm:$0x3]  ;;  %s1219_s29 = scalar_lea.vmem %s1745_s11, 32  ;;  %p1843_p0 = scmp.ne.s32.totalorder %s1838_s14, 0 }
  0x75   : > { %v265_v34 = vunpack.c.l.bf16 %v263_v24  ;;  %v296_v38 = vunpack.c.l.bf16 %v294_v29  ;;  %v280_v44 = vunpack.c.l.bf16 %v278_v35  ;;  %v343_v45 = vunpack.c.l.bf16 %v341_v36  ;;  %v990_v24 = vld [vmem:[%s1540_s28 + $0x8] sm:$0x1]  ;;  %p1220_p11 = scmp.ne.s32.totalorder %s1745_s11, %s1219_s29  ;;  %s1328_s24 = smov [#allocation8]  }
  0x76   : > { %v319_v49 = vunpack.c.l.bf16 %v317_v39  ;;  %v1599_v56 = vrot.slane %v414_v47, %v1550_v2  ;;  %v396_v60 = vmul.bf16 %v978_v46, %v1593_v50  ;;  %v436_v61 = vshrl.u32 %v410_v33, 16  ;;  %v576_v43 = vld [vmem:[#allocation5 + $0x8] sm:$0x1]  ;;  %s1223_s30 = sshll.u32 %s1328_s24, 4  ;;  %s1224_s30 = int_to_ptr.vmem [resolvable:$false] %s1223_s30 }
  0x77   : > { %v968_v48 = vrot.slane %v296_v38, 9  ;;  %v282_v53 = vadd.f32 %v280_v44, %v265_v34  ;;  %v972_v59 = vrot.slane %v343_v45, 10  ;;  %v462_v0 = vpack.i.b16 %v457_v52, %v457_v52  ;;  %v992_v34 = vld [vmem:[%s1540_s28 + $0xa] sm:$0x1]  ;;  %p1221_p2 = pnand %p1220_p11, %p1843_p0  ;;  %s1225_s6 = scalar_lea.vmem %s1224_s30, 64 }
  0x78   : > { %v970_v58 = vrot.slane %v319_v49, 9  ;;  %v420_v63 = vmul.bf16 %v982_v51, %v1599_v56  ;;  %v476_v1 = vshrl.u32 %v457_v52, 16  ;;  %v437_v3 = vpack.i.b16 %v436_v61, %v436_v61  ;;  %v1002_v51 = vld [vmem:[%s1540_s28 + $0x8] sm:$0x2]  ;;  %p1226_p7 = scmp.lt.s32.totalorder %s1745_s11, %s1224_s30  ;;  %p1227_p9 = scmp.lt.s32.totalorder %s1225_s6, %s1219_s29 }
  0x79   : > { %v306_v62 = vadd.f32 %v968_v48, %v282_v53  ;;  %v493_v5 = vpack.i.b16 %v489_v57, %v489_v57  ;;  %v515_v6 = vshrl.u32 %v489_v57, 16  ;;  %v367_v9 = vunpack.c.l.bf16 %v365_v54  ;;  %v615_v48 = vld [vmem:[#allocation5 + $0x8] sm:$0x2]  ;;  %p1222_p3 = pneg %p1221_p2 }
  0x7a   : > { %v398_v10 = vunpack.c.l.bf16 %v396_v60  ;;  %v477_v12 = vpack.i.b16 %v476_v1, %v476_v1  ;;  %v1605_v16 = vrot.slane %v437_v3, %v1550_v2  ;;  %v1608_v17 = vrot.slane %v462_v0, %v1552_v4  ;;  %p1228_p12 = por %p1227_p9, %p1226_p7 }
  0x7b   : > { %v329_v7 = vadd.f32 %v970_v58, %v306_v62  ;;  %v1611_v18 = vrot.slane %v493_v5, %v1554_v8  ;;  %v516_v19 = vpack.i.b16 %v515_v6, %v515_v6  ;;  %v383_v22 = vunpack.c.l.bf16 %v381_v55  ;;  %v662_v58 = vld [vmem:[#allocation5 + $0x8] sm:$0x4]  ;;  %v1014_v5 = vld [vmem:[%s1540_s28 + $0xe] sm:$0x3]  ;;  %v1006_v6 = vld [vmem:[%s1540_s28 + $0xc] sm:$0x1] }
  0x7c   : > { %v422_v23 = vunpack.c.l.bf16 %v420_v63  ;;  %v443_v28 = vmul.bf16 %v986_v11, %v1605_v16  ;;  %v1617_v29 = vrot.slane %v477_v12, %v1552_v4  ;;  %v540_v31 = vpack.i.b16 %v536_v15, %v536_v15  ;;  %p1229_p1 = pnand %p1228_p12, %p1222_p3 }
  0x7d   : > { %v353_v21 = vadd.f32 %v972_v59, %v329_v7  ;;  %v980_v33 = vrot.slane %v398_v10, 9  ;;  %v1621_v35 = vrot.slane %v516_v19, %v1554_v8  ;;  %v563_v36 = vshrl.u32 %v536_v15, 16 }
  0x7e   : > { %v445_v38 = vunpack.c.l.bf16 %v443_v28  ;;  %v468_v39 = vmul.bf16 %v990_v24, %v1608_v17  ;;  %v499_v40 = vmul.bf16 %v994_v26, %v1611_v18  ;;  %v984_v45 = vrot.slane %v422_v23, 9 }
  0x7f   : > { %v369_v32 = vadd.f32 %v367_v9, %v353_v21  ;;  %v1627_v46 = vrot.slane %v540_v31, %v1557_v13  ;;  %v564_v47 = vpack.i.b16 %v563_v36, %v563_v36  ;;  %v483_v49 = vmul.bf16 %v992_v34, %v1617_v29  ;;  %v1008_v21 = vld [vmem:[%s1540_s28 + $0xe] sm:$0x1]  ;;  %v694_v31 = vld [vmem:[#allocation5 + $0x8] sm:$0x8]  ;;  %v1018_v36 = vld [vmem:[%s1540_s28 + $0xc] sm:$0x2] }
  0x80   : > { %v580_v52 = vpack.i.b16 %v576_v43, %v576_v43  ;;  %v988_v54 = vrot.slane %v445_v38, 10  ;;  %v522_v55 = vmul.bf16 %v998_v41, %v1621_v35  ;;  %v594_v57 = vshrl.u32 %v576_v43, 16 }
  0x81   : > { %v385_v44 = vadd.f32 %v383_v22, %v369_v32  ;;  %v470_v59 = vunpack.c.l.bf16 %v468_v39  ;;  %v501_v60 = vunpack.c.l.bf16 %v499_v40  ;;  %v619_v61 = vpack.i.b16 %v615_v48, %v615_v48  ;;  %v1010_v22 = vld [vmem:[%s1540_s28 + $0xc] sm:$0x3] }
  0x82   : > { %v641_v62 = vshrl.u32 %v615_v48, 16  ;;  %v546_v0 = vmul.bf16 %v1002_v51, %v1627_v46  ;;  %v1634_v1 = vrot.slane %v564_v47, %v1557_v13  ;;  %v595_v3 = vpack.i.b16 %v594_v57, %v594_v57  ;;  %v255_v48 = vld [vmem:[%s1540_s28 + $0x8] sm:$0x1] }
  0x83   : > { %v408_v53 = vadd.f32 %v980_v33, %v385_v44  ;;  %v1639_v7 = vrot.slane %v580_v52, %v1550_v2  ;;  %v1642_v9 = vrot.slane %v619_v61, %v1552_v4  ;;  %v667_v11 = vpack.i.b16 %v662_v58, %v662_v58  ;;  %v270_v52 = vld [vmem:[%s1540_s28 + $0xa] sm:$0x1] }
  0x84   : > { %v642_v10 = vpack.i.b16 %v641_v62, %v641_v62  ;;  %v485_v15 = vunpack.c.l.bf16 %v483_v49  ;;  %v524_v19 = vunpack.c.l.bf16 %v522_v55  ;;  %v1647_v23 = vrot.slane %v595_v3, %v1550_v2  ;;  %v741_v62 = vld [vmem:[#allocation5 + $0xc] sm:$0x1] }
  0x85   : > { %v432_v63 = vadd.f32 %v984_v45, %v408_v53  ;;  %v996_v24 = vrot.slane %v501_v60, 9  ;;  %v625_v26 = vmul.bf16 %v1014_v5, %v1642_v9  ;;  %v548_v33 = vunpack.c.l.bf16 %v546_v0 }
  0x86   : > { %v1651_v28 = vrot.slane %v642_v10, %v1552_v4  ;;  %v570_v34 = vmul.bf16 %v1006_v6, %v1634_v1  ;;  %v681_v38 = vshrl.u32 %v662_v58, 16  ;;  %v586_v39 = vmul.bf16 %v1008_v21, %v1639_v7  ;;  %v1661_v4 = vld [vmem:[%s1540_s28 + $0x10] sm:$0x1]  ;;  %v286_v58 = vld [vmem:[%s1540_s28 + $0x8] sm:$0x3] }
  0x87   : > { %v455_v12 = vadd.f32 %v988_v54, %v432_v63  ;;  %v601_v40 = vmul.bf16 %v1010_v22, %v1647_v23  ;;  %v1658_v41 = vrot.slane %v667_v11, %v1554_v8  ;;  %v1000_v44 = vrot.slane %v524_v19, 9  ;;  %v309_v10 = vld [vmem:[%s1540_s28 + $0xa] sm:$0x3]  ;;  %v333_v11 = vld [vmem:[%s1540_s28 + $0x8] sm:$0x2] }
  0x88   : > { %v698_v45 = vpack.i.b16 %v694_v31, %v694_v31  ;;  %v720_v47 = vshrl.u32 %v694_v31, 16  ;;  %v1664_v49 = vunpack.c.l.bf16 %v625_v26  ;;  %v648_v51 = vmul.bf16 %v1018_v36, %v1651_v28  ;;  %v1026_v19 = vld [vmem:[%s1540_s28 + $0x10] sm:$0x3] }
  0x89   : > { %v472_v32 = vadd.f32 %v470_v59, %v455_v12  ;;  %v1004_v54 = vrot.slane %v548_v33, 10  ;;  %v572_v55 = vunpack.c.l.bf16 %v570_v34  ;;  %v682_v57 = vpack.i.b16 %v681_v38, %v681_v38  ;;  %v979_v38 = vld [vmem:[%s1540_s28 + $0xc] sm:$0x3] }
  0x8a   : > { %v588_v59 = vunpack.c.l.bf16 %v586_v39  ;;  %v603_v60 = vunpack.c.l.bf16 %v601_v40  ;;  %v673_v61 = vmul.bf16 %v1661_v4, %v1658_v41  ;;  %v264_v63 = vmul.bf16 %v1560_v14, %v255_v48  ;;  %v1030_v4 = vld [vmem:[%s1540_s28 + $0x12] sm:$0x3] }
  0x8b   : > { %v487_v43 = vadd.f32 %v485_v15, %v472_v32  ;;  %v1673_v3 = vrot.slane %v698_v45, %v1557_v13  ;;  %v721_v5 = vpack.i.b16 %v720_v47, %v720_v47  ;;  %v279_v6 = vmul.bf16 %v1570_v25, %v270_v52  ;;  %v975_v25 = vld [vmem:[%s1540_s28 + $0xc] sm:$0x1] }
  0x8c   : > { %v1016_v12 = vrot.slane %v1664_v49, 9  ;;  %v650_v15 = vunpack.c.l.bf16 %v648_v51  ;;  %v266_v21 = vunpack.c.l.bf16 %v264_v63  ;;  %v295_v22 = vmul.bf16 %v1565_v20, %v286_v58  ;;  %v1024_v20 = vld [vmem:[%s1540_s28 + $0x12] sm:$0x1]  ;;  %v983_v49 = vld [vmem:[%s1540_s28 + $0xe] sm:$0x3] }
  0x8d   : > { %v511_v53 = vadd.f32 %v996_v24, %v487_v43  ;;  %v1682_v24 = vrot.slane %v682_v57, %v1554_v8  ;;  %v745_v26 = vpack.i.b16 %v741_v62, %v741_v62  ;;  %v281_v31 = vunpack.c.l.bf16 %v279_v6 }
  0x8e   : > { %v1012_v32 = vrot.slane %v603_v60, 9  ;;  %v297_v33 = vunpack.c.l.bf16 %v295_v22  ;;  %v318_v34 = vmul.bf16 %v1578_v30, %v309_v10  ;;  %v342_v36 = vmul.bf16 %v1574_v27, %v333_v11 }
  0x8f   : > { %v534_v0 = vadd.f32 %v1000_v44, %v511_v53  ;;  %v704_v40 = vmul.bf16 %v1026_v19, %v1673_v3  ;;  %v1691_v8 = vrot.slane %v721_v5, %v1557_v13  ;;  %v283_v43 = vadd.f32 %v281_v31, %v266_v21  ;;  %v977_v44 = vld [vmem:[%s1540_s28 + $0xe] sm:$0x1]  ;;  %v995_v31 = vld [vmem:[%s1540_s28 + $0x10] sm:$0x3] }
  0x90   : > { %v969_v45 = vrot.slane %v297_v33, 9  ;;  %v320_v47 = vunpack.c.l.bf16 %v318_v34  ;;  %v344_v48 = vunpack.c.l.bf16 %v342_v36  ;;  %v366_v30 = vmul.bf16 %v975_v25, %v1583_v37  ;;  %v993_v34 = vld [vmem:[%s1540_s28 + $0x12] sm:$0x1] }
  0x91   : > { %v558_v14 = vadd.f32 %v1004_v54, %v534_v0  ;;  %v1020_v51 = vrot.slane %v650_v15, 10  ;;  %v1698_v52 = vrot.slane %v745_v26, %v1550_v2  ;;  %v397_v53 = vmul.bf16 %v979_v38, %v1593_v50  ;;  %v987_v54 = vld [vmem:[%s1540_s28 + $0xc] sm:$0x2]  ;;  %v999_v36 = vld [vmem:[%s1540_s28 + $0x12] sm:$0x3] }
  0x92   : > { %v307_v13 = vadd.f32 %v969_v45, %v283_v43  ;;  %v971_v57 = vrot.slane %v320_v47, 9  ;;  %v973_v58 = vrot.slane %v344_v48, 10  ;;  %v382_v60 = vmul.bf16 %v977_v44, %v1589_v42 }
  0x93   : > { %v574_v39 = vadd.f32 %v572_v55, %v558_v14  ;;  %v1034_v55 = vld [vmem:[%s1540_s28 + $0x10] sm:$0x2]  ;;  %v688_v63 = vmul.bf16 %v1024_v20, %v1682_v24  ;;  %v727_v37 = vmul.bf16 %v1030_v4, %v1691_v8  ;;  %v368_v0 = vunpack.c.l.bf16 %v366_v30 }
  0x94   : > { %v330_v2 = vadd.f32 %v971_v57, %v307_v13  ;;  %v399_v5 = vunpack.c.l.bf16 %v397_v53  ;;  %v444_v50 = vmul.bf16 %v987_v54, %v1605_v16  ;;  %v675_v10 = vunpack.c.l.bf16 %v673_v61  ;;  %v1003_v4 = vld [vmem:[%s1540_s28 + $0x10] sm:$0x2] }
  0x95   : > { %v590_v27 = vadd.f32 %v588_v59, %v574_v39  ;;  %v421_v59 = vmul.bf16 %v983_v49, %v1599_v56  ;;  %v706_v11 = vunpack.c.l.bf16 %v704_v40  ;;  %v751_v42 = vmul.bf16 %v1034_v55, %v1698_v52  ;;  %v991_v56 = vld [vmem:[%s1540_s28 + $0x10] sm:$0x1] }
  0x96   : > { %v354_v15 = vadd.f32 %v973_v58, %v330_v2  ;;  %v384_v19 = vunpack.c.l.bf16 %v382_v60  ;;  %v690_v14 = vunpack.c.l.bf16 %v688_v63  ;;  %v729_v26 = vunpack.c.l.bf16 %v727_v37  ;;  %v1719_v55 = vld [vmem:[#allocation7] ss:$0 sm:$0xff]  ;;  %v1009_v2 = vld [vmem:[%s1540_s28 + $0x16] sm:$0x1] }
  0x97   : > { %v613_v62 = vadd.f32 %v1012_v32, %v590_v27  ;;  %v423_v21 = vunpack.c.l.bf16 %v421_v59  ;;  %v981_v32 = vrot.slane %v399_v5, 9  ;;  %v446_v33 = vunpack.c.l.bf16 %v444_v50 }
  0x98   : > { %v370_v25 = vadd.f32 %v368_v0, %v354_v15  ;;  %v753_v61 = vunpack.c.l.bf16 %v751_v42  ;;  %v469_v20 = vmul.bf16 %v991_v56, %v1608_v17  ;;  %v500_v40 = vmul.bf16 %v995_v31, %v1611_v18  ;;  %v1015_v0 = vld [vmem:[%s1540_s28 + $0x16] sm:$0x3] }
  0x99   : > { %v637_v6 = vadd.f32 %v1016_v12, %v613_v62  ;;  %v1028_v12 = vrot.slane %v706_v11, 9  ;;  %v985_v39 = vrot.slane %v423_v21, 9  ;;  %v1032_v44 = vrot.slane %v729_v26, 9  ;;  %v1011_v62 = vld [vmem:[%s1540_s28 + $0x14] sm:$0x3] }
  0x9a   : > { %v386_v38 = vadd.f32 %v384_v19, %v370_v25  ;;  %v989_v47 = vrot.slane %v446_v33, 10  ;;  %v484_v48 = vmul.bf16 %v993_v34, %v1617_v29  ;;  %v523_v30 = vmul.bf16 %v999_v36, %v1621_v35  ;;  %v1007_v29 = vld [vmem:[%s1540_s28 + $0x14] sm:$0x1]  ;;  %v1019_v11 = vld [vmem:[%s1540_s28 + $0x14] sm:$0x2] }
  0x9b   : > { %v660_v22 = vadd.f32 %v1020_v51, %v637_v6  ;;  %v1036_v27 = vrot.slane %v753_v61, 10  ;;  %v471_v53 = vunpack.c.l.bf16 %v469_v20  ;;  %v502_v17 = vunpack.c.l.bf16 %v500_v40  ;;  %v1023_v25 = vld [vmem:[%s1540_s28 + $0x18] sm:$0x1]  ;;  %v1025_v61 = vld [vmem:[%s1540_s28 + $0x1a] sm:$0x1] }
  0x9c   : > { %v409_v45 = vadd.f32 %v981_v32, %v386_v38  ;;  %v547_v18 = vmul.bf16 %v1003_v4, %v1627_v46  ;;  %v486_v57 = vunpack.c.l.bf16 %v484_v48  ;;  %v525_v58 = vunpack.c.l.bf16 %v523_v30  ;;  %v1027_v32 = vld [vmem:[%s1540_s28 + $0x18] sm:$0x3] }
  0x9d   : > { %v677_v16 = vadd.f32 %v675_v10, %v660_v22  ;;  %v997_v63 = vrot.slane %v502_v17, 9  ;;  %v571_v46 = vmul.bf16 %v1007_v29, %v1634_v1  ;;  %v602_v6 = vmul.bf16 %v1011_v62, %v1647_v23 }
  0x9e   : > { %v433_v51 = vadd.f32 %v985_v39, %v409_v45  ;;  %v549_v37 = vunpack.c.l.bf16 %v547_v18  ;;  %v1001_v50 = vrot.slane %v525_v58, 9  ;;  %v587_v19 = vmul.bf16 %v1009_v2, %v1639_v7  ;;  %v1035_v39 = vld [vmem:[%s1540_s28 + $0x18] sm:$0x2] }
  0x9f   : > { %v692_v43 = vadd.f32 %v690_v14, %v677_v16  ;;  %v626_v21 = vmul.bf16 %v1015_v0, %v1642_v9  ;;  %v573_v14 = vunpack.c.l.bf16 %v571_v46  ;;  %v604_v26 = vunpack.c.l.bf16 %v602_v6  ;;  %v1031_v9 = vld [vmem:[%s1540_s28 + $0x1a] sm:$0x3] }
  0xa0   : > { %v456_v13 = vadd.f32 %v989_v47, %v433_v51  ;;  %v1005_v15 = vrot.slane %v549_v37, 10  ;;  %v649_v1 = vmul.bf16 %v1019_v11, %v1651_v28  ;;  %v589_v23 = vunpack.c.l.bf16 %v587_v19 }
  0xa1   : > { %v716_v49 = vadd.f32 %v1028_v12, %v692_v43  ;;  %v628_v31 = vunpack.c.l.bf16 %v626_v21  ;;  %v1013_v16 = vrot.slane %v604_v26, 9  ;;  %v674_v7 = vmul.bf16 %v1023_v25, %v1658_v41 }
  0xa2   : > { %v473_v35 = vadd.f32 %v471_v53, %v456_v13  ;;  %v651_v12 = vunpack.c.l.bf16 %v649_v1  ;;  %v705_v38 = vmul.bf16 %v1027_v32, %v1673_v3  ;;  %v689_v28 = vmul.bf16 %v1025_v61, %v1682_v24 }
  0xa3   : > { %v739_v54 = vadd.f32 %v1032_v44, %v716_v49  ;;  %v1017_v36 = vrot.slane %v628_v31, 9  ;;  %v728_v43 = vmul.bf16 %v1031_v9, %v1691_v8  ;;  %v676_v4 = vunpack.c.l.bf16 %v674_v7 }
  0xa4   : > { %v488_v5 = vadd.f32 %v486_v57, %v473_v35  ;;  %v1021_v40 = vrot.slane %v651_v12, 10  ;;  %v707_v48 = vunpack.c.l.bf16 %v705_v38  ;;  %v752_v41 = vmul.bf16 %v1035_v39, %v1698_v52 }
  0xa5   : > { %v763_v60 = vadd.f32 %v1036_v27, %v739_v54  ;;  %v691_v49 = vunpack.c.l.bf16 %v689_v28  ;;  %v730_v27 = vunpack.c.l.bf16 %v728_v43  ;;  %vm792_vm0 = vcmask 1041408  }
  0xa6   : > { %v512_v42 = vadd.f32 %v997_v63, %v488_v5  ;;  %v1029_v51 = vrot.slane %v707_v48, 9  ;;  %v754_v53 = vunpack.c.l.bf16 %v752_v41 }
  0xa7   : > { %v772_v59 = vadd.f32 %v1719_v55, %v763_v60  ;;  %v1033_v18 = vrot.slane %v730_v27, 9 }
  0xa8   : > { %v535_v22 = vadd.f32 %v1001_v50, %v512_v42  ;;  %v1037_v54 = vrot.slane %v754_v53, 10 }
  0xa9   : > { %v1039_v10 = vmul.f32 -1.442695, %v772_v59 }
  0xaa   : > { %v559_v56 = vadd.f32 %v1005_v15, %v535_v22 }
  0xab   : > { %1125 = vpow2.f32 %v1039_v10 }
  0xac   : > { %v575_v33 = vadd.f32 %v573_v14, %v559_v56 }
  0xae   : > { %v591_v34 = vadd.f32 %v589_v23, %v575_v33 }
  0xb0   : > { %v614_v20 = vadd.f32 %v1013_v16, %v591_v34 }
  0xb2   : > { %v638_v47 = vadd.f32 %v1017_v36, %v614_v20 }
  0xb4   : > { %v661_v30 = vadd.f32 %v1021_v40, %v638_v47 }
  0xb5   : > { %v1126_v44 = vpop.eup %1125 }
  0xb6   : > { %v780_v45 = vadd.f32 1.0, %v1126_v44  ;;  %v678_v3 = vadd.f32 %v676_v4, %v661_v30 }
  0xb8   : > { %1127 = vrcp.f32 %v780_v45  ;;  %v693_v17 = vadd.f32 %v691_v49, %v678_v3 }
  0xba   : > { %v717_v24 = vadd.f32 %v1029_v51, %v693_v17 }
  0xbc   : > { %v740_v8 = vadd.f32 %v1033_v18, %v717_v24 }
  0xbe   : > { %v764_v57 = vadd.f32 %v1037_v54, %v740_v8 }
  0xc0   : > { %v773_v60 = vadd.f32 %v1719_v55, %v764_v57 }
  0xc2   : > { %v1128_v13 = vpop.eup %1127  ;;  %v1040_v29 = vmul.f32 -1.442695, %v773_v60 }
  0xc3   : > { %v786_v58 = vmul.f32 %v1128_v13, %v772_v59 }
  0xc4   : > { %1129 = vpow2.f32 %v1040_v29 }
  0xc5   : > { %v788_v52 = vpack.c.bf16 %v786_v58, %v786_v58  ;;  %v793_v37 = vsel %vm792_vm0, %v786_v58, 0.0 }
  0xc7   : > { %790 = vst [vmem:[%s246_s23] sm:$0x1] %v788_v52 }
  0xce   : > { %v1130_v62 = vpop.eup %1129 }
  0xcf   : > { %v781_v35 = vadd.f32 1.0, %v1130_v62 }
  0xd1   : > { %1131 = vrcp.f32 %v781_v35 }
  0xdb   : > { %v1132_v63 = vpop.eup %1131 }
  0xdc   : > { %v787_v55 = vmul.f32 %v1132_v63, %v773_v60 }
  0xde   : > { %v789_v59 = vpack.c.bf16 %v787_v55, %v787_v55  ;;  %v794_v2 = vsel %vm792_vm0, %v787_v55, 0.0 }
  0xdf   : > { %v795_v0 = vadd.f32 %v794_v2, %v793_v37 }
  0xe0   : > { %791 = vst [vmem:[%s246_s23 + $0x1] sm:$0x1] %v789_v59 }
  0xe1   : > { %v796_v5 = vrot.slane %v795_v0, 4 }
  0xe2   : > { %1232 = shalt.err (!%p1229_p1)
}
  0xe3   : > { %s1233_s26 = scalar_lea.hbm %s1750_s7, 32  ;;  %s1237_s28 = scalar_lea.hbm %s1828_s3, 64 }
  0xe4   : > { %p1234_p13 = scmp.ne.s32.totalorder %s1750_s7, %s1233_s26  ;;  %p1238_p4 = scmp.lt.u32.totalorder %s1750_s7, %s1828_s3 }
  0xe5   : > { %p1239_p5 = scmp.lt.u32.totalorder %s1237_s28, %s1233_s26  ;;  %p1241_p11 = scmp.lt.u32.totalorder %s1233_s26, %s1750_s7 }
  0xe6   : > { %p1235_p6 = pnand %p1234_p13, %p1843_p0 }
  0xe7   : > { %p1240_p8 = por %p1239_p5, %p1238_p4 }
  0xe8   : > { %p1236_p10 = pneg %p1235_p6 }
  0xe9   : > { %p1242_p2 = por %p1241_p11, %p1240_p8 }
  0xeb   : > { %p1243_p3 = pnand %p1242_p2, %p1236_p10 }
  0xed   : > { %1246 = shalt.err (!%p1243_p3)
}
  0xee   : > { %s1329_s12 = smov 16   ;;  %s1330_s5 = smov 1   ;;  %v797_v50 = vadd.f32 %v796_v5, %v795_v0 }
  0xef   : > { %1059 = dma.vmem_to_hbm [thread:$0]  (%p1843_p0), %s1745_s11, 32, %s1750_s7, %s805_s8, %s1329_s12, %s1329_s12, %s1330_s5  }
  0xf0   : > { %v798_v46 = vrot.slane %v797_v50, 2  ;;  %s252_s25 = scalar_lea.vmem [#allocation9], %s1536_s9  ;;  %s1044_s24 = sshll.u32 %s1378_s19, 4 }
  0xf1   : > { %s838_s29 = sshll.u32 %s252_s25, 4  ;;  %s1783_s26 = scalar_lea.hbm %s1829_s4, %s1044_s24  ;;  %s1778_s29 = int_to_ptr.vmem [resolvable:$true] %s838_s29 }
  0xf2   : > { %v799_v6 = vadd.f32 %v798_v46, %v797_v50  ;;  %s810_s11 = scalar_lea.sflag [#allocation10], %s1536_s9  ;;  %s1247_s7 = scalar_lea.vmem %s1778_s29, 16 }
  0xf3   : > { %p1248_p7 = scmp.ne.s32.totalorder %s1778_s29, %s1247_s7  ;;  %s1331_s19 = smov [#allocation9]  }
  0xf4   : > { %v800_v10 = vrot.slane %v799_v6, 1  ;;  %s1251_s8 = sshll.u32 %s1331_s19, 4  ;;  %s1252_s8 = int_to_ptr.vmem [resolvable:$false] %s1251_s8 }
  0xf5   : > { %p1249_p9 = pnand %p1248_p7, %p1843_p0  ;;  %s1253_s13 = scalar_lea.vmem %s1252_s8, 32 }
  0xf6   : > { %v801_v11 = vadd.f32 %v800_v10, %v799_v6  ;;  %p1254_p1 = scmp.lt.s32.totalorder %s1778_s29, %s1252_s8  ;;  %p1255_p13 = scmp.lt.s32.totalorder %s1253_s13, %s1247_s7 }
  0xf7   : > { %p1250_p12 = pneg %p1249_p9 }
  0xf8   : > { %v802_v42 = vmul.f32 0.25, %v801_v11  ;;  %p1256_p6 = por %p1255_p13, %p1254_p1 }
  0xfa   : > { %803 = vst [vmem:[%s252_s25] sm:$0x1] %v802_v42  ;;  %p1257_p10 = pnand %p1256_p6, %p1250_p12 }
  0xfc   : > { %1260 = shalt.err (!%p1257_p10)
}
  0xfd   : > { %s1261_s9 = scalar_lea.hbm %s1783_s26, 16  ;;  %s1265_s21 = scalar_lea.hbm %s1829_s4, 32 }
  0xfe   : > { %p1262_p4 = scmp.ne.s32.totalorder %s1783_s26, %s1261_s9  ;;  %p1266_p11 = scmp.lt.u32.totalorder %s1783_s26, %s1829_s4 }
  0xff   : > { %p1267_p2 = scmp.lt.u32.totalorder %s1265_s21, %s1261_s9  ;;  %p1269_p7 = scmp.lt.u32.totalorder %s1261_s9, %s1783_s26 }
 0x100   : > { %p1263_p5 = pnand %p1262_p4, %p1843_p0 }
 0x101   : > { %p1268_p3 = por %p1267_p2, %p1266_p11 }
 0x102   : > { %p1264_p8 = pneg %p1263_p5 }
 0x103   : > { %p1270_p9 = por %p1269_p7, %p1268_p3 }
 0x105   : > { %p1271_p12 = pnand %p1270_p9, %p1264_p8 }
 0x107   : > { %1274 = shalt.err (!%p1271_p12)
}
 0x108   : > { %1060 = dma.vmem_to_hbm [thread:$0]  (%p1843_p0), %s1778_s29, 16, %s1783_s26, %s810_s11  }
 0x109 PF: > { %s850_s5 = sand.u32 1, %s1309_s15   ;;  %p1844_p1 = scmp.ne.s32.totalorder %s1834_s22, 0 }
 0x10a   : > { %p1845_p13 = scmp.ge.s32.totalorder %s1321_s18, 2  ;;  %s851_s25 = scalar_lea.sflag [#allocation4], %s850_s5 }
 0x10c   : > { %p1075_p6 = pnand %p1845_p13, %p1844_p1 }
 0x10e   : > { %1300 = dma.done.wait (!%p1075_p6), %s851_s25, 32  }
 0x10f   : > { %1302 = vsyncadd (!%p1075_p6), %s851_s25, 4294967264  ;;  %s860_s24 = scalar_lea.sflag [#allocation10], %s850_s5 }
 0x110   : > { %1304 = dma.done.wait (!%p1075_p6), %s860_s24, 16  }
 0x111   : > { %1306 = vsyncadd (!%p1075_p6), %s860_s24, 4294967280  ;;  %p22_p0 = scmp.ge.s32.totalorder %s1471_s10, 4   ;;  %s1846_s15 = smov %s1313_s16 }
 0x112   : > { %s1847_s16 = smov %s1317_s17  ;;  %s1848_s17 = smov %s1487_s20 }
 0x113   : > { %s1849_s18 = smov %s1471_s10  ;;  %24 = sbr.rel (!%p22_p0) target bundleno = 8 (0x8), region = 106 }
 0x11a   :  { %864 = vsyncpa [#allocation3], 1 }
 0x11b   :  { %866 = vsyncpa [#allocation3 + $0x1], 1 }
 0x11c   :  { %867 = vsyncpa [#allocation6], 1 }
 0x11d   :  { %868 = vsyncpa [#allocation4], 1 }
 0x11e   :  { %870 = vsyncpa [#allocation4 + $0x1], 1 }
 0x11f   :  { %871 = vsyncpa [#allocation10], 1 }
 0x120   :  { %873 = vsyncpa [#allocation10 + $0x1], 1 }

// kernel: _lambda_.37
= control target key start
LH: loop header
LB: loop body
LE: loop exit
PB: predicated region body
PF: predicated region fallthrough
CT: control target
= control target key end

     0   :  { %8 = vsyncpa [#allocation4], 0  ;;  %s659_s0 = inlined_call_operand.hbm [shape: bf16[1,8,384], index: 0, kind: input, shape index: {}]   ;;  %s660_s1 = inlined_call_operand.hbm [shape: bf16[384,128], index: 1, kind: input, shape index: {}]   ;;  %s661_s2 = inlined_call_operand.hbm [shape: f32[1,128], index: 2, kind: input, shape index: {}]   ;;  %s662_s3 = inlined_call_operand.hbm [shape: f32[1,8,128], index: 3, kind: output, shape index: {}]  }
   0x1   :  { %9 = vsyncpa [#allocation7], 0 }
   0x2   :  { %10 = vsyncpa [#allocation5], 0  ;;  %s583_s12 = smov [#allocation6]   ;;  %s489_s16 = scalar_lea.hbm %s660_s1, 3072 }
   0x3   :  { %s26_s13 = sshll.u32 %s583_s12, 4  ;;  %p490_p0 = scmp.ne.s32.totalorder %s660_s1, %s489_s16  ;;  %s27_s13 = int_to_ptr.vmem [resolvable:$true] %s26_s13 }
   0x4   :  { %p493_p1 = scmp.lt.u32.totalorder %s489_s16, %s660_s1 }
   0x6   :  { %p495_p2 = pnand %p493_p1, %p490_p0 }
   0x8   :  { %498 = shalt.err (!%p495_p2)
}
   0x9   :  { %s499_s21 = scalar_lea.vmem %s27_s13, 3072  ;;  %p504_p4 = scmp.lt.s32.totalorder %s27_s13, %s27_s13 }
   0xa   :  { %p500_p3 = scmp.ne.s32.totalorder %s27_s13, %s499_s21  ;;  %p505_p5 = scmp.lt.s32.totalorder %s499_s21, %s499_s21 }
   0xc   :  { %p506_p6 = por %p505_p5, %p504_p4 }
   0xe   :  { %p507_p7 = pnand %p506_p6, %p500_p3 }
  0x10   :  { %510 = shalt.err (!%p507_p7)
}
  0x11   :  { %s584_s22 = smov 64   ;;  %s585_s23 = smov 4  }
  0x12   :  { %32 = dma.hbm_to_vmem [thread:$0]  %s660_s1, 3072, %s27_s13, [#allocation7], %s584_s22, %s584_s22, %s585_s23  }
  0x13   :  { %s586_s26 = smov [#allocation3]   ;;  %s587_s28 = smov [#allocation8]  }
  0x14   :  { %s17_s27 = sshll.u32 %s586_s26, 4  ;;  %s39_s29 = sshll.u32 %s587_s28, 4  ;;  %s18_s27 = int_to_ptr.vmem [resolvable:$true] %s17_s27  ;;  %s40_s29 = int_to_ptr.vmem [resolvable:$true] %s39_s29 }
  0x15   :  { %s511_s5 = scalar_lea.hbm %s659_s0, 192 }
  0x16   :  { %p512_p8 = scmp.ne.s32.totalorder %s659_s0, %s511_s5  ;;  %p515_p9 = scmp.lt.u32.totalorder %s511_s5, %s659_s0 }
  0x18   :  { %p517_p10 = pnand %p515_p9, %p512_p8 }
  0x1a   :  { %520 = shalt.err (!%p517_p10)
}
  0x1b   :  { %s521_s1 = scalar_lea.vmem %s18_s27, 192  ;;  %p526_p12 = scmp.lt.s32.totalorder %s18_s27, %s18_s27 }
  0x1c   :  { %p522_p11 = scmp.ne.s32.totalorder %s18_s27, %s521_s1  ;;  %p527_p13 = scmp.lt.s32.totalorder %s521_s1, %s521_s1 }
  0x1e   :  { %p528_p0 = por %p527_p13, %p526_p12 }
  0x20   :  { %p529_p1 = pnand %p528_p0, %p522_p11 }
  0x22   :  { %532 = shalt.err (!%p529_p1)
}
  0x23   :  { %20 = dma.hbm_to_vmem [thread:$0]  %s659_s0, 192, %s18_s27, [#allocation4]  }
  0x24   :  { %s533_s14 = scalar_lea.hbm %s661_s2, 16 }
  0x25   :  { %p534_p2 = scmp.ne.s32.totalorder %s661_s2, %s533_s14  ;;  %p537_p3 = scmp.lt.u32.totalorder %s533_s14, %s661_s2 }
  0x27   :  { %p539_p4 = pnand %p537_p3, %p534_p2 }
  0x29   :  { %542 = shalt.err (!%p539_p4)
}
  0x2a   :  { %s543_s19 = scalar_lea.vmem %s40_s29, 16  ;;  %s547_s20 = scalar_lea.vmem %s40_s29, 32 }
  0x2b   :  { %p544_p5 = scmp.ne.s32.totalorder %s40_s29, %s543_s19  ;;  %p548_p6 = scmp.lt.s32.totalorder %s40_s29, %s40_s29 }
  0x2c   :  { %p549_p7 = scmp.lt.s32.totalorder %s547_s20, %s543_s19 }
  0x2e   :  { %p550_p8 = por %p549_p7, %p548_p6 }
  0x30   :  { %p551_p9 = pnand %p550_p8, %p544_p5 }
  0x32   :  { %554 = shalt.err (!%p551_p9)
}
  0x33   :  { %42 = dma.hbm_to_vmem [thread:$0]  %s661_s2, 16, %s40_s29, [#allocation7]  }
  0x34   :  { %577 = dma.done.wait [#allocation4], 192  }
  0x35   :  { %578 = vsyncadd [#allocation4], 4294967104 }
  0x36   :  { %579 = dma.done.wait [#allocation7], 3088  }
  0x37   :  { %580 = vsyncadd [#allocation7], 4294964208  ;;  %v588_v0 = vmov 0.0   ;;  %vm589_vm0 = vmmov 0   ;;  %v462_v1 = vld [vmem:[#allocation6 + $0x40] sm:$0xff]   ;;  %v465_v4 = vld [vmem:[#allocation6 + $0x48] sm:$0xff]  }
  0x38   :  { %434 = vmatprep.subr.bf16.mxu1 %v588_v0  ;;  %450 = vmatprep.mubr.msk.bf16.mxu1 %vm589_vm0, %v588_v0  ;;  %v463_v2 = vld [vmem:[#allocation6] sm:$0xff]   ;;  %v466_v5 = vld [vmem:[#allocation6 + $0x8] sm:$0xff]   ;;  %v468_v7 = vld [vmem:[#allocation6 + $0x50] sm:$0xff]   ;;  %s590_s2 = smov [#allocation9]  }
  0x39   :  { %403 = vmatprep.subr.bf16.mxu0 %v462_v1  ;;  %v464_v3 = vld [vmem:[#allocation6 + $0x80] sm:$0xff]   ;;  %v467_v6 = vld [vmem:[#allocation6 + $0x88] sm:$0xff]   ;;  %v469_v8 = vld [vmem:[#allocation6 + $0x10] sm:$0xff]   ;;  %s365_s22 = sshll.u32 %s590_s2, 4  ;;  %s366_s22 = int_to_ptr.vmem [resolvable:$true] %s365_s22 }
  0x3a   :  { %404 = vmatpush3.bf16.msra.mxu0 %v463_v2  ;;  %435 = vmatpush3.bf16.msra.mxu1 %v464_v3  ;;  %v470_v9 = vld [vmem:[#allocation6 + $0x90] sm:$0xff]   ;;  %v471_v10 = vld [vmem:[#allocation6 + $0x58] sm:$0xff]   ;;  %v474_v13 = vld [vmem:[#allocation6 + $0x60] sm:$0xff]   ;;  %s555_s23 = scalar_lea.vmem %s366_s22, 128  ;;  %p560_p11 = scmp.lt.s32.totalorder %s366_s22, %s366_s22 }
  0x3b   :  { %405 = vmatprep.subr.bf16.mxu0 %v465_v4  ;;  %436 = vmatprep.subr.bf16.mxu1 %v588_v0  ;;  %v472_v11 = vld [vmem:[#allocation6 + $0x18] sm:$0xff]   ;;  %v475_v14 = vld [vmem:[#allocation6 + $0x20] sm:$0xff]   ;;  %v477_v16 = vld [vmem:[#allocation6 + $0x68] sm:$0xff]   ;;  %p556_p10 = scmp.ne.s32.totalorder %s366_s22, %s555_s23  ;;  %p561_p12 = scmp.lt.s32.totalorder %s555_s23, %s555_s23 }
  0x3c   :  { %v473_v12 = vld [vmem:[#allocation6 + $0x98] sm:$0xff]   ;;  %v476_v15 = vld [vmem:[#allocation6 + $0xa0] sm:$0xff]   ;;  %v478_v17 = vld [vmem:[#allocation6 + $0x28] sm:$0xff]  }
  0x3d   :  { %v479_v18 = vld [vmem:[#allocation6 + $0xa8] sm:$0xff]   ;;  %v480_v19 = vld [vmem:[#allocation6 + $0x70] sm:$0xff]   ;;  %v483_v22 = vld [vmem:[#allocation6 + $0x78] sm:$0xff]   ;;  %p562_p13 = por %p561_p12, %p560_p11 }
  0x3e   :  { %406 = vmatpush3.bf16.msra.mxu0 %v466_v5  ;;  %437 = vmatpush3.bf16.msra.mxu1 %v467_v6  ;;  %v481_v20 = vld [vmem:[#allocation6 + $0x30] sm:$0xff]   ;;  %v484_v25 = vld [vmem:[#allocation6 + $0x38] sm:$0xff]   ;;  %v402_v37 = vld [vmem:[#allocation8] ss:$0 sm:$0xff] }
  0x3f   :  { %407 = vmatprep.subr.bf16.mxu0 %v468_v7  ;;  %438 = vmatprep.subr.bf16.mxu1 %v588_v0  ;;  %v482_v21 = vld [vmem:[#allocation6 + $0xb0] sm:$0xff]   ;;  %v485_v26 = vld [vmem:[#allocation6 + $0xb8] sm:$0xff]   ;;  %p563_p0 = pnand %p562_p13, %p556_p10 }
  0x40   :  { %v58_v23 = vld [vmem:[#allocation3] sm:$0xff]  ;;  %v488_v28 = vld [vmem:[#allocation3 + $0x8] ss:$0 sps:$4 sm:$0xff]  }
  0x41   :  { %v376_v24 = vcombine.high %v58_v23, %v58_v23  ;;  %v375_v27 = vcombine.low %v58_v23, %v58_v23 }
  0x42   :  { %408 = vmatpush3.bf16.msra.mxu0 %v469_v8  ;;  %439 = vmatpush3.bf16.msra.mxu1 %v470_v9 }
  0x43   :  { %409 = vmatprep.subr.bf16.mxu0 %v471_v10  ;;  %440 = vmatprep.subr.bf16.mxu1 %v588_v0 }
  0x44   :  { %296 = vmatprep.mubr.bf16.mxu0 %v376_v24 }
  0x46   :  { %410 = vmatpush3.bf16.msra.mxu0 %v472_v11  ;;  %441 = vmatpush3.bf16.msra.mxu1 %v473_v12 }
  0x47   :  { %411 = vmatprep.subr.bf16.mxu0 %v474_v13  ;;  %442 = vmatprep.subr.bf16.mxu1 %v588_v0 }
  0x4a   :  { %412 = vmatpush3.bf16.msra.mxu0 %v475_v14  ;;  %443 = vmatpush3.bf16.msra.mxu1 %v476_v15 }
  0x4b   :  { %413 = vmatprep.subr.bf16.mxu0 %v477_v16  ;;  %444 = vmatprep.subr.bf16.mxu1 %v588_v0 }
  0x4e   :  { %414 = vmatpush3.bf16.msra.mxu0 %v478_v17  ;;  %445 = vmatpush3.bf16.msra.mxu1 %v479_v18 }
  0x4f   :  { %415 = vmatprep.subr.bf16.mxu0 %v480_v19  ;;  %446 = vmatprep.subr.bf16.mxu1 %v588_v0 }
  0x52   :  { %416 = vmatpush3.bf16.msra.mxu0 %v481_v20  ;;  %447 = vmatpush3.bf16.msra.mxu1 %v482_v21 }
  0x53   :  { %417 = vmatprep.subr.bf16.mxu0 %v483_v22  ;;  %448 = vmatprep.subr.bf16.mxu1 %v588_v0 }
  0x56   :  { %418 = vmatpush3.bf16.msra.mxu0 %v484_v25  ;;  %449 = vmatpush3.bf16.msra.mxu1 %v485_v26 }
  0x59   :  { %297 = vmatmul.mubr.bf16.vlgmr.msra.gmra.mrb[0].mxu0 %v375_v27  ;;  %451 = vmatmul.mubr.bf16.vlgmr.msra.gmra.mrb[0].mxu1 %v488_v28 }
 0x12c   :  { %v419_v29 = vpop.f32.mrb[0].mxu0  ;;  %v338_v30 = vpop.f32.mrb[0].mxu1 }
 0x12d   :  { %v420_v31 = vpop.f32.mrb[1].mxu0  ;;  %v452_v33 = vpop.f32.mrb[1].mxu1 }
 0x12e   :  { %v421_v32 = vadd.f32 %v420_v31, %v419_v29  ;;  %v422_v34 = vpop.f32.mrb[2].mxu0  ;;  %v341_v35 = vpop.f32.mrb[2].mxu1 }
 0x12f   :  { %v423_v36 = vpop.f32.mrb[3].mxu0  ;;  %v453_v39 = vpop.f32.mrb[3].mxu1 }
 0x130   :  { %v339_v38 = vadd.f32 %v421_v32, %v338_v30 }
 0x132   :  { %v357_v40 = vadd.f32 %v402_v37, %v339_v38 }
 0x134   :  { %358 = vst [vmem:[#allocation9] sm:$0xff] %v357_v40 }
 0x135   :  { %566 = shalt.err (!%p563_p0)
}
 0x136   :  { %s567_s26 = scalar_lea.hbm %s662_s3, 128 }
 0x137   :  { %p568_p1 = scmp.ne.s32.totalorder %s662_s3, %s567_s26  ;;  %p571_p2 = scmp.lt.u32.totalorder %s567_s26, %s662_s3 }
 0x139   :  { %p573_p3 = pnand %p571_p2, %p568_p1 }
 0x13b   :  { %576 = shalt.err (!%p573_p3)
}
 0x13c   :  { %368 = dma.vmem_to_hbm [thread:$0]  %s366_s22, 128, %s662_s3, [#allocation5]  }
 0x13d   :  { %581 = dma.done.wait [#allocation5], 128  }
 0x13e   :  { %582 = vsyncadd [#allocation5], 4294967168 }
 0x13f   :  { %372 = vsyncpa [#allocation4], 1 }
 0x140   :  { %373 = vsyncpa [#allocation7], 1 }
 0x141   :  { %374 = vsyncpa [#allocation5], 1 }

</bundles_post_ra>
